<compile_context>
chip_gen: v7x
topology: tpu7x:2x2x1
jax: 0.10.0
libtpu: 0.0.40
codegen_flags: <defaults>
</compile_context>

<pallas_src>
import functools

import jax
import jax.numpy as jnp
from jax import lax
from jax.experimental import pallas as pl
from jax.experimental.pallas import tpu as pltpu

# Module hyperparameters (match the PyTorch spec's globals).
N_EMBD = 384                   # n_embd
N_HEAD = 8                     # n_head
HEAD_SIZE = N_EMBD // N_HEAD   # 48
BLOCK_SIZE = 64                # block_size (= T)
BATCH = 2
LN_EPS = 1e-5
NEG_BIG = -1e30                # finite "masked" value (softmax / bf16 safe)


def _layer_norm_f32(x, gamma, beta):
    """LayerNorm with biased variance (matches torch.nn.LayerNorm), f32 math."""
    mean = jnp.mean(x, axis=-1, keepdims=True)
    var = jnp.mean(jnp.square(x - mean), axis=-1, keepdims=True)
    return (x - mean) * lax.rsqrt(var + LN_EPS) * gamma + beta


def block_kernel(x_ref,
                 wqkv_ref,                        # (C, 3C) bf16 fused Q|K|V
                 wp_ref, bp_ref,                  # (C, C) bf16, (1, C) f32
                 g1_ref, be1_ref,                 # LayerNorm 1 params (1, C) f32
                 w1_ref, bf1_ref,                 # (C, 4C) bf16, (1, 4C) f32
                 w2_ref, bf2_ref,                 # (4C, C) bf16, (1, C) f32
                 g2_ref, be2_ref,                 # LayerNorm 2 params (1, C) f32
                 o_ref,
                 *, num_heads, head_size):
    x = x_ref[...].astype(jnp.float32)             # (T, C) -- batch dim squeezed
    T, C = x.shape
    xb = x.astype(jnp.bfloat16)

    # --- fused QKV projection: single (T,C)x(C,3C) MXU contraction ----------
    qkv = jnp.dot(xb, wqkv_ref[...], preferred_element_type=jnp.float32)  # (T,3C)
    q = qkv[:, :C]                # static lane slices at multiples of 128
    k = qkv[:, C:2 * C]
    v = qkv[:, 2 * C:]

    scale = head_size ** (-0.5)
    qh = (q * scale).astype(jnp.bfloat16).reshape(T, num_heads, head_size)
    kh = k.astype(jnp.bfloat16).reshape(T, num_heads, head_size)
    vh = v.astype(jnp.bfloat16).reshape(T, num_heads, head_size)

    # scores[h, t, s] = <q[t,h,:], k[s,h,:]>  (scale already folded into q)
    scores = jnp.einsum('thd,shd->hts', qh, kh,
                        preferred_element_type=jnp.float32)              # (H,T,T)

    # causal mask: allow s <= t (large finite negative, not -inf)
    row = lax.broadcasted_iota(jnp.int32, (T, T), 0)
    col = lax.broadcasted_iota(jnp.int32, (T, T), 1)
    causal = (row >= col)[None, :, :]
    scores = jnp.where(causal, scores, NEG_BIG)

    # softmax over the key axis (f32; divide via EUP approx reciprocal)
    m = jnp.max(scores, axis=-1, keepdims=True)
    e = jnp.exp(scores - m)
    denom = jnp.sum(e, axis=-1, keepdims=True)
    p = e * pl.reciprocal(denom, approx=True)                            # (H,T,T)

    attn = jnp.einsum('hts,shd->thd', p.astype(jnp.bfloat16), vh,
                      preferred_element_type=jnp.float32)                # (T,H,hs)
    attn = attn.reshape(T, C)                                            # concat heads

    sa = jnp.dot(attn.astype(jnp.bfloat16), wp_ref[...],
                 preferred_element_type=jnp.float32) + bp_ref[...]       # (T, C)

    # --- residual + LayerNorm 1 (f32) ---------------------------------------
    x1 = _layer_norm_f32(x + sa, g1_ref[...], be1_ref[...])

    # --- feed-forward --------------------------------------------------------
    h = jnp.dot(x1.astype(jnp.bfloat16), w1_ref[...],
                preferred_element_type=jnp.float32) + bf1_ref[...]       # (T, 4C)
    h = jnp.maximum(h, 0.0)                                              # ReLU
    ff = jnp.dot(h.astype(jnp.bfloat16), w2_ref[...],
                 preferred_element_type=jnp.float32) + bf2_ref[...]      # (T, C)

    # --- residual + LayerNorm 2 (f32) ---------------------------------------
    x2 = _layer_norm_f32(x1 + ff, g2_ref[...], be2_ref[...])

    o_ref[...] = x2.astype(o_ref.dtype)


def transformer_block(x, params):
    """x: (B, T, C) float32 -> (B, T, C) float32."""
    B, T, C = x.shape
    H = N_HEAD
    hs = C // H

    kernel = functools.partial(block_kernel, num_heads=H, head_size=hs)

    # Matmul weights in bf16 (MXU-native, half the DMA bytes); LN params and
    # biases stay f32 (added/used in f32 VPU math). Q/K/V weights fused into
    # one (C, 3C) matrix so the kernel issues a single QKV contraction.
    bf16 = lambda a: a.astype(jnp.bfloat16)
    wqkv = jnp.concatenate([params['wq'], params['wk'], params['wv']], axis=1)
    weight_args = (bf16(wqkv),
                   bf16(params['wp']), params['bp'],
                   params['g1'], params['be1'],
                   bf16(params['w1']), params['bf1'],
                   bf16(params['w2']), params['bf2'],
                   params['g2'], params['be2'])

    def full_spec(arr):
        nd = arr.ndim
        return pl.BlockSpec(arr.shape, lambda b, _nd=nd: (0,) * _nd)

    return pl.pallas_call(
        kernel,
        out_shape=jax.ShapeDtypeStruct((B, T, C), x.dtype),
        grid=(B,),
        # Leading batch dim squeezed (None) -> kernel refs are (T, C) directly.
        in_specs=[pl.BlockSpec((None, T, C), lambda b: (b, 0, 0))]
                 + [full_spec(w) for w in weight_args],
        out_specs=pl.BlockSpec((None, T, C), lambda b: (b, 0, 0)),
        compiler_params=pltpu.CompilerParams(
            dimension_semantics=("parallel",)),
    )(x, *weight_args)


def reference_block(x, p):
    """Pure-JAX f32 reference of the PyTorch Block.forward (eval mode)."""
    B, T, C = x.shape
    H, hs = N_HEAD, C // N_HEAD
    q = x @ p['wq']
    k = x @ p['wk']
    v = x @ p['wv']
    qh = q.reshape(B, T, H, hs).transpose(0, 2, 1, 3)
    kh = k.reshape(B, T, H, hs).transpose(0, 2, 1, 3)
    vh = v.reshape(B, T, H, hs).transpose(0, 2, 1, 3)
    scores = (qh @ kh.transpose(0, 1, 3, 2)) * hs ** (-0.5)
    mask = jnp.tril(jnp.ones((T, T), bool))
    scores = jnp.where(mask[None, None], scores, -jnp.inf)
    w = jax.nn.softmax(scores, axis=-1)
    attn = (w @ vh).transpose(0, 2, 1, 3).reshape(B, T, C)
    sa = attn @ p['wp'] + p['bp']

    def ln(z, g, b):
        m = z.mean(-1, keepdims=True)
        v_ = ((z - m) ** 2).mean(-1, keepdims=True)
        return (z - m) / jnp.sqrt(v_ + LN_EPS) * g + b

    x1 = ln(x + sa, p['g1'], p['be1'])
    ff = jnp.maximum(x1 @ p['w1'] + p['bf1'], 0.0) @ p['w2'] + p['bf2']
    return ln(x1 + ff, p['g2'], p['be2'])


def init_params(key):
    C = N_EMBD
    ks = jax.random.split(key, 8)
    s = 0.02
    return {
        'wq': jax.random.normal(ks[0], (C, C), jnp.float32) * s,
        'wk': jax.random.normal(ks[1], (C, C), jnp.float32) * s,
        'wv': jax.random.normal(ks[2], (C, C), jnp.float32) * s,
        'wp': jax.random.normal(ks[3], (C, C), jnp.float32) * s,
        'bp': jax.random.normal(ks[4], (1, C), jnp.float32) * s,
        'g1': jnp.ones((1, C), jnp.float32),
        'be1': jnp.zeros((1, C), jnp.float32),
        'w1': jax.random.normal(ks[5], (C, 4 * C), jnp.float32) * s,
        'bf1': jax.random.normal(ks[6], (1, 4 * C), jnp.float32) * s,
        'w2': jax.random.normal(ks[7], (4 * C, C), jnp.float32) * s,
        'bf2': jnp.zeros((1, C), jnp.float32),
        'g2': jnp.ones((1, C), jnp.float32),
        'be2': jnp.zeros((1, C), jnp.float32),
    }


if __name__ == "__main__":
    key = jax.random.PRNGKey(0)
    pkey, xkey = jax.random.split(key)
    params = init_params(pkey)
    x = jax.random.normal(xkey, (BATCH, BLOCK_SIZE, N_EMBD), jnp.float32)

    out = transformer_block(x, params)
    out = jax.block_until_ready(out)

    ref = reference_block(x, params)
    assert out.shape == ref.shape
    max_err = jnp.max(jnp.abs(out - ref))
    # bf16 matmul inputs + approx reciprocal -> looser tolerance than pure f32.
    assert jnp.allclose(out, ref, atol=5e-2, rtol=5e-2), f"max err {max_err}"
    print("KERNEL_OK")
</pallas_src>

<mosaic_0001>
module attributes {stable_mosaic.version = 11 : i64} {
  func.func @block_kernel(%arg0: i32, %arg1: memref<1x64x384xf32, #tpu.memory_space<vmem>>, %arg2: memref<384x1152xbf16, #tpu.memory_space<vmem>>, %arg3: memref<384x384xbf16, #tpu.memory_space<vmem>>, %arg4: memref<1x384xf32, #tpu.memory_space<vmem>>, %arg5: memref<1x384xf32, #tpu.memory_space<vmem>>, %arg6: memref<1x384xf32, #tpu.memory_space<vmem>>, %arg7: memref<384x1536xbf16, #tpu.memory_space<vmem>>, %arg8: memref<1x1536xf32, #tpu.memory_space<vmem>>, %arg9: memref<1536x384xbf16, #tpu.memory_space<vmem>>, %arg10: memref<1x384xf32, #tpu.memory_space<vmem>>, %arg11: memref<1x384xf32, #tpu.memory_space<vmem>>, %arg12: memref<1x384xf32, #tpu.memory_space<vmem>>, %arg13: memref<1x64x384xf32, #tpu.memory_space<vmem>>) attributes {dimension_semantics = [#tpu.dimension_semantics<parallel>], iteration_bounds = array<i64: 2>, scalar_prefetch = 0 : i64, scratch_operands = 0 : i64, tpu.core_type = #tpu.core_type<tc>, window_params = [{transform_indices = @transform_0, window_bounds = array<i64: 1, 64, 384>}, {pipeline_mode = #tpu.pipeline_mode<synchronous>, transform_indices = @transform_1, window_bounds = array<i64: 384, 1152>}, {pipeline_mode = #tpu.pipeline_mode<synchronous>, transform_indices = @transform_2, window_bounds = array<i64: 384, 384>}, {pipeline_mode = #tpu.pipeline_mode<synchronous>, transform_indices = @transform_3, window_bounds = array<i64: 1, 384>}, {pipeline_mode = #tpu.pipeline_mode<synchronous>, transform_indices = @transform_4, window_bounds = array<i64: 1, 384>}, {pipeline_mode = #tpu.pipeline_mode<synchronous>, transform_indices = @transform_5, window_bounds = array<i64: 1, 384>}, {pipeline_mode = #tpu.pipeline_mode<synchronous>, transform_indices = @transform_6, window_bounds = array<i64: 384, 1536>}, {pipeline_mode = #tpu.pipeline_mode<synchronous>, transform_indices = @transform_7, window_bounds = array<i64: 1, 1536>}, {pipeline_mode = #tpu.pipeline_mode<synchronous>, transform_indices = @transform_8, window_bounds = array<i64: 1536, 384>}, {pipeline_mode = #tpu.pipeline_mode<synchronous>, transform_indices = @transform_9, window_bounds = array<i64: 1, 384>}, {pipeline_mode = #tpu.pipeline_mode<synchronous>, transform_indices = @transform_10, window_bounds = array<i64: 1, 384>}, {pipeline_mode = #tpu.pipeline_mode<synchronous>, transform_indices = @transform_11, window_bounds = array<i64: 1, 384>}, {transform_indices = @transform_12, window_bounds = array<i64: 1, 64, 384>}]} {
    %c0 = arith.constant 0 : index
    %c0_0 = arith.constant 0 : index
    %c0_1 = arith.constant 0 : index
    %0 = vector.load %arg1[%c0, %c0_0, %c0_1] : memref<1x64x384xf32, #tpu.memory_space<vmem>>, vector<1x64x384xf32>
    %1 = vector.shape_cast %0 : vector<1x64x384xf32> to vector<64x384xf32>
    %2 = arith.truncf %1 : vector<64x384xf32> to vector<64x384xbf16>
    %c0_2 = arith.constant 0 : index
    %c0_3 = arith.constant 0 : index
    %3 = vector.load %arg2[%c0_2, %c0_3] : memref<384x1152xbf16, #tpu.memory_space<vmem>>, vector<384x1152xbf16>
    %cst = arith.constant dense<0.000000e+00> : vector<64x1152xf32>
    %4 = tpu.matmul %2, %3, %cst {dimension_numbers = #tpu.dot_dimension_numbers<[1], [0], [0], [1], [0, 0, 1, 1], [], []>} : vector<64x384xbf16>, vector<384x1152xbf16>, vector<64x1152xf32> -> vector<64x1152xf32>
    %5 = vector.extract_strided_slice %4 {offsets = [0, 0], sizes = [64, 384], strides = [1, 1]} : vector<64x1152xf32> to vector<64x384xf32>
    %6 = vector.extract_strided_slice %4 {offsets = [0, 384], sizes = [64, 384], strides = [1, 1]} : vector<64x1152xf32> to vector<64x384xf32>
    %7 = vector.extract_strided_slice %4 {offsets = [0, 768], sizes = [64, 384], strides = [1, 1]} : vector<64x1152xf32> to vector<64x384xf32>
    %cst_4 = arith.constant 0.144337565 : f32
    %8 = vector.broadcast %cst_4 : f32 to vector<64x384xf32>
    %9 = arith.mulf %5, %8 : vector<64x384xf32>
    %10 = arith.truncf %9 : vector<64x384xf32> to vector<64x384xbf16>
    %11 = vector.shape_cast %10 : vector<64x384xbf16> to vector<64x8x48xbf16>
    %12 = arith.truncf %6 : vector<64x384xf32> to vector<64x384xbf16>
    %13 = vector.shape_cast %12 : vector<64x384xbf16> to vector<64x8x48xbf16>
    %14 = arith.truncf %7 : vector<64x384xf32> to vector<64x384xbf16>
    %15 = vector.shape_cast %14 : vector<64x384xbf16> to vector<64x8x48xbf16>
    "tpu.trace_start"() <{level = 10 : i32, message = "thd,shd->hts"}> : () -> ()
    %cst_5 = arith.constant dense<0.000000e+00> : vector<8x64x64xf32>
    %16 = tpu.matmul %11, %13, %cst_5 {dimension_numbers = #tpu.dot_dimension_numbers<[2], [2], [0], [0], [0, 1, 0, 0, 1, 0], [1], [1]>} : vector<64x8x48xbf16>, vector<64x8x48xbf16>, vector<8x64x64xf32> -> vector<8x64x64xf32>
    "tpu.trace_stop"() : () -> ()
    %17 = tpu.iota {dimensions = array<i32: 0>} : vector<64x64xi32>
    %18 = tpu.iota {dimensions = array<i32: 1>} : vector<64x64xi32>
    %19 = arith.cmpi sge, %17, %18 : vector<64x64xi32>
    %20 = vector.shape_cast %19 : vector<64x64xi1> to vector<1x64x64xi1>
    %cst_6 = arith.constant -1.000000e+30 : f32
    %21 = vector.shape_cast %20 : vector<1x64x64xi1> to vector<1x64x64xi1>
    %22 = vector.broadcast %21 : vector<1x64x64xi1> to vector<8x64x64xi1>
    %23 = vector.broadcast %cst_6 : f32 to vector<8x64x64xf32>
    %24 = arith.select %22, %16, %23 : vector<8x64x64xi1>, vector<8x64x64xf32>
    %cst_7 = arith.constant dense<0xFF800000> : vector<8x64xf32>
    %25 = vector.multi_reduction <maximumf>, %24, %cst_7 [2] : vector<8x64x64xf32> to vector<8x64xf32>
    %26 = vector.shape_cast %25 : vector<8x64xf32> to vector<8x64x1xf32>
    %27 = vector.broadcast %26 : vector<8x64x1xf32> to vector<8x64x64xf32>
    %28 = arith.subf %24, %27 : vector<8x64x64xf32>
    %29 = math.exp %28 : vector<8x64x64xf32>
    %cst_8 = arith.constant dense<0.000000e+00> : vector<8x64xf32>
    %30 = vector.multi_reduction <add>, %29, %cst_8 [2] : vector<8x64x64xf32> to vector<8x64xf32>
    %31 = vector.shape_cast %30 : vector<8x64xf32> to vector<8x64x1xf32>
    %32 = tpu.reciprocal %31 {approx = true} : vector<8x64x1xf32> -> vector<8x64x1xf32>
    %33 = vector.broadcast %32 : vector<8x64x1xf32> to vector<8x64x64xf32>
    %34 = arith.mulf %29, %33 : vector<8x64x64xf32>
    %35 = arith.truncf %34 : vector<8x64x64xf32> to vector<8x64x64xbf16>
    "tpu.trace_start"() <{level = 10 : i32, message = "hts,shd->thd"}> : () -> ()
    %cst_9 = arith.constant dense<0.000000e+00> : vector<8x48x64xf32>
    %36 = tpu.matmul %15, %35, %cst_9 {dimension_numbers = #tpu.dot_dimension_numbers<[0], [2], [2], [1], [0, 1, 0, 2, 1, 1], [1], [0]>} : vector<64x8x48xbf16>, vector<8x64x64xbf16>, vector<8x48x64xf32> -> vector<8x48x64xf32>
    %37 = tpu.transpose %36, [2, 0, 1] : vector<8x48x64xf32> -> vector<64x8x48xf32>
    "tpu.trace_stop"() : () -> ()
    %38 = vector.shape_cast %37 : vector<64x8x48xf32> to vector<64x384xf32>
    %39 = arith.truncf %38 : vector<64x384xf32> to vector<64x384xbf16>
    %c0_10 = arith.constant 0 : index
    %c0_11 = arith.constant 0 : index
    %40 = vector.load %arg3[%c0_10, %c0_11] : memref<384x384xbf16, #tpu.memory_space<vmem>>, vector<384x384xbf16>
    %cst_12 = arith.constant dense<0.000000e+00> : vector<64x384xf32>
    %41 = tpu.matmul %39, %40, %cst_12 {dimension_numbers = #tpu.dot_dimension_numbers<[1], [0], [0], [1], [0, 0, 1, 1], [], []>} : vector<64x384xbf16>, vector<384x384xbf16>, vector<64x384xf32> -> vector<64x384xf32>
    %c0_13 = arith.constant 0 : index
    %c0_14 = arith.constant 0 : index
    %42 = vector.load %arg4[%c0_13, %c0_14] : memref<1x384xf32, #tpu.memory_space<vmem>>, vector<1x384xf32>
    %43 = vector.broadcast %42 : vector<1x384xf32> to vector<64x384xf32>
    %44 = arith.addf %41, %43 : vector<64x384xf32>
    %45 = arith.addf %1, %44 : vector<64x384xf32>
    %c0_15 = arith.constant 0 : index
    %c0_16 = arith.constant 0 : index
    %46 = vector.load %arg5[%c0_15, %c0_16] : memref<1x384xf32, #tpu.memory_space<vmem>>, vector<1x384xf32>
    %c0_17 = arith.constant 0 : index
    %c0_18 = arith.constant 0 : index
    %47 = vector.load %arg6[%c0_17, %c0_18] : memref<1x384xf32, #tpu.memory_space<vmem>>, vector<1x384xf32>
    %cst_19 = arith.constant dense<0.000000e+00> : vector<64xf32>
    %48 = vector.multi_reduction <add>, %45, %cst_19 [1] : vector<64x384xf32> to vector<64xf32>
    %49 = vector.shape_cast %48 : vector<64xf32> to vector<64x1xf32>
    %cst_20 = arith.constant 3.840000e+02 : f32
    %50 = vector.broadcast %cst_20 : f32 to vector<64x1xf32>
    %51 = arith.divf %49, %50 : vector<64x1xf32>
    %52 = vector.broadcast %51 : vector<64x1xf32> to vector<64x384xf32>
    %53 = arith.subf %45, %52 : vector<64x384xf32>
    %54 = arith.mulf %53, %53 : vector<64x384xf32>
    %cst_21 = arith.constant dense<0.000000e+00> : vector<64xf32>
    %55 = vector.multi_reduction <add>, %54, %cst_21 [1] : vector<64x384xf32> to vector<64xf32>
    %56 = vector.shape_cast %55 : vector<64xf32> to vector<64x1xf32>
    %cst_22 = arith.constant 3.840000e+02 : f32
    %57 = vector.broadcast %cst_22 : f32 to vector<64x1xf32>
    %58 = arith.divf %56, %57 : vector<64x1xf32>
    %59 = vector.broadcast %51 : vector<64x1xf32> to vector<64x384xf32>
    %60 = arith.subf %45, %59 : vector<64x384xf32>
    %cst_23 = arith.constant 9.99999974E-6 : f32
    %61 = vector.broadcast %cst_23 : f32 to vector<64x1xf32>
    %62 = arith.addf %58, %61 : vector<64x1xf32>
    %63 = math.rsqrt %62 : vector<64x1xf32>
    %64 = vector.broadcast %63 : vector<64x1xf32> to vector<64x384xf32>
    %65 = arith.mulf %60, %64 : vector<64x384xf32>
    %66 = vector.broadcast %46 : vector<1x384xf32> to vector<64x384xf32>
    %67 = arith.mulf %65, %66 : vector<64x384xf32>
    %68 = vector.broadcast %47 : vector<1x384xf32> to vector<64x384xf32>
    %69 = arith.addf %67, %68 : vector<64x384xf32>
    %70 = arith.truncf %69 : vector<64x384xf32> to vector<64x384xbf16>
    %c0_24 = arith.constant 0 : index
    %c0_25 = arith.constant 0 : index
    %71 = vector.load %arg7[%c0_24, %c0_25] : memref<384x1536xbf16, #tpu.memory_space<vmem>>, vector<384x1536xbf16>
    %cst_26 = arith.constant dense<0.000000e+00> : vector<64x1536xf32>
    %72 = tpu.matmul %70, %71, %cst_26 {dimension_numbers = #tpu.dot_dimension_numbers<[1], [0], [0], [1], [0, 0, 1, 1], [], []>} : vector<64x384xbf16>, vector<384x1536xbf16>, vector<64x1536xf32> -> vector<64x1536xf32>
    %c0_27 = arith.constant 0 : index
    %c0_28 = arith.constant 0 : index
    %73 = vector.load %arg8[%c0_27, %c0_28] : memref<1x1536xf32, #tpu.memory_space<vmem>>, vector<1x1536xf32>
    %74 = vector.broadcast %73 : vector<1x1536xf32> to vector<64x1536xf32>
    %75 = arith.addf %72, %74 : vector<64x1536xf32>
    %cst_29 = arith.constant 0.000000e+00 : f32
    %76 = vector.broadcast %cst_29 : f32 to vector<64x1536xf32>
    %77 = arith.maximumf %75, %76 : vector<64x1536xf32>
    %78 = arith.truncf %77 : vector<64x1536xf32> to vector<64x1536xbf16>
    %c0_30 = arith.constant 0 : index
    %c0_31 = arith.constant 0 : index
    %79 = vector.load %arg9[%c0_30, %c0_31] : memref<1536x384xbf16, #tpu.memory_space<vmem>>, vector<1536x384xbf16>
    %cst_32 = arith.constant dense<0.000000e+00> : vector<64x384xf32>
    %80 = tpu.matmul %78, %79, %cst_32 {dimension_numbers = #tpu.dot_dimension_numbers<[1], [0], [0], [1], [0, 0, 1, 1], [], []>} : vector<64x1536xbf16>, vector<1536x384xbf16>, vector<64x384xf32> -> vector<64x384xf32>
    %c0_33 = arith.constant 0 : index
    %c0_34 = arith.constant 0 : index
    %81 = vector.load %arg10[%c0_33, %c0_34] : memref<1x384xf32, #tpu.memory_space<vmem>>, vector<1x384xf32>
    %82 = vector.broadcast %81 : vector<1x384xf32> to vector<64x384xf32>
    %83 = arith.addf %80, %82 : vector<64x384xf32>
    %84 = arith.addf %69, %83 : vector<64x384xf32>
    %c0_35 = arith.constant 0 : index
    %c0_36 = arith.constant 0 : index
    %85 = vector.load %arg11[%c0_35, %c0_36] : memref<1x384xf32, #tpu.memory_space<vmem>>, vector<1x384xf32>
    %c0_37 = arith.constant 0 : index
    %c0_38 = arith.constant 0 : index
    %86 = vector.load %arg12[%c0_37, %c0_38] : memref<1x384xf32, #tpu.memory_space<vmem>>, vector<1x384xf32>
    %cst_39 = arith.constant dense<0.000000e+00> : vector<64xf32>
    %87 = vector.multi_reduction <add>, %84, %cst_39 [1] : vector<64x384xf32> to vector<64xf32>
    %88 = vector.shape_cast %87 : vector<64xf32> to vector<64x1xf32>
    %cst_40 = arith.constant 3.840000e+02 : f32
    %89 = vector.broadcast %cst_40 : f32 to vector<64x1xf32>
    %90 = arith.divf %88, %89 : vector<64x1xf32>
    %91 = vector.broadcast %90 : vector<64x1xf32> to vector<64x384xf32>
    %92 = arith.subf %84, %91 : vector<64x384xf32>
    %93 = arith.mulf %92, %92 : vector<64x384xf32>
    %cst_41 = arith.constant dense<0.000000e+00> : vector<64xf32>
    %94 = vector.multi_reduction <add>, %93, %cst_41 [1] : vector<64x384xf32> to vector<64xf32>
    %95 = vector.shape_cast %94 : vector<64xf32> to vector<64x1xf32>
    %cst_42 = arith.constant 3.840000e+02 : f32
    %96 = vector.broadcast %cst_42 : f32 to vector<64x1xf32>
    %97 = arith.divf %95, %96 : vector<64x1xf32>
    %98 = vector.broadcast %90 : vector<64x1xf32> to vector<64x384xf32>
    %99 = arith.subf %84, %98 : vector<64x384xf32>
    %cst_43 = arith.constant 9.99999974E-6 : f32
    %100 = vector.broadcast %cst_43 : f32 to vector<64x1xf32>
    %101 = arith.addf %97, %100 : vector<64x1xf32>
    %102 = math.rsqrt %101 : vector<64x1xf32>
    %103 = vector.broadcast %102 : vector<64x1xf32> to vector<64x384xf32>
    %104 = arith.mulf %99, %103 : vector<64x384xf32>
    %105 = vector.broadcast %85 : vector<1x384xf32> to vector<64x384xf32>
    %106 = arith.mulf %104, %105 : vector<64x384xf32>
    %107 = vector.broadcast %86 : vector<1x384xf32> to vector<64x384xf32>
    %108 = arith.addf %106, %107 : vector<64x384xf32>
    %c0_44 = arith.constant 0 : index
    %c0_45 = arith.constant 0 : index
    %c0_46 = arith.constant 0 : index
    %109 = vector.load %arg13[%c0_44, %c0_45, %c0_46] : memref<1x64x384xf32, #tpu.memory_space<vmem>>, vector<1x64x384xf32>
    %110 = vector.shape_cast %109 : vector<1x64x384xf32> to vector<64x384xf32>
    %111 = vector.shape_cast %108 : vector<64x384xf32> to vector<1x64x384xf32>
    tpu.vector_store %arg13[%c0_44, %c0_45, %c0_46], %111 {strides = array<i32>} : memref<1x64x384xf32, #tpu.memory_space<vmem>>, vector<1x64x384xf32>,
    return
  }
  func.func @transform_0(%arg0: i32) -> (i32, i32, i32) {
    %c0_i32 = arith.constant 0 : i32
    %c0_i32_0 = arith.constant 0 : i32
    %c0_i32_1 = arith.constant 0 : i32
    return %arg0, %c0_i32, %c0_i32_0 : i32, i32, i32
  }
  func.func @transform_1(%arg0: i32) -> (i32, i32) {
    %c0_i32 = arith.constant 0 : i32
    %c0_i32_0 = arith.constant 0 : i32
    %c0_i32_1 = arith.constant 0 : i32
    return %c0_i32, %c0_i32_0 : i32, i32
  }
  func.func @transform_2(%arg0: i32) -> (i32, i32) {
    %c0_i32 = arith.constant 0 : i32
    %c0_i32_0 = arith.constant 0 : i32
    %c0_i32_1 = arith.constant 0 : i32
    return %c0_i32, %c0_i32_0 : i32, i32
  }
  func.func @transform_3(%arg0: i32) -> (i32, i32) {
    %c0_i32 = arith.constant 0 : i32
    %c0_i32_0 = arith.constant 0 : i32
    %c0_i32_1 = arith.constant 0 : i32
    return %c0_i32, %c0_i32_0 : i32, i32
  }
  func.func @transform_4(%arg0: i32) -> (i32, i32) {
    %c0_i32 = arith.constant 0 : i32
    %c0_i32_0 = arith.constant 0 : i32
    %c0_i32_1 = arith.constant 0 : i32
    return %c0_i32, %c0_i32_0 : i32, i32
  }
  func.func @transform_5(%arg0: i32) -> (i32, i32) {
    %c0_i32 = arith.constant 0 : i32
    %c0_i32_0 = arith.constant 0 : i32
    %c0_i32_1 = arith.constant 0 : i32
    return %c0_i32, %c0_i32_0 : i32, i32
  }
  func.func @transform_6(%arg0: i32) -> (i32, i32) {
    %c0_i32 = arith.constant 0 : i32
    %c0_i32_0 = arith.constant 0 : i32
    %c0_i32_1 = arith.constant 0 : i32
    return %c0_i32, %c0_i32_0 : i32, i32
  }
  func.func @transform_7(%arg0: i32) -> (i32, i32) {
    %c0_i32 = arith.constant 0 : i32
    %c0_i32_0 = arith.constant 0 : i32
    %c0_i32_1 = arith.constant 0 : i32
    return %c0_i32, %c0_i32_0 : i32, i32
  }
  func.func @transform_8(%arg0: i32) -> (i32, i32) {
    %c0_i32 = arith.constant 0 : i32
    %c0_i32_0 = arith.constant 0 : i32
    %c0_i32_1 = arith.constant 0 : i32
    return %c0_i32, %c0_i32_0 : i32, i32
  }
  func.func @transform_9(%arg0: i32) -> (i32, i32) {
    %c0_i32 = arith.constant 0 : i32
    %c0_i32_0 = arith.constant 0 : i32
    %c0_i32_1 = arith.constant 0 : i32
    return %c0_i32, %c0_i32_0 : i32, i32
  }
  func.func @transform_10(%arg0: i32) -> (i32, i32) {
    %c0_i32 = arith.constant 0 : i32
    %c0_i32_0 = arith.constant 0 : i32
    %c0_i32_1 = arith.constant 0 : i32
    return %c0_i32, %c0_i32_0 : i32, i32
  }
  func.func @transform_11(%arg0: i32) -> (i32, i32) {
    %c0_i32 = arith.constant 0 : i32
    %c0_i32_0 = arith.constant 0 : i32
    %c0_i32_1 = arith.constant 0 : i32
    return %c0_i32, %c0_i32_0 : i32, i32
  }
  func.func @transform_12(%arg0: i32) -> (i32, i32, i32) {
    %c0_i32 = arith.constant 0 : i32
    %c0_i32_0 = arith.constant 0 : i32
    %c0_i32_1 = arith.constant 0 : i32
    return %arg0, %c0_i32, %c0_i32_0 : i32, i32, i32
  }
}

</mosaic_0001>

<bundles_post_ra>
// kernel: tpu_custom_call.1
= control target key start
LH: loop header
LB: loop body
LE: loop exit
PB: predicated region body
PF: predicated region fallthrough
CT: control target
= control target key end

     0   :  { %s24399_s0 = inlined_call_operand.hbm [shape: f32[2,64,384], index: 0, kind: input, shape index: {}]   ;;  %s24400_s1 = inlined_call_operand.hbm [shape: bf16[384,1152], index: 1, kind: input, shape index: {}]   ;;  %s24401_s2 = inlined_call_operand.hbm [shape: bf16[384,384], index: 2, kind: input, shape index: {}]   ;;  %s24402_s3 = inlined_call_operand.hbm [shape: f32[1,384], index: 3, kind: input, shape index: {}]   ;;  %s24403_s4 = inlined_call_operand.hbm [shape: f32[1,384], index: 4, kind: input, shape index: {}]   ;;  %s24404_s5 = inlined_call_operand.hbm [shape: f32[1,384], index: 5, kind: input, shape index: {}]   ;;  %s24405_s6 = inlined_call_operand.hbm [shape: bf16[384,1536], index: 6, kind: input, shape index: {}]   ;;  %s24406_s7 = inlined_call_operand.hbm [shape: f32[1,1536], index: 7, kind: input, shape index: {}]   ;;  %s24407_s8 = inlined_call_operand.hbm [shape: bf16[1536,384], index: 8, kind: input, shape index: {}]   ;;  %s24408_s9 = inlined_call_operand.hbm [shape: f32[1,384], index: 9, kind: input, shape index: {}]   ;;  %s24409_s10 = inlined_call_operand.hbm [shape: f32[1,384], index: 10, kind: input, shape index: {}]   ;;  %s24410_s11 = inlined_call_operand.hbm [shape: f32[1,384], index: 11, kind: input, shape index: {}]   ;;  %s24411_s12 = inlined_call_operand.hbm [shape: f32[2,64,384], index: 12, kind: output, shape index: {}]  }
   0x1   :  { %24499 = sst [smem:[#allocation84_spill]] %s24399_s0 }
   0x2   :  { %24500 = sst [smem:[#allocation85_spill]] %s24400_s1 }
   0x3   :  { %24501 = sst [smem:[#allocation86_spill]] %s24401_s2 }
   0x4   :  { %24502 = sst [smem:[#allocation87_spill]] %s24402_s3 }
   0x5   :  { %24503 = sst [smem:[#allocation88_spill]] %s24411_s12 }
   0x6   :  { %17 = vsyncpa [#allocation3], 0 }
   0x7   :  { %19 = vsyncpa [#allocation3 + $0x1], 0 }
   0x8   :  { %20 = vsyncpa [#allocation6], 0 }
   0x9   :  { %21 = vsyncpa [#allocation9], 0 }
   0xa   :  { %22 = vsyncpa [#allocation12], 0 }
   0xb   :  { %23 = vsyncpa [#allocation15], 0 }
   0xc   :  { %24 = vsyncpa [#allocation18], 0 }
   0xd   :  { %25 = vsyncpa [#allocation21], 0 }
   0xe   :  { %26 = vsyncpa [#allocation4], 0 }
   0xf   :  { %28 = vsyncpa [#allocation4 + $0x1], 0  ;;  %s19835_s21 = smov 0   ;;  %s19837_s22 = smov 0  }
  0x10   :  { %s19839_s23 = smov 0   ;;  %s19841_s24 = smov 0  }
  0x11 LB: > { %s19735_s25 = smov [#allocation5]   ;;  %s19856_s27 = sadd.s32 4294967295, %s19733_s24   ;;  %s19733_s24 = sphi %s19841_s24, %s24768_s24   ;;  %s19729_s23 = sphi %s19839_s23, %s24767_s23   ;;  %s19725_s22 = sphi %s19837_s22, %s24766_s22   ;;  %s19721_s21 = sphi %s19835_s21, %s24765_s21  }
  0x12   : > { %s334_s26 = sshll.u32 %s19735_s25, 4  ;;  %24504 = sst [smem:[#allocation31_spill]] %s19856_s27  ;;  %s19861_s26 = int_to_ptr.vmem [resolvable:$true] %s334_s26 }
  0x13   : > { %p15257_p0 = scmp.ge.s32.totalorder %s19733_s24, 1  ;;  %p24418_p1 = scmp.eq.s32.totalorder %s19856_s27, 0 }
  0x14   : > { %p322_p2 = scmp.lt.s32.totalorder %s19733_s24, 3  ;;  %s19736_s29 = smov [#allocation8]  }
  0x15   : > { %s361_s30 = sshll.u32 %s19736_s29, 4  ;;  %s19737_s14 = smov [#allocation11]   ;;  %s19876_s30 = int_to_ptr.vmem [resolvable:$true] %s361_s30 }
  0x16   : > { %p19863_p3 = pnand %p15257_p0, %p322_p2  ;;  %s383_s15 = sshll.u32 %s19737_s14, 4  ;;  %s19878_s15 = int_to_ptr.vmem [resolvable:$true] %s383_s15 }
  0x17   : > { %s24508_s1 = sld [smem:[#allocation85_spill]] }
  0x18   : > { %s24505_s28 = scalar_select %p19863_p3, 1, 0 }
  0x19   : > { %p17498_p5 = pneg %p19863_p3 }
  0x1a   : > { %24506 = sst [smem:[#allocation32_spill]] %s24505_s28 }
  0x1b   : > { %p19872_p6 = pnand %p17498_p5, %p24418_p1 }
  0x1d   : > { %s19305_s18 = scalar_lea.hbm %s24508_s1, 27648  ;;  %p19888_p8 = pneg %p19872_p6 }
  0x1e   : > { %p19306_p7 = scmp.ne.s32.totalorder %s24508_s1, %s19305_s18  ;;  %p19312_p11 = scmp.lt.u32.totalorder %s19305_s18, %s24508_s1 }
  0x20   : > { %p19308_p9 = pnand %p19888_p8, %p19306_p7 }
  0x22   : > { %p19309_p10 = pneg %p19308_p9 }
  0x24   : > { %p19314_p12 = pnand %p19312_p11, %p19309_p10 }
  0x26   : > { %19317 = shalt.err (!%p19314_p12)
}
  0x27   : > { %s19318_s16 = scalar_lea.vmem %s19861_s26, 27648  ;;  %p19326_p5 = scmp.lt.s32.totalorder %s19861_s26, %s19861_s26 }
  0x28   : > { %p19319_p13 = scmp.ne.s32.totalorder %s19861_s26, %s19318_s16  ;;  %p19327_p4 = scmp.lt.s32.totalorder %s19318_s16, %s19318_s16 }
  0x2a   : > { %p19321_p0 = pnand %p19319_p13, %p19888_p8  ;;  %p19328_p7 = por %p19327_p4, %p19326_p5 }
  0x2c   : > { %p19322_p2 = pneg %p19321_p0 }
  0x2e   : > { %p19329_p9 = pnand %p19328_p7, %p19322_p2 }
  0x30   : > { %19332 = shalt.err (!%p19329_p9)
}
  0x31   : > { %s19738_s17 = smov 576   ;;  %s19739_s18 = smov 36  }
  0x32   : > { %17501 = dma.hbm_to_vmem [thread:$0]  (!%p19872_p6), %s24508_s1, 27648, %s19861_s26, [#allocation6], %s19738_s17, %s19738_s17, %s19739_s18  }
  0x33   : > { %s24510_s3 = sld [smem:[#allocation87_spill]] }
  0x39   : > { %s19333_s12 = scalar_lea.hbm %s24510_s3, 48 }
  0x3a   : > { %p19334_p4 = scmp.ne.s32.totalorder %s24510_s3, %s19333_s12  ;;  %p19340_p12 = scmp.lt.u32.totalorder %s19333_s12, %s24510_s3 }
  0x3c   : > { %p19336_p10 = pnand %p19334_p4, %p19888_p8 }
  0x3e   : > { %p19337_p11 = pneg %p19336_p10 }
  0x40   : > { %p19342_p13 = pnand %p19340_p12, %p19337_p11 }
  0x42   : > { %19345 = shalt.err (!%p19342_p13)
}
  0x43   : > { %s19346_s26 = scalar_lea.vmem %s19876_s30, 48  ;;  %s19353_s0 = scalar_lea.vmem %s19876_s30, 64 }
  0x44   : > { %p19347_p0 = scmp.ne.s32.totalorder %s19876_s30, %s19346_s26  ;;  %p19354_p7 = scmp.lt.s32.totalorder %s19876_s30, %s19876_s30 }
  0x45   : > { %p19355_p9 = scmp.lt.s32.totalorder %s19353_s0, %s19346_s26 }
  0x46   : > { %p19349_p2 = pnand %p19347_p0, %p19888_p8 }
  0x47   : > { %p19356_p4 = por %p19355_p9, %p19354_p7 }
  0x48   : > { %p19350_p5 = pneg %p19349_p2 }
  0x4a   : > { %p19357_p10 = pnand %p19356_p4, %p19350_p5 }
  0x4c   : > { %19360 = shalt.err (!%p19357_p10)
}
  0x4d   : > { %17507 = dma.hbm_to_vmem [thread:$0]  (!%p19872_p6), %s24510_s3, 48, %s19876_s30, [#allocation9]  }
  0x4e   : > { %s19361_s18 = scalar_lea.hbm %s24404_s5, 48 }
  0x4f   : > { %p19362_p11 = scmp.ne.s32.totalorder %s24404_s5, %s19361_s18  ;;  %p19368_p0 = scmp.lt.u32.totalorder %s19361_s18, %s24404_s5 }
  0x51   : > { %p19364_p12 = pnand %p19362_p11, %p19888_p8 }
  0x53   : > { %p19365_p13 = pneg %p19364_p12 }
  0x55   : > { %p19370_p2 = pnand %p19368_p0, %p19365_p13 }
  0x57   : > { %19373 = shalt.err (!%p19370_p2)
}
  0x58   : > { %s19374_s30 = scalar_lea.vmem %s19878_s15, 48  ;;  %s19381_s16 = scalar_lea.vmem %s19878_s15, 64 }
  0x59   : > { %p19375_p5 = scmp.ne.s32.totalorder %s19878_s15, %s19374_s30  ;;  %p19382_p4 = scmp.lt.s32.totalorder %s19878_s15, %s19878_s15 }
  0x5a   : > { %p19383_p10 = scmp.lt.s32.totalorder %s19381_s16, %s19374_s30 }
  0x5b   : > { %p19377_p7 = pnand %p19375_p5, %p19888_p8 }
  0x5c   : > { %p19384_p11 = por %p19383_p10, %p19382_p4 }
  0x5d   : > { %p19378_p9 = pneg %p19377_p7 }
  0x5f   : > { %p19385_p12 = pnand %p19384_p11, %p19378_p9 }
  0x61   : > { %19388 = shalt.err (!%p19385_p12)
}
  0x62   : > { %17513 = dma.hbm_to_vmem [thread:$0]  (!%p19872_p6), %s24404_s5, 48, %s19878_s15, [#allocation12]  }
  0x63   : > { %s19740_s12 = smov [#allocation14]   ;;  %s19741_s28 = smov [#allocation17]  }
  0x64   : > { %s407_s27 = sshll.u32 %s19740_s12, 4  ;;  %s431_s17 = sshll.u32 %s19741_s28, 4  ;;  %s408_s27 = int_to_ptr.vmem [resolvable:$true] %s407_s27  ;;  %s432_s17 = int_to_ptr.vmem [resolvable:$true] %s431_s17 }
  0x65   : > { %s19389_s20 = scalar_lea.hbm %s24406_s7, 192 }
  0x66   : > { %p19390_p13 = scmp.ne.s32.totalorder %s24406_s7, %s19389_s20  ;;  %p19396_p5 = scmp.lt.u32.totalorder %s19389_s20, %s24406_s7 }
  0x68   : > { %p19392_p0 = pnand %p19390_p13, %p19888_p8 }
  0x6a   : > { %p19393_p2 = pneg %p19392_p0 }
  0x6c   : > { %p19398_p7 = pnand %p19396_p5, %p19393_p2 }
  0x6e   : > { %19401 = shalt.err (!%p19398_p7)
}
  0x6f   : > { %s19402_s15 = scalar_lea.vmem %s408_s27, 192  ;;  %p19410_p11 = scmp.lt.s32.totalorder %s408_s27, %s408_s27 }
  0x70   : > { %p19403_p9 = scmp.ne.s32.totalorder %s408_s27, %s19402_s15  ;;  %p19411_p12 = scmp.lt.s32.totalorder %s19402_s15, %s19402_s15 }
  0x72   : > { %p19405_p4 = pnand %p19403_p9, %p19888_p8  ;;  %p19412_p1 = por %p19411_p12, %p19410_p11 }
  0x74   : > { %p19406_p10 = pneg %p19405_p4 }
  0x76   : > { %p19413_p3 = pnand %p19412_p1, %p19406_p10 }
  0x78   : > { %19416 = shalt.err (!%p19413_p3)
}
  0x79   : > { %17519 = dma.hbm_to_vmem [thread:$0]  (!%p19872_p6), %s24406_s7, 192, %s408_s27, [#allocation15]  }
  0x7a   : > { %s19417_s18 = scalar_lea.hbm %s24408_s9, 48 }
  0x7b   : > { %p19418_p13 = scmp.ne.s32.totalorder %s24408_s9, %s19417_s18  ;;  %p19424_p3 = scmp.lt.u32.totalorder %s19417_s18, %s24408_s9 }
  0x7d   : > { %p19420_p0 = pnand %p19418_p13, %p19888_p8 }
  0x7f   : > { %p19421_p1 = pneg %p19420_p0 }
  0x81   : > { %p19426_p2 = pnand %p19424_p3, %p19421_p1 }
  0x83   : > { %19429 = shalt.err (!%p19426_p2)
}
  0x84   : > { %s19430_s30 = scalar_lea.vmem %s432_s17, 48  ;;  %s19437_s27 = scalar_lea.vmem %s432_s17, 64 }
  0x85   : > { %p19431_p5 = scmp.ne.s32.totalorder %s432_s17, %s19430_s30  ;;  %p19438_p4 = scmp.lt.s32.totalorder %s432_s17, %s432_s17 }
  0x86   : > { %p19439_p10 = scmp.lt.s32.totalorder %s19437_s27, %s19430_s30 }
  0x87   : > { %p19433_p7 = pnand %p19431_p5, %p19888_p8 }
  0x88   : > { %p19440_p11 = por %p19439_p10, %p19438_p4 }
  0x89   : > { %p19434_p9 = pneg %p19433_p7 }
  0x8b   : > { %p19441_p12 = pnand %p19440_p11, %p19434_p9 }
  0x8d   : > { %19444 = shalt.err (!%p19441_p12)
}
  0x8e   : > { %17525 = dma.hbm_to_vmem [thread:$0]  (!%p19872_p6), %s24408_s9, 48, %s432_s17, [#allocation18]  }
  0x8f   : > { %s19742_s26 = smov [#allocation7]   ;;  %s24511_s2 = sld [smem:[#allocation86_spill]] }
  0x90   : > { %s347_s0 = sshll.u32 %s19742_s26, 4  ;;  %s348_s0 = int_to_ptr.vmem [resolvable:$true] %s347_s0 }
  0x95   : > { %s19445_s18 = scalar_lea.hbm %s24511_s2, 9216 }
  0x96   : > { %p19446_p13 = scmp.ne.s32.totalorder %s24511_s2, %s19445_s18  ;;  %p19452_p3 = scmp.lt.u32.totalorder %s19445_s18, %s24511_s2 }
  0x98   : > { %p19448_p0 = pnand %p19446_p13, %p19888_p8 }
  0x9a   : > { %p19449_p1 = pneg %p19448_p0 }
  0x9c   : > { %p19454_p2 = pnand %p19452_p3, %p19449_p1 }
  0x9e   : > { %19457 = shalt.err (!%p19454_p2)
}
  0x9f   : > { %s19458_s17 = scalar_lea.vmem %s348_s0, 9216  ;;  %p19466_p4 = scmp.lt.s32.totalorder %s348_s0, %s348_s0 }
  0xa0   : > { %p19459_p5 = scmp.ne.s32.totalorder %s348_s0, %s19458_s17  ;;  %p19467_p10 = scmp.lt.s32.totalorder %s19458_s17, %s19458_s17 }
  0xa2   : > { %p19461_p7 = pnand %p19459_p5, %p19888_p8  ;;  %p19468_p11 = por %p19467_p10, %p19466_p4 }
  0xa4   : > { %p19462_p9 = pneg %p19461_p7 }
  0xa6   : > { %p19469_p12 = pnand %p19468_p11, %p19462_p9 }
  0xa8   : > { %19472 = shalt.err (!%p19469_p12)
}
  0xa9   : > { %s24420_s30 = smov 192   ;;  %s24421_s27 = smov 12  }
  0xaa   : > { %17504 = dma.hbm_to_vmem [thread:$0]  (!%p19872_p6), %s24511_s2, 9216, %s348_s0, [#allocation6], %s24420_s30, %s24420_s30, %s24421_s27  }
  0xab   : > { %s19745_s26 = smov [#allocation10]   ;;  %s19746_s28 = smov [#allocation13]  }
  0xac   : > { %s372_s12 = sshll.u32 %s19745_s26, 4  ;;  %s393_s18 = sshll.u32 %s19746_s28, 4  ;;  %s373_s12 = int_to_ptr.vmem [resolvable:$true] %s372_s12  ;;  %s20014_s18 = int_to_ptr.vmem [resolvable:$true] %s393_s18 }
  0xad   : > { %s19473_s29 = scalar_lea.hbm %s24403_s4, 48 }
  0xae   : > { %p19474_p13 = scmp.ne.s32.totalorder %s24403_s4, %s19473_s29  ;;  %p19480_p3 = scmp.lt.u32.totalorder %s19473_s29, %s24403_s4 }
  0xb0   : > { %p19476_p0 = pnand %p19474_p13, %p19888_p8 }
  0xb2   : > { %p19477_p1 = pneg %p19476_p0 }
  0xb4   : > { %p19482_p2 = pnand %p19480_p3, %p19477_p1 }
  0xb6   : > { %19485 = shalt.err (!%p19482_p2)
}
  0xb7   : > { %s19486_s15 = scalar_lea.vmem %s373_s12, 48  ;;  %s19493_s26 = scalar_lea.vmem %s373_s12, 64 }
  0xb8   : > { %p19487_p5 = scmp.ne.s32.totalorder %s373_s12, %s19486_s15  ;;  %p19494_p4 = scmp.lt.s32.totalorder %s373_s12, %s373_s12 }
  0xb9   : > { %p19495_p10 = scmp.lt.s32.totalorder %s19493_s26, %s19486_s15 }
  0xba   : > { %p19489_p7 = pnand %p19487_p5, %p19888_p8 }
  0xbb   : > { %p19496_p11 = por %p19495_p10, %p19494_p4 }
  0xbc   : > { %p19490_p9 = pneg %p19489_p7 }
  0xbe   : > { %p19497_p12 = pnand %p19496_p11, %p19490_p9 }
  0xc0   : > { %19500 = shalt.err (!%p19497_p12)
}
  0xc1   : > { %17510 = dma.hbm_to_vmem [thread:$0]  (!%p19872_p6), %s24403_s4, 48, %s373_s12, [#allocation9]  }
  0xc2   : > { %s19501_s14 = scalar_lea.hbm %s24405_s6, 36864 }
  0xc3   : > { %p19502_p13 = scmp.ne.s32.totalorder %s24405_s6, %s19501_s14  ;;  %p19508_p3 = scmp.lt.u32.totalorder %s19501_s14, %s24405_s6 }
  0xc5   : > { %p19504_p0 = pnand %p19502_p13, %p19888_p8 }
  0xc7   : > { %p19505_p1 = pneg %p19504_p0 }
  0xc9   : > { %p19510_p2 = pnand %p19508_p3, %p19505_p1 }
  0xcb   : > { %19513 = shalt.err (!%p19510_p2)
}
  0xcc   : > { %s19514_s12 = scalar_lea.vmem %s20014_s18, 36864  ;;  %p19522_p4 = scmp.lt.s32.totalorder %s20014_s18, %s20014_s18 }
  0xcd   : > { %p19515_p5 = scmp.ne.s32.totalorder %s20014_s18, %s19514_s12  ;;  %p19523_p10 = scmp.lt.s32.totalorder %s19514_s12, %s19514_s12 }
  0xcf   : > { %p19517_p7 = pnand %p19515_p5, %p19888_p8  ;;  %p19524_p11 = por %p19523_p10, %p19522_p4 }
  0xd1   : > { %p19518_p9 = pneg %p19517_p7 }
  0xd3   : > { %p19525_p12 = pnand %p19524_p11, %p19518_p9 }
  0xd5   : > { %19528 = shalt.err (!%p19525_p12)
}
  0xd6   : > { %s19747_s26 = smov 768   ;;  %s19748_s28 = smov 48  }
  0xd7   : > { %17516 = dma.hbm_to_vmem [thread:$0]  (!%p19872_p6), %s24405_s6, 36864, %s20014_s18, [#allocation12], %s19747_s26, %s19747_s26, %s19748_s28  }
  0xd8   : > { %s19749_s29 = smov [#allocation16]   ;;  %s19750_s17 = smov [#allocation19]  }
  0xd9   : > { %s417_s14 = sshll.u32 %s19749_s29, 4  ;;  %s442_s16 = sshll.u32 %s19750_s17, 4  ;;  %s418_s14 = int_to_ptr.vmem [resolvable:$true] %s417_s14  ;;  %s20057_s16 = int_to_ptr.vmem [resolvable:$true] %s442_s16 }
  0xda   : > { %s19529_s12 = scalar_lea.hbm %s24407_s8, 36864 }
  0xdb   : > { %p19530_p13 = scmp.ne.s32.totalorder %s24407_s8, %s19529_s12  ;;  %p19536_p3 = scmp.lt.u32.totalorder %s19529_s12, %s24407_s8 }
  0xdd   : > { %p19532_p0 = pnand %p19530_p13, %p19888_p8 }
  0xdf   : > { %p19533_p1 = pneg %p19532_p0 }
  0xe1   : > { %p19538_p2 = pnand %p19536_p3, %p19533_p1 }
  0xe3   : > { %19541 = shalt.err (!%p19538_p2)
}
  0xe4   : > { %s19542_s26 = scalar_lea.vmem %s418_s14, 36864  ;;  %p19550_p4 = scmp.lt.s32.totalorder %s418_s14, %s418_s14 }
  0xe5   : > { %p19543_p5 = scmp.ne.s32.totalorder %s418_s14, %s19542_s26  ;;  %p19551_p10 = scmp.lt.s32.totalorder %s19542_s26, %s19542_s26 }
  0xe7   : > { %p19545_p7 = pnand %p19543_p5, %p19888_p8  ;;  %p19552_p11 = por %p19551_p10, %p19550_p4 }
  0xe9   : > { %p19546_p9 = pneg %p19545_p7 }
  0xeb   : > { %p19553_p12 = pnand %p19552_p11, %p19546_p9 }
  0xed   : > { %19556 = shalt.err (!%p19553_p12)
}
  0xee   : > { %s24512_s30 = smov 12   ;;  %s24513_s27 = smov 192  }
  0xef   : > { %17522 = dma.hbm_to_vmem [thread:$0]  (!%p19872_p6), %s24407_s8, 36864, %s418_s14, [#allocation15], %s24513_s27, %s24513_s27, %s24512_s30  }
  0xf0   : > { %s19557_s0 = scalar_lea.hbm %s24409_s10, 48 }
  0xf1   : > { %p19558_p13 = scmp.ne.s32.totalorder %s24409_s10, %s19557_s0  ;;  %p19564_p3 = scmp.lt.u32.totalorder %s19557_s0, %s24409_s10 }
  0xf3   : > { %p19560_p0 = pnand %p19558_p13, %p19888_p8 }
  0xf5   : > { %p19561_p1 = pneg %p19560_p0 }
  0xf7   : > { %p19566_p2 = pnand %p19564_p3, %p19561_p1 }
  0xf9   : > { %19569 = shalt.err (!%p19566_p2)
}
  0xfa   : > { %s19570_s14 = scalar_lea.vmem %s20057_s16, 48  ;;  %s19577_s26 = scalar_lea.vmem %s20057_s16, 64 }
  0xfb   : > { %p19571_p5 = scmp.ne.s32.totalorder %s20057_s16, %s19570_s14  ;;  %p19578_p4 = scmp.lt.s32.totalorder %s20057_s16, %s20057_s16 }
  0xfc   : > { %p19579_p10 = scmp.lt.s32.totalorder %s19577_s26, %s19570_s14 }
  0xfd   : > { %p19573_p7 = pnand %p19571_p5, %p19888_p8 }
  0xfe   : > { %p19580_p11 = por %p19579_p10, %p19578_p4 }
  0xff   : > { %p19574_p9 = pneg %p19573_p7 }
 0x101   : > { %p19581_p12 = pnand %p19580_p11, %p19574_p9 }
 0x103   : > { %19584 = shalt.err (!%p19581_p12)
}
 0x104   : > { %17528 = dma.hbm_to_vmem [thread:$0]  (!%p19872_p6), %s24409_s10, 48, %s20057_s16, [#allocation18]  }
 0x105   : > { %s19751_s28 = smov [#allocation20]   ;;  %s19585_s0 = scalar_lea.hbm %s24410_s11, 48 }
 0x106   : > { %s453_s20 = sshll.u32 %s19751_s28, 4  ;;  %p19586_p13 = scmp.ne.s32.totalorder %s24410_s11, %s19585_s0  ;;  %s454_s20 = int_to_ptr.vmem [resolvable:$true] %s453_s20 }
 0x107   : > { %p19592_p3 = scmp.lt.u32.totalorder %s19585_s0, %s24410_s11 }
 0x108   : > { %p19588_p0 = pnand %p19586_p13, %p19888_p8 }
 0x10a   : > { %p19589_p1 = pneg %p19588_p0 }
 0x10c   : > { %p19594_p2 = pnand %p19592_p3, %p19589_p1 }
 0x10e   : > { %19597 = shalt.err (!%p19594_p2)
}
 0x10f   : > { %s19598_s16 = scalar_lea.vmem %s454_s20, 48  ;;  %s19605_s14 = scalar_lea.vmem %s454_s20, 64 }
 0x110   : > { %p19599_p5 = scmp.ne.s32.totalorder %s454_s20, %s19598_s16  ;;  %p19606_p4 = scmp.lt.s32.totalorder %s454_s20, %s454_s20 }
 0x111   : > { %p19607_p10 = scmp.lt.s32.totalorder %s19605_s14, %s19598_s16 }
 0x112   : > { %p19601_p7 = pnand %p19599_p5, %p19888_p8 }
 0x113   : > { %p19608_p11 = por %p19607_p10, %p19606_p4 }
 0x114   : > { %p19602_p9 = pneg %p19601_p7 }
 0x116   : > { %p19609_p12 = pnand %p19608_p11, %p19602_p9 }
 0x118   : > { %19612 = shalt.err (!%p19609_p12)
}
 0x119   : > { %s24514_s25 = sld [smem:[#allocation31_spill]]  ;;  %s15256_s27 = sadd.s32 4294967294, %s19733_s24  }
 0x11a   : > { %17531 = dma.hbm_to_vmem [thread:$0]  (!%p19872_p6), %s24410_s11, 48, %s454_s20, [#allocation21]  }
 0x11b   : > { %s20124_s13 = sadd.s32 1, %s19733_s24   ;;  %s41_s28 = sadd.s32 1, %s19729_s23 }
 0x11c   : > { %s38_s29 = ssub.s32 %s19733_s24, %s20124_s13  ;;  %p48_p8 = scmp.ne.s32.totalorder %s19729_s23, %s19725_s22 }
 0x11d   : > { %p39_p13 = scmp.eq.s32.totalorder %s38_s29, 0  ;;  %p49_p0 = scmp.eq.s32.totalorder %s19733_s24, 0 }
 0x11e   : > { %p54_p1 = scmp.ne.s32.totalorder %s19725_s22, %s19721_s21  ;;  %p315_p9 = scmp.eq.s32.totalorder %s15256_s27, 1 }
 0x11f   : > { %p309_p3 = scmp.eq.s32.totalorder %s24514_s25, 1  ;;  %p50_p2 = por %p49_p0, %p48_p8 }
 0x120   : > { %s20136_s17 = scalar_select %p39_p13, %s19729_s23, %s41_s28  }
 0x121   : > { %p24515_p5 = scmp.eq.s32.totalorder %s24514_s25, 0  ;;  %p20144_p6 = por %p309_p3, %p48_p8 }
 0x122   : > { %p17551_p4 = scmp.lt.s32.totalorder %s19733_s24, 2  ;;  %s464_s15 = sand.u32 1, %s19729_s23  }
 0x123   : > { %p20140_p7 = por %p24515_p5, %p54_p1  ;;  %p20150_p10 = por %p315_p9, %p54_p1 }
 0x124   : > { %s24517_s20 = scalar_select %p20144_p6, 1, 0 }
 0x125   : > { %s24518_s12 = scalar_select %p20150_p10, 1, 0 }
 0x126   : > { %s17446_s19 = smul.u32 192, %s464_s15  ;;  %p20154_p11 = pnand %p17551_p4, %p50_p2 }
 0x127   : > { %s17447_s16 = smul.u32 3072, %s19733_s24  ;;  %s24520_s30 = sld [smem:[#allocation84_spill]] }
 0x128   : > { %s468_s27 = scalar_lea.vmem [#allocation2], %s17446_s19  ;;  %s20166_s29 = scalar_lea.sflag [#allocation3], %s464_s15 }
 0x129   : > { %s475_s28 = sshll.u32 %s468_s27, 4  ;;  %p19615_p8 = pneg %p20154_p11  ;;  %s20164_s28 = int_to_ptr.vmem [resolvable:$true] %s475_s28 }
 0x12d   : > { %s20162_s25 = scalar_lea.hbm %s24520_s30, %s17447_s16  ;;  %s19618_s26 = scalar_lea.hbm %s24520_s30, 6144 }
 0x12e   : > { %s19613_s1 = scalar_lea.hbm %s20162_s25, 3072  ;;  %p19619_p1 = scmp.lt.u32.totalorder %s20162_s25, %s24520_s30 }
 0x12f   : > { %p19614_p12 = scmp.ne.s32.totalorder %s20162_s25, %s19613_s1  ;;  %p19620_p3 = scmp.lt.u32.totalorder %s19618_s26, %s19613_s1 }
 0x130   : > { %p19622_p5 = scmp.lt.u32.totalorder %s19613_s1, %s20162_s25 }
 0x131   : > { %p19616_p13 = pnand %p19615_p8, %p19614_p12  ;;  %p19621_p2 = por %p19620_p3, %p19619_p1 }
 0x133   : > { %p19617_p0 = pneg %p19616_p13  ;;  %p19623_p9 = por %p19622_p5, %p19621_p2 }
 0x135   : > { %p19624_p4 = pnand %p19623_p9, %p19617_p0 }
 0x137   : > { %19627 = shalt.err (!%p19624_p4)
}
 0x138   : > { %s19628_s15 = scalar_lea.vmem %s20164_s28, 3072  ;;  %s19752_s19 = smov [#allocation2]  }
 0x139   : > { %p19629_p12 = scmp.ne.s32.totalorder %s20164_s28, %s19628_s15  ;;  %s19633_s27 = sshll.u32 %s19752_s19, 4  ;;  %s19634_s27 = int_to_ptr.vmem [resolvable:$false] %s19633_s27 }
 0x13a   : > { %s19635_s2 = scalar_lea.vmem %s19634_s27, 6144  ;;  %p19636_p6 = scmp.lt.s32.totalorder %s20164_s28, %s19634_s27 }
 0x13b   : > { %p19631_p13 = pnand %p19629_p12, %p19615_p8  ;;  %p19637_p1 = scmp.lt.s32.totalorder %s19635_s2, %s19628_s15 }
 0x13d   : > { %p19632_p10 = pneg %p19631_p13  ;;  %p19638_p3 = por %p19637_p1, %p19636_p6 }
 0x13f   : > { %p19639_p2 = pnand %p19638_p3, %p19632_p10 }
 0x141   : > { %19642 = shalt.err (!%p19639_p2)
}
 0x142   : > { %s19753_s1 = smov 384   ;;  %s19754_s3 = smov 24  }
 0x143   : > { %17535 = dma.hbm_to_vmem [thread:$0]  (!%p20154_p11), %s20162_s25, 3072, %s20164_s28, %s20166_s29, %s19753_s1, %s19753_s1, %s19754_s3  }
 0x144   : > { %s24521_s16 = sld [smem:[#allocation32_spill]] }
 0x14a   : > { %p24522_p8 = scmp.ne.s32.totalorder %s24521_s16, 0 }
 0x14c   : > { %487 = sbr.rel (%p24522_p8) target bundleno = 4026 (0xfba), region = 68 }
 0x153   : > { %s20197_s14 = sand.u32 1, %s19725_s22  }
 0x154   : > { %s17448_s26 = smul.u32 192, %s20197_s14  ;;  %s490_s15 = scalar_lea.sflag [#allocation3], %s20197_s14 }
 0x156   : > { %s20203_s19 = scalar_lea.vmem [#allocation2], %s17448_s26 }
 0x157   : > { %19688 = dma.done.wait (%p20140_p7), %s490_s15, 3072  }
 0x158   : > { %19690 = vsyncadd (%p20140_p7), %s490_s15, 4294964224  ;;  %s24523_s18 = sld [smem:[#allocation31_spill]] }
 0x15e   : > { %p24524_p6 = scmp.eq.s32.totalorder %s24523_s18, 0 }
 0x160   : > { %19692 = dma.done.wait (%p24524_p6), [#allocation6], 36864   ;;  %p24525_p10 = pmov %p24524_p6 }
 0x161   : > { %p24526_p11 = pmov %p24524_p6 }
 0x162   : > { %19694 = vsyncadd (%p24525_p10), [#allocation6], 4294930432 }
 0x163   : > { %19696 = dma.done.wait (%p24526_p11), [#allocation9], 96   ;;  %p24527_p0 = pmov %p24524_p6 }
 0x165   : > { %19698 = vsyncadd (%p24527_p0), [#allocation9], 4294967200  ;;  %p24528_p5 = pmov %p24527_p0 }
 0x166   : > { %p24529_p9 = pmov %p24527_p0 }
 0x167   : > { %19700 = dma.done.wait (%p24528_p5), [#allocation12], 36912  }
 0x168   : > { %19702 = vsyncadd (%p24529_p9), [#allocation12], 4294930384  ;;  %p24530_p7 = pmov %p24527_p0 }
 0x169   : > { %p24531_p4 = pmov %p24527_p0 }
 0x16a   : > { %19704 = dma.done.wait (%p24530_p7), [#allocation15], 37056  }
 0x16b   : > { %19706 = vsyncadd (%p24531_p4), [#allocation15], 4294930240  ;;  %p24532_p12 = pmov %p24527_p0 }
 0x16c   : > { %p24533_p13 = pmov %p24527_p0 }
 0x16d   : > { %19708 = dma.done.wait (%p24532_p12), [#allocation18], 96  }
 0x16e   : > { %19710 = vsyncadd (%p24533_p13), [#allocation18], 4294967200  ;;  %p24534_p1 = pmov %p24527_p0 }
 0x16f   : > { %p24535_p3 = pmov %p24527_p0 }
 0x170   : > { %19712 = dma.done.wait (%p24534_p1), [#allocation21], 48  }
 0x171   : > { %19714 = vsyncadd (%p24535_p3), [#allocation21], 4294967248  ;;  %v17769_v0 = vld [vmem:[#allocation5 + $0x4] ss:$36 sps:$4 sm:$0xff]   ;;  %v17771_v1 = vld [vmem:[#allocation5 + $0x14] ss:$36 sps:$4 sm:$0xff]  }
 0x172   : > { %1959 = vmatprep.subr.bf16.mxu1 %v17769_v0  ;;  %v17773_v2 = vld [vmem:[#allocation5] ss:$36 sps:$4 sm:$0xff]   ;;  %v17774_v3 = vld [vmem:[#allocation5 + $0x10] ss:$36 sps:$4 sm:$0xff]   ;;  %2251 = vmatprep.subr.bf16.mxu0 %v17771_v1  ;;  %v17779_v6 = vld [vmem:[#allocation5 + $0x48] ss:$36 sps:$4 sm:$0xff]  }
 0x173   : > { %v17775_v4 = vld [vmem:[#allocation5 + $0x4c] ss:$36 sps:$4 sm:$0xff]   ;;  %1960 = vmatpush1.bf16.msra.mxu1 %v17773_v2  ;;  %2252 = vmatpush1.bf16.msra.mxu0 %v17774_v3  ;;  %v17777_v5 = vld [vmem:[#allocation5 + $0x5c] ss:$36 sps:$4 sm:$0xff]   ;;  %v17781_v8 = vld [vmem:[#allocation5 + $0x94] ss:$36 sps:$4 sm:$0xff]  }
 0x174   : > { %1961 = vmatprep.subr.bf16.mxu1 %v17775_v4  ;;  %v17780_v7 = vld [vmem:[#allocation5 + $0x58] ss:$36 sps:$4 sm:$0xff]   ;;  %2253 = vmatprep.subr.bf16.mxu0 %v17777_v5  ;;  %v17783_v9 = vld [vmem:[#allocation5 + $0xa4] ss:$36 sps:$4 sm:$0xff]   ;;  %v17785_v10 = vld [vmem:[#allocation5 + $0x90] ss:$36 sps:$4 sm:$0xff]  }
 0x175   : > { %v17786_v11 = vld [vmem:[#allocation5 + $0xa0] ss:$36 sps:$4 sm:$0xff]   ;;  %v17789_v13 = vld [vmem:[#allocation5 + $0xec] ss:$36 sps:$4 sm:$0xff]   ;;  %v17791_v14 = vld [vmem:[#allocation5 + $0xd8] ss:$36 sps:$4 sm:$0xff]  }
 0x176   : > { %v17787_v12 = vld [vmem:[#allocation5 + $0xdc] ss:$36 sps:$4 sm:$0xff]   ;;  %v17792_v15 = vld [vmem:[#allocation5 + $0xe8] ss:$36 sps:$4 sm:$0xff]   ;;  %v17795_v17 = vld [vmem:[#allocation5 + $0x134] ss:$36 sps:$4 sm:$0xff]  }
 0x177   : > { %1962 = vmatpush1.bf16.msra.mxu1 %v17779_v6  ;;  %2254 = vmatpush1.bf16.msra.mxu0 %v17780_v7  ;;  %v17793_v16 = vld [vmem:[#allocation5 + $0x124] ss:$36 sps:$4 sm:$0xff]   ;;  %v17798_v19 = vld [vmem:[#allocation5 + $0x130] ss:$36 sps:$4 sm:$0xff]   ;;  %v17801_v21 = vld [vmem:[#allocation5 + $0x17c] ss:$36 sps:$4 sm:$0xff]  }
 0x178   : > { %1963 = vmatprep.subr.bf16.mxu1 %v17781_v8  ;;  %2255 = vmatprep.subr.bf16.mxu0 %v17783_v9  ;;  %v17797_v18 = vld [vmem:[#allocation5 + $0x120] ss:$36 sps:$4 sm:$0xff]   ;;  %v17799_v20 = vld [vmem:[#allocation5 + $0x16c] ss:$36 sps:$4 sm:$0xff]   ;;  %v17804_v23 = vld [vmem:[#allocation5 + $0x178] ss:$36 sps:$4 sm:$0xff]  }
 0x179   : > { %v17803_v22 = vld [vmem:[#allocation5 + $0x168] ss:$36 sps:$4 sm:$0xff]   ;;  %v17805_v24 = vld [vmem:[#allocation5 + $0x1b4] ss:$36 sps:$4 sm:$0xff]   ;;  %v17810_v27 = vld [vmem:[#allocation5 + $0x1c0] ss:$36 sps:$4 sm:$0xff]  }
 0x17a   : > { %v17807_v25 = vld [vmem:[#allocation5 + $0x1c4] ss:$36 sps:$4 sm:$0xff]   ;;  %v17809_v26 = vld [vmem:[#allocation5 + $0x1b0] ss:$36 sps:$4 sm:$0xff]   ;;  %v17811_v28 = vld [vmem:[#allocation5 + $0x1fc] ss:$36 sps:$4 sm:$0xff]  }
 0x17b   : > { %1964 = vmatpush1.bf16.msra.mxu1 %v17785_v10  ;;  %2256 = vmatpush1.bf16.msra.mxu0 %v17786_v11  ;;  %v17813_v29 = vld [vmem:[#allocation5 + $0x20c] ss:$36 sps:$4 sm:$0xff]   ;;  %v17815_v30 = vld [vmem:[#allocation5 + $0x1f8] ss:$36 sps:$4 sm:$0xff]   ;;  %v17817_v32 = vld [vmem:[#allocation5 + $0x244] ss:$36 sps:$4 sm:$0xff]  }
 0x17c   : > { %1965 = vmatprep.subr.bf16.mxu1 %v17787_v12  ;;  %2257 = vmatprep.subr.bf16.mxu0 %v17789_v13  ;;  %v17816_v31 = vld [vmem:[#allocation5 + $0x208] ss:$36 sps:$4 sm:$0xff]   ;;  %v17819_v33 = vld [vmem:[#allocation5 + $0x254] ss:$36 sps:$4 sm:$0xff]   ;;  %v17821_v34 = vld [vmem:[#allocation5 + $0x240] ss:$36 sps:$4 sm:$0xff]  }
 0x17d   : > { %v17822_v35 = vld [vmem:[#allocation5 + $0x250] ss:$36 sps:$4 sm:$0xff]   ;;  %v17825_v37 = vld [vmem:[#allocation5 + $0x29c] ss:$36 sps:$4 sm:$0xff]   ;;  %v17827_v38 = vld [vmem:[#allocation5 + $0x288] ss:$36 sps:$4 sm:$0xff]  }
 0x17e   : > { %v17823_v36 = vld [vmem:[#allocation5 + $0x28c] ss:$36 sps:$4 sm:$0xff]   ;;  %v17828_v39 = vld [vmem:[#allocation5 + $0x298] ss:$36 sps:$4 sm:$0xff]   ;;  %v17831_v41 = vld [vmem:[#allocation5 + $0x2e4] ss:$36 sps:$4 sm:$0xff]  }
 0x17f   : > { %1966 = vmatpush1.bf16.msra.mxu1 %v17791_v14  ;;  %2258 = vmatpush1.bf16.msra.mxu0 %v17792_v15  ;;  %v17829_v40 = vld [vmem:[#allocation5 + $0x2d4] ss:$36 sps:$4 sm:$0xff]   ;;  %v17834_v43 = vld [vmem:[#allocation5 + $0x2e0] ss:$36 sps:$4 sm:$0xff]   ;;  %v17837_v45 = vld [vmem:[#allocation5 + $0x32c] ss:$36 sps:$4 sm:$0xff]  }
 0x180   : > { %1967 = vmatprep.subr.bf16.mxu1 %v17793_v16  ;;  %2259 = vmatprep.subr.bf16.mxu0 %v17795_v17  ;;  %v17833_v42 = vld [vmem:[#allocation5 + $0x2d0] ss:$36 sps:$4 sm:$0xff]   ;;  %v17835_v44 = vld [vmem:[#allocation5 + $0x31c] ss:$36 sps:$4 sm:$0xff]   ;;  %v580_v46 = vld [vmem:[%s20203_s19 + $0x8] sm:$0xff]  ;;  %s19756_s0 = smov 112  }
 0x181   : > { %v17839_v47 = vld [vmem:[#allocation5 + $0x318] ss:$36 sps:$4 sm:$0xff]   ;;  %v17840_v48 = vld [vmem:[#allocation5 + $0x328] ss:$36 sps:$4 sm:$0xff]   ;;  %v583_v49 = vld [vmem:[%s20203_s19 + $0x20] sm:$0xff]  ;;  %s19757_s25 = smov 32  }
 0x182   : > { %v17841_v50 = vld [vmem:[#allocation5 + $0x364] ss:$36 sps:$4 sm:$0xff]   ;;  %v20235_v51 = vpack.c.bf16 %v583_v49, %v580_v46  ;;  %v17843_v52 = vld [vmem:[#allocation5 + $0x374] ss:$36 sps:$4 sm:$0xff]   ;;  %v17847_v55 = vld [vmem:[#allocation5 + $0x3ac] ss:$36 sps:$4 sm:$0xff]  }
 0x183   : > { %1968 = vmatpush1.bf16.msra.mxu1 %v17797_v18  ;;  %2260 = vmatpush1.bf16.msra.mxu0 %v17798_v19  ;;  %v17845_v53 = vld [vmem:[#allocation5 + $0x360] ss:$36 sps:$4 sm:$0xff]   ;;  %v17846_v54 = vld [vmem:[#allocation5 + $0x370] ss:$36 sps:$4 sm:$0xff]   ;;  %v17851_v57 = vld [vmem:[#allocation5 + $0x3a8] ss:$36 sps:$4 sm:$0xff]  }
 0x184   : > { %1969 = vmatprep.subr.bf16.mxu1 %v17799_v20  ;;  %2261 = vmatprep.subr.bf16.mxu0 %v17801_v21  ;;  %v17849_v56 = vld [vmem:[#allocation5 + $0x3bc] ss:$36 sps:$4 sm:$0xff]   ;;  %v17853_v59 = vld [vmem:[#allocation5 + $0x3f4] ss:$36 sps:$4 sm:$0xff]   ;;  %v17855_v60 = vld [vmem:[#allocation5 + $0x404] ss:$36 sps:$4 sm:$0xff]  }
 0x185   : > { %1991 = vmatprep.mubr.bf16.mxu1 %v20235_v51  ;;  %2283 = vmatprep.mubr.bf16.mxu0 %v20235_v51  ;;  %v17852_v58 = vld [vmem:[#allocation5 + $0x3b8] ss:$36 sps:$4 sm:$0xff]   ;;  %v17857_v61 = vld [vmem:[#allocation5 + $0x3f0] ss:$36 sps:$4 sm:$0xff]   ;;  %v17858_v62 = vld [vmem:[#allocation5 + $0x400] ss:$36 sps:$4 sm:$0xff]  }
 0x186   : > { %v17859_v63 = vld [vmem:[#allocation5 + $0x43c] ss:$36 sps:$4 sm:$0xff]   ;;  %v17861_v0 = vld [vmem:[#allocation5 + $0x44c] ss:$36 sps:$4 sm:$0xff]   ;;  %v17867_v5 = vld [vmem:[#allocation5 + $0x484] ss:$36 sps:$4 sm:$0xff]  }
 0x187   : > { %1970 = vmatpush1.bf16.msra.mxu1 %v17803_v22  ;;  %2262 = vmatpush1.bf16.msra.mxu0 %v17804_v23  ;;  %v17863_v1 = vld [vmem:[#allocation5 + $0x438] ss:$36 sps:$4 sm:$0xff]   ;;  %v17864_v2 = vld [vmem:[#allocation5 + $0x448] ss:$36 sps:$4 sm:$0xff]   ;;  %v579_v3 = vld [vmem:[%s20203_s19] sm:$0xff]  ;;  %s19758_s28 = smov 16  }
 0x188   : > { %1971 = vmatprep.subr.bf16.mxu1 %v17805_v24  ;;  %2263 = vmatprep.subr.bf16.mxu0 %v17807_v25  ;;  %v582_v4 = vld [vmem:[%s20203_s19 + $0x18] sm:$0xff]  ;;  %v17865_v7 = vld [vmem:[#allocation5 + $0x480] ss:$36 sps:$4 sm:$0xff]   ;;  %v17868_v9 = vld [vmem:[#allocation5 + $0x490] ss:$36 sps:$4 sm:$0xff]   ;;  %s19759_s29 = smov 64  }
 0x189   : > { %v17870_v6 = vld [vmem:[#allocation5 + $0x494] ss:$36 sps:$4 sm:$0xff]   ;;  %v20241_v8 = vpack.c.bf16 %v582_v4, %v579_v3  ;;  %v17873_v12 = vld [vmem:[#allocation5 + $0x4cc] ss:$36 sps:$4 sm:$0xff]   ;;  %v17876_v13 = vld [vmem:[#allocation5 + $0x4dc] ss:$36 sps:$4 sm:$0xff]  }
 0x18a   : > { %v586_v10 = vld [vmem:[%s20203_s19 + $0x38] sm:$0xff]  ;;  %v589_v11 = vld [vmem:[%s20203_s19 + $0x50] sm:$0xff]  ;;  %v17871_v14 = vld [vmem:[#allocation5 + $0x4c8] ss:$36 sps:$4 sm:$0xff]   ;;  %s19760_s27 = smov 48   ;;  %vm3195_vm0 = vcmask 392192  }
 0x18b   : > { %1972 = vmatpush1.bf16.msra.mxu1 %v17809_v26  ;;  %2264 = vmatpush1.bf16.msra.mxu0 %v17810_v27  ;;  %v20245_v15 = vpack.c.bf16 %v589_v11, %v586_v10  ;;  %v17874_v16 = vld [vmem:[#allocation5 + $0x4d8] ss:$36 sps:$4 sm:$0xff]   ;;  %v585_v17 = vld [vmem:[%s20203_s19 + $0x30] sm:$0xff]  ;;  %v588_v18 = vld [vmem:[%s20203_s19 + $0x48] sm:$0xff]  ;;  %s19761_s2 = smov 96   ;;  %s19762_s1 = smov 80  }
 0x18c   : > { %1973 = vmatprep.subr.bf16.mxu1 %v17811_v28  ;;  %2265 = vmatprep.subr.bf16.mxu0 %v17813_v29  ;;  %v17879_v19 = vld [vmem:[#allocation5 + $0x514] ss:$36 sps:$4 sm:$0xff]   ;;  %v17882_v20 = vld [vmem:[#allocation5 + $0x524] ss:$36 sps:$4 sm:$0xff]   ;;  %v20254_v22 = vpack.c.bf16 %v588_v18, %v585_v17  ;;  %v17885_v26 = vld [vmem:[#allocation5 + $0x55c] ss:$36 sps:$4 sm:$0xff]  }
 0x18d   : > { %v592_v21 = vld [vmem:[%s20203_s19 + $0x68] sm:$0xff]  ;;  %v595_v23 = vld [vmem:[%s20203_s19 + $0x80] sm:$0xff]  ;;  %v17877_v24 = vld [vmem:[#allocation5 + $0x510] ss:$36 sps:$4 sm:$0xff]   ;;  %vm2782_vm1 = vcmask 130048   ;;  %vm2741_vm2 = vcmask 261120  }
 0x18e   : > { %v17880_v25 = vld [vmem:[#allocation5 + $0x520] ss:$36 sps:$4 sm:$0xff]   ;;  %v17888_v27 = vld [vmem:[#allocation5 + $0x56c] ss:$36 sps:$4 sm:$0xff]   ;;  %v20257_v28 = vpack.c.bf16 %v595_v23, %v592_v21  ;;  %v17883_v29 = vld [vmem:[#allocation5 + $0x558] ss:$36 sps:$4 sm:$0xff]  }
 0x18f   : > { %1974 = vmatpush1.bf16.msra.mxu1 %v17815_v30  ;;  %2266 = vmatpush1.bf16.msra.mxu0 %v17816_v31  ;;  %v17886_v30 = vld [vmem:[#allocation5 + $0x568] ss:$36 sps:$4 sm:$0xff]   ;;  %v591_v31 = vld [vmem:[%s20203_s19 + $0x60] sm:$0xff]  ;;  %v602_v18 = vld [vmem:[%s20203_s19 + $0xb8] sm:$0xff]  ;;  %vm3911_vm4 = vcmask 523264   ;;  %vm19764_vm12 = vmmov 0  }
 0x190   : > { %1975 = vmatprep.subr.bf16.mxu1 %v17817_v32  ;;  %2267 = vmatprep.subr.bf16.mxu0 %v17819_v33  ;;  %v594_v32 = vld [vmem:[%s20203_s19 + $0x78] sm:$0xff]  ;;  %v17891_v33 = vld [vmem:[#allocation5 + $0x5a4] ss:$36 sps:$4 sm:$0xff]   ;;  %v17927_v11 = vld [vmem:[#allocation5 + $0x12c] ss:$36 sps:$4 sm:$0xff]   ;;  %vm8064_vm13 = vcmask 785408  }
 0x191   : > { %v600_v46 = vld [vmem:[%s20203_s19 + $0xa8] sm:$0xff]  ;;  %v17921_v3 = vld [vmem:[#allocation5 + $0x9c] ss:$36 sps:$4 sm:$0xff]   ;;  %vm8090_vm14 = vcmask 916480   ;;  %vm8108_vm15 = vcmask 654336   ;;  %s24265_s3 = scalar_lea.vmem [#allocation22], %s17448_s26 }
 0x192   : > { %v596_v10 = vld [vmem:[%s20203_s19 + $0x88] sm:$0xff]  ;;  %v599_v17 = vld [vmem:[%s20203_s19 + $0xa0] sm:$0xff]  ;;  %v17931_v21 = vld [vmem:[#allocation5 + $0x1b8] ss:$36 sps:$4 sm:$0xff]   ;;  %s17449_s16 = smul.u32 3072, %s24523_s18  ;;  %s15078_s26 = sshll.u32 %s24265_s3, 4  ;;  %s24354_s26 = int_to_ptr.vmem [resolvable:$true] %s15078_s26 }
 0x193   : > { %1976 = vmatpush1.bf16.msra.mxu1 %v17821_v34  ;;  %2268 = vmatpush1.bf16.msra.mxu0 %v17822_v35  ;;  %v17894_v34 = vld [vmem:[#allocation5 + $0x5b4] ss:$36 sps:$4 sm:$0xff]   ;;  %v17889_v35 = vld [vmem:[#allocation5 + $0x5a0] ss:$36 sps:$4 sm:$0xff]   ;;  %s24761_s18 = sld [smem:[#allocation88_spill]]  ;;  %p24762_p8 = scmp.ne.s32.totalorder %s24517_s20, 0 }
 0x194   : > { %1977 = vmatprep.subr.bf16.mxu1 %v17823_v36  ;;  %2269 = vmatprep.subr.bf16.mxu0 %v17825_v37  ;;  %v20265_v36 = vpack.c.bf16 %v594_v32, %v591_v31  ;;  %v17892_v37 = vld [vmem:[#allocation5 + $0x5b0] ss:$36 sps:$4 sm:$0xff]   ;;  %v17936_v23 = vld [vmem:[#allocation5 + $0x204] ss:$36 sps:$4 sm:$0xff]   ;;  %v17943_v31 = vld [vmem:[#allocation5 + $0x2d8] ss:$36 sps:$4 sm:$0xff]  }
 0x195   : > { %v17948_v32 = vld [vmem:[#allocation5 + $0x324] ss:$36 sps:$4 sm:$0xff]  }
 0x197   : > { %1978 = vmatpush1.bf16.msra.mxu1 %v17827_v38  ;;  %2270 = vmatpush1.bf16.msra.mxu0 %v17828_v39  ;;  %v598_v38 = vld [vmem:[%s20203_s19 + $0x98] sm:$0xff]  ;;  %v601_v39 = vld [vmem:[%s20203_s19 + $0xb0] sm:$0xff] }
 0x198   : > { %1979 = vmatprep.subr.bf16.mxu1 %v17829_v40  ;;  %2271 = vmatprep.subr.bf16.mxu0 %v17831_v41  ;;  %v17897_v40 = vld [vmem:[#allocation5 + $0x5ec] ss:$36 sps:$4 sm:$0xff]   ;;  %v17900_v41 = vld [vmem:[#allocation5 + $0x5fc] ss:$36 sps:$4 sm:$0xff]  }
 0x19b   : > { %1980 = vmatpush1.bf16.msra.mxu1 %v17833_v42  ;;  %2272 = vmatpush1.bf16.msra.mxu0 %v17834_v43  ;;  %v17895_v42 = vld [vmem:[#allocation5 + $0x5e8] ss:$36 sps:$4 sm:$0xff]   ;;  %v17898_v43 = vld [vmem:[#allocation5 + $0x5f8] ss:$36 sps:$4 sm:$0xff]  }
 0x19c   : > { %1981 = vmatprep.subr.bf16.mxu1 %v17835_v44  ;;  %2273 = vmatprep.subr.bf16.mxu0 %v17837_v45  ;;  %v20269_v44 = vpack.c.bf16 %v601_v39, %v598_v38  ;;  %v597_v45 = vld [vmem:[%s20203_s19 + $0x90] sm:$0xff]  ;;  %v17957_v39 = vld [vmem:[#allocation5 + $0x3fc] ss:$36 sps:$4 sm:$0xff]  }
 0x19d   : > { %v20277_v49 = vpack.c.bf16 %v600_v46, %v597_v45  ;;  %v17952_v38 = vld [vmem:[#allocation5 + $0x3b0] ss:$36 sps:$4 sm:$0xff]   ;;  %v17961_v45 = vld [vmem:[#allocation5 + $0x488] ss:$36 sps:$4 sm:$0xff]  }
 0x19e   : > { %v17966_v46 = vld [vmem:[#allocation5 + $0x4d4] ss:$36 sps:$4 sm:$0xff]  }
 0x19f   : > { %1982 = vmatpush1.bf16.msra.mxu1 %v17839_v47  ;;  %2274 = vmatpush1.bf16.msra.mxu0 %v17840_v48  ;;  %v17903_v47 = vld [vmem:[#allocation5 + $0x634] ss:$36 sps:$4 sm:$0xff]   ;;  %v17906_v48 = vld [vmem:[#allocation5 + $0x644] ss:$36 sps:$4 sm:$0xff]  }
 0x1a0   : > { %1983 = vmatprep.subr.bf16.mxu1 %v17841_v50  ;;  %2275 = vmatprep.subr.bf16.mxu0 %v17843_v52  ;;  %v17901_v50 = vld [vmem:[#allocation5 + $0x630] ss:$36 sps:$4 sm:$0xff]   ;;  %v17904_v52 = vld [vmem:[#allocation5 + $0x640] ss:$36 sps:$4 sm:$0xff]  }
 0x1a3   : > { %1984 = vmatpush1.bf16.msra.mxu1 %v17845_v53  ;;  %2276 = vmatpush1.bf16.msra.mxu0 %v17846_v54  ;;  %v17909_v53 = vld [vmem:[#allocation5 + $0x67c] ss:$36 sps:$4 sm:$0xff]   ;;  %v17912_v54 = vld [vmem:[#allocation5 + $0x68c] ss:$36 sps:$4 sm:$0xff]  }
 0x1a4   : > { %1985 = vmatprep.subr.bf16.mxu1 %v17847_v55  ;;  %2277 = vmatprep.subr.bf16.mxu0 %v17849_v56  ;;  %v17907_v55 = vld [vmem:[#allocation5 + $0x678] ss:$36 sps:$4 sm:$0xff]   ;;  %v17910_v56 = vld [vmem:[#allocation5 + $0x688] ss:$36 sps:$4 sm:$0xff]  }
 0x1a7   : > { %1986 = vmatpush1.bf16.msra.mxu1 %v17851_v57  ;;  %2278 = vmatpush1.bf16.msra.mxu0 %v17852_v58  ;;  %v581_v57 = vld [vmem:[%s20203_s19 + $0x10] sm:$0xff]  ;;  %v584_v58 = vld [vmem:[%s20203_s19 + $0x28] sm:$0xff] }
 0x1a8   : > { %1987 = vmatprep.subr.bf16.mxu1 %v17853_v59  ;;  %2279 = vmatprep.subr.bf16.mxu0 %v17855_v60  ;;  %v17915_v59 = vld [vmem:[#allocation5 + $0xc] ss:$36 sps:$4 sm:$0xff]   ;;  %v24423_v60 = vmov 0  }
 0x1ab   : > { %1988 = vmatpush1.bf16.msra.mxu1 %v17857_v61  ;;  %2280 = vmatpush1.bf16.msra.mxu0 %v17858_v62  ;;  %v20285_v61 = vpack.c.bf16 %v584_v58, %v581_v57  ;;  %v17913_v62 = vld [vmem:[#allocation5 + $0x8] ss:$36 sps:$4 sm:$0xff]   ;;  %v17976_v57 = vld [vmem:[#allocation5 + $0x5f0] ss:$36 sps:$4 sm:$0xff]   ;;  %v17981_v58 = vld [vmem:[#allocation5 + $0x63c] ss:$36 sps:$4 sm:$0xff]  }
 0x1ac   : > { %1989 = vmatprep.subr.bf16.mxu1 %v17859_v63  ;;  %2281 = vmatprep.subr.bf16.mxu0 %v17861_v0  ;;  %v17918_v63 = vld [vmem:[#allocation5 + $0x54] ss:$36 sps:$4 sm:$0xff]  }
 0x1ad   : > { %v17916_v0 = vld [vmem:[#allocation5 + $0x50] ss:$36 sps:$4 sm:$0xff]  }
 0x1af   : > { %1990 = vmatpush1.bf16.msra.mxu1 %v17863_v1  ;;  %2282 = vmatpush1.bf16.msra.mxu0 %v17864_v2  ;;  %v587_v1 = vld [vmem:[%s20203_s19 + $0x40] sm:$0xff]  ;;  %v590_v2 = vld [vmem:[%s20203_s19 + $0x58] sm:$0xff] }
 0x1b0   : > { %2032 = vmatprep.subr.bf16.mxu1 %v17867_v5  ;;  %2324 = vmatprep.subr.bf16.mxu0 %v17870_v6  ;;  %v20293_v4 = vpack.c.bf16 %v590_v2, %v587_v1  ;;  %v17919_v5 = vld [vmem:[#allocation5 + $0x98] ss:$36 sps:$4 sm:$0xff]   ;;  %v17924_v6 = vld [vmem:[#allocation5 + $0xe4] ss:$36 sps:$4 sm:$0xff]  }
 0x1b1   : > { %v17985_v1 = vld [vmem:[#allocation5 + $0x18] ss:$36 sps:$4 sm:$0xff]   ;;  %v17990_v2 = vld [vmem:[#allocation5 + $0x64] ss:$36 sps:$4 sm:$0xff]  }
 0x1b2   : > { %1992 = vmatmul.mubr.bf16.vlgmr.msra.gmra.mrb[0].mxu1 %v20241_v8  ;;  %2284 = vmatmul.mubr.bf16.vlgmr.msra.gmra.mrb[0].mxu0 %v20241_v8 }
 0x1b3   : > { %2033 = vmatpush1.bf16.msra.mxu1 %v17865_v7  ;;  %2325 = vmatpush1.bf16.msra.mxu0 %v17868_v9  ;;  %v17922_v7 = vld [vmem:[#allocation5 + $0xe0] ss:$36 sps:$4 sm:$0xff]   ;;  %v593_v9 = vld [vmem:[%s20203_s19 + $0x70] sm:$0xff] }
 0x1b4   : > { %2034 = vmatprep.subr.bf16.mxu1 %v17873_v12  ;;  %2326 = vmatprep.subr.bf16.mxu0 %v17876_v13  ;;  %v20301_v12 = vpack.c.bf16 %v596_v10, %v593_v9  ;;  %v17925_v13 = vld [vmem:[#allocation5 + $0x128] ss:$36 sps:$4 sm:$0xff]   ;;  %v17994_v9 = vld [vmem:[#allocation5 + $0xf0] ss:$36 sps:$4 sm:$0xff]   ;;  %v17999_v10 = vld [vmem:[#allocation5 + $0x13c] ss:$36 sps:$4 sm:$0xff]  }
 0x1b5   : > { %2001 = vmatprep.mubr.bf16.mxu1 %v20245_v15  ;;  %2293 = vmatprep.mubr.bf16.mxu0 %v20245_v15 }
 0x1b7   : > { %2035 = vmatpush1.bf16.msra.mxu1 %v17871_v14  ;;  %2327 = vmatpush1.bf16.msra.mxu0 %v17874_v16  ;;  %v17930_v14 = vld [vmem:[#allocation5 + $0x174] ss:$36 sps:$4 sm:$0xff]  }
 0x1b8   : > { %2036 = vmatprep.subr.bf16.mxu1 %v17879_v19  ;;  %2328 = vmatprep.subr.bf16.mxu0 %v17882_v20  ;;  %v17928_v16 = vld [vmem:[#allocation5 + $0x170] ss:$36 sps:$4 sm:$0xff]   ;;  %v17933_v19 = vld [vmem:[#allocation5 + $0x1bc] ss:$36 sps:$4 sm:$0xff]   ;;  %v20309_v20 = vpack.c.bf16 %v602_v18, %v599_v17  ;;  %v18003_v17 = vld [vmem:[#allocation5 + $0x1c8] ss:$36 sps:$4 sm:$0xff]  }
 0x1b9   : > { %v18008_v18 = vld [vmem:[#allocation5 + $0x214] ss:$36 sps:$4 sm:$0xff]  }
 0x1ba   : > { %2002 = vmatmul.mubr.bf16.gmra.mrb[4].mxu1 %v20254_v22  ;;  %2294 = vmatmul.mubr.bf16.gmra.mrb[4].mxu0 %v20254_v22 }
 0x1bb   : > { %2037 = vmatpush1.bf16.msra.mxu1 %v17877_v24  ;;  %2329 = vmatpush1.bf16.msra.mxu0 %v17880_v25  ;;  %v17934_v24 = vld [vmem:[#allocation5 + $0x200] ss:$36 sps:$4 sm:$0xff]   ;;  %v17939_v25 = vld [vmem:[#allocation5 + $0x24c] ss:$36 sps:$4 sm:$0xff]  }
 0x1bc   : > { %2038 = vmatprep.subr.bf16.mxu1 %v17885_v26  ;;  %2330 = vmatprep.subr.bf16.mxu0 %v17888_v27  ;;  %v17937_v26 = vld [vmem:[#allocation5 + $0x248] ss:$36 sps:$4 sm:$0xff]   ;;  %v17942_v27 = vld [vmem:[#allocation5 + $0x294] ss:$36 sps:$4 sm:$0xff]  }
 0x1bd   : > { %2011 = vmatprep.mubr.bf16.mxu1 %v20257_v28  ;;  %2303 = vmatprep.mubr.bf16.mxu0 %v20257_v28 }
 0x1bf   : > { %2039 = vmatpush1.bf16.msra.mxu1 %v17883_v29  ;;  %2331 = vmatpush1.bf16.msra.mxu0 %v17886_v30  ;;  %v17940_v29 = vld [vmem:[#allocation5 + $0x290] ss:$36 sps:$4 sm:$0xff]   ;;  %v17945_v30 = vld [vmem:[#allocation5 + $0x2dc] ss:$36 sps:$4 sm:$0xff]  }
 0x1c0   : > { %2040 = vmatprep.subr.bf16.mxu1 %v17891_v33  ;;  %2332 = vmatprep.subr.bf16.mxu0 %v17894_v34  ;;  %v17946_v33 = vld [vmem:[#allocation5 + $0x320] ss:$36 sps:$4 sm:$0xff]   ;;  %v17951_v34 = vld [vmem:[#allocation5 + $0x36c] ss:$36 sps:$4 sm:$0xff]  }
 0x1c2   : > { %2012 = vmatmul.mubr.bf16.gmra.mrb[8].mxu1 %v20265_v36  ;;  %2304 = vmatmul.mubr.bf16.gmra.mrb[8].mxu0 %v20265_v36 }
 0x1c3   : > { %2041 = vmatpush1.bf16.msra.mxu1 %v17889_v35  ;;  %2333 = vmatpush1.bf16.msra.mxu0 %v17892_v37  ;;  %v17949_v35 = vld [vmem:[#allocation5 + $0x368] ss:$36 sps:$4 sm:$0xff]   ;;  %v17954_v37 = vld [vmem:[#allocation5 + $0x3b4] ss:$36 sps:$4 sm:$0xff]  }
 0x1c4   : > { %2042 = vmatprep.subr.bf16.mxu1 %v17897_v40  ;;  %2334 = vmatprep.subr.bf16.mxu0 %v17900_v41  ;;  %v17955_v40 = vld [vmem:[#allocation5 + $0x3f8] ss:$36 sps:$4 sm:$0xff]   ;;  %v17960_v41 = vld [vmem:[#allocation5 + $0x444] ss:$36 sps:$4 sm:$0xff]  }
 0x1c5   : > { %2021 = vmatprep.mubr.bf16.mxu1 %v20269_v44  ;;  %2313 = vmatprep.mubr.bf16.mxu0 %v20269_v44 }
 0x1c7   : > { %2043 = vmatpush1.bf16.msra.mxu1 %v17895_v42  ;;  %2335 = vmatpush1.bf16.msra.mxu0 %v17898_v43  ;;  %v17958_v42 = vld [vmem:[#allocation5 + $0x440] ss:$36 sps:$4 sm:$0xff]   ;;  %v17963_v43 = vld [vmem:[#allocation5 + $0x48c] ss:$36 sps:$4 sm:$0xff]  }
 0x1c8   : > { %2044 = vmatprep.subr.bf16.mxu1 %v17903_v47  ;;  %2336 = vmatprep.subr.bf16.mxu0 %v17906_v48  ;;  %v17964_v47 = vld [vmem:[#allocation5 + $0x4d0] ss:$36 sps:$4 sm:$0xff]   ;;  %v17969_v48 = vld [vmem:[#allocation5 + $0x51c] ss:$36 sps:$4 sm:$0xff]  }
 0x1ca   : > { %2022 = vmatmul.mubr.bf16.gmra.mrb[12].mxu1 %v20277_v49  ;;  %2314 = vmatmul.mubr.bf16.gmra.mrb[12].mxu0 %v20277_v49 }
 0x1cb   : > { %2045 = vmatpush1.bf16.msra.mxu1 %v17901_v50  ;;  %2337 = vmatpush1.bf16.msra.mxu0 %v17904_v52  ;;  %v17967_v50 = vld [vmem:[#allocation5 + $0x518] ss:$36 sps:$4 sm:$0xff]   ;;  %v17972_v52 = vld [vmem:[#allocation5 + $0x564] ss:$36 sps:$4 sm:$0xff]  }
 0x1cc   : > { %2046 = vmatprep.subr.bf16.mxu1 %v17909_v53  ;;  %2338 = vmatprep.subr.bf16.mxu0 %v17912_v54  ;;  %v17970_v53 = vld [vmem:[#allocation5 + $0x560] ss:$36 sps:$4 sm:$0xff]   ;;  %v17975_v54 = vld [vmem:[#allocation5 + $0x5ac] ss:$36 sps:$4 sm:$0xff]  }
 0x1cd   : > { %2064 = vmatprep.mubr.bf16.mxu1 %v24423_v60  ;;  %2356 = vmatprep.mubr.bf16.mxu0 %v24423_v60 }
 0x1cf   : > { %2047 = vmatpush1.bf16.msra.mxu1 %v17907_v55  ;;  %2339 = vmatpush1.bf16.msra.mxu0 %v17910_v56  ;;  %v17973_v55 = vld [vmem:[#allocation5 + $0x5a8] ss:$36 sps:$4 sm:$0xff]   ;;  %v17978_v56 = vld [vmem:[#allocation5 + $0x5f4] ss:$36 sps:$4 sm:$0xff]  }
 0x1d0   : > { %2105 = vmatprep.subr.bf16.mxu1 %v17915_v59  ;;  %v17979_v59 = vld [vmem:[#allocation5 + $0x638] ss:$36 sps:$4 sm:$0xff]  }
 0x1d2   : > { %2065 = vmatmul.mubr.bf16.vlgmr.msra.gmra.mrb[0].mxu1 %v20285_v61  ;;  %2357 = vmatmul.mubr.bf16.vlgmr.msra.gmra.mrb[0].mxu0 %v20285_v61 }
 0x1d3   : > { %2106 = vmatpush1.bf16.msra.mxu1 %v17913_v62  ;;  %2074 = vmatprep.mubr.bf16.mxu1 %v24423_v60  ;;  %v17984_v62 = vld [vmem:[#allocation5 + $0x684] ss:$36 sps:$4 sm:$0xff]  }
 0x1d4   : > { %2107 = vmatprep.subr.bf16.mxu1 %v17918_v63  ;;  %2366 = vmatprep.mubr.bf16.mxu0 %v24423_v60  ;;  %v17982_v63 = vld [vmem:[#allocation5 + $0x680] ss:$36 sps:$4 sm:$0xff]  }
 0x1d7   : > { %2108 = vmatpush1.bf16.msra.mxu1 %v17916_v0  ;;  %v17987_v0 = vld [vmem:[#allocation5 + $0x1c] ss:$36 sps:$4 sm:$0xff]  }
 0x1d8   : > { %2109 = vmatprep.subr.bf16.mxu1 %v17921_v3  ;;  %v17988_v3 = vld [vmem:[#allocation5 + $0x60] ss:$36 sps:$4 sm:$0xff]  }
 0x1da   : > { %2075 = vmatmul.mubr.bf16.gmra.mrb[4].mxu1 %v20293_v4  ;;  %2367 = vmatmul.mubr.bf16.gmra.mrb[4].mxu0 %v20293_v4 }
 0x1db   : > { %2110 = vmatpush1.bf16.msra.mxu1 %v17919_v5  ;;  %2084 = vmatprep.mubr.bf16.mxu1 %v24423_v60  ;;  %v17993_v5 = vld [vmem:[#allocation5 + $0xac] ss:$36 sps:$4 sm:$0xff]  }
 0x1dc   : > { %2111 = vmatprep.subr.bf16.mxu1 %v17924_v6  ;;  %2376 = vmatprep.mubr.bf16.mxu0 %v24423_v60  ;;  %v17991_v6 = vld [vmem:[#allocation5 + $0xa8] ss:$36 sps:$4 sm:$0xff]  }
 0x1df   : > { %2112 = vmatpush1.bf16.msra.mxu1 %v17922_v7  ;;  %v17996_v7 = vld [vmem:[#allocation5 + $0xf4] ss:$36 sps:$4 sm:$0xff]  }
 0x1e0   : > { %2113 = vmatprep.subr.bf16.mxu1 %v17927_v11  ;;  %v17997_v11 = vld [vmem:[#allocation5 + $0x138] ss:$36 sps:$4 sm:$0xff]  }
 0x1e2   : > { %2085 = vmatmul.mubr.bf16.gmra.mrb[8].mxu1 %v20301_v12  ;;  %2377 = vmatmul.mubr.bf16.gmra.mrb[8].mxu0 %v20301_v12 }
 0x1e3   : > { %2114 = vmatpush1.bf16.msra.mxu1 %v17925_v13  ;;  %2094 = vmatprep.mubr.bf16.mxu1 %v24423_v60  ;;  %v18002_v13 = vld [vmem:[#allocation5 + $0x184] ss:$36 sps:$4 sm:$0xff]  }
 0x1e4   : > { %2115 = vmatprep.subr.bf16.mxu1 %v17930_v14  ;;  %2386 = vmatprep.mubr.bf16.mxu0 %v24423_v60  ;;  %v18000_v14 = vld [vmem:[#allocation5 + $0x180] ss:$36 sps:$4 sm:$0xff]  }
 0x1e7   : > { %2116 = vmatpush1.bf16.msra.mxu1 %v17928_v16  ;;  %v18005_v16 = vld [vmem:[#allocation5 + $0x1cc] ss:$36 sps:$4 sm:$0xff]  }
 0x1e8   : > { %2117 = vmatprep.subr.bf16.mxu1 %v17933_v19  ;;  %v18006_v19 = vld [vmem:[#allocation5 + $0x210] ss:$36 sps:$4 sm:$0xff]  }
 0x1ea   : > { %2095 = vmatmul.mubr.bf16.gmra.mrb[12].mxu1 %v20309_v20  ;;  %2387 = vmatmul.mubr.bf16.gmra.mrb[12].mxu0 %v20309_v20 }
 0x1eb   : > { %2118 = vmatpush1.bf16.msra.mxu1 %v17931_v21  ;;  %2137 = vmatprep.mubr.bf16.mxu1 %v20235_v51  ;;  %v18011_v21 = vld [vmem:[#allocation5 + $0x25c] ss:$36 sps:$4 sm:$0xff]  }
 0x1ec   : > { %2119 = vmatprep.subr.bf16.mxu1 %v17936_v23  ;;  %2575 = vmatprep.mubr.bf16.mxu0 %v20235_v51  ;;  %v18009_v23 = vld [vmem:[#allocation5 + $0x258] ss:$36 sps:$4 sm:$0xff]  }
 0x1ef   : > { %2120 = vmatpush1.bf16.msra.mxu1 %v17934_v24  ;;  %v18014_v24 = vld [vmem:[#allocation5 + $0x2a4] ss:$36 sps:$4 sm:$0xff]  }
 0x1f0   : > { %2121 = vmatprep.subr.bf16.mxu1 %v17939_v25  ;;  %v18012_v25 = vld [vmem:[#allocation5 + $0x2a0] ss:$36 sps:$4 sm:$0xff]  }
 0x1f3   : > { %2122 = vmatpush1.bf16.msra.mxu1 %v17937_v26  ;;  %v18017_v26 = vld [vmem:[#allocation5 + $0x2ec] ss:$36 sps:$4 sm:$0xff]  }
 0x1f4   : > { %2123 = vmatprep.subr.bf16.mxu1 %v17942_v27  ;;  %v18015_v27 = vld [vmem:[#allocation5 + $0x2e8] ss:$36 sps:$4 sm:$0xff]  }
 0x1f7   : > { %2124 = vmatpush1.bf16.msra.mxu1 %v17940_v29  ;;  %v18020_v29 = vld [vmem:[#allocation5 + $0x334] ss:$36 sps:$4 sm:$0xff]  }
 0x1f8   : > { %2125 = vmatprep.subr.bf16.mxu1 %v17945_v30  ;;  %v18018_v30 = vld [vmem:[#allocation5 + $0x330] ss:$36 sps:$4 sm:$0xff]  }
 0x1fb   : > { %2126 = vmatpush1.bf16.msra.mxu1 %v17943_v31  ;;  %v18023_v31 = vld [vmem:[#allocation5 + $0x37c] ss:$36 sps:$4 sm:$0xff]  }
 0x1fc   : > { %2127 = vmatprep.subr.bf16.mxu1 %v17948_v32  ;;  %v18021_v32 = vld [vmem:[#allocation5 + $0x378] ss:$36 sps:$4 sm:$0xff]  }
 0x1ff   : > { %2128 = vmatpush1.bf16.msra.mxu1 %v17946_v33  ;;  %v18026_v33 = vld [vmem:[#allocation5 + $0x3c4] ss:$36 sps:$4 sm:$0xff]  }
 0x200   : > { %2129 = vmatprep.subr.bf16.mxu1 %v17951_v34  ;;  %v18029_v34 = vld [vmem:[#allocation5 + $0x40c] ss:$36 sps:$4 sm:$0xff]  }
 0x203   : > { %2130 = vmatpush1.bf16.msra.mxu1 %v17949_v35  ;;  %v18065_v35 = vld [vmem:[#allocation5 + $0x260] ss:$36 sps:$4 sm:$0xff]  }
 0x204   : > { %2131 = vmatprep.subr.bf16.mxu1 %v17954_v37  ;;  %v18066_v37 = vld [vmem:[#allocation5 + $0x20] ss:$36 sps:$4 sm:$0xff]   ;;  %16270 = vmatprep.subr.bf16.mxu0 %v18065_v35 }
 0x205   : > { %16271 = vmatpush3.bf16.msra.mxu0 %v18066_v37 }
 0x207   : > { %2132 = vmatpush1.bf16.msra.mxu1 %v17952_v38  ;;  %v18027_v38 = vld [vmem:[#allocation5 + $0x408] ss:$36 sps:$4 sm:$0xff]  }
 0x208   : > { %2133 = vmatprep.subr.bf16.mxu1 %v17957_v39  ;;  %v18032_v39 = vld [vmem:[#allocation5 + $0x454] ss:$36 sps:$4 sm:$0xff]  }
 0x20b   : > { %2134 = vmatpush1.bf16.msra.mxu1 %v17955_v40  ;;  %v18067_v40 = vld [vmem:[#allocation5 + $0x2a8] ss:$36 sps:$4 sm:$0xff]  }
 0x20c   : > { %2135 = vmatprep.subr.bf16.mxu1 %v17960_v41  ;;  %v18068_v41 = vld [vmem:[#allocation5 + $0x68] ss:$36 sps:$4 sm:$0xff]   ;;  %16272 = vmatprep.subr.bf16.mxu0 %v18067_v40 }
 0x20d   : > { %16273 = vmatpush3.bf16.msra.mxu0 %v18068_v41 }
 0x20f   : > { %2136 = vmatpush1.bf16.msra.mxu1 %v17958_v42  ;;  %v18030_v42 = vld [vmem:[#allocation5 + $0x450] ss:$36 sps:$4 sm:$0xff]  }
 0x210   : > { %2178 = vmatprep.subr.bf16.mxu1 %v17963_v43  ;;  %v18035_v43 = vld [vmem:[#allocation5 + $0x49c] ss:$36 sps:$4 sm:$0xff]  }
 0x212   : > { %2138 = vmatmul.mubr.bf16.vlgmr.msra.gmra.mrb[16].mxu1 %v20241_v8 }
 0x213   : > { %2179 = vmatpush1.bf16.msra.mxu1 %v17961_v45  ;;  %2147 = vmatprep.mubr.bf16.mxu1 %v20245_v15  ;;  %v18069_v45 = vld [vmem:[#allocation5 + $0x2f0] ss:$36 sps:$4 sm:$0xff]  }
 0x214   : > { %2180 = vmatprep.subr.bf16.mxu1 %v17966_v46  ;;  %v18070_v46 = vld [vmem:[#allocation5 + $0xb0] ss:$36 sps:$4 sm:$0xff]   ;;  %16274 = vmatprep.subr.bf16.mxu0 %v18069_v45 }
 0x215   : > { %16275 = vmatpush3.bf16.msra.mxu0 %v18070_v46 }
 0x217   : > { %2181 = vmatpush1.bf16.msra.mxu1 %v17964_v47  ;;  %v18033_v47 = vld [vmem:[#allocation5 + $0x498] ss:$36 sps:$4 sm:$0xff]  }
 0x218   : > { %2182 = vmatprep.subr.bf16.mxu1 %v17969_v48  ;;  %v18038_v48 = vld [vmem:[#allocation5 + $0x4e4] ss:$36 sps:$4 sm:$0xff]  }
 0x21a   : > { %2148 = vmatmul.mubr.bf16.gmra.mrb[20].mxu1 %v20254_v22 }
 0x21b   : > { %2183 = vmatpush1.bf16.msra.mxu1 %v17967_v50  ;;  %2157 = vmatprep.mubr.bf16.mxu1 %v20257_v28  ;;  %v18071_v50 = vld [vmem:[#allocation5 + $0x338] ss:$36 sps:$4 sm:$0xff]  }
 0x21c   : > { %2184 = vmatprep.subr.bf16.mxu1 %v17972_v52  ;;  %v18072_v52 = vld [vmem:[#allocation5 + $0xf8] ss:$36 sps:$4 sm:$0xff]   ;;  %16276 = vmatprep.subr.bf16.mxu0 %v18071_v50 }
 0x21d   : > { %16277 = vmatpush3.bf16.msra.mxu0 %v18072_v52 }
 0x21f   : > { %2185 = vmatpush1.bf16.msra.mxu1 %v17970_v53  ;;  %v18036_v53 = vld [vmem:[#allocation5 + $0x4e0] ss:$36 sps:$4 sm:$0xff]  }
 0x220   : > { %2186 = vmatprep.subr.bf16.mxu1 %v17975_v54  ;;  %v18041_v54 = vld [vmem:[#allocation5 + $0x52c] ss:$36 sps:$4 sm:$0xff]  }
 0x222   : > { %2158 = vmatmul.mubr.bf16.gmra.mrb[24].mxu1 %v20265_v36 }
 0x223   : > { %2187 = vmatpush1.bf16.msra.mxu1 %v17973_v55  ;;  %2167 = vmatprep.mubr.bf16.mxu1 %v20269_v44  ;;  %v18073_v55 = vld [vmem:[#allocation5 + $0x380] ss:$36 sps:$4 sm:$0xff]  }
 0x224   : > { %2188 = vmatprep.subr.bf16.mxu1 %v17978_v56  ;;  %v18074_v56 = vld [vmem:[#allocation5 + $0x140] ss:$36 sps:$4 sm:$0xff]   ;;  %16278 = vmatprep.subr.bf16.mxu0 %v18073_v55 }
 0x225   : > { %16279 = vmatpush3.bf16.msra.mxu0 %v18074_v56 }
 0x227   : > { %2189 = vmatpush1.bf16.msra.mxu1 %v17976_v57  ;;  %v18039_v57 = vld [vmem:[#allocation5 + $0x528] ss:$36 sps:$4 sm:$0xff]  }
 0x228   : > { %2190 = vmatprep.subr.bf16.mxu1 %v17981_v58  ;;  %v18044_v58 = vld [vmem:[#allocation5 + $0x574] ss:$36 sps:$4 sm:$0xff]  }
 0x22a   : > { %2168 = vmatmul.mubr.bf16.gmra.mrb[28].mxu1 %v20277_v49 }
 0x22b   : > { %2191 = vmatpush1.bf16.msra.mxu1 %v17979_v59  ;;  %2210 = vmatprep.mubr.bf16.mxu1 %v24423_v60  ;;  %v18075_v59 = vld [vmem:[#allocation5 + $0x3c8] ss:$36 sps:$4 sm:$0xff]  }
 0x22c   : > { %2192 = vmatprep.subr.bf16.mxu1 %v17984_v62  ;;  %v18076_v62 = vld [vmem:[#allocation5 + $0x188] ss:$36 sps:$4 sm:$0xff]   ;;  %16280 = vmatprep.subr.bf16.mxu0 %v18075_v59 }
 0x22d   : > { %16281 = vmatpush3.bf16.msra.mxu0 %v18076_v62 }
 0x22f   : > { %2193 = vmatpush1.bf16.msra.mxu1 %v17982_v63  ;;  %v18042_v63 = vld [vmem:[#allocation5 + $0x570] ss:$36 sps:$4 sm:$0xff]  }
 0x230   : > { %2397 = vmatprep.subr.bf16.mxu1 %v17987_v0  ;;  %v18047_v0 = vld [vmem:[#allocation5 + $0x5bc] ss:$36 sps:$4 sm:$0xff]  }
 0x232   : > { %2211 = vmatmul.mubr.bf16.vlgmr.msra.gmra.mrb[16].mxu1 %v20285_v61 }
 0x233   : > { %2398 = vmatpush1.bf16.msra.mxu1 %v17985_v1  ;;  %2220 = vmatprep.mubr.bf16.mxu1 %v24423_v60  ;;  %v18077_v1 = vld [vmem:[#allocation5 + $0x410] ss:$36 sps:$4 sm:$0xff]  }
 0x234   : > { %2399 = vmatprep.subr.bf16.mxu1 %v17990_v2  ;;  %v18078_v2 = vld [vmem:[#allocation5 + $0x1d0] ss:$36 sps:$4 sm:$0xff]   ;;  %16282 = vmatprep.subr.bf16.mxu0 %v18077_v1 }
 0x235   : > { %16283 = vmatpush3.bf16.msra.mxu0 %v18078_v2 }
 0x237   : > { %2400 = vmatpush1.bf16.msra.mxu1 %v17988_v3  ;;  %v18045_v3 = vld [vmem:[#allocation5 + $0x5b8] ss:$36 sps:$4 sm:$0xff]  }
 0x238   : > { %2401 = vmatprep.subr.bf16.mxu1 %v17993_v5  ;;  %v18050_v5 = vld [vmem:[#allocation5 + $0x604] ss:$36 sps:$4 sm:$0xff]  }
 0x23a   : > { %2221 = vmatmul.mubr.bf16.gmra.mrb[20].mxu1 %v20293_v4 }
 0x23b   : > { %2402 = vmatpush1.bf16.msra.mxu1 %v17991_v6  ;;  %2230 = vmatprep.mubr.bf16.mxu1 %v24423_v60  ;;  %v18079_v6 = vld [vmem:[#allocation5 + $0x458] ss:$36 sps:$4 sm:$0xff]  }
 0x23c   : > { %2403 = vmatprep.subr.bf16.mxu1 %v17996_v7  ;;  %v18080_v7 = vld [vmem:[#allocation5 + $0x218] ss:$36 sps:$4 sm:$0xff]   ;;  %16284 = vmatprep.subr.bf16.mxu0 %v18079_v6 }
 0x23d   : > { %16285 = vmatpush3.bf16.msra.mxu0 %v18080_v7 }
 0x23f   : > { %2404 = vmatpush1.bf16.msra.mxu1 %v17994_v9  ;;  %v18048_v9 = vld [vmem:[#allocation5 + $0x600] ss:$36 sps:$4 sm:$0xff]  }
 0x240   : > { %2405 = vmatprep.subr.bf16.mxu1 %v17999_v10  ;;  %v18053_v10 = vld [vmem:[#allocation5 + $0x64c] ss:$36 sps:$4 sm:$0xff]   ;;  %2576 = vmatmul.mubr.bf16.vlgmr.msra.gmra.mrb[16].mxu0 %v20241_v8 }
 0x241   : > { %2583 = vmatprep.mubr.bf16.mxu0 %v20245_v15 }
 0x242   : > { %2231 = vmatmul.mubr.bf16.gmra.mrb[24].mxu1 %v20301_v12 }
 0x243   : > { %2406 = vmatpush1.bf16.msra.mxu1 %v17997_v11  ;;  %2240 = vmatprep.mubr.bf16.mxu1 %v24423_v60  ;;  %v18051_v11 = vld [vmem:[#allocation5 + $0x648] ss:$36 sps:$4 sm:$0xff]  }
 0x244   : > { %2407 = vmatprep.subr.bf16.mxu1 %v18002_v13  ;;  %v18056_v13 = vld [vmem:[#allocation5 + $0x694] ss:$36 sps:$4 sm:$0xff]  }
 0x247   : > { %2408 = vmatpush1.bf16.msra.mxu1 %v18000_v14  ;;  %v18054_v14 = vld [vmem:[#allocation5 + $0x690] ss:$36 sps:$4 sm:$0xff]  }
 0x248   : > { %2409 = vmatprep.subr.bf16.mxu1 %v18005_v16  ;;  %v18057_v16 = vld [vmem:[#allocation5 + $0x4a0] ss:$36 sps:$4 sm:$0xff]   ;;  %2584 = vmatmul.mubr.bf16.gmra.mrb[20].mxu0 %v20254_v22 }
 0x249   : > { %2591 = vmatprep.mubr.bf16.mxu0 %v20257_v28 }
 0x24a   : > { %2241 = vmatmul.mubr.bf16.gmra.mrb[28].mxu1 %v20309_v20 }
 0x24b   : > { %2410 = vmatpush1.bf16.msra.mxu1 %v18003_v17  ;;  %2429 = vmatprep.mubr.bf16.mxu1 %v20235_v51  ;;  %v18024_v51 = vld [vmem:[#allocation5 + $0x3c0] ss:$36 sps:$4 sm:$0xff]   ;;  %v18058_v17 = vld [vmem:[#allocation5 + $0x4e8] ss:$36 sps:$4 sm:$0xff]  }
 0x24c   : > { %2411 = vmatprep.subr.bf16.mxu1 %v18008_v18 }
 0x24f   : > { %2412 = vmatpush1.bf16.msra.mxu1 %v18006_v19 }
 0x250   : > { %2413 = vmatprep.subr.bf16.mxu1 %v18011_v21  ;;  %2592 = vmatmul.mubr.bf16.gmra.mrb[24].mxu0 %v20265_v36 }
 0x251   : > { %2599 = vmatprep.mubr.bf16.mxu0 %v20269_v44 }
 0x253   : > { %2414 = vmatpush1.bf16.msra.mxu1 %v18009_v23 }
 0x254   : > { %2415 = vmatprep.subr.bf16.mxu1 %v18014_v24 }
 0x257   : > { %2416 = vmatpush1.bf16.msra.mxu1 %v18012_v25 }
 0x258   : > { %2417 = vmatprep.subr.bf16.mxu1 %v18017_v26  ;;  %2600 = vmatmul.mubr.bf16.gmra.mrb[28].mxu0 %v20277_v49 }
 0x25b   : > { %2418 = vmatpush1.bf16.msra.mxu1 %v18015_v27 }
 0x25c   : > { %2419 = vmatprep.subr.bf16.mxu1 %v18020_v29 }
 0x25f   : > { %2420 = vmatpush1.bf16.msra.mxu1 %v18018_v30 }
 0x260   : > { %2421 = vmatprep.subr.bf16.mxu1 %v18023_v31 }
 0x263   : > { %2422 = vmatpush1.bf16.msra.mxu1 %v18021_v32 }
 0x264   : > { %2423 = vmatprep.subr.bf16.mxu1 %v18026_v33 }
 0x267   : > { %2424 = vmatpush1.bf16.msra.mxu1 %v18024_v51 }
 0x268   : > { %2425 = vmatprep.subr.bf16.mxu1 %v18029_v34 }
 0x26b   : > { %2426 = vmatpush1.bf16.msra.mxu1 %v18027_v38 }
 0x26c   : > { %2427 = vmatprep.subr.bf16.mxu1 %v18032_v39 }
 0x26f   : > { %2428 = vmatpush1.bf16.msra.mxu1 %v18030_v42 }
 0x270   : > { %2470 = vmatprep.subr.bf16.mxu1 %v18035_v43 }
 0x272   : > { %2430 = vmatmul.mubr.bf16.vlgmr.msra.gmra.mrb[32].mxu1 %v20241_v8  ;;  %v18059_v8 = vld [vmem:[#allocation5 + $0x530] ss:$36 sps:$4 sm:$0xff]  }
 0x273   : > { %2471 = vmatpush1.bf16.msra.mxu1 %v18033_v47  ;;  %2439 = vmatprep.mubr.bf16.mxu1 %v20245_v15  ;;  %v18060_v15 = vld [vmem:[#allocation5 + $0x578] ss:$36 sps:$4 sm:$0xff]  }
 0x274   : > { %2472 = vmatprep.subr.bf16.mxu1 %v18038_v48 }
 0x277   : > { %2473 = vmatpush1.bf16.msra.mxu1 %v18036_v53 }
 0x278   : > { %2474 = vmatprep.subr.bf16.mxu1 %v18041_v54 }
 0x27a   : > { %2440 = vmatmul.mubr.bf16.gmra.mrb[36].mxu1 %v20254_v22  ;;  %v18061_v22 = vld [vmem:[#allocation5 + $0x5c0] ss:$36 sps:$4 sm:$0xff]  }
 0x27b   : > { %2475 = vmatpush1.bf16.msra.mxu1 %v18039_v57  ;;  %2449 = vmatprep.mubr.bf16.mxu1 %v20257_v28  ;;  %v18062_v28 = vld [vmem:[#allocation5 + $0x608] ss:$36 sps:$4 sm:$0xff]  }
 0x27c   : > { %2476 = vmatprep.subr.bf16.mxu1 %v18044_v58 }
 0x27f   : > { %2477 = vmatpush1.bf16.msra.mxu1 %v18042_v63 }
 0x280   : > { %2478 = vmatprep.subr.bf16.mxu1 %v18047_v0 }
 0x282   : > { %2450 = vmatmul.mubr.bf16.gmra.mrb[40].mxu1 %v20265_v36  ;;  %v18063_v36 = vld [vmem:[#allocation5 + $0x650] ss:$36 sps:$4 sm:$0xff]  }
 0x283   : > { %2479 = vmatpush1.bf16.msra.mxu1 %v18045_v3  ;;  %2459 = vmatprep.mubr.bf16.mxu1 %v20269_v44 }
 0x284   : > { %2480 = vmatprep.subr.bf16.mxu1 %v18050_v5 }
 0x287   : > { %2481 = vmatpush1.bf16.msra.mxu1 %v18048_v9 }
 0x288   : > { %2482 = vmatprep.subr.bf16.mxu1 %v18053_v10 }
 0x28a   : > { %2460 = vmatmul.mubr.bf16.gmra.mrb[44].mxu1 %v20277_v49  ;;  %v18064_v49 = vld [vmem:[#allocation5 + $0x698] ss:$36 sps:$4 sm:$0xff]  }
 0x28b   : > { %2483 = vmatpush1.bf16.msra.mxu1 %v18051_v11  ;;  %2502 = vmatprep.mubr.bf16.mxu1 %v24423_v60 }
 0x28c   : > { %2484 = vmatprep.subr.bf16.mxu1 %v18056_v13 }
 0x28f   : > { %2485 = vmatpush1.bf16.msra.mxu1 %v18054_v14 }
 0x290   : > { %16726 = vmatprep.subr.bf16.mxu1 %v18057_v16 }
 0x292   : > { %2503 = vmatmul.mubr.bf16.vlgmr.msra.gmra.mrb[32].mxu1 %v20285_v61 }
 0x293   : > { %16727 = vmatpush3.bf16.msra.mxu1 %v18057_v16  ;;  %2512 = vmatprep.mubr.bf16.mxu1 %v24423_v60 }
 0x294   : > { %16728 = vmatprep.subr.bf16.mxu1 %v18058_v17 }
 0x297   : > { %16729 = vmatpush3.bf16.msra.mxu1 %v18058_v17 }
 0x298   : > { %16730 = vmatprep.subr.bf16.mxu1 %v18059_v8 }
 0x29a   : > { %2513 = vmatmul.mubr.bf16.gmra.mrb[36].mxu1 %v20293_v4 }
 0x29b   : > { %16731 = vmatpush3.bf16.msra.mxu1 %v18059_v8  ;;  %2522 = vmatprep.mubr.bf16.mxu1 %v24423_v60 }
 0x29c   : > { %16732 = vmatprep.subr.bf16.mxu1 %v18060_v15 }
 0x29f   : > { %16733 = vmatpush3.bf16.msra.mxu1 %v18060_v15 }
 0x2a0   : > { %16734 = vmatprep.subr.bf16.mxu1 %v18061_v22 }
 0x2a2   : > { %2523 = vmatmul.mubr.bf16.gmra.mrb[40].mxu1 %v20301_v12 }
 0x2a3   : > { %16735 = vmatpush3.bf16.msra.mxu1 %v18061_v22  ;;  %2532 = vmatprep.mubr.bf16.mxu1 %v24423_v60 }
 0x2a4   : > { %16736 = vmatprep.subr.bf16.mxu1 %v18062_v28 }
 0x2a5   : > { %v2066_v44 = vpop.f32.mrb[0].mxu1  ;;  %v2358_v18 = vpop.f32.mrb[0].mxu0 }
 0x2a6   : > { %v2673_v19 = vmul.f32 0.14433756, %v2066_v44  ;;  %v2068_v21 = vpop.f32.mrb[1].mxu1  ;;  %v2360_v23 = vpop.f32.mrb[1].mxu0 }
 0x2a7   : > { %v2674_v24 = vmul.f32 0.14433756, %v2068_v21  ;;  %v2070_v25 = vpop.f32.mrb[2].mxu1  ;;  %v2362_v26 = vpop.f32.mrb[2].mxu0  ;;  %16737 = vmatpush3.bf16.msra.mxu1 %v18062_v28 }
 0x2a8   : > { %v2676_v27 = vmul.f32 0.14433756, %v2070_v25  ;;  %v2804_v29 = vpack.c.bf16 %v2362_v26, %v2358_v18  ;;  %v2072_v30 = vpop.f32.mrb[3].mxu1  ;;  %v2364_v31 = vpop.f32.mrb[3].mxu0  ;;  %16738 = vmatprep.subr.bf16.mxu1 %v18063_v36 }
 0x2a9   : > { %v2677_v32 = vmul.f32 0.14433756, %v2072_v30  ;;  %v2805_v33 = vpack.c.bf16 %v2364_v31, %v2360_v23 }
 0x2aa   : > { %2859 = vrot.lane.b32.xlu0 %v2804_v29, %s19756_s0  ;;  %2837 = vrot.lane.b32.xlu1 %v2804_v29, %s19757_s25  ;;  %v2697_v51 = vpack.c.bf16 %v2676_v27, %v2673_v19 }
 0x2ab   : > { %v20354_v34 = vpack.c.bf16 %v2677_v32, %v2674_v24  ;;  %2533 = vmatmul.mubr.bf16.gmra.mrb[44].mxu1 %v20309_v20 }
 0x2ac   : > { %16739 = vmatpush3.bf16.msra.mxu1 %v18063_v36  ;;  %16742 = vmatprep.mubr.bf16.mxu1 %v20285_v61 }
 0x2ad   : > { %v2076_v35 = vpop.f32.mrb[4].mxu1  ;;  %v2368_v37 = vpop.f32.mrb[4].mxu0  ;;  %16740 = vmatprep.subr.bf16.mxu1 %v18064_v49 }
 0x2ae   : > { %v2679_v38 = vmul.f32 0.14433756, %v2076_v35  ;;  %2887 = vrot.lane.b32.xlu0 %v2804_v29, %s19758_s28  ;;  %2889 = vrot.lane.b32.xlu1 %v2805_v33, %s19758_s28  ;;  %v2078_v39 = vpop.f32.mrb[5].mxu1  ;;  %v2370_v40 = vpop.f32.mrb[5].mxu0 }
 0x2af   : > { %v2680_v41 = vmul.f32 0.14433756, %v2078_v39  ;;  %v2080_v42 = vpop.f32.mrb[6].mxu1  ;;  %v2372_v43 = vpop.f32.mrb[6].mxu0 }
 0x2b0   : > { %v2682_v45 = vmul.f32 0.14433756, %v2080_v42  ;;  %v20360_v46 = vpack.c.bf16 %v2372_v43, %v2368_v37  ;;  %16741 = vmatpush3.bf16.msra.mxu1 %v18064_v49  ;;  %v2082_v47 = vpop.f32.mrb[7].mxu1  ;;  %v2374_v61 = vpop.f32.mrb[7].mxu0 }
 0x2b1   : > { %v2683_v48 = vmul.f32 0.14433756, %v2082_v47  ;;  %v2808_v50 = vpack.c.bf16 %v2374_v61, %v2370_v40 }
 0x2b2   : > { %2871 = vrot.lane.b32.xlu0 %v2804_v29, %s19759_s29  ;;  %2923 = vrot.lane.b32.xlu1 %v2805_v33, %s19760_s27  ;;  %v20364_v52 = vpack.c.bf16 %v2682_v45, %v2679_v38 }
 0x2b3   : > { %v20366_v53 = vpack.c.bf16 %v2683_v48, %v2680_v41  ;;  %16743 = vmatmul.mubr.bf16.vlgmr.msra.gmra.mrb[48].mxu1 %v20293_v4 }
 0x2b4   : > { %16746 = vmatprep.mubr.bf16.mxu1 %v20301_v12 }
 0x2b5   : > { %v2086_v54 = vpop.f32.mrb[8].mxu1  ;;  %v2378_v55 = vpop.f32.mrb[8].mxu0 }
 0x2b6   : > { %v2685_v56 = vmul.f32 0.14433756, %v2086_v54  ;;  %2911 = vrot.lane.b32.xlu0 %v2805_v33, %s19761_s2  ;;  %v2380_v57 = vpop.f32.mrb[9].mxu0  ;;  %2727 = vrot.lane.b32.xlu1 %v20354_v34, %s19757_s25  ;;  %v2088_v58 = vpop.f32.mrb[9].mxu1 }
 0x2b7   : > { %v2686_v59 = vmul.f32 0.14433756, %v2088_v58  ;;  %v2090_v62 = vpop.f32.mrb[10].mxu1  ;;  %v2382_v63 = vpop.f32.mrb[10].mxu0 }
 0x2b8   : > { %v2688_v0 = vmul.f32 0.14433756, %v2090_v62  ;;  %v2810_v1 = vpack.c.bf16 %v2382_v63, %v2378_v55  ;;  %v2092_v4 = vpop.f32.mrb[11].mxu1  ;;  %v2384_v2 = vpop.f32.mrb[11].mxu0 }
 0x2b9   : > { %v2689_v12 = vmul.f32 0.14433756, %v2092_v4  ;;  %v2811_v3 = vpack.c.bf16 %v2384_v2, %v2380_v57 }
 0x2ba   : > { %2713 = vrot.lane.b32.xlu0 %v2697_v51, %s19762_s1  ;;  %2861 = vrot.lane.b32.xlu1 %v20360_v46, %s19756_s0  ;;  %v20376_v5 = vpack.c.bf16 %v2688_v0, %v2685_v56 }
 0x2bb   : > { %v2704_v6 = vpack.c.bf16 %v2689_v12, %v2686_v59  ;;  %16747 = vmatmul.mubr.bf16.gmra.mrb[52].mxu1 %v20309_v20 }
 0x2bc   : > { %16756 = vmatprep.mubr.msk.bf16.mxu1 %vm3195_vm0, %v2697_v51 }
 0x2bd   : > { %v2096_v7 = vpop.f32.mrb[12].mxu1  ;;  %v2388_v9 = vpop.f32.mrb[12].mxu0 }
 0x2be   : > { %v2691_v10 = vmul.f32 0.14433756, %v2096_v7  ;;  %v2390_v11 = vpop.f32.mrb[13].mxu0  ;;  %2725 = vrot.lane.b32.xlu0 %v2697_v51, %s19757_s25  ;;  %2873 = vrot.lane.b32.xlu1 %v20360_v46, %s19759_s29  ;;  %v2098_v13 = vpop.f32.mrb[13].mxu1 }
 0x2bf   : > { %v2692_v14 = vmul.f32 0.14433756, %v2098_v13  ;;  %v2100_v16 = vpop.f32.mrb[14].mxu1  ;;  %v2392_v17 = vpop.f32.mrb[14].mxu0 }
 0x2c0   : > { %v2694_v8 = vmul.f32 0.14433756, %v2100_v16  ;;  %v2813_v15 = vpack.c.bf16 %v2392_v17, %v2388_v9  ;;  %v2102_v22 = vpop.f32.mrb[15].mxu1  ;;  %v2394_v28 = vpop.f32.mrb[15].mxu0 }
 0x2c1   : > { %v2695_v20 = vmul.f32 0.14433756, %v2102_v22  ;;  %v2814_v36 = vpack.c.bf16 %v2394_v28, %v2390_v11 }
 0x2c2   : > { %2746 = vrot.lane.b32.xlu0 %v20354_v34, %s19756_s0  ;;  %2893 = vrot.lane.b32.xlu1 %v2808_v50, %s19758_s28  ;;  %v20386_v44 = vpack.c.bf16 %v2694_v8, %v2691_v10 }
 0x2c3   : > { %v20388_v18 = vpack.c.bf16 %v2695_v20, %v2692_v14 }
 0x2c6   : > { %2766 = vrot.lane.b32.xlu0 %v20354_v34, %s19758_s28  ;;  %2925 = vrot.lane.b32.xlu1 %v2808_v50, %s19760_s27 }
 0x2ca   : > { %2754 = vrot.lane.b32.xlu0 %v20354_v34, %s19759_s29  ;;  %2715 = vrot.lane.b32.xlu1 %v20364_v52, %s19762_s1 }
 0x2ce   : > { %2841 = vrot.lane.b32.xlu0 %v20360_v46, %s19757_s25  ;;  %2731 = vrot.lane.b32.xlu1 %v20366_v53, %s19757_s25 }
 0x2d2   : > { %2891 = vrot.lane.b32.xlu0 %v20360_v46, %s19758_s28  ;;  %2748 = vrot.lane.b32.xlu1 %v20366_v53, %s19756_s0 }
 0x2d6   : > { %2913 = vrot.lane.b32.xlu0 %v2808_v50, %s19761_s2  ;;  %2845 = vrot.lane.b32.xlu1 %v2810_v1, %s19757_s25 }
 0x2da   : > { %2729 = vrot.lane.b32.xlu0 %v20364_v52, %s19757_s25  ;;  %2897 = vrot.lane.b32.xlu1 %v2811_v3, %s19758_s28 }
 0x2de   : > { %2863 = vrot.lane.b32.xlu0 %v2810_v1, %s19756_s0  ;;  %2927 = vrot.lane.b32.xlu1 %v2811_v3, %s19760_s27 }
 0x2e2   : > { %2895 = vrot.lane.b32.xlu0 %v2810_v1, %s19758_s28  ;;  %2735 = vrot.lane.b32.xlu1 %v2704_v6, %s19757_s25 }
 0x2e6   : > { %2875 = vrot.lane.b32.xlu0 %v2810_v1, %s19759_s29  ;;  %2865 = vrot.lane.b32.xlu1 %v2813_v15, %s19756_s0 }
 0x2ea   : > { %2915 = vrot.lane.b32.xlu0 %v2811_v3, %s19761_s2  ;;  %2899 = vrot.lane.b32.xlu1 %v2813_v15, %s19758_s28 }
 0x2ee   : > { %2717 = vrot.lane.b32.xlu0 %v20376_v5, %s19762_s1  ;;  %2877 = vrot.lane.b32.xlu1 %v2813_v15, %s19759_s29 }
 0x2f2   : > { %2733 = vrot.lane.b32.xlu0 %v20376_v5, %s19757_s25  ;;  %2929 = vrot.lane.b32.xlu1 %v2814_v36, %s19760_s27 }
 0x2f6   : > { %2750 = vrot.lane.b32.xlu0 %v2704_v6, %s19756_s0  ;;  %2719 = vrot.lane.b32.xlu1 %v20386_v44, %s19762_s1 }
 0x2fa   : > { %2774 = vrot.lane.b32.xlu0 %v2704_v6, %s19758_s28 }
 0x2fe   : > { %2758 = vrot.lane.b32.xlu0 %v2704_v6, %s19759_s29 }
 0x302   : > { %2849 = vrot.lane.b32.xlu0 %v2813_v15, %s19757_s25 }
 0x305   : > { %v2212_v19 = vpop.f32.mrb[16].mxu1 }
 0x306   : > { %2901 = vrot.lane.b32.xlu0 %v2814_v36, %s19758_s28  ;;  %v2214_v21 = vpop.f32.mrb[17].mxu1  ;;  %v2675_v23 = vmul.f32 0.14433756, %v2212_v19 }
 0x307   : > { %v2216_v24 = vpop.f32.mrb[18].mxu1 }
 0x308   : > { %v2678_v25 = vmul.f32 0.14433756, %v2216_v24  ;;  %v2218_v26 = vpop.f32.mrb[19].mxu1 }
 0x309   : > { %v20431_v49 = vpack.c.bf16 %v2218_v26, %v2214_v21 }
 0x30a   : > { %2917 = vrot.lane.b32.xlu0 %v2814_v36, %s19761_s2  ;;  %v20434_v27 = vpack.c.bf16 %v2678_v25, %v2675_v23 }
 0x30d   : > { %v2222_v29 = vpop.f32.mrb[20].mxu1 }
 0x30e   : > { %2737 = vrot.lane.b32.xlu0 %v20386_v44, %s19757_s25  ;;  %v2224_v30 = vpop.f32.mrb[21].mxu1  ;;  %v2681_v31 = vmul.f32 0.14433756, %v2222_v29 }
 0x30f   : > { %v2226_v32 = vpop.f32.mrb[22].mxu1 }
 0x310   : > { %v2684_v33 = vmul.f32 0.14433756, %v2226_v32  ;;  %v2228_v51 = vpop.f32.mrb[23].mxu1 }
 0x311   : > { %v2806_v34 = vpack.c.bf16 %v2228_v51, %v2224_v30 }
 0x312   : > { %2819 = vrot.lane.b32.xlu0 %v20431_v49, %s19762_s1  ;;  %v20440_v35 = vpack.c.bf16 %v2684_v33, %v2681_v31 }
 0x313   : > { %2839 = vrot.lane.b32.xlu1 %v2806_v34, %s19757_s25  ;;  %v16286_v25 = vpop.f32.mrb[16].mxu0 }
 0x314   : > { %v16287_v30 = vpop.f32.mrb[17].mxu0 }
 0x315   : > { %v2232_v37 = vpop.f32.mrb[24].mxu1  ;;  %v16289_v31 = vpop.f32.mrb[18].mxu0 }
 0x316   : > { %2835 = vrot.lane.b32.xlu0 %v20431_v49, %s19757_s25  ;;  %v2234_v38 = vpop.f32.mrb[25].mxu1  ;;  %v2687_v40 = vmul.f32 0.14433756, %v2232_v37  ;;  %v16290_v32 = vpop.f32.mrb[19].mxu0 }
 0x317   : > { %v2236_v39 = vpop.f32.mrb[26].mxu1 }
 0x318   : > { %v2690_v41 = vmul.f32 0.14433756, %v2236_v39  ;;  %v2238_v42 = vpop.f32.mrb[27].mxu1 }
 0x319   : > { %v2809_v43 = vpack.c.bf16 %v2238_v42, %v2234_v38 }
 0x31a   : > { %2787 = vrot.lane.b32.xlu0 %v20434_v27, %s19761_s2  ;;  %v20447_v45 = vpack.c.bf16 %v2690_v41, %v2687_v40 }
 0x31b   : > { %2823 = vrot.lane.b32.xlu1 %v2809_v43, %s19762_s1 }
 0x31c   : > { %v2860_v46 = vpop.permute.xlu0 %2859  ;;  %v20450_v47 = vpop.permute.xlu1 %2837 }
 0x31d   : > { %v2242_v61 = vpop.f32.mrb[28].mxu1 }
 0x31e   : > { %2821 = vrot.lane.b32.xlu0 %v2806_v34, %s19762_s1  ;;  %v2244_v48 = vpop.f32.mrb[29].mxu1  ;;  %v2693_v54 = vmul.f32 0.14433756, %v2242_v61 }
 0x31f   : > { %v2246_v50 = vpop.f32.mrb[30].mxu1 }
 0x320   : > { %v2696_v55 = vmul.f32 0.14433756, %v2246_v50  ;;  %v20453_v56 = vpop.permute.xlu0 %2887  ;;  %v20455_v57 = vpop.permute.xlu1 %2889 }
 0x321   : > { %v2248_v58 = vpop.f32.mrb[31].mxu1 }
 0x322   : > { %v2812_v59 = vpack.c.bf16 %v2248_v58, %v2244_v48  ;;  %2772 = vrot.lane.b32.xlu0 %v20440_v35, %s19758_s28  ;;  %v20459_v62 = vpack.c.bf16 %v2696_v55, %v2693_v54  ;;  %v2903_v48 = vsel %vm2782_vm1, %v20453_v56, %v20455_v57  ;;  %v16292_v57 = vpop.f32.mrb[20].mxu0 }
 0x324   : > { %2825 = vrot.lane.b32.xlu1 %v2812_v59, %s19762_s1  ;;  %v2872_v63 = vpop.permute.xlu0 %2871  ;;  %v20462_v0 = vpop.permute.xlu1 %2923 }
 0x326   : > { %2789 = vrot.lane.b32.xlu0 %v20440_v35, %s19761_s2 }
 0x328   : > { %2847 = vrot.lane.b32.xlu1 %v2812_v59, %s19757_s25  ;;  %v20467_v1 = vpop.permute.xlu0 %2911  ;;  %v20469_v4 = vpop.permute.xlu1 %2727 }
 0x32a   : > { %2843 = vrot.lane.b32.xlu0 %v2809_v43, %s19757_s25 }
 0x32c   : > { %v2714_v2 = vpop.permute.xlu0 %2713  ;;  %v2862_v12 = vpop.permute.xlu1 %2861 }
 0x32d   : > { %16770 = vmatprep.mubr.msk.bf16.mxu0 %vm3195_vm0, %v2714_v2 }
 0x32e   : > { %2780 = vrot.lane.b32.xlu0 %v20459_v62, %s19758_s28 }
 0x330   : > { %v20475_v3 = vpop.permute.xlu0 %2725  ;;  %v2874_v6 = vpop.permute.xlu1 %2873 }
 0x334   : > { %v20477_v7 = vpop.permute.xlu0 %2746  ;;  %v2894_v9 = vpop.permute.xlu1 %2893 }
 0x338   : > { %v20479_v10 = vpop.permute.xlu0 %2766  ;;  %v20481_v11 = vpop.permute.xlu1 %2925 }
 0x33c   : > { %v20483_v13 = vpop.permute.xlu0 %2754  ;;  %v20485_v14 = vpop.permute.xlu1 %2715 }
 0x340   : > { %v20487_v16 = vpop.permute.xlu0 %2841  ;;  %v20489_v17 = vpop.permute.xlu1 %2731 }
 0x344   : > { %v2892_v8 = vpop.permute.xlu0 %2891  ;;  %v20491_v15 = vpop.permute.xlu1 %2748 }
 0x345   : > { %v2904_v58 = vsel %vm2782_vm1, %v2892_v8, %v2894_v9 }
 0x348   : > { %v20493_v22 = vpop.permute.xlu0 %2913  ;;  %v20495_v28 = vpop.permute.xlu1 %2845 }
 0x34b   : > { %3067 = vxpose.xlu1.c.b16.start [1/4] (short) (narrow) %v20431_v49, 48  ;;  %v20504_v49 = vadd.f32 %v16287_v30, %v16286_v25 }
 0x34c   : > { %v20498_v20 = vpop.permute.xlu0 %2729  ;;  %v2898_v36 = vpop.permute.xlu1 %2897  ;;  %3131 = vxpose.xlu0.c.b16.start [1/4] (short) (narrow) %v2872_v63, 48 }
 0x34f   : > { %3068 = vxpose.xlu1.c.b16.cont [2/4] (short) (narrow) %v2806_v34, 48  ;;  %v20508_v34 = vadd.f32 %v16290_v32, %v16289_v31 }
 0x350   : > { %v2864_v19 = vpop.permute.xlu0 %2863  ;;  %v20500_v21 = vpop.permute.xlu1 %2927  ;;  %3132 = vxpose.xlu0.c.b16.cont [2/4] (short) (narrow) %v2874_v6, 48 }
 0x353   : > { %3069 = vxpose.xlu1.c.b16.cont [3/4] (short) (narrow) %v2809_v43, 48 }
 0x354   : > { %v2896_v23 = vpop.permute.xlu0 %2895  ;;  %v20502_v24 = vpop.permute.xlu1 %2735 }
 0x355   : > { %v2905_v56 = vsel %vm2782_vm1, %v2896_v23, %v2898_v36 }
 0x357   : > { %3070 = vxpose.xlu1.c.b16.end [4/4] (short) (narrow) %v2812_v59, 48 }
 0x358   : > { %v2876_v26 = vpop.permute.xlu0 %2875  ;;  %v2866_v29 = vpop.permute.xlu1 %2865 }
 0x359   : > { %3133 = vxpose.xlu0.c.b16.cont [3/4] (short) (narrow) %v2876_v26, 48  ;;  %v16293_v26 = vpop.f32.mrb[21].mxu0 }
 0x35a   : > { %v16294_v30 = vadd.f32 %v16293_v26, %v16292_v57  ;;  %v16295_v9 = vpop.f32.mrb[22].mxu0 }
 0x35b   : > { %3115 = vxpose.xlu1.c.b16.start [1/4] (short) (narrow) %v2860_v46, 48  ;;  %v16296_v32 = vpop.f32.mrb[23].mxu0 }
 0x35c   : > { %v20506_v33 = vpop.permute.xlu0 %2915  ;;  %v2900_v51 = vpop.permute.xlu1 %2899 }
 0x35d   : > { %v16298_v36 = vpop.f32.mrb[24].mxu0 }
 0x35f   : > { %3116 = vxpose.xlu1.c.b16.cont [2/4] (short) (narrow) %v2862_v12, 48 }
 0x360   : > { %v20510_v37 = vpop.permute.xlu0 %2717  ;;  %v2878_v38 = vpop.permute.xlu1 %2877 }
 0x361   : > { %3134 = vxpose.xlu0.c.b16.end [4/4] (short) (narrow) %v2878_v38, 48 }
 0x363   : > { %3117 = vxpose.xlu1.c.b16.cont [3/4] (short) (narrow) %v2864_v19, 48 }
 0x364   : > { %v20512_v39 = vpop.permute.xlu0 %2733 }
 0x365   : > { %v2504_v40 = vpop.f32.mrb[32].mxu1 }
 0x366   : > { %v2506_v41 = vpop.f32.mrb[33].mxu1 }
 0x367   : > { %3118 = vxpose.xlu1.c.b16.end [4/4] (short) (narrow) %v2866_v29, 48  ;;  %v2508_v42 = vpop.f32.mrb[34].mxu1 }
 0x368   : > { %v20514_v43 = vpop.permute.xlu0 %2750  ;;  %v20516_v46 = vpack.c.bf16 %v2508_v42, %v2504_v40  ;;  %v2510_v61 = vpop.f32.mrb[35].mxu1  ;;  %v16297_v42 = vadd.f32 %v16296_v32, %v16295_v9 }
 0x369   : > { %v20521_v50 = vpack.c.bf16 %v2510_v61, %v2506_v41 }
 0x36b   : > { %3147 = vxpose.xlu1.c.b16.start [1/4] (short) (narrow) %v2903_v48, 48 }
 0x36c   : > { %v20523_v54 = vpop.permute.xlu0 %2774 }
 0x36d   : > { %v2514_v55 = vpop.f32.mrb[36].mxu1 }
 0x36e   : > { %v2516_v59 = vpop.f32.mrb[37].mxu1 }
 0x36f   : > { %3148 = vxpose.xlu1.c.b16.cont [2/4] (short) (narrow) %v2904_v58, 48  ;;  %v2518_v63 = vpop.f32.mrb[38].mxu1 }
 0x370   : > { %v20526_v2 = vpop.permute.xlu0 %2758  ;;  %v20528_v12 = vpack.c.bf16 %v2518_v63, %v2514_v55  ;;  %v2520_v6 = vpop.f32.mrb[39].mxu1 }
 0x371   : > { %24536 = vst [vmem:[#allocation33_spill] sm:$0xff] %v20526_v2  ;;  %v20530_v19 = vpack.c.bf16 %v2520_v6, %v2516_v59  ;;  %v16299_v55 = vpop.f32.mrb[25].mxu0 }
 0x372   : > { %v16300_v58 = vadd.f32 %v16299_v55, %v16298_v36  ;;  %v16301_v59 = vpop.f32.mrb[26].mxu0  ;;  %v2930_v36 = vpop.permute.xlu1 %2929 }
 0x373   : > { %3149 = vxpose.xlu1.c.b16.cont [3/4] (short) (narrow) %v2905_v56, 48  ;;  %v16302_v56 = vpop.f32.mrb[27].mxu0 }
 0x374   : > { %v20533_v25 = vpop.permute.xlu0 %2849 }
 0x375   : > { %v2524_v29 = vpop.f32.mrb[40].mxu1 }
 0x376   : > { %v2526_v8 = vpop.f32.mrb[41].mxu1 }
 0x377   : > { %v2528_v31 = vpop.f32.mrb[42].mxu1 }
 0x378   : > { %v2902_v38 = vpop.permute.xlu0 %2901  ;;  %v20535_v40 = vpack.c.bf16 %v2528_v31, %v2524_v29  ;;  %v2530_v41 = vpop.f32.mrb[43].mxu1  ;;  %v16303_v29 = vadd.f32 %v16302_v56, %v16301_v59 }
 0x379   : > { %v2906_v61 = vsel %vm2782_vm1, %v2900_v51, %v2902_v38  ;;  %v20538_v48 = vpack.c.bf16 %v2530_v41, %v2526_v8  ;;  %v16304_v8 = vpop.f32.mrb[28].mxu0 }
 0x37a   : > { %3150 = vxpose.xlu1.c.b16.end [4/4] (short) (narrow) %v2906_v61, 48  ;;  %v16305_v32 = vpop.f32.mrb[29].mxu0 }
 0x37b   : > { %v16306_v38 = vadd.f32 %v16305_v32, %v16304_v8  ;;  %v16307_v41 = vpop.f32.mrb[30].mxu0  ;;  %v20553_v8 = vpop.permute.xlu1 %2719 }
 0x37c   : > { %v20540_v23 = vpop.permute.xlu0 %2917 }
 0x37e   : > { %3179 = vxpose.xlu1.c.b16.start [1/4] (short) (narrow) %v20462_v0, 48  ;;  %v2534_v63 = vpop.f32.mrb[44].mxu1  ;;  %v16308_v0 = vpop.f32.mrb[31].mxu0 }
 0x37f   : > { %v2536_v6 = vpop.f32.mrb[45].mxu1  ;;  %v16309_v55 = vadd.f32 %v16308_v0, %v16307_v41 }
 0x380   : > { %v20543_v57 = vpop.permute.xlu0 %2737  ;;  %v2538_v26 = vpop.f32.mrb[46].mxu1 }
 0x381   : > { %v20545_v9 = vpack.c.bf16 %v2538_v26, %v2534_v63  ;;  %v2540_v51 = vpop.f32.mrb[47].mxu1 }
 0x382   : > { %3180 = vxpose.xlu1.c.b16.cont [2/4] (short) (narrow) %v20481_v11, 48  ;;  %v20548_v31 = vpack.c.bf16 %v2540_v51, %v2536_v6 }
 0x384   : > { %v2820_v61 = vpop.permute.xlu0 %2819 }
 0x385   : > { %3083 = vxpose.xlu0.c.b16.start [1/4] (short) (narrow) %v2820_v61, 48 }
 0x386   : > { %3181 = vxpose.xlu1.c.b16.cont [3/4] (short) (narrow) %v20500_v21, 48  ;;  %v16744_v60 = vpop.f32.mrb[48].mxu1  ;;  %v2840_v21 = vpop.permute.xlu1 %2839 }
 0x387   : > { %v2642_v59 = vpop.f32.mrb[49].mxu1  ;;  %v2651_v63 = vadd.f32 %v16744_v60, %v16294_v30 }
 0x388   : > { %v2836_v56 = vpop.permute.xlu0 %2835  ;;  %v2643_v26 = vadd.f32 %v20504_v49, %v2642_v59  ;;  %v16745_v2 = vpop.f32.mrb[50].mxu1 }
 0x389   : > { %v2645_v11 = vpop.f32.mrb[51].mxu1  ;;  %v2654_v6 = vadd.f32 %v16745_v2, %v16297_v42 }
 0x38a   : > { %3182 = vxpose.xlu1.c.b16.end [4/4] (short) (narrow) %v2930_v36, 48  ;;  %v2646_v51 = vadd.f32 %v20508_v34, %v2645_v11 }
 0x38b   : > { %v20555_v32 = vpack.c.bf16 %v2654_v6, %v2651_v63 }
 0x38c   : > { %v20557_v61 = vpop.permute.xlu0 %2787  ;;  %v20559_v41 = vpack.c.bf16 %v2646_v51, %v2643_v26 }
 0x38d   : > { %v2824_v11 = vpop.permute.xlu1 %2823 }
 0x38e   : > { %4648 = vxpose.xlu1.c.b16.start [1/4] (short) (narrow) %v20516_v46, 48  ;;  %v16748_v60 = vpop.f32.mrb[52].mxu1 }
 0x38f   : > { %v2658_v30 = vpop.f32.mrb[53].mxu1  ;;  %v2667_v49 = vadd.f32 %v16748_v60, %v16306_v38 }
 0x390   : > { %v2822_v0 = vpop.permute.xlu0 %2821  ;;  %v2659_v59 = vadd.f32 %v16300_v58, %v2658_v30  ;;  %v16749_v2 = vpop.f32.mrb[54].mxu1  ;;  %v2744_v30 = vsel %vm2741_vm2, %v20512_v39, %v20502_v24 }
 0x391   : > { %3084 = vxpose.xlu0.c.b16.cont [2/4] (short) (narrow) %v2822_v0, 48  ;;  %v2661_v42 = vpop.f32.mrb[55].mxu1  ;;  %v2670_v34 = vadd.f32 %v16749_v2, %v16309_v55 }
 0x392   : > { %4649 = vxpose.xlu1.c.b16.cont [2/4] (short) (narrow) %v20528_v12, 48  ;;  %v2662_v36 = vadd.f32 %v16303_v29, %v2661_v42 }
 0x393   : > { %v20563_v63 = vpack.c.bf16 %v2670_v34, %v2667_v49 }
 0x394   : > { %v20565_v26 = vpack.c.bf16 %v2662_v36, %v2659_v59  ;;  %v20575_v58 = vpop.permute.xlu0 %2772  ;;  %v24540_v59 = vld [vmem:[#allocation33_spill] sm:$0xff] }
 0x395   : > { %3085 = vxpose.xlu0.c.b16.cont [3/4] (short) (narrow) %v2824_v11, 48 }
 0x396   : > { %4650 = vxpose.xlu1.c.b16.cont [3/4] (short) (narrow) %v20535_v40, 48  ;;  %v2826_v6 = vpop.permute.xlu1 %2825 }
 0x399   : > { %3086 = vxpose.xlu0.c.b16.end [4/4] (short) (narrow) %v2826_v6, 48 }
 0x39a   : > { %4651 = vxpose.xlu1.c.b16.end [4/4] (short) (narrow) %v20545_v9, 48  ;;  %v2848_v29 = vpop.permute.xlu1 %2847 }
 0x39d   : > { %3163 = vxpose.xlu0.c.b16.start [1/4] (short) (narrow) %v20467_v1, 48  ;;  %v20583_v1 = vpop.permute.xlu0 %2789 }
 0x39e   : > { %2739 = vrot.lane.b32.xlu1 %v20388_v18, %s19757_s25 }
 0x3a1   : > { %3164 = vxpose.xlu0.c.b16.cont [2/4] (short) (narrow) %v20493_v22, 48  ;;  %v2851_v22 = vsel %vm2741_vm2, %v2836_v56, %v20450_v47  ;;  %v2844_v38 = vpop.permute.xlu0 %2843 }
 0x3a2   : > { %2752 = vrot.lane.b32.xlu1 %v20388_v18, %s19756_s0 }
 0x3a5   : > { %3165 = vxpose.xlu0.c.b16.cont [3/4] (short) (narrow) %v20506_v33, 48  ;;  %v2852_v33 = vsel %vm2741_vm2, %v2840_v21, %v20487_v16  ;;  %v2743_v21 = vsel %vm2741_vm2, %v20498_v20, %v20489_v17 }
 0x3a6   : > { %2768 = vrot.lane.b32.xlu1 %v20434_v27, %s19758_s28 }
 0x3a9   : > { %3166 = vxpose.xlu0.c.b16.end [4/4] (short) (narrow) %v20540_v23, 48  ;;  %v2853_v23 = vsel %vm2741_vm2, %v2844_v38, %v20495_v28 }
 0x3aa   : > { %2770 = vrot.lane.b32.xlu1 %v20366_v53, %s19758_s28 }
 0x3ad   : > { %3099 = vxpose.xlu0.c.b16.start [1/4] (short) (narrow) %v2851_v22, 48 }
 0x3ae   : > { %2756 = vrot.lane.b32.xlu1 %v20366_v53, %s19759_s29  ;;  %v2854_v53 = vsel %vm2741_vm2, %v2848_v29, %v20533_v25 }
 0x3b1   : > { %v3075_v55 = vpop.trf.xlu1  ;;  %3100 = vxpose.xlu0.c.b16.cont [2/4] (short) (narrow) %v2852_v33, 48 }
 0x3b2   : > { %16750 = vmatprep.subr.bf16.mxu1 %v3075_v55  ;;  %2776 = vrot.lane.b32.xlu1 %v20447_v45, %s19758_s28 }
 0x3b3   : > { %16751 = vmatpush3.bf16.msra.mxu1 %v3075_v55 }
 0x3b5   : > { %v3076_v47 = vpop.trf.xlu1  ;;  %3101 = vxpose.xlu0.c.b16.cont [3/4] (short) (narrow) %v2853_v23, 48 }
 0x3b6   : > { %16752 = vmatprep.subr.bf16.mxu1 %v3076_v47  ;;  %2778 = vrot.lane.b32.xlu1 %v20388_v18, %s19758_s28 }
 0x3b7   : > { %16753 = vmatpush3.bf16.msra.mxu1 %v3076_v47 }
 0x3b9   : > { %v3077_v16 = vpop.trf.xlu1  ;;  %3102 = vxpose.xlu0.c.b16.end [4/4] (short) (narrow) %v2854_v53, 48 }
 0x3ba   : > { %16754 = vmatprep.subr.bf16.mxu1 %v3077_v16  ;;  %2760 = vrot.lane.b32.xlu1 %v20388_v18, %s19759_s29  ;;  %v2742_v18 = vsel %vm2741_vm2, %v20475_v3, %v20469_v4 }
 0x3bb   : > { %16755 = vmatpush3.bf16.msra.mxu1 %v3077_v16 }
 0x3be   : > { %16757 = vmatmul.mubr.msk.bf16.vlgmr.msra.gmra.mrb[56].mxu1 %vm3195_vm0, %v20364_v52  ;;  %2795 = vrot.lane.b32.xlu1 %v20434_v27, %s19760_s27 }
 0x3bf   : > { %16760 = vmatprep.mubr.msk.bf16.mxu1 %vm3195_vm0, %v20376_v5 }
 0x3c1   : > { %v3123_v52 = vpop.trf.xlu1 }
 0x3c2   : > { %2791 = vrot.lane.b32.xlu0 %v20447_v45, %s19761_s2  ;;  %2797 = vrot.lane.b32.xlu1 %v20440_v35, %s19760_s27  ;;  %v20641_v35 = vpop.permute.xlu0 %2780 }
 0x3c5   : > { %v3124_v5 = vpop.trf.xlu1 }
 0x3c6   : > { %16761 = vmatmul.mubr.msk.bf16.gmra.mrb[60].mxu1 %vm3195_vm0, %v20386_v44  ;;  %2793 = vrot.lane.b32.xlu0 %v20459_v62, %s19761_s2 }
 0x3c7   : > { %16784 = vmatprep.mubr.msk.bf16.mxu1 %vm3195_vm0, %v2742_v18  ;;  %2799 = vrot.lane.b32.xlu1 %v20447_v45, %s19760_s27 }
 0x3c9   : > { %v3125_v44 = vpop.trf.xlu1 }
 0x3ca   : > { %2953 = vrot.lane.b32.xlu0 %v20528_v12, %s19762_s1 }
 0x3cb   : > { %2801 = vrot.lane.b32.xlu1 %v20459_v62, %s19760_s27  ;;  %v20647_v62 = vpop.trf.xlu0 }
 0x3ce   : > { %2969 = vrot.lane.b32.xlu0 %v20521_v50, %s19757_s25 }
 0x3cf   : > { %2951 = vrot.lane.b32.xlu1 %v20516_v46, %s19762_s1  ;;  %v20659_v3 = vpop.trf.xlu0 }
 0x3d2   : > { %2973 = vrot.lane.b32.xlu0 %v20530_v19, %s19757_s25 }
 0x3d3   : > { %2955 = vrot.lane.b32.xlu1 %v20535_v40, %s19762_s1 }
 0x3d4   : > { %v3155_v27 = vpop.trf.xlu1 }
 0x3d6   : > { %2975 = vrot.lane.b32.xlu0 %v20535_v40, %s19757_s25 }
 0x3d7   : > { %2957 = vrot.lane.b32.xlu1 %v20545_v9, %s19762_s1 }
 0x3d8   : > { %v3156_v45 = vpop.trf.xlu1 }
 0x3da   : > { %2995 = vrot.lane.b32.xlu0 %v20538_v48, %s19756_s0 }
 0x3db   : > { %2967 = vrot.lane.b32.xlu1 %v20516_v46, %s19757_s25  ;;  %v20667_v46 = vpop.trf.xlu0 }
 0x3dc   : > { %v20655_v4 = vpop.trf.xlu1 }
 0x3de   : > { %2981 = vrot.lane.b32.xlu0 %v20548_v31, %s19757_s25 }
 0x3df   : > { %2991 = vrot.lane.b32.xlu1 %v20521_v50, %s19756_s0 }
 0x3e2   : > { %3021 = vrot.lane.b32.xlu0 %v20559_v41, %s19758_s28 }
 0x3e3   : > { %2971 = vrot.lane.b32.xlu1 %v20528_v12, %s19757_s25 }
 0x3e4   : > { %v20665_v28 = vpop.trf.xlu1 }
 0x3e6   : > { %3023 = vrot.lane.b32.xlu0 %v20530_v19, %s19758_s28 }
 0x3e7   : > { %2993 = vrot.lane.b32.xlu1 %v20530_v19, %s19756_s0 }
 0x3e8   : > { %v20673_v12 = vpop.trf.xlu1 }
 0x3ea   : > { %3027 = vrot.lane.b32.xlu0 %v20538_v48, %s19758_s28 }
 0x3eb   : > { %2977 = vrot.lane.b32.xlu1 %v20538_v48, %s19757_s25 }
 0x3ee   : > { %3007 = vrot.lane.b32.xlu0 %v20538_v48, %s19759_s29  ;;  %v20683_v48 = vpop.trf.xlu1 }
 0x3ef   : > { %2979 = vrot.lane.b32.xlu1 %v20545_v9, %s19757_s25 }
 0x3f2   : > { %3033 = vrot.lane.b32.xlu0 %v20563_v63, %s19758_s28 }
 0x3f3   : > { %2997 = vrot.lane.b32.xlu1 %v20548_v31, %s19756_s0  ;;  %v3091_v25 = vpop.trf.xlu0 }
 0x3f4   : > { %16764 = vmatprep.subr.bf16.mxu0 %v3091_v25  ;;  %v20689_v56 = vpop.trf.xlu1 }
 0x3f5   : > { %16765 = vmatpush3.bf16.msra.mxu0 %v3091_v25  ;;  %24537 = vst [vmem:[#allocation34_spill] sm:$0xff] %v20689_v56 }
 0x3f6   : > { %3055 = vrot.lane.b32.xlu0 %v20559_v41, %s19760_s27 }
 0x3f7   : > { %3019 = vrot.lane.b32.xlu1 %v20521_v50, %s19758_s28  ;;  %v3092_v40 = vpop.trf.xlu0 }
 0x3f8   : > { %16766 = vmatprep.subr.bf16.mxu0 %v3092_v40  ;;  %v20703_v51 = vpop.trf.xlu1 }
 0x3f9   : > { %16767 = vmatpush3.bf16.msra.mxu0 %v3092_v40  ;;  %24538 = vst [vmem:[#allocation35_spill] sm:$0xff] %v20703_v51 }
 0x3fa   : > { %3057 = vrot.lane.b32.xlu0 %v20555_v32, %s19760_s27 }
 0x3fb   : > { %3003 = vrot.lane.b32.xlu1 %v20521_v50, %s19759_s29  ;;  %v3093_v9 = vpop.trf.xlu0 }
 0x3fc   : > { %16768 = vmatprep.subr.bf16.mxu0 %v3093_v9 }
 0x3fd   : > { %16769 = vmatpush3.bf16.msra.mxu0 %v3093_v9 }
 0x3fe   : > { %16792 = vmatprep.subr.bf16.mxu0 %v3123_v52  ;;  %3049 = vrot.lane.b32.xlu0 %v20563_v63, %s19761_s2 }
 0x3ff   : > { %3025 = vrot.lane.b32.xlu1 %v20555_v32, %s19758_s28 }
 0x400   : > { %16771 = vmatmul.mubr.msk.bf16.vlgmr.msra.gmra.mrb[32].mxu0 %vm3195_vm0, %v20485_v14  ;;  %v20713_v14 = vpop.trf.xlu1 }
 0x401   : > { %16774 = vmatprep.mubr.msk.bf16.mxu0 %vm3195_vm0, %v20510_v37  ;;  %16793 = vmatpush3.bf16.msra.mxu0 %v3123_v52  ;;  %24539 = vst [vmem:[#allocation36_spill] sm:$0xff] %v20713_v14 }
 0x402   : > { %16794 = vmatprep.subr.bf16.mxu0 %v3124_v5 }
 0x403   : > { %3005 = vrot.lane.b32.xlu1 %v20530_v19, %s19759_s29  ;;  %v20701_v50 = vpop.trf.xlu0 }
 0x405   : > { %16795 = vmatpush3.bf16.msra.mxu0 %v3124_v5 }
 0x406   : > { %16796 = vmatprep.subr.bf16.mxu0 %v3125_v44 }
 0x407   : > { %3029 = vrot.lane.b32.xlu1 %v20565_v26, %s19758_s28  ;;  %v20707_v60 = vpop.trf.xlu0 }
 0x408   : > { %16775 = vmatmul.mubr.msk.bf16.gmra.mrb[36].mxu0 %vm3195_vm0, %v20553_v8 }
 0x409   : > { %16798 = vmatprep.mubr.msk.bf16.mxu0 %vm3195_vm0, %v20477_v7  ;;  %16797 = vmatpush3.bf16.msra.mxu0 %v3125_v44 }
 0x40a   : > { %16820 = vmatprep.subr.bf16.mxu0 %v3155_v27 }
 0x40b   : > { %3031 = vrot.lane.b32.xlu1 %v20548_v31, %s19758_s28  ;;  %v20717_v37 = vpop.trf.xlu0 }
 0x40f   : > { %3009 = vrot.lane.b32.xlu1 %v20548_v31, %s19759_s29 }
 0x410   : > { %16799 = vmatmul.mubr.msk.bf16.vlgmr.msra.gmra.mrb[40].mxu0 %vm3195_vm0, %v20491_v15  ;;  %v2740_v19 = vpop.permute.xlu1 %2739 }
 0x411   : > { %16821 = vmatpush3.bf16.msra.mxu0 %v3155_v27  ;;  %16802 = vmatprep.mubr.msk.bf16.mxu0 %vm3195_vm0, %v20514_v43  ;;  %v2745_v24 = vsel %vm2741_vm2, %v20543_v57, %v2740_v19  ;;  %v3812_v27 = vlaneseq }
 0x412   : > { %16822 = vmatprep.subr.bf16.mxu0 %v3156_v45 }
 0x413   : > { %v3107_v7 = vpop.trf.xlu0  ;;  %3043 = vrot.lane.b32.xlu1 %v20559_v41, %s19761_s2 }
 0x414   : > { %16778 = vmatprep.subr.bf16.mxu1 %v3107_v7  ;;  %v2753_v8 = vpop.permute.xlu1 %2752 }
 0x415   : > { %16823 = vmatpush3.bf16.msra.mxu0 %v3156_v45  ;;  %16779 = vmatpush3.bf16.msra.mxu1 %v3107_v7 }
 0x416   : > { %16824 = vmatprep.subr.bf16.mxu0 %v20655_v4 }
 0x417   : > { %v3108_v31 = vpop.trf.xlu0  ;;  %3045 = vrot.lane.b32.xlu1 %v20555_v32, %s19761_s2 }
 0x418   : > { %16780 = vmatprep.subr.bf16.mxu1 %v3108_v31  ;;  %16803 = vmatmul.mubr.msk.bf16.gmra.mrb[44].mxu0 %vm3195_vm0, %v2753_v8  ;;  %v2769_v15 = vpop.permute.xlu1 %2768 }
 0x419   : > { %16825 = vmatpush3.bf16.msra.mxu0 %v20655_v4  ;;  %v2783_v43 = vsel %vm2782_vm1, %v20479_v10, %v2769_v15  ;;  %16781 = vmatpush3.bf16.msra.mxu1 %v3108_v31 }
 0x41a   : > { %16826 = vmatprep.mubr.msk.bf16.mxu0 %vm3195_vm0, %v2783_v43  ;;  %16848 = vmatprep.subr.bf16.mxu0 %v20665_v28 }
 0x41b   : > { %v3109_v41 = vpop.trf.xlu0  ;;  %3047 = vrot.lane.b32.xlu1 %v20565_v26, %s19761_s2 }
 0x41c   : > { %16782 = vmatprep.subr.bf16.mxu1 %v3109_v41  ;;  %v2771_v32 = vpop.permute.xlu1 %2770 }
 0x41d   : > { %16783 = vmatpush3.bf16.msra.mxu1 %v3109_v41  ;;  %v2784_v10 = vsel %vm2782_vm1, %v2771_v32, %v20575_v58 }
 0x41e   : > { %16806 = vmatprep.subr.bf16.mxu1 %v20647_v62 }
 0x41f   : > { %3059 = vrot.lane.b32.xlu1 %v20565_v26, %s19760_s27 }
 0x420   : > { %16785 = vmatmul.mubr.msk.bf16.vlgmr.msra.gmra.mrb[64].mxu1 %vm3195_vm0, %v2743_v21  ;;  %16827 = vmatmul.mubr.msk.bf16.vlgmr.msra.gmra.mrb[48].mxu0 %vm3195_vm0, %v2784_v10  ;;  %v2757_v49 = vpop.permute.xlu1 %2756 }
 0x421   : > { %16849 = vmatpush3.bf16.msra.mxu0 %v20665_v28  ;;  %16788 = vmatprep.mubr.msk.bf16.mxu1 %vm3195_vm0, %v2744_v30 }
 0x422   : > { %16807 = vmatpush3.bf16.msra.mxu1 %v20647_v62  ;;  %16850 = vmatprep.subr.bf16.mxu0 %v20673_v12  ;;  %v3822_v62 = vand.u32 127, %v3812_v27 }
 0x423   : > { %16808 = vmatprep.subr.bf16.mxu1 %v20659_v3  ;;  %3061 = vrot.lane.b32.xlu1 %v20563_v63, %s19760_s27 }
 0x424   : > { %v2777_v17 = vpop.permute.xlu1 %2776 }
 0x425   : > { %16851 = vmatpush3.bf16.msra.mxu0 %v20673_v12  ;;  %v2785_v20 = vsel %vm2782_vm1, %v20523_v54, %v2777_v17 }
 0x426   : > { %16809 = vmatpush3.bf16.msra.mxu1 %v20659_v3  ;;  %16852 = vmatprep.subr.bf16.mxu0 %v20683_v48 }
 0x427   : > { %16810 = vmatprep.subr.bf16.mxu1 %v20667_v46  ;;  %16830 = vmatprep.mubr.msk.bf16.mxu0 %vm3195_vm0, %v2785_v20 }
 0x428   : > { %16789 = vmatmul.mubr.msk.bf16.gmra.mrb[68].mxu1 %vm3195_vm0, %v2745_v24  ;;  %v2779_v39 = vpop.permute.xlu1 %2778 }
 0x429   : > { %16853 = vmatpush3.bf16.msra.mxu0 %v20683_v48  ;;  %v2786_v0 = vsel %vm2782_vm1, %v2779_v39, %v20641_v35  ;;  %16812 = vmatprep.mubr.msk.bf16.mxu1 %vm3195_vm0, %v20483_v13  ;;  %v20799_v35 = vshrl.u32 %v3812_v27, 7 }
 0x42a   : > { %16811 = vmatpush3.bf16.msra.mxu1 %v20667_v46  ;;  %16831 = vmatmul.mubr.msk.bf16.gmra.mrb[52].mxu0 %vm3195_vm0, %v2786_v0 }
 0x42b   : > { %16834 = vmatprep.subr.bf16.mxu1 %v20701_v50  ;;  %24541 = vst [vmem:[#allocation33_spill] sm:$0xff] %v20799_v35  ;;  %v3815_v45 = vadd.s32 16, %v20799_v35  ;;  %v3816_v4 = vadd.s32 24, %v20799_v35  ;;  %v3814_v3 = vadd.s32 8, %v20799_v35  ;;  %vm20809_vm5 = vcmp.ge.s32.totalorder %v20799_v35, %v3822_v62 }
 0x42c   : > { %v2761_v54 = vpop.permute.xlu1 %2760  ;;  %v3819_v19 = vadd.s32 48, %v20799_v35  ;;  %v3817_v43 = vadd.s32 32, %v20799_v35  ;;  %v3820_v41 = vadd.s32 56, %v20799_v35  ;;  %v3818_v10 = vadd.s32 40, %v20799_v35 }
 0x42d   : > { %vm20804_vm3 = vcmp.ge.s32.totalorder %v3815_v45, %v3822_v62  ;;  %vm20817_vm6 = vcmp.ge.s32.totalorder %v3816_v4, %v3822_v62  ;;  %vm20821_vm7 = vcmp.ge.s32.totalorder %v3814_v3, %v3822_v62 }
 0x42e   : > { %vm20846_vm8 = vcmp.ge.s32.totalorder %v3819_v19, %v3822_v62  ;;  %vm20853_vm9 = vcmp.ge.s32.totalorder %v3817_v43, %v3822_v62  ;;  %vm20857_vm10 = vcmp.ge.s32.totalorder %v3820_v41, %v3822_v62  ;;  %vm20867_vm11 = vcmp.ge.s32.totalorder %v3818_v10, %v3822_v62 }
 0x430   : > { %16813 = vmatmul.mubr.msk.bf16.vlgmr.msra.gmra.mrb[72].mxu1 %vm3195_vm0, %v2757_v49  ;;  %v2796_v57 = vpop.permute.xlu1 %2795 }
 0x431   : > { %16835 = vmatpush3.bf16.msra.mxu1 %v20701_v50  ;;  %16816 = vmatprep.mubr.msk.bf16.mxu1 %vm3195_vm0, %v24540_v59 }
 0x432   : > { %16836 = vmatprep.subr.bf16.mxu1 %v20707_v60  ;;  %16854 = vmatprep.mubr.msk.bf16.mxu0 %vm3195_vm0, %v2796_v57 }
 0x434   : > { %v2798_v13 = vpop.permute.xlu1 %2797  ;;  %v2792_v2 = vpop.permute.xlu0 %2791 }
 0x435   : > { %16837 = vmatpush3.bf16.msra.mxu1 %v20707_v60  ;;  %16855 = vmatmul.mubr.msk.bf16.vlgmr.msra.gmra.mrb[56].mxu0 %vm3195_vm0, %v2798_v13 }
 0x436   : > { %16838 = vmatprep.subr.bf16.mxu1 %v20717_v37 }
 0x438   : > { %16817 = vmatmul.mubr.msk.bf16.gmra.mrb[76].mxu1 %vm3195_vm0, %v2761_v54  ;;  %v2794_v34 = vpop.permute.xlu0 %2793 }
 0x439   : > { %16839 = vmatpush3.bf16.msra.mxu1 %v20717_v37  ;;  %v2800_v42 = vpop.permute.xlu1 %2799  ;;  %16840 = vmatprep.mubr.msk.bf16.mxu1 %vm3195_vm0, %v20557_v61 }
 0x43a   : > { %16858 = vmatprep.mubr.msk.bf16.mxu0 %vm3195_vm0, %v2800_v42 }
 0x43c   : > { %v2954_v11 = vpop.permute.xlu0 %2953 }
 0x43d   : > { %v2802_v36 = vpop.permute.xlu1 %2801 }
 0x43e   : > { %16859 = vmatmul.mubr.msk.bf16.gmra.mrb[60].mxu0 %vm3195_vm0, %v2802_v36 }
 0x440   : > { %16841 = vmatmul.mubr.msk.bf16.vlgmr.msra.gmra.mrb[80].mxu1 %vm3195_vm0, %v20583_v1  ;;  %v2970_v6 = vpop.permute.xlu0 %2969 }
 0x441   : > { %v2952_v63 = vpop.permute.xlu1 %2951  ;;  %16844 = vmatprep.mubr.msk.bf16.mxu1 %vm3195_vm0, %v2792_v2 }
 0x442   : > { %4664 = vxpose.xlu0.c.b16.start [1/4] (short) (narrow) %v2952_v63, 48 }
 0x444   : > { %v2974_v29 = vpop.permute.xlu0 %2973 }
 0x445   : > { %v2956_v26 = vpop.permute.xlu1 %2955 }
 0x446   : > { %4665 = vxpose.xlu0.c.b16.cont [2/4] (short) (narrow) %v2954_v11, 48 }
 0x448   : > { %16845 = vmatmul.mubr.msk.bf16.gmra.mrb[84].mxu1 %vm3195_vm0, %v2794_v34  ;;  %v2976_v1 = vpop.permute.xlu0 %2975 }
 0x449   : > { %v2958_v61 = vpop.permute.xlu1 %2957 }
 0x44a   : > { %4666 = vxpose.xlu0.c.b16.cont [3/4] (short) (narrow) %v2956_v26, 48 }
 0x44c   : > { %v2996_v47 = vpop.permute.xlu0 %2995 }
 0x44d   : > { %v2968_v58 = vpop.permute.xlu1 %2967 }
 0x44e   : > { %v2983_v22 = vsel %vm2741_vm2, %v2968_v58, %v2970_v6  ;;  %4667 = vxpose.xlu0.c.b16.end [4/4] (short) (narrow) %v2958_v61, 48 }
 0x44f   : > { %4680 = vxpose.xlu1.c.b16.start [1/4] (short) (narrow) %v2983_v22, 48 }
 0x450   : > { %v2982_v18 = vpop.permute.xlu0 %2981 }
 0x451   : > { %v2992_v33 = vpop.permute.xlu1 %2991 }
 0x452   : > { %4696 = vxpose.xlu0.c.b16.start [1/4] (short) (narrow) %v2992_v33, 48 }
 0x454   : > { %v20923_v62 = vpop.permute.xlu0 %3021 }
 0x455   : > { %v2972_v38 = vpop.permute.xlu1 %2971  ;;  %24560 = vst [vmem:[#allocation39_spill] sm:$0xff] %v20923_v62 }
 0x456   : > { %v2984_v55 = vsel %vm2741_vm2, %v2972_v38, %v2974_v29 }
 0x457   : > { %4681 = vxpose.xlu1.c.b16.cont [2/4] (short) (narrow) %v2984_v55, 48 }
 0x459   : > { %v2994_v23 = vpop.permute.xlu1 %2993 }
 0x45a   : > { %4697 = vxpose.xlu0.c.b16.cont [2/4] (short) (narrow) %v2994_v23, 48 }
 0x45d   : > { %v2978_v53 = vpop.permute.xlu1 %2977 }
 0x45e   : > { %v2985_v16 = vsel %vm2741_vm2, %v2976_v1, %v2978_v53  ;;  %4698 = vxpose.xlu0.c.b16.cont [3/4] (short) (narrow) %v2996_v47, 48 }
 0x45f   : > { %4682 = vxpose.xlu1.c.b16.cont [3/4] (short) (narrow) %v2985_v16, 48 }
 0x461   : > { %v2980_v52 = vpop.permute.xlu1 %2979 }
 0x462   : > { %v2986_v5 = vsel %vm2741_vm2, %v2980_v52, %v2982_v18 }
 0x463   : > { %4683 = vxpose.xlu1.c.b16.end [4/4] (short) (narrow) %v2986_v5, 48 }
 0x465   : > { %v2998_v44 = vpop.permute.xlu1 %2997 }
 0x466   : > { %4699 = vxpose.xlu0.c.b16.end [4/4] (short) (narrow) %v2998_v44, 48 }
 0x469   : > { %v20911_v53 = vpop.permute.xlu1 %3019 }
 0x46a   : > { %24558 = vst [vmem:[#allocation37_spill] sm:$0xff] %v20911_v53 }
 0x46d   : > { %v20915_v5 = vpop.permute.xlu1 %3003 }
 0x46e   : > { %24559 = vst [vmem:[#allocation38_spill] sm:$0xff] %v20915_v5 }
 0x471   : > { %v20927_v3 = vpop.permute.xlu1 %3025 }
 0x472   : > { %24561 = vst [vmem:[#allocation40_spill] sm:$0xff] %v20927_v3 }
 0x491   : > { %v16758_v12 = vpop.f32.mrb[56].mxu1 }
 0x492   : > { %v20815_v25 = vsel %vm20804_vm3, %v16758_v12, -1e+30  ;;  %v3242_v40 = vpop.f32.mrb[57].mxu1 }
 0x493   : > { %v3918_v50 = vsel %vm3911_vm4, %v20815_v25, -inf  ;;  %v20829_v60 = vsel %vm20809_vm5, %v3242_v40, -1e+30  ;;  %v16759_v37 = vpop.f32.mrb[58].mxu1  ;;  %v20931_v40 = vpop.permute.xlu0 %3023 }
 0x494   : > { %v3912_v7 = vsel %vm3911_vm4, %v20829_v60, -inf  ;;  %v3245_v8 = vpop.f32.mrb[59].mxu1  ;;  %3919 = vmax.xlane.f32.xlu1 %v3918_v50  ;;  %v20836_v31 = vsel %vm20817_vm6, %v16759_v37, -1e+30  ;;  %24562 = vst [vmem:[#allocation41_spill] sm:$0xff] %v20931_v40 }
 0x495   : > { %v20840_v15 = vsel %vm20821_vm7, %v3245_v8, -1e+30  ;;  %3913 = vmax.xlane.f32.xlu0 %v3912_v7  ;;  %v3921_v30 = vsel %vm3911_vm4, %v20836_v31, -inf  ;;  %v20939_v7 = vpop.permute.xlu1 %3005 }
 0x496   : > { %v3915_v32 = vsel %vm3911_vm4, %v20840_v15, -inf  ;;  %24563 = vst [vmem:[#allocation42_spill] sm:$0xff] %v20939_v7 }
 0x497   : > { %v20941_v8 = vpop.permute.xlu0 %3027 }
 0x498   : > { %3916 = vmax.xlane.f32.xlu1 %v3915_v32  ;;  %24564 = vst [vmem:[#allocation43_spill] sm:$0xff] %v20941_v8 }
 0x499   : > { %v16762_v49 = vpop.f32.mrb[60].mxu1  ;;  %3922 = vmax.xlane.f32.xlu0 %v3921_v30 }
 0x49a   : > { %v20863_v24 = vsel %vm20846_vm8, %v16762_v49, -1e+30  ;;  %v3258_v39 = vpop.f32.mrb[61].mxu1  ;;  %v20951_v49 = vpop.permute.xlu1 %3029 }
 0x49b   : > { %v3930_v0 = vsel %vm3911_vm4, %v20863_v24, -inf  ;;  %v16763_v54 = vpop.f32.mrb[62].mxu1  ;;  %v20873_v59 = vsel %vm20853_vm9, %v3258_v39, -1e+30  ;;  %24565 = vst [vmem:[#allocation44_spill] sm:$0xff] %v20951_v49 }
 0x49c   : > { %v20877_v13 = vsel %vm20857_vm10, %v16763_v54, -1e+30  ;;  %v3261_v2 = vpop.f32.mrb[63].mxu1  ;;  %3931 = vmax.xlane.f32.xlu1 %v3930_v0  ;;  %v3924_v36 = vsel %vm3911_vm4, %v20873_v59, -inf }
 0x49d   : > { %v3933_v42 = vsel %vm3911_vm4, %v20877_v13, -inf  ;;  %v20883_v34 = vsel %vm20867_vm11, %v3261_v2, -1e+30 }
 0x49e   : > { %3934 = vmax.xlane.f32.xlu0 %v3933_v42  ;;  %v3927_v63 = vsel %vm3911_vm4, %v20883_v34, -inf }
 0x4a0   : > { %3925 = vmax.xlane.f32.xlu1 %v3924_v36 }
 0x4a2   : > { %3928 = vmax.xlane.f32.xlu0 %v3927_v63 }
 0x4d3   : > { %v16772_v11 = vpop.f32.mrb[32].mxu0 }
 0x4d4   : > { %v20891_v26 = vsel %vm20804_vm3, %v16772_v11, -1e+30  ;;  %v3319_v6 = vpop.f32.mrb[33].mxu0 }
 0x4d5   : > { %v3942_v61 = vsel %vm3911_vm4, %v20891_v26, -inf  ;;  %v20897_v58 = vsel %vm20809_vm5, %v3319_v6, -1e+30  ;;  %v16773_v22 = vpop.f32.mrb[34].mxu0 }
 0x4d6   : > { %v3936_v29 = vsel %vm3911_vm4, %v20897_v58, -inf  ;;  %v3322_v33 = vpop.f32.mrb[35].mxu0  ;;  %3943 = vmax.xlane.f32.xlu1 %v3942_v61  ;;  %v20903_v1 = vsel %vm20817_vm6, %v16773_v22, -1e+30  ;;  %v20975_v22 = vpop.permute.xlu0 %3007 }
 0x4d7   : > { %3937 = vmax.xlane.f32.xlu0 %v3936_v29  ;;  %v3945_v38 = vsel %vm3911_vm4, %v20903_v1, -inf  ;;  %v20909_v55 = vsel %vm20821_vm7, %v3322_v33, -1e+30  ;;  %24566 = vst [vmem:[#allocation45_spill] sm:$0xff] %v20975_v22  ;;  %v20981_v33 = vpop.permute.xlu1 %3031 }
 0x4d8   : > { %v3939_v18 = vsel %vm3911_vm4, %v20909_v55, -inf  ;;  %24567 = vst [vmem:[#allocation46_spill] sm:$0xff] %v20981_v33 }
 0x4db   : > { %v16776_v23 = vpop.f32.mrb[36].mxu0  ;;  %3946 = vmax.xlane.f32.xlu0 %v3945_v38 }
 0x4dc   : > { %v3335_v47 = vpop.f32.mrb[37].mxu0  ;;  %v20979_v29 = vsel %vm20846_vm8, %v16776_v23, -1e+30  ;;  %v20993_v23 = vpop.permute.xlu0 %3033 }
 0x4dd   : > { %v16777_v16 = vpop.f32.mrb[38].mxu0  ;;  %24569 = vst [vmem:[#allocation48_spill] sm:$0xff] %v20993_v23 }
 0x4de   : > { %v3338_v52 = vpop.f32.mrb[39].mxu0 }
 0x4df   : > { %3940 = vmax.xlane.f32.xlu0 %v3939_v18  ;;  %v21011_v23 = vsel %vm20867_vm11, %v3338_v52, -1e+30 }
 0x4e0   : > { %24571 = vst [vmem:[#allocation50_spill] sm:$0xff] %v21011_v23 }
 0x4e3   : > { %v20917_v44 = vpop.f32.mrb[40].mxu0 }
 0x4e4   : > { %v20919_v27 = vpop.f32.mrb[41].mxu0 }
 0x4e5   : > { %v20921_v45 = vpop.f32.mrb[42].mxu0 }
 0x4e6   : > { %v20925_v4 = vpop.f32.mrb[43].mxu0 }
 0x4eb   : > { %v20929_v12 = vpop.f32.mrb[44].mxu0 }
 0x4ec   : > { %v20933_v50 = vpop.f32.mrb[45].mxu0 }
 0x4ed   : > { %v20935_v37 = vpop.f32.mrb[46].mxu0 }
 0x4ee   : > { %v20937_v19 = vpop.f32.mrb[47].mxu0 }
 0x4f3   : > { %v16786_v43 = vpop.f32.mrb[64].mxu1  ;;  %v20943_v41 = vpop.f32.mrb[48].mxu0 }
 0x4f4   : > { %v20947_v32 = vsel %vm20804_vm3, %v16786_v43, -1e+30  ;;  %v3396_v10 = vpop.f32.mrb[65].mxu1  ;;  %v20949_v30 = vpop.f32.mrb[49].mxu0 }
 0x4f5   : > { %v3966_v39 = vsel %vm3911_vm4, %v20947_v32, -inf  ;;  %v20957_v0 = vsel %vm20809_vm5, %v3396_v10, -1e+30  ;;  %v16787_v54 = vpop.f32.mrb[66].mxu1  ;;  %v20959_v2 = vpop.f32.mrb[50].mxu0  ;;  %v3954_v10 = vsel %vm3911_vm4, %v20979_v29, -inf }
 0x4f6   : > { %3967 = vmax.xlane.f32.xlu1 %v3966_v39  ;;  %v20963_v42 = vsel %vm20817_vm6, %v16787_v54, -1e+30  ;;  %v3399_v36 = vpop.f32.mrb[67].mxu1  ;;  %v20965_v63 = vpop.f32.mrb[51].mxu0  ;;  %v3960_v6 = vsel %vm3911_vm4, %v20957_v0, -inf }
 0x4f7   : > { %v3969_v11 = vsel %vm3911_vm4, %v20963_v42, -inf  ;;  %v20973_v61 = vsel %vm20821_vm7, %v3399_v36, -1e+30  ;;  %v20989_v39 = vsel %vm20857_vm10, %v16777_v16, -1e+30  ;;  %v21005_v16 = vpop.permute.xlu1 %3009 }
 0x4f8   : > { %3970 = vmax.xlane.f32.xlu0 %v3969_v11  ;;  %v3963_v18 = vsel %vm3911_vm4, %v20973_v61, -inf  ;;  %24568 = vst [vmem:[#allocation47_spill] sm:$0xff] %v20989_v39  ;;  %v20997_v11 = vsel %vm20853_vm9, %v3335_v47, -1e+30  ;;  %v3957_v33 = vsel %vm3911_vm4, %v20989_v39, -inf  ;;  %24570 = vst [vmem:[#allocation49_spill] sm:$0xff] %v21005_v16 }
 0x4f9   : > { %v3951_v16 = vsel %vm3911_vm4, %v21011_v23, -inf }
 0x4fa   : > { %3961 = vmax.xlane.f32.xlu1 %v3960_v6 }
 0x4fb   : > { %v16790_v38 = vpop.f32.mrb[68].mxu1  ;;  %v21023_v22 = vpop.permute.xlu1 %3043 }
 0x4fc   : > { %v3412_v43 = vpop.f32.mrb[69].mxu1  ;;  %3964 = vmax.xlane.f32.xlu0 %v3963_v18  ;;  %v3948_v18 = vsel %vm3911_vm4, %v20997_v11, -inf  ;;  %v21019_v49 = vsel %vm20846_vm8, %v16790_v38, -1e+30  ;;  %24574 = vst [vmem:[#allocation53_spill] sm:$0xff] %v21023_v22 }
 0x4fd   : > { %v16791_v54 = vpop.f32.mrb[70].mxu1  ;;  %v20991_v36 = vpop.f32.mrb[52].mxu0  ;;  %24573 = vst [vmem:[#allocation52_spill] sm:$0xff] %v21019_v49  ;;  %v3978_v52 = vsel %vm3911_vm4, %v21019_v49, -inf  ;;  %v21035_v38 = vsel %vm20853_vm9, %v3412_v43, -1e+30 }
 0x4fe   : > { %v3415_v6 = vpop.f32.mrb[71].mxu1  ;;  %3955 = vmax.xlane.f32.xlu1 %v3954_v10  ;;  %v20999_v35 = vpop.f32.mrb[53].mxu0  ;;  %24577 = vst [vmem:[#allocation56_spill] sm:$0xff] %v21035_v38 }
 0x4ff   : > { %v21003_v8 = vpop.f32.mrb[54].mxu0  ;;  %v21015_v10 = vpop.permute.xlu0 %3055 }
 0x500   : > { %v21013_v47 = vpop.f32.mrb[55].mxu0  ;;  %3958 = vmax.xlane.f32.xlu0 %v3957_v33  ;;  %24572 = vst [vmem:[#allocation51_spill] sm:$0xff] %v21015_v10  ;;  %v21029_v33 = vsel %vm20857_vm10, %v16791_v54, -1e+30  ;;  %v21041_v7 = vpop.permute.xlu1 %3045  ;;  %v3972_v54 = vsel %vm3911_vm4, %v21035_v38, -inf }
 0x501   : > { %24575 = vst [vmem:[#allocation54_spill] sm:$0xff] %v21029_v33  ;;  %v3981_v22 = vsel %vm3911_vm4, %v21029_v33, -inf  ;;  %24578 = vst [vmem:[#allocation57_spill] sm:$0xff] %v21041_v7 }
 0x502   : > { %3949 = vmax.xlane.f32.xlu1 %v3948_v18 }
 0x503   : > { %v16814_v40 = vpop.f32.mrb[72].mxu1  ;;  %v21031_v53 = vpop.permute.xlu0 %3057 }
 0x504   : > { %v3550_v3 = vpop.f32.mrb[73].mxu1  ;;  %3952 = vmax.xlane.f32.xlu0 %v3951_v16  ;;  %24576 = vst [vmem:[#allocation55_spill] sm:$0xff] %v21031_v53  ;;  %v21047_v16 = vsel %vm20867_vm11, %v3415_v6, -1e+30  ;;  %v21080_v38 = vpop.permute.xlu1 %3047 }
 0x505   : > { %v16815_v10 = vpop.f32.mrb[74].mxu1  ;;  %24579 = vst [vmem:[#allocation58_spill] sm:$0xff] %v21047_v16  ;;  %v3975_v6 = vsel %vm3911_vm4, %v21047_v16, -inf  ;;  %24585 = vst [vmem:[#allocation64_spill] sm:$0xff] %v21080_v38  ;;  %v21121_v49 = vsel %vm20809_vm5, %v3550_v3, -1e+30 }
 0x506   : > { %v3553_v18 = vpop.f32.mrb[75].mxu1  ;;  %3979 = vmax.xlane.f32.xlu1 %v3978_v52  ;;  %v21056_v52 = vsel %vm20804_vm3, %v20917_v44, -1e+30  ;;  %24591 = vst [vmem:[#allocation70_spill] sm:$0xff] %v21121_v49  ;;  %v21136_v3 = vsel %vm20846_vm8, %v20929_v12, -1e+30 }
 0x507   : > { %v21051_v43 = vpop.permute.xlu0 %3049  ;;  %24581 = vst [vmem:[#allocation60_spill] sm:$0xff] %v21056_v52  ;;  %24593 = vst [vmem:[#allocation72_spill] sm:$0xff] %v21136_v3  ;;  %v21153_v12 = vsel %vm20857_vm10, %v20935_v37, -1e+30 }
 0x508   : > { %v21039_v62 = vpop.f32.mrb[56].mxu0  ;;  %3982 = vmax.xlane.f32.xlu0 %v3981_v22  ;;  %24580 = vst [vmem:[#allocation59_spill] sm:$0xff] %v21051_v43  ;;  %v3990_v22 = vsel %vm3911_vm4, %v21056_v52, -inf  ;;  %v21071_v43 = vsel %vm20817_vm6, %v20921_v45, -1e+30  ;;  %v21109_v23 = vpop.permute.xlu1 %3059  ;;  %24596 = vst [vmem:[#allocation75_spill] sm:$0xff] %v21153_v12 }
 0x509   : > { %v21049_v53 = vpop.f32.mrb[57].mxu0  ;;  %24582 = vst [vmem:[#allocation61_spill] sm:$0xff] %v21071_v43  ;;  %v3993_v52 = vsel %vm3911_vm4, %v21071_v43, -inf  ;;  %24589 = vst [vmem:[#allocation68_spill] sm:$0xff] %v21109_v23 }
 0x50a   : > { %v21058_v5 = vpop.f32.mrb[58].mxu0  ;;  %3973 = vmax.xlane.f32.xlu1 %v3972_v54  ;;  %v21076_v54 = vsel %vm20809_vm5, %v20919_v27, -1e+30  ;;  %v21095_v27 = vsel %vm20804_vm3, %v16814_v40, -1e+30 }
 0x50b   : > { %v16818_v7 = vpop.f32.mrb[76].mxu1  ;;  %v21060_v14 = vpop.f32.mrb[59].mxu0  ;;  %24583 = vst [vmem:[#allocation62_spill] sm:$0xff] %v21076_v54  ;;  %v3984_v45 = vsel %vm3911_vm4, %v21076_v54, -inf  ;;  %24587 = vst [vmem:[#allocation66_spill] sm:$0xff] %v21095_v27  ;;  %v4014_v40 = vsel %vm3911_vm4, %v21095_v27, -inf }
 0x50c   : > { %v21064_v51 = vpop.f32.mrb[77].mxu1  ;;  %3976 = vmax.xlane.f32.xlu0 %v3975_v6  ;;  %v21078_v56 = vpop.trf.xlu0  ;;  %v21089_v6 = vsel %vm20821_vm7, %v20925_v4, -1e+30  ;;  %v4008_v27 = vsel %vm3911_vm4, %v21121_v49, -inf  ;;  %v21362_v28 = vsel %vm20809_vm5, %v21049_v53, -1e+30 }
 0x50d   : > { %v16819_v44 = vpop.f32.mrb[78].mxu1  ;;  %24584 = vst [vmem:[#allocation63_spill] sm:$0xff] %v21078_v56  ;;  %24586 = vst [vmem:[#allocation65_spill] sm:$0xff] %v21089_v6  ;;  %v3987_v54 = vsel %vm3911_vm4, %v21089_v6, -inf  ;;  %v21371_v48 = vsel %vm20821_vm7, %v21060_v14, -1e+30 }
 0x50e   : > { %v3569_v16 = vpop.f32.mrb[79].mxu1  ;;  %3991 = vmax.xlane.f32.xlu1 %v3990_v22  ;;  %v4083_v46 = vsel %vm3911_vm4, %v21371_v48, -inf }
 0x510   : > { %3994 = vmax.xlane.f32.xlu0 %v3993_v52  ;;  %v21105_v43 = vpop.trf.xlu0  ;;  %v21115_v52 = vsel %vm20817_vm6, %v16815_v10, -1e+30  ;;  %v21131_v10 = vsel %vm20821_vm7, %v3553_v18, -1e+30 }
 0x511   : > { %v21091_v33 = vpop.f32.mrb[60].mxu0  ;;  %24588 = vst [vmem:[#allocation67_spill] sm:$0xff] %v21105_v43  ;;  %24590 = vst [vmem:[#allocation69_spill] sm:$0xff] %v21115_v52  ;;  %v4017_v23 = vsel %vm3911_vm4, %v21115_v52, -inf  ;;  %v4011_v49 = vsel %vm3911_vm4, %v21131_v10, -inf }
 0x512   : > { %v21097_v22 = vpop.f32.mrb[61].mxu0  ;;  %3985 = vmax.xlane.f32.xlu1 %v3984_v45  ;;  %24592 = vst [vmem:[#allocation71_spill] sm:$0xff] %v21131_v10 }
 0x513   : > { %v21099_v56 = vpop.f32.mrb[62].mxu0  ;;  %v21101_v38 = vpop.f32.mrb[80].mxu1 }
 0x514   : > { %v21107_v4 = vpop.f32.mrb[63].mxu0  ;;  %v21117_v45 = vpop.f32.mrb[81].mxu1  ;;  %3988 = vmax.xlane.f32.xlu0 %v3987_v54 }
 0x515   : > { %v16843_v6 = vpop.f32.mrb[82].mxu1  ;;  %v21138_v54 = vpop.trf.xlu0 }
 0x516   : > { %4015 = vmax.xlane.f32.xlu1 %v4014_v40  ;;  %v21123_v43 = vpop.f32.mrb[83].mxu1  ;;  %24594 = vst [vmem:[#allocation73_spill] sm:$0xff] %v21138_v54  ;;  %v21140_v40 = vpop.permute.xlu1 %3061 }
 0x517   : > { %24595 = vst [vmem:[#allocation74_spill] sm:$0xff] %v21140_v40 }
 0x518   : > { %4018 = vmax.xlane.f32.xlu0 %v4017_v23  ;;  %v4002_v23 = vsel %vm3911_vm4, %v21136_v3, -inf  ;;  %v4005_v3 = vsel %vm3911_vm4, %v21153_v12, -inf }
 0x519   : > { %v21168_v10 = vpop.trf.xlu0 }
 0x51a   : > { %4009 = vmax.xlane.f32.xlu1 %v4008_v27  ;;  %v21160_v27 = vsel %vm20853_vm9, %v20933_v50, -1e+30  ;;  %v21164_v40 = vpop.trf.xlu1  ;;  %24598 = vst [vmem:[#allocation77_spill] sm:$0xff] %v21168_v10  ;;  %v21179_v50 = vsel %vm20846_vm8, %v16818_v7, -1e+30 }
 0x51b   : > { %v21142_v39 = vpop.f32.mrb[84].mxu1  ;;  %24597 = vst [vmem:[#allocation76_spill] sm:$0xff] %v21164_v40  ;;  %v3996_v37 = vsel %vm3911_vm4, %v21160_v27, -inf  ;;  %v4026_v10 = vsel %vm3911_vm4, %v21179_v50, -inf  ;;  %v21187_v40 = vsel %vm20857_vm10, %v16819_v44, -1e+30 }
 0x51c   : > { %v21146_v52 = vpop.f32.mrb[85].mxu1  ;;  %4012 = vmax.xlane.f32.xlu0 %v4011_v49  ;;  %v21175_v49 = vsel %vm20867_vm11, %v20937_v19, -1e+30  ;;  %v21194_v19 = vsel %vm20853_vm9, %v21064_v51, -1e+30 }
 0x51d   : > { %v21155_v18 = vpop.f32.mrb[86].mxu1  ;;  %v21196_v7 = vpop.trf.xlu0  ;;  %v21204_v44 = vsel %vm20867_vm11, %v3569_v16, -1e+30  ;;  %v21222_v16 = vsel %vm20817_vm6, %v20959_v2, -1e+30 }
 0x51e   : > { %v21162_v54 = vpop.f32.mrb[87].mxu1  ;;  %4003 = vmax.xlane.f32.xlu1 %v4002_v23  ;;  %v3999_v23 = vsel %vm3911_vm4, %v21175_v49, -inf  ;;  %v21189_v12 = vpop.trf.xlu1  ;;  %24600 = vst [vmem:[#allocation79_spill] sm:$0xff] %v21196_v7  ;;  %24603 = vst [vmem:[#allocation82_spill] sm:$0xff] %v21222_v16 }
 0x51f   : > { %24599 = vst [vmem:[#allocation78_spill] sm:$0xff] %v21189_v12 }
 0x520   : > { %4006 = vmax.xlane.f32.xlu0 %v4005_v3  ;;  %v4029_v3 = vsel %vm3911_vm4, %v21187_v40, -inf }
 0x521   : > { %v21215_v7 = vpop.trf.xlu0 }
 0x522   : > { %3997 = vmax.xlane.f32.xlu1 %v3996_v37  ;;  %v4020_v37 = vsel %vm3911_vm4, %v21194_v19, -inf  ;;  %v21211_v51 = vpop.trf.xlu1  ;;  %24602 = vst [vmem:[#allocation81_spill] sm:$0xff] %v21215_v7  ;;  %v21236_v7 = vsel %vm20821_vm7, %v20965_v63, -1e+30  ;;  %v21250_v63 = vsel %vm20817_vm6, %v16843_v6, -1e+30 }
 0x523   : > { %24601 = vst [vmem:[#allocation80_spill] sm:$0xff] %v21211_v51  ;;  %24604 = vst [vmem:[#allocation83_spill] sm:$0xff] %v21236_v7  ;;  %v21265_v6 = vsel %vm20821_vm7, %v21123_v43, -1e+30  ;;  %v21280_v43 = vsel %vm20857_vm10, %v21003_v8, -1e+30 }
 0x524   : > { %4000 = vmax.xlane.f32.xlu0 %v3999_v23  ;;  %v21209_v23 = vsel %vm20804_vm3, %v20943_v41, -1e+30  ;;  %v21227_v41 = vsel %vm20809_vm5, %v20949_v30, -1e+30  ;;  %v21295_v8 = vsel %vm20853_vm9, %v21146_v52, -1e+30 }
 0x525   : > { %v4038_v12 = vsel %vm3911_vm4, %v21209_v23, -inf  ;;  %v3914_v30 = vpop.xlane.xlu0 %3913 }
 0x526   : > { %4027 = vmax.xlane.f32.xlu1 %v4026_v10  ;;  %v4023_v10 = vsel %vm3911_vm4, %v21204_v44, -inf  ;;  %v3920_v2 = vpop.xlane.xlu1 %3919 }
 0x527   : > { %v4106_v51 = vsub.f32 %v20815_v25, %v3920_v2  ;;  %v4104_v25 = vsub.f32 %v20829_v60, %v3914_v30  ;;  %v4059_v60 = vsel %vm3911_vm4, %v21265_v6, -inf }
 0x528   : > { %4030 = vmax.xlane.f32.xlu0 %v4029_v3  ;;  %v4041_v3 = vsel %vm3911_vm4, %v21222_v16, -inf }
 0x529   : > { %v3923_v2 = vpop.xlane.xlu0 %3922 }
 0x52a   : > { %4021 = vmax.xlane.f32.xlu1 %v4020_v37  ;;  %v4032_v37 = vsel %vm3911_vm4, %v21227_v41, -inf  ;;  %v3917_v30 = vpop.xlane.xlu1 %3916 }
 0x52c   : > { %4024 = vmax.xlane.f32.xlu0 %v4023_v10  ;;  %v21241_v10 = vsel %vm20804_vm3, %v21101_v38, -1e+30  ;;  %v21255_v38 = vsel %vm20809_vm5, %v21117_v45, -1e+30  ;;  %v21270_v45 = vsel %vm20846_vm8, %v20991_v36, -1e+30 }
 0x52d   : > { %v4062_v16 = vsel %vm3911_vm4, %v21241_v10, -inf  ;;  %v21285_v36 = vsel %vm20853_vm9, %v20999_v35, -1e+30  ;;  %v21300_v35 = vsel %vm20846_vm8, %v21142_v39, -1e+30  ;;  %v3935_v39 = vpop.xlane.xlu0 %3934 }
 0x52e   : > { %4039 = vmax.xlane.f32.xlu1 %v4038_v12  ;;  %v4035_v12 = vsel %vm3911_vm4, %v21236_v7, -inf  ;;  %v4056_v7 = vsel %vm3911_vm4, %v21255_v38, -inf  ;;  %v4074_v52 = vsel %vm3911_vm4, %v21300_v35, -inf }
 0x530   : > { %4042 = vmax.xlane.f32.xlu0 %v4041_v3  ;;  %v4065_v3 = vsel %vm3911_vm4, %v21250_v63, -inf }
 0x532   : > { %4033 = vmax.xlane.f32.xlu1 %v4032_v37  ;;  %v4172_v37 = vmul.f32 1.442695, %v4106_v51  ;;  %v4107_v51 = vsub.f32 %v20836_v31, %v3923_v2  ;;  %v4105_v31 = vsub.f32 %v20840_v15, %v3917_v30  ;;  %v4068_v2 = vsel %vm3911_vm4, %v21295_v8, -inf }
 0x534   : > { %4036 = vmax.xlane.f32.xlu0 %v4035_v12  ;;  %18993 = vpow2.f32 %v4172_v37  ;;  %v4050_v12 = vsel %vm3911_vm4, %v21270_v45, -inf  ;;  %v4044_v37 = vsel %vm3911_vm4, %v21285_v36, -inf  ;;  %v4170_v15 = vmul.f32 1.442695, %v4105_v31 }
 0x536   : > { %4063 = vmax.xlane.f32.xlu1 %v4062_v16  ;;  %v4168_v16 = vmul.f32 1.442695, %v4104_v25  ;;  %v3932_v25 = vpop.xlane.xlu1 %3931 }
 0x537   : > { %v4110_v30 = vsub.f32 %v20863_v24, %v3932_v25  ;;  %v3929_v25 = vpop.xlane.xlu0 %3928 }
 0x538   : > { %4066 = vmax.xlane.f32.xlu0 %v4065_v3  ;;  %v4053_v3 = vsel %vm3911_vm4, %v21280_v43, -inf  ;;  %18995 = vpow2.f32 %v4168_v16 }
 0x53a   : > { %4057 = vmax.xlane.f32.xlu1 %v4056_v7  ;;  %v4174_v7 = vmul.f32 1.442695, %v4107_v51  ;;  %v21307_v51 = vsel %vm20867_vm11, %v21013_v47, -1e+30  ;;  %v3926_v47 = vpop.xlane.xlu1 %3925 }
 0x53b   : > { %v4047_v16 = vsel %vm3911_vm4, %v21307_v51, -inf  ;;  %v4108_v24 = vsub.f32 %v20873_v59, %v3926_v47 }
 0x53c   : > { %4060 = vmax.xlane.f32.xlu0 %v4059_v60  ;;  %18997 = vpow2.f32 %v4174_v7 }
 0x53d   : > { %18999 = vpow2.f32 %v4170_v15  ;;  %v4180_v15 = vmul.f32 1.442695, %v4110_v30 }
 0x53e   : > { %4051 = vmax.xlane.f32.xlu1 %v4050_v12  ;;  %v21311_v60 = vpop.eup %18993  ;;  %v21319_v12 = vsel %vm20857_vm10, %v21155_v18, -1e+30 }
 0x53f   : > { %v4302_v31 = vsel %vm3911_vm4, %v21311_v60, 0.0  ;;  %19001 = vpow2.f32 %v4180_v15  ;;  %v4080_v15 = vsel %vm3911_vm4, %v21362_v28, -inf }
 0x540   : > { %4054 = vmax.xlane.f32.xlu0 %v4053_v3  ;;  %v4111_v3 = vsub.f32 %v20877_v13, %v3935_v39  ;;  %v4109_v39 = vsub.f32 %v20883_v34, %v3929_v25 }
 0x542   : > { %4045 = vmax.xlane.f32.xlu1 %v4044_v37  ;;  %v21323_v7 = vpop.eup %18995  ;;  %v4077_v37 = vsel %vm3911_vm4, %v21319_v12, -inf  ;;  %v4182_v13 = vmul.f32 1.442695, %v4111_v3 }
 0x543   : > { %v4296_v18 = vsel %vm3911_vm4, %v21323_v7, 0.0 }
 0x544   : > { %4069 = vmax.xlane.f32.xlu0 %v4068_v2  ;;  %19003 = vpow2.f32 %v4182_v13  ;;  %v21392_v13 = vsel %vm20846_vm8, %v21091_v33, -1e+30 }
 0x546   : > { %4075 = vmax.xlane.f32.xlu1 %v4074_v52  ;;  %v21329_v2 = vpop.eup %18997  ;;  %v21336_v52 = vsel %vm20867_vm11, %v21162_v54, -1e+30  ;;  %v21348_v54 = vsel %vm20804_vm3, %v21039_v62, -1e+30 }
 0x547   : > { %v4305_v59 = vsel %vm3911_vm4, %v21329_v2, 0.0  ;;  %v21341_v30 = vpop.eup %18999  ;;  %v4071_v47 = vsel %vm3911_vm4, %v21336_v52, -inf  ;;  %v4086_v3 = vsel %vm3911_vm4, %v21348_v54, -inf }
 0x548   : > { %4048 = vmax.xlane.f32.xlu0 %v4047_v16  ;;  %v4176_v16 = vmul.f32 1.442695, %v4108_v24  ;;  %v4299_v34 = vsel %vm3911_vm4, %v21341_v30, 0.0 }
 0x54a   : > { %4303 = vadd.xlane.f32.xlu1 %v4302_v31  ;;  %v4178_v31 = vmul.f32 1.442695, %v4109_v39  ;;  %19005 = vpow2.f32 %v4176_v16 }
 0x54c   : > { %4078 = vmax.xlane.f32.xlu0 %v4077_v37  ;;  %v21357_v37 = vsel %vm20817_vm6, %v21058_v5, -1e+30  ;;  %19007 = vpow2.f32 %v4178_v31  ;;  %v21373_v5 = vpop.eup %19001  ;;  %v4098_v31 = vsel %vm3911_vm4, %v21392_v13, -inf }
 0x54d   : > { %v4089_v62 = vsel %vm3911_vm4, %v21357_v37, -inf  ;;  %v4314_v24 = vsel %vm3911_vm4, %v21373_v5, 0.0 }
 0x54e   : > { %4297 = vadd.xlane.f32.xlu1 %v4296_v18  ;;  %v21377_v53 = vpop.eup %19003 }
 0x54f   : > { %v4317_v14 = vsel %vm3911_vm4, %v21377_v53, 0.0 }
 0x550   : > { %4306 = vadd.xlane.f32.xlu0 %v4305_v59 }
 0x552   : > { %4072 = vmax.xlane.f32.xlu1 %v4071_v47 }
 0x554   : > { %4300 = vadd.xlane.f32.xlu0 %v4299_v34  ;;  %v21381_v25 = vpop.eup %19005  ;;  %v21402_v34 = vsel %vm20853_vm9, %v21097_v22, -1e+30 }
 0x555   : > { %v4308_v18 = vsel %vm3911_vm4, %v21381_v25, 0.0 }
 0x556   : > { %4087 = vmax.xlane.f32.xlu1 %v4086_v3  ;;  %v21385_v9 = vpop.eup %19007 }
 0x557   : > { %v4311_v59 = vsel %vm3911_vm4, %v21385_v9, 0.0 }
 0x558   : > { %4090 = vmax.xlane.f32.xlu0 %v4089_v62 }
 0x55a   : > { %4081 = vmax.xlane.f32.xlu1 %v4080_v15  ;;  %v21410_v15 = vsel %vm20857_vm10, %v21099_v56, -1e+30 }
 0x55c   : > { %4084 = vmax.xlane.f32.xlu0 %v4083_v46 }
 0x55e   : > { %4315 = vadd.xlane.f32.xlu1 %v4314_v24  ;;  %v21418_v24 = vsel %vm20867_vm11, %v21107_v4, -1e+30 }
 0x560   : > { %4318 = vadd.xlane.f32.xlu0 %v4317_v14  ;;  %v4095_v14 = vsel %vm3911_vm4, %v21418_v24, -inf }
 0x562   : > { %4309 = vadd.xlane.f32.xlu1 %v4308_v18  ;;  %v24445_v18 = vmov 0.0  }
 0x563   : > { %v3944_v39 = vpop.xlane.xlu1 %3943  ;;  %16862 = vmatprep.subr.bf16.mxu1 %v24445_v18  ;;  %16882 = vmatprep.subr.bf16.mxu0 %v24445_v18 }
 0x564   : > { %v4114_v16 = vsub.f32 %v20891_v26, %v3944_v39  ;;  %v3938_v47 = vpop.xlane.xlu0 %3937  ;;  %4312 = vadd.xlane.f32.xlu0 %v4311_v59  ;;  %v4092_v26 = vsel %vm3911_vm4, %v21402_v34, -inf  ;;  %16870 = vmatprep.mubr.msk.bf16.mxu1 %vm19764_vm12, %v24445_v18 }
 0x565   : > { %v4112_v21 = vsub.f32 %v20897_v58, %v3938_v47  ;;  %v4101_v58 = vsel %vm3911_vm4, %v21410_v15, -inf  ;;  %16890 = vmatprep.mubr.msk.bf16.mxu0 %vm19764_vm12, %v24445_v18 }
 0x566   : > { %v4188_v33 = vmul.f32 1.442695, %v4114_v16  ;;  %4099 = vmax.xlane.f32.xlu1 %v4098_v31 }
 0x567   : > { %v4184_v3 = vmul.f32 1.442695, %v4112_v21 }
 0x568   : > { %19009 = vpow2.f32 %v4188_v33  ;;  %v3947_v62 = vpop.xlane.xlu0 %3946  ;;  %4093 = vmax.xlane.f32.xlu0 %v4092_v26 }
 0x569   : > { %v4115_v17 = vsub.f32 %v20903_v1, %v3947_v62  ;;  %19011 = vpow2.f32 %v4184_v3 }
 0x56b   : > { %v4190_v22 = vmul.f32 1.442695, %v4115_v17 }
 0x56c   : > { %v3941_v46 = vpop.xlane.xlu0 %3940  ;;  %4102 = vmax.xlane.f32.xlu0 %v4101_v58 }
 0x56d   : > { %19013 = vpow2.f32 %v4190_v22  ;;  %v4113_v20 = vsub.f32 %v20909_v55, %v3941_v46 }
 0x56f   : > { %v4186_v56 = vmul.f32 1.442695, %v4113_v20 }
 0x570   : > { %4096 = vmax.xlane.f32.xlu0 %v4095_v14 }
 0x571   : > { %19015 = vpow2.f32 %v4186_v56 }
 0x572   : > { %v21423_v1 = vpop.eup %19009 }
 0x573   : > { %v4326_v57 = vsel %vm3911_vm4, %v21423_v1, 0.0  ;;  %v21429_v4 = vpop.eup %19011 }
 0x574   : > { %4327 = vadd.xlane.f32.xlu1 %v4326_v57  ;;  %v4320_v39 = vsel %vm3911_vm4, %v21429_v4, 0.0 }
 0x577   : > { %v21431_v55 = vpop.eup %19013 }
 0x578   : > { %4321 = vadd.xlane.f32.xlu1 %v4320_v39  ;;  %v4329_v16 = vsel %vm3911_vm4, %v21431_v55, 0.0 }
 0x579   : > { %4330 = vadd.xlane.f32.xlu0 %v4329_v16 }
 0x57b   : > { %v21437_v59 = vpop.eup %19015 }
 0x57c   : > { %v4323_v47 = vsel %vm3911_vm4, %v21437_v59, 0.0 }
 0x57d   : > { %4324 = vadd.xlane.f32.xlu0 %v4323_v47 }
 0x583   : > { %v3968_v31 = vpop.xlane.xlu1 %3967 }
 0x584   : > { %v4122_v21 = vsub.f32 %v20947_v32, %v3968_v31 }
 0x585   : > { %v3971_v3 = vpop.xlane.xlu0 %3970 }
 0x586   : > { %v4204_v33 = vmul.f32 1.442695, %v4122_v21  ;;  %v4123_v26 = vsub.f32 %v20963_v42, %v3971_v3  ;;  %v24606_v3 = vld [vmem:[#allocation52_spill] sm:$0xff] }
 0x587   : > { %v3962_v62 = vpop.xlane.xlu1 %3961 }
 0x588   : > { %19017 = vpow2.f32 %v4204_v33  ;;  %v4120_v17 = vsub.f32 %v20957_v0, %v3962_v62  ;;  %v4206_v22 = vmul.f32 1.442695, %v4123_v26  ;;  %v24607_v62 = vld [vmem:[#allocation50_spill] sm:$0xff] }
 0x589   : > { %v3965_v46 = vpop.xlane.xlu0 %3964 }
 0x58a   : > { %v4200_v58 = vmul.f32 1.442695, %v4120_v17  ;;  %19019 = vpow2.f32 %v4206_v22  ;;  %v4121_v20 = vsub.f32 %v20973_v61, %v3965_v46  ;;  %v24605_v61 = vld [vmem:[#allocation47_spill] sm:$0xff] }
 0x58b   : > { %v3956_v56 = vpop.xlane.xlu1 %3955 }
 0x58c   : > { %19021 = vpow2.f32 %v4200_v58  ;;  %v4118_v14 = vsub.f32 %v20979_v29, %v3956_v56  ;;  %v4202_v57 = vmul.f32 1.442695, %v4121_v20 }
 0x58d   : > { %v3959_v39 = vpop.xlane.xlu0 %3958 }
 0x58e   : > { %v4196_v32 = vmul.f32 1.442695, %v4118_v14  ;;  %19023 = vpow2.f32 %v4202_v57  ;;  %v4119_v47 = vsub.f32 %v24605_v61, %v3959_v39  ;;  %v24608_v14 = vld [vmem:[#allocation54_spill] sm:$0xff] }
 0x58f   : > { %v3950_v16 = vpop.xlane.xlu1 %3949 }
 0x590   : > { %19025 = vpow2.f32 %v4196_v32  ;;  %v4116_v42 = vsub.f32 %v20997_v11, %v3950_v16  ;;  %v4198_v58 = vmul.f32 1.442695, %v4119_v47  ;;  %v24609_v16 = vld [vmem:[#allocation56_spill] sm:$0xff] }
 0x591   : > { %v3953_v31 = vpop.xlane.xlu0 %3952 }
 0x592   : > { %v21451_v0 = vpop.eup %19017  ;;  %v4192_v29 = vmul.f32 1.442695, %v4116_v42  ;;  %v4117_v17 = vsub.f32 %v24607_v62, %v3953_v31 }
 0x593   : > { %v3980_v21 = vpop.xlane.xlu1 %3979  ;;  %v4350_v33 = vsel %vm3911_vm4, %v21451_v0, 0.0 }
 0x594   : > { %19027 = vpow2.f32 %v4192_v29  ;;  %v4126_v11 = vsub.f32 %v24606_v3, %v3980_v21  ;;  %4351 = vadd.xlane.f32.xlu1 %v4350_v33  ;;  %v21457_v26 = vpop.eup %19019  ;;  %v4194_v29 = vmul.f32 1.442695, %v4117_v17 }
 0x595   : > { %v3983_v20 = vpop.xlane.xlu0 %3982  ;;  %v4353_v56 = vsel %vm3911_vm4, %v21457_v26, 0.0 }
 0x596   : > { %v21460_v22 = vpop.eup %19021  ;;  %v4212_v46 = vmul.f32 1.442695, %v4126_v11  ;;  %v4127_v57 = vsub.f32 %v24608_v14, %v3983_v20  ;;  %4354 = vadd.xlane.f32.xlu0 %v4353_v56  ;;  %v24611_v11 = vld [vmem:[#allocation58_spill] sm:$0xff]  ;;  %v24612_v56 = vld [vmem:[#allocation60_spill] sm:$0xff] }
 0x597   : > { %v3974_v32 = vpop.xlane.xlu1 %3973  ;;  %v4344_v39 = vsel %vm3911_vm4, %v21460_v22, 0.0 }
 0x598   : > { %19029 = vpow2.f32 %v4212_v46  ;;  %v4124_v42 = vsub.f32 %v24609_v16, %v3974_v32  ;;  %4345 = vadd.xlane.f32.xlu1 %v4344_v39  ;;  %v21468_v61 = vpop.eup %19023  ;;  %v4214_v31 = vmul.f32 1.442695, %v4127_v57  ;;  %v24614_v39 = vld [vmem:[#allocation61_spill] sm:$0xff] }
 0x599   : > { %19031 = vpow2.f32 %v4198_v58  ;;  %v3977_v33 = vpop.xlane.xlu0 %3976  ;;  %v4347_v3 = vsel %vm3911_vm4, %v21468_v61, 0.0 }
 0x59a   : > { %v21470_v47 = vpop.eup %19025  ;;  %v4208_v21 = vmul.f32 1.442695, %v4124_v42  ;;  %v4125_v62 = vsub.f32 %v24611_v11, %v3977_v33  ;;  %4348 = vadd.xlane.f32.xlu0 %v4347_v3  ;;  %v24615_v3 = vld [vmem:[#allocation62_spill] sm:$0xff] }
 0x59b   : > { %24610 = vst [vmem:[#allocation47_spill] sm:$0xff] %v21470_v47  ;;  %v3992_v20 = vpop.xlane.xlu1 %3991  ;;  %v4338_v46 = vsel %vm3911_vm4, %v21470_v47, 0.0 }
 0x59c   : > { %19033 = vpow2.f32 %v4208_v21  ;;  %v4130_v14 = vsub.f32 %v24612_v56, %v3992_v20  ;;  %4339 = vadd.xlane.f32.xlu1 %v4338_v46  ;;  %v4210_v17 = vmul.f32 1.442695, %v4125_v62  ;;  %v24617_v46 = vld [vmem:[#allocation65_spill] sm:$0xff] }
 0x59d   : > { %19035 = vpow2.f32 %v4194_v29  ;;  %v3995_v32 = vpop.xlane.xlu0 %3994 }
 0x59e   : > { %v21478_v58 = vpop.eup %19027  ;;  %19037 = vpow2.f32 %v4214_v31  ;;  %v4220_v57 = vmul.f32 1.442695, %v4130_v14  ;;  %v4131_v16 = vsub.f32 %v24614_v39, %v3995_v32  ;;  %v24619_v39 = vld [vmem:[#allocation66_spill] sm:$0xff] }
 0x59f   : > { %24613 = vst [vmem:[#allocation52_spill] sm:$0xff] %v21478_v58  ;;  %v3986_v42 = vpop.xlane.xlu1 %3985  ;;  %v4332_v33 = vsel %vm3911_vm4, %v21478_v58, 0.0  ;;  %19039 = vpow2.f32 %v4210_v17 }
 0x5a0   : > { %v4128_v11 = vsub.f32 %v24615_v3, %v3986_v42  ;;  %4333 = vadd.xlane.f32.xlu1 %v4332_v33  ;;  %v4222_v21 = vmul.f32 1.442695, %v4131_v16  ;;  %19041 = vpow2.f32 %v4220_v57  ;;  %v24621_v3 = vld [vmem:[#allocation69_spill] sm:$0xff] }
 0x5a1   : > { %v3989_v62 = vpop.xlane.xlu0 %3988 }
 0x5a2   : > { %v21484_v20 = vpop.eup %19029  ;;  %v4216_v29 = vmul.f32 1.442695, %v4128_v11  ;;  %v4129_v31 = vsub.f32 %v24617_v46, %v3989_v62  ;;  %19043 = vpow2.f32 %v4222_v21  ;;  %v24623_v21 = vld [vmem:[#allocation70_spill] sm:$0xff] }
 0x5a3   : > { %24616 = vst [vmem:[#allocation50_spill] sm:$0xff] %v21484_v20  ;;  %v4016_v56 = vpop.xlane.xlu1 %4015  ;;  %v4362_v14 = vsel %vm3911_vm4, %v21484_v20, 0.0  ;;  %v21489_v32 = vpop.eup %19031 }
 0x5a4   : > { %24618 = vst [vmem:[#allocation54_spill] sm:$0xff] %v21489_v32  ;;  %v4138_v18 = vsub.f32 %v24619_v39, %v4016_v56  ;;  %4363 = vadd.xlane.f32.xlu0 %v4362_v14  ;;  %v4218_v42 = vmul.f32 1.442695, %v4129_v31  ;;  %19045 = vpow2.f32 %v4216_v29  ;;  %v4341_v20 = vsel %vm3911_vm4, %v21489_v32, 0.0 }
 0x5a5   : > { %v4019_v57 = vpop.xlane.xlu0 %4018 }
 0x5a6   : > { %v21492_v17 = vpop.eup %19033  ;;  %v4236_v16 = vmul.f32 1.442695, %v4138_v18  ;;  %v4139_v11 = vsub.f32 %v24621_v3, %v4019_v57  ;;  %19047 = vpow2.f32 %v4218_v42  ;;  %v24624_v57 = vld [vmem:[#allocation71_spill] sm:$0xff]  ;;  %v24626_v42 = vld [vmem:[#allocation72_spill] sm:$0xff] }
 0x5a7   : > { %24620 = vst [vmem:[#allocation56_spill] sm:$0xff] %v21492_v17  ;;  %v21494_v33 = vpop.eup %19035  ;;  %v4010_v62 = vpop.xlane.xlu1 %4009  ;;  %v4356_v46 = vsel %vm3911_vm4, %v21492_v17, 0.0 }
 0x5a8   : > { %v21501_v56 = vpop.eup %19037  ;;  %v4136_v31 = vsub.f32 %v24623_v21, %v4010_v62  ;;  %4357 = vadd.xlane.f32.xlu1 %v4356_v46  ;;  %4342 = vadd.xlane.f32.xlu0 %v4341_v20  ;;  %v4238_v18 = vmul.f32 1.442695, %v4139_v11  ;;  %19049 = vpow2.f32 %v4236_v16  ;;  %v4335_v17 = vsel %vm3911_vm4, %v21494_v33, 0.0 }
 0x5a9   : > { %24622 = vst [vmem:[#allocation58_spill] sm:$0xff] %v21501_v56  ;;  %v4013_v14 = vpop.xlane.xlu0 %4012  ;;  %v21504_v39 = vpop.eup %19039  ;;  %v4365_v32 = vsel %vm3911_vm4, %v21501_v56, 0.0 }
 0x5aa   : > { %v4232_v29 = vmul.f32 1.442695, %v4136_v31  ;;  %v4137_v3 = vsub.f32 %v24624_v57, %v4013_v14  ;;  %v21511_v58 = vpop.eup %19041  ;;  %19051 = vpow2.f32 %v4238_v18  ;;  %v4359_v31 = vsel %vm3911_vm4, %v21504_v39, 0.0 }
 0x5ab   : > { %v4004_v47 = vpop.xlane.xlu1 %4003  ;;  %24625 = vst [vmem:[#allocation60_spill] sm:$0xff] %v21511_v58  ;;  %v4374_v21 = vsel %vm3911_vm4, %v21511_v58, 0.0 }
 0x5ac   : > { %4336 = vadd.xlane.f32.xlu0 %v4335_v17  ;;  %4366 = vadd.xlane.f32.xlu1 %v4365_v32  ;;  %19053 = vpow2.f32 %v4232_v29  ;;  %v4234_v20 = vmul.f32 1.442695, %v4137_v3  ;;  %v4134_v16 = vsub.f32 %v24626_v42, %v4004_v47  ;;  %v21514_v62 = vpop.eup %19043 }
 0x5ad   : > { %v4007_v11 = vpop.xlane.xlu0 %4006  ;;  %24627 = vst [vmem:[#allocation61_spill] sm:$0xff] %v21514_v62  ;;  %v4377_v42 = vsel %vm3911_vm4, %v21514_v62, 0.0 }
 0x5ae   : > { %v21520_v14 = vpop.eup %19045  ;;  %19055 = vpow2.f32 %v4234_v20  ;;  %v4228_v32 = vmul.f32 1.442695, %v4134_v16  ;;  %v24629_v20 = vld [vmem:[#allocation75_spill] sm:$0xff] }
 0x5af   : > { %v3998_v46 = vpop.xlane.xlu1 %3997  ;;  %24628 = vst [vmem:[#allocation62_spill] sm:$0xff] %v21520_v14  ;;  %v4368_v3 = vsel %vm3911_vm4, %v21520_v14, 0.0  ;;  %v4135_v16 = vsub.f32 %v24629_v20, %v4007_v11 }
 0x5b0   : > { %v4132_v17 = vsub.f32 %v21160_v27, %v3998_v46  ;;  %4375 = vadd.xlane.f32.xlu1 %v4374_v21  ;;  %4360 = vadd.xlane.f32.xlu0 %v4359_v31  ;;  %v21523_v29 = vpop.eup %19047 }
 0x5b1   : > { %v4001_v47 = vpop.xlane.xlu0 %4000  ;;  %v4230_v11 = vmul.f32 1.442695, %v4135_v16 }
 0x5b2   : > { %v4224_v18 = vmul.f32 1.442695, %v4132_v17  ;;  %v21529_v58 = vpop.eup %19049 }
 0x5b3   : > { %v4028_v57 = vpop.xlane.xlu1 %4027  ;;  %v4398_v62 = vsel %vm3911_vm4, %v21529_v58, 0.0 }
 0x5b4   : > { %19057 = vpow2.f32 %v4224_v18  ;;  %v4142_v27 = vsub.f32 %v21179_v50, %v4028_v57  ;;  %4369 = vadd.xlane.f32.xlu1 %v4368_v3  ;;  %4378 = vadd.xlane.f32.xlu0 %v4377_v42  ;;  %v21533_v31 = vpop.eup %19051  ;;  %v4371_v18 = vsel %vm3911_vm4, %v21523_v29, 0.0 }
 0x5b5   : > { %19059 = vpow2.f32 %v4228_v32  ;;  %v4031_v21 = vpop.xlane.xlu0 %4030  ;;  %v4133_v32 = vsub.f32 %v21175_v49, %v4001_v47  ;;  %v4401_v20 = vsel %vm3911_vm4, %v21533_v31, 0.0 }
 0x5b6   : > { %v4244_v46 = vmul.f32 1.442695, %v4142_v27  ;;  %v4143_v17 = vsub.f32 %v21187_v40, %v4031_v21  ;;  %v21540_v56 = vpop.eup %19053 }
 0x5b7   : > { %v4022_v14 = vpop.xlane.xlu1 %4021  ;;  %v4392_v27 = vsel %vm3911_vm4, %v21540_v56, 0.0  ;;  %v4226_v49 = vmul.f32 1.442695, %v4133_v32 }
 0x5b8   : > { %v4140_v50 = vsub.f32 %v21194_v19, %v4022_v14  ;;  %4399 = vadd.xlane.f32.xlu1 %v4398_v62  ;;  %4372 = vadd.xlane.f32.xlu0 %v4371_v18  ;;  %19061 = vpow2.f32 %v4244_v46  ;;  %v4246_v57 = vmul.f32 1.442695, %v4143_v17  ;;  %v21548_v21 = vpop.eup %19055 }
 0x5b9   : > { %v4025_v40 = vpop.xlane.xlu0 %4024  ;;  %v4395_v18 = vsel %vm3911_vm4, %v21548_v21, 0.0 }
 0x5ba   : > { %v4240_v3 = vmul.f32 1.442695, %v4140_v50  ;;  %v4141_v62 = vsub.f32 %v21204_v44, %v4025_v40 }
 0x5bb   : > { %v4040_v42 = vpop.xlane.xlu1 %4039 }
 0x5bc   : > { %19063 = vpow2.f32 %v4240_v3  ;;  %v4146_v19 = vsub.f32 %v21209_v23, %v4040_v42  ;;  %4393 = vadd.xlane.f32.xlu1 %v4392_v27  ;;  %4402 = vadd.xlane.f32.xlu0 %v4401_v20  ;;  %v4242_v44 = vmul.f32 1.442695, %v4141_v62 }
 0x5bd   : > { %19065 = vpow2.f32 %v4230_v11  ;;  %v4043_v16 = vpop.xlane.xlu0 %4042  ;;  %v24630_v11 = vld [vmem:[#allocation82_spill] sm:$0xff] }
 0x5be   : > { %v21552_v14 = vpop.eup %19057  ;;  %19067 = vpow2.f32 %v4246_v57  ;;  %v4252_v47 = vmul.f32 1.442695, %v4146_v19  ;;  %v4147_v32 = vsub.f32 %v24630_v11, %v4043_v16  ;;  %v24632_v19 = vld [vmem:[#allocation83_spill] sm:$0xff] }
 0x5bf   : > { %v4034_v46 = vpop.xlane.xlu1 %4033  ;;  %v4380_v17 = vsel %vm3911_vm4, %v21552_v14, 0.0  ;;  %v21558_v50 = vpop.eup %19059  ;;  %19069 = vpow2.f32 %v4226_v49 }
 0x5c0   : > { %v4144_v23 = vsub.f32 %v21227_v41, %v4034_v46  ;;  %4381 = vadd.xlane.f32.xlu1 %v4380_v17  ;;  %4396 = vadd.xlane.f32.xlu0 %v4395_v18  ;;  %19071 = vpow2.f32 %v4252_v47  ;;  %v4386_v42 = vsel %vm3911_vm4, %v21558_v50, 0.0  ;;  %v4254_v41 = vmul.f32 1.442695, %v4147_v32 }
 0x5c1   : > { %v4037_v3 = vpop.xlane.xlu0 %4036  ;;  %19073 = vpow2.f32 %v4242_v44 }
 0x5c2   : > { %v4248_v57 = vmul.f32 1.442695, %v4144_v23  ;;  %v21564_v27 = vpop.eup %19061  ;;  %v4145_v46 = vsub.f32 %v24632_v19, %v4037_v3 }
 0x5c3   : > { %v4064_v40 = vpop.xlane.xlu1 %4063  ;;  %24631 = vst [vmem:[#allocation65_spill] sm:$0xff] %v21564_v27  ;;  %v4410_v23 = vsel %vm3911_vm4, %v21564_v27, 0.0 }
 0x5c4   : > { %v4154_v20 = vsub.f32 %v21241_v10, %v4064_v40  ;;  %4387 = vadd.xlane.f32.xlu0 %v4386_v42  ;;  %19075 = vpow2.f32 %v4248_v57  ;;  %v4250_v11 = vmul.f32 1.442695, %v4145_v46 }
 0x5c5   : > { %v4067_v47 = vpop.xlane.xlu0 %4066  ;;  %19077 = vpow2.f32 %v4254_v41 }
 0x5c6   : > { %v21568_v49 = vpop.eup %19063  ;;  %v4268_v62 = vmul.f32 1.442695, %v4154_v20  ;;  %v4155_v32 = vsub.f32 %v21250_v63, %v4067_v47 }
 0x5c7   : > { %v21570_v16 = vpop.eup %19065  ;;  %v4058_v17 = vpop.xlane.xlu1 %4057  ;;  %v4404_v18 = vsel %vm3911_vm4, %v21568_v49, 0.0 }
 0x5c8   : > { %v21576_v10 = vpop.eup %19067  ;;  %v4152_v44 = vsub.f32 %v21255_v38, %v4058_v17  ;;  %4405 = vadd.xlane.f32.xlu1 %v4404_v18  ;;  %4411 = vadd.xlane.f32.xlu0 %v4410_v23  ;;  %19079 = vpow2.f32 %v4268_v62  ;;  %v4389_v20 = vsel %vm3911_vm4, %v21570_v16, 0.0  ;;  %v4270_v38 = vmul.f32 1.442695, %v4155_v32 }
 0x5c9   : > { %v4061_v3 = vpop.xlane.xlu0 %4060  ;;  %v21580_v40 = vpop.eup %19069  ;;  %v4413_v19 = vsel %vm3911_vm4, %v21576_v10, 0.0  ;;  %19081 = vpow2.f32 %v4250_v11 }
 0x5ca   : > { %v4264_v57 = vmul.f32 1.442695, %v4152_v44  ;;  %v21586_v27 = vpop.eup %19071  ;;  %v4153_v63 = vsub.f32 %v21265_v6, %v4061_v3  ;;  %v4383_v47 = vsel %vm3911_vm4, %v21580_v40, 0.0 }
 0x5cb   : > { %v4052_v42 = vpop.xlane.xlu1 %4051  ;;  %24633 = vst [vmem:[#allocation66_spill] sm:$0xff] %v21586_v27  ;;  %v21589_v46 = vpop.eup %19073  ;;  %v4422_v17 = vsel %vm3911_vm4, %v21586_v27, 0.0 }
 0x5cc   : > { %4390 = vadd.xlane.f32.xlu0 %v4389_v20  ;;  %4414 = vadd.xlane.f32.xlu1 %v4413_v19  ;;  %19083 = vpow2.f32 %v4264_v57  ;;  %v4266_v44 = vmul.f32 1.442695, %v4153_v63  ;;  %v4150_v6 = vsub.f32 %v21270_v45, %v4052_v42  ;;  %v4407_v27 = vsel %vm3911_vm4, %v21589_v46, 0.0 }
 0x5cd   : > { %v4055_v41 = vpop.xlane.xlu0 %4054  ;;  %19085 = vpow2.f32 %v4270_v38 }
 0x5ce   : > { %v21595_v18 = vpop.eup %19075  ;;  %v4260_v45 = vmul.f32 1.442695, %v4150_v6 }
 0x5cf   : > { %v4046_v62 = vpop.xlane.xlu1 %4045  ;;  %v21599_v57 = vpop.eup %19077  ;;  %v4416_v19 = vsel %vm3911_vm4, %v21595_v18, 0.0 }
 0x5d0   : > { %v4148_v23 = vsub.f32 %v21285_v36, %v4046_v62  ;;  %4384 = vadd.xlane.f32.xlu0 %v4383_v47  ;;  %4423 = vadd.xlane.f32.xlu1 %v4422_v17  ;;  %v4425_v17 = vsel %vm3911_vm4, %v21599_v57, 0.0 }
 0x5d1   : > { %v4070_v32 = vpop.xlane.xlu0 %4069 }
 0x5d2   : > { %v4256_v11 = vmul.f32 1.442695, %v4148_v23  ;;  %v4156_v3 = vsub.f32 %v21295_v8, %v4070_v32  ;;  %v21606_v36 = vpop.eup %19079 }
 0x5d3   : > { %v4076_v20 = vpop.xlane.xlu1 %4075  ;;  %v21609_v62 = vpop.eup %19081  ;;  %v4446_v47 = vsel %vm3911_vm4, %v21606_v36, 0.0 }
 0x5d4   : > { %19087 = vpow2.f32 %v4256_v11  ;;  %4417 = vadd.xlane.f32.xlu1 %v4416_v19  ;;  %4408 = vadd.xlane.f32.xlu0 %v4407_v27  ;;  %v4272_v38 = vmul.f32 1.442695, %v4156_v3  ;;  %v4158_v42 = vsub.f32 %v21300_v35, %v4076_v20  ;;  %v4151_v27 = vsub.f32 %v21280_v43, %v4055_v41 }
 0x5d5   : > { %19089 = vpow2.f32 %v4266_v44  ;;  %v4049_v63 = vpop.xlane.xlu0 %4048  ;;  %v4419_v3 = vsel %vm3911_vm4, %v21609_v62, 0.0 }
 0x5d6   : > { %19091 = vpow2.f32 %v4272_v38  ;;  %v21615_v23 = vpop.eup %19083  ;;  %v4276_v44 = vmul.f32 1.442695, %v4158_v42  ;;  %v4149_v43 = vsub.f32 %v21307_v51, %v4049_v63 }
 0x5d7   : > { %v4304_v8 = vpop.xlane.xlu1 %4303  ;;  %19093 = vpow2.f32 %v4260_v45  ;;  %v4440_v32 = vsel %vm3911_vm4, %v21615_v23, 0.0  ;;  %v21623_v20 = vpop.eup %19085  ;;  %v4262_v45 = vmul.f32 1.442695, %v4151_v27 }
 0x5d8   : > { %4447 = vadd.xlane.f32.xlu1 %v4446_v47  ;;  %4426 = vadd.xlane.f32.xlu0 %v4425_v17  ;;  %19095 = vpow2.f32 %v4276_v44  ;;  %v4449_v47 = vsel %vm3911_vm4, %v21623_v20, 0.0  ;;  %v4258_v27 = vmul.f32 1.442695, %v4149_v43 }
 0x5d9   : > { %v4079_v35 = vpop.xlane.xlu0 %4078 }
 0x5da   : > { %v4159_v6 = vsub.f32 %v21319_v12, %v4079_v35 }
 0x5db   : > { %v4298_v11 = vpop.xlane.xlu1 %4297 }
 0x5dc   : > { %4441 = vadd.xlane.f32.xlu1 %v4440_v32  ;;  %4420 = vadd.xlane.f32.xlu0 %v4419_v3  ;;  %v4278_v19 = vmul.f32 1.442695, %v4159_v6 }
 0x5dd   : > { %v4307_v41 = vpop.xlane.xlu0 %4306 }
 0x5de   : > { %v21625_v38 = vpop.eup %19087  ;;  %19097 = vpow2.f32 %v4278_v19 }
 0x5df   : > { %v4073_v12 = vpop.xlane.xlu1 %4072  ;;  %v4428_v42 = vsel %vm3911_vm4, %v21625_v38, 0.0  ;;  %v21632_v17 = vpop.eup %19089  ;;  %19099 = vrcp.f32 %v4298_v11 }
 0x5e0   : > { %4429 = vadd.xlane.f32.xlu1 %v4428_v42  ;;  %4450 = vadd.xlane.f32.xlu0 %v4449_v47  ;;  %v21634_v35 = vpop.eup %19091  ;;  %19101 = vpow2.f32 %v4262_v45  ;;  %v4157_v51 = vsub.f32 %v21336_v52, %v4073_v12  ;;  %v4443_v6 = vsel %vm3911_vm4, %v21632_v17, 0.0 }
 0x5e1   : > { %v4301_v63 = vpop.xlane.xlu0 %4300  ;;  %v4452_v32 = vsel %vm3911_vm4, %v21634_v35, 0.0  ;;  %v21641_v3 = vpop.eup %19093 }
 0x5e2   : > { %19103 = vrcp.f32 %v4301_v63  ;;  %v4274_v11 = vmul.f32 1.442695, %v4157_v51  ;;  %v4434_v42 = vsel %vm3911_vm4, %v21641_v3, 0.0  ;;  %v21647_v47 = vpop.eup %19095 }
 0x5e3   : > { %v4088_v44 = vpop.xlane.xlu1 %4087  ;;  %19105 = vrcp.f32 %v4307_v41 }
 0x5e4   : > { %v4162_v19 = vsub.f32 %v21348_v54, %v4088_v44  ;;  %4444 = vadd.xlane.f32.xlu0 %v4443_v6  ;;  %4453 = vadd.xlane.f32.xlu1 %v4452_v32  ;;  %19107 = vpow2.f32 %v4258_v27  ;;  %v4458_v32 = vsel %vm3911_vm4, %v21647_v47, 0.0 }
 0x5e5   : > { %v4091_v52 = vpop.xlane.xlu0 %4090  ;;  %19109 = vrcp.f32 %v4304_v8 }
 0x5e6   : > { %v4284_v45 = vmul.f32 1.442695, %v4162_v19  ;;  %v4163_v43 = vsub.f32 %v21357_v37, %v4091_v52 }
 0x5e7   : > { %v4082_v12 = vpop.xlane.xlu1 %4081 }
 0x5e8   : > { %19111 = vpow2.f32 %v4284_v45  ;;  %v4160_v63 = vsub.f32 %v21362_v28, %v4082_v12  ;;  %4435 = vadd.xlane.f32.xlu0 %v4434_v42  ;;  %v21650_v54 = vpop.eup %19097  ;;  %v4286_v41 = vmul.f32 1.442695, %v4163_v43 }
 0x5e9   : > { %19113 = vpow2.f32 %v4274_v11  ;;  %v4085_v51 = vpop.xlane.xlu0 %4084  ;;  %v4461_v8 = vsel %vm3911_vm4, %v21650_v54, 0.0  ;;  %v19100_v37 = vpop.eup %19099 }
 0x5ea   : > { %v4280_v27 = vmul.f32 1.442695, %v4160_v63  ;;  %v4161_v44 = vsub.f32 %v21371_v48, %v4085_v51  ;;  %4462 = vadd.xlane.f32.xlu1 %v4461_v8  ;;  %v21657_v19 = vpop.eup %19101  ;;  %v4552_v52 = vmul.f32 %v19100_v37, %v21323_v7 }
 0x5eb   : > { %v4316_v6 = vpop.xlane.xlu1 %4315  ;;  %v4437_v48 = vsel %vm3911_vm4, %v21657_v19, 0.0 }
 0x5ec   : > { %19115 = vpow2.f32 %v4280_v27  ;;  %4459 = vadd.xlane.f32.xlu0 %v4458_v32  ;;  %v19104_v28 = vpop.eup %19103  ;;  %v4282_v11 = vmul.f32 1.442695, %v4161_v44 }
 0x5ed   : > { %19117 = vpow2.f32 %v4286_v41  ;;  %v4319_v45 = vpop.xlane.xlu0 %4318  ;;  %v4553_v43 = vmul.f32 %v19104_v28, %v21341_v30  ;;  %v19106_v12 = vpop.eup %19105 }
 0x5ee   : > { %v21663_v63 = vpop.eup %19107  ;;  %v4555_v7 = vmul.f32 %v19106_v12, %v21329_v2 }
 0x5ef   : > { %v4310_v42 = vpop.xlane.xlu1 %4309  ;;  %v4616_v51 = vpack.c.bf16 %v4553_v43, %v4552_v52  ;;  %v19110_v8 = vpop.eup %19109  ;;  %v4431_v37 = vsel %vm3911_vm4, %v21663_v63, 0.0  ;;  %v24634_v43 = vmov 0.0  }
 0x5f0   : > { %4438 = vadd.xlane.f32.xlu0 %v4437_v48  ;;  %19119 = vrcp.f32 %v4310_v42 }
 0x5f1   : > { %19121 = vpow2.f32 %v4282_v11  ;;  %v4313_v41 = vpop.xlane.xlu0 %4312  ;;  %v4786_v44 = vsel %vm3911_vm4, %v4616_v51, 0  ;;  %v4554_v11 = vmul.f32 %v19110_v8, %v21311_v60 }
 0x5f2   : > { %v21665_v27 = vpop.eup %19111  ;;  %19123 = vrcp.f32 %v4313_v41  ;;  %16863 = vmatpush3.bf16.xpose.msra.mxu1 %v4786_v44 }
 0x5f3   : > { %v4100_v30 = vpop.xlane.xlu1 %4099  ;;  %v4470_v32 = vsel %vm3911_vm4, %v21665_v27, 0.0  ;;  %v21673_v28 = vpop.eup %19113  ;;  %19125 = vrcp.f32 %v4319_v45  ;;  %16864 = vmatprep.subr.bf16.mxu1 %v24634_v43  ;;  %v4617_v48 = vpack.c.bf16 %v4555_v7, %v4554_v11 }
 0x5f4   : > { %v4166_v52 = vsub.f32 %v21392_v13, %v4100_v30  ;;  %4432 = vadd.xlane.f32.xlu0 %v4431_v37  ;;  %4471 = vadd.xlane.f32.xlu1 %v4470_v32  ;;  %19127 = vrcp.f32 %v4316_v6  ;;  %v4455_v41 = vsel %vm3911_vm4, %v21673_v28, 0.0 }
 0x5f5   : > { %v4094_v42 = vpop.xlane.xlu0 %4093  ;;  %v4789_v8 = vsel %vm3911_vm4, %v4617_v48, 0 }
 0x5f6   : > { %v21678_v2 = vpop.eup %19115  ;;  %v4292_v12 = vmul.f32 1.442695, %v4166_v52  ;;  %v4164_v51 = vsub.f32 %v21402_v34, %v4094_v42 }
 0x5f7   : > { %v4464_v13 = vsel %vm3911_vm4, %v21678_v2, 0.0  ;;  %v21685_v44 = vpop.eup %19117 }
 0x5f8   : > { %19129 = vpow2.f32 %v4292_v12  ;;  %4456 = vadd.xlane.f32.xlu0 %v4455_v41  ;;  %4465 = vadd.xlane.f32.xlu1 %v4464_v13  ;;  %v4288_v60 = vmul.f32 1.442695, %v4164_v51  ;;  %v4473_v34 = vsel %vm3911_vm4, %v21685_v44, 0.0 }
 0x5f9   : > { %v4103_v45 = vpop.xlane.xlu0 %4102 }
 0x5fa   : > { %v19120_v30 = vpop.eup %19119  ;;  %19131 = vpow2.f32 %v4288_v60  ;;  %v4167_v6 = vsub.f32 %v21410_v15, %v4103_v45  ;;  %16865 = vmatpush3.bf16.xpose.msra.mxu1 %v4789_v8 }
 0x5fb   : > { %v21691_v7 = vpop.eup %19121  ;;  %16866 = vmatprep.subr.bf16.mxu1 %v24634_v43  ;;  %v4556_v11 = vmul.f32 %v19120_v30, %v21381_v25 }
 0x5fc   : > { %4474 = vadd.xlane.f32.xlu0 %v4473_v34  ;;  %v19124_v37 = vpop.eup %19123  ;;  %v4294_v32 = vmul.f32 1.442695, %v4167_v6  ;;  %v4467_v48 = vsel %vm3911_vm4, %v21691_v7, 0.0 }
 0x5fd   : > { %v4097_v52 = vpop.xlane.xlu0 %4096  ;;  %v4557_v12 = vmul.f32 %v19124_v37, %v21385_v9  ;;  %v19126_v42 = vpop.eup %19125 }
 0x5fe   : > { %19133 = vpow2.f32 %v4294_v32  ;;  %v4165_v15 = vsub.f32 %v21418_v24, %v4097_v52  ;;  %v19128_v41 = vpop.eup %19127  ;;  %v4559_v25 = vmul.f32 %v19126_v42, %v21377_v53 }
 0x5ff   : > { %v4618_v51 = vpack.c.bf16 %v4557_v12, %v4556_v11  ;;  %v4558_v24 = vmul.f32 %v19128_v41, %v21373_v5 }
 0x600   : > { %4468 = vadd.xlane.f32.xlu0 %v4467_v48  ;;  %v4290_v13 = vmul.f32 1.442695, %v4165_v15  ;;  %v24635_v15 = vld [vmem:[#allocation34_spill] sm:$0xff] }
 0x601   : > { %v4328_v60 = vpop.xlane.xlu1 %4327  ;;  %v4792_v8 = vsel %vm3911_vm4, %v4618_v51, 0  ;;  %v4619_v32 = vpack.c.bf16 %v4559_v25, %v4558_v24  ;;  %v24636_v24 = vld [vmem:[#allocation35_spill] sm:$0xff] }
 0x602   : > { %v21699_v45 = vpop.eup %19129  ;;  %19135 = vpow2.f32 %v4290_v13  ;;  %16867 = vmatpush3.bf16.xpose.msra.mxu1 %v4792_v8 }
 0x603   : > { %v4482_v9 = vsel %vm3911_vm4, %v21699_v45, 0.0  ;;  %16868 = vmatprep.subr.bf16.mxu1 %v24634_v43  ;;  %v4795_v52 = vsel %vm3911_vm4, %v4619_v32, 0 }
 0x604   : > { %4483 = vadd.xlane.f32.xlu0 %v4482_v9  ;;  %v21707_v30 = vpop.eup %19131 }
 0x605   : > { %v4322_v6 = vpop.xlane.xlu1 %4321  ;;  %v4476_v34 = vsel %vm3911_vm4, %v21707_v30, 0.0 }
 0x606   : > { %v4331_v37 = vpop.xlane.xlu0 %4330  ;;  %4477 = vadd.xlane.f32.xlu1 %v4476_v34  ;;  %19137 = vrcp.f32 %v4322_v6 }
 0x608   : > { %v21711_v53 = vpop.eup %19133 }
 0x609   : > { %v4485_v11 = vsel %vm3911_vm4, %v21711_v53, 0.0 }
 0x60a   : > { %v4325_v12 = vpop.xlane.xlu0 %4324  ;;  %16869 = vmatpush3.bf16.xpose.msra.mxu1 %v4795_v52  ;;  %4486 = vadd.xlane.f32.xlu0 %v4485_v11 }
 0x60b   : > { %19139 = vrcp.f32 %v4325_v12  ;;  %16902 = vmatprep.subr.bf16.mxu1 %v24634_v43 }
 0x60c   : > { %v21717_v5 = vpop.eup %19135  ;;  %19141 = vrcp.f32 %v4331_v37  ;;  %v24637_v37 = vld [vmem:[#allocation36_spill] sm:$0xff] }
 0x60d   : > { %v4479_v42 = vsel %vm3911_vm4, %v21717_v5, 0.0  ;;  %19143 = vrcp.f32 %v4328_v60 }
 0x60e   : > { %4480 = vadd.xlane.f32.xlu0 %v4479_v42 }
 0x610   : > { %v19138_v48 = vpop.eup %19137 }
 0x611   : > { %16871 = vmatmul.mubr.msk.bf16.vlgmr.msra.gmra.mrb[88].mxu1 %vm3911_vm4, %v24635_v15  ;;  %v4560_v41 = vmul.f32 %v19138_v48, %v21429_v4 }
 0x612   : > { %16874 = vmatprep.mubr.msk.bf16.mxu1 %vm19764_vm12, %v24634_v43 }
 0x615   : > { %v19140_v51 = vpop.eup %19139 }
 0x616   : > { %v4561_v13 = vmul.f32 %v19140_v51, %v21437_v59  ;;  %v19142_v8 = vpop.eup %19141  ;;  %v24638_v51 = vld [vmem:[#allocation38_spill] sm:$0xff] }
 0x617   : > { %v19144_v9 = vpop.eup %19143  ;;  %v4563_v6 = vmul.f32 %v19142_v8, %v21431_v55 }
 0x618   : > { %v4620_v25 = vpack.c.bf16 %v4561_v13, %v4560_v41  ;;  %v4562_v4 = vmul.f32 %v19144_v9, %v21423_v1 }
 0x619   : > { %16875 = vmatmul.mubr.msk.bf16.gmra.mrb[92].mxu1 %vm3911_vm4, %v24636_v24 }
 0x61a   : > { %v4864_v60 = vsel %vm3911_vm4, %v4620_v25, 0  ;;  %16878 = vmatprep.mubr.msk.bf16.mxu1 %vm19764_vm12, %v24634_v43  ;;  %v4621_v34 = vpack.c.bf16 %v4563_v6, %v4562_v4  ;;  %v24639_v6 = vld [vmem:[#allocation42_spill] sm:$0xff] }
 0x61b   : > { %16883 = vmatpush3.bf16.xpose.msra.mxu0 %v4864_v60 }
 0x61c   : > { %16884 = vmatprep.subr.bf16.mxu0 %v24634_v43  ;;  %v4867_v32 = vsel %vm3911_vm4, %v4621_v34, 0 }
 0x621   : > { %v4352_v59 = vpop.xlane.xlu1 %4351  ;;  %16879 = vmatmul.mubr.msk.bf16.gmra.mrb[96].mxu1 %vm3911_vm4, %v24637_v37 }
 0x622   : > { %16910 = vmatprep.mubr.msk.bf16.mxu1 %vm19764_vm12, %v24634_v43 }
 0x623   : > { %16885 = vmatpush3.bf16.xpose.msra.mxu0 %v4867_v32  ;;  %v4355_v55 = vpop.xlane.xlu0 %4354  ;;  %v24641_v32 = vld [vmem:[#allocation37_spill] sm:$0xff] }
 0x624   : > { %16886 = vmatprep.subr.bf16.mxu0 %v24634_v43 }
 0x625   : > { %v4346_v52 = vpop.xlane.xlu1 %4345 }
 0x626   : > { %19145 = vrcp.f32 %v4346_v52  ;;  %v24642_v52 = vld [vmem:[#allocation45_spill] sm:$0xff] }
 0x627   : > { %v4349_v11 = vpop.xlane.xlu0 %4348 }
 0x628   : > { %19147 = vrcp.f32 %v4349_v11 }
 0x629   : > { %19149 = vrcp.f32 %v4355_v55  ;;  %v4340_v1 = vpop.xlane.xlu1 %4339 }
 0x62a   : > { %19151 = vrcp.f32 %v4352_v59 }
 0x62d   : > { %v4334_v42 = vpop.xlane.xlu1 %4333 }
 0x62e   : > { %19153 = vrcp.f32 %v4334_v42  ;;  %v24643_v42 = vld [vmem:[#allocation40_spill] sm:$0xff] }
 0x630   : > { %v19146_v12 = vpop.eup %19145 }
 0x631   : > { %v4364_v15 = vpop.xlane.xlu0 %4363  ;;  %v4568_v41 = vmul.f32 %v19146_v12, %v21460_v22 }
 0x632   : > { %v19148_v48 = vpop.eup %19147 }
 0x633   : > { %4712 = vxpose.xlu1.c.b16.start [1/4] (short) (narrow) %v24638_v51, 48  ;;  %v4569_v13 = vmul.f32 %v19148_v48, %v21468_v61  ;;  %v19150_v8 = vpop.eup %19149  ;;  %v24640_v61 = vld [vmem:[#allocation39_spill] sm:$0xff]  ;;  %v24644_v48 = vld [vmem:[#allocation41_spill] sm:$0xff] }
 0x634   : > { %v19152_v60 = vpop.eup %19151  ;;  %v4571_v34 = vmul.f32 %v19150_v8, %v21457_v26  ;;  %v3035_v55 = vsel %vm2782_vm1, %v24641_v32, %v24640_v61  ;;  %v3036_v51 = vsel %vm2782_vm1, %v24644_v48, %v24643_v42 }
 0x635   : > { %v4358_v25 = vpop.xlane.xlu1 %4357  ;;  %v4343_v9 = vpop.xlane.xlu0 %4342  ;;  %v4624_v24 = vpack.c.bf16 %v4569_v13, %v4568_v41  ;;  %v4570_v22 = vmul.f32 %v19152_v60, %v21451_v0  ;;  %v24645_v0 = vld [vmem:[#allocation49_spill] sm:$0xff] }
 0x636   : > { %v24648_v60 = vld [vmem:[#allocation53_spill] sm:$0xff] }
 0x637   : > { %4713 = vxpose.xlu1.c.b16.cont [2/4] (short) (narrow) %v24639_v6, 48  ;;  %v4942_v4 = vsel %vm3911_vm4, %v4624_v24, 0  ;;  %v4625_v11 = vpack.c.bf16 %v4571_v34, %v4570_v22  ;;  %v24647_v24 = vld [vmem:[#allocation43_spill] sm:$0xff] }
 0x638   : > { %16903 = vmatpush3.bf16.xpose.msra.mxu1 %v4942_v4 }
 0x639   : > { %v4367_v59 = vpop.xlane.xlu1 %4366  ;;  %v4337_v37 = vpop.xlane.xlu0 %4336  ;;  %16904 = vmatprep.subr.bf16.mxu1 %v24634_v43  ;;  %v4945_v41 = vsel %vm3911_vm4, %v4625_v11, 0 }
 0x63a   : > { %19155 = vrcp.f32 %v4337_v37 }
 0x63b   : > { %19157 = vrcp.f32 %v4358_v25  ;;  %4714 = vxpose.xlu1.c.b16.cont [3/4] (short) (narrow) %v24642_v52, 48  ;;  %4728 = vxpose.xlu0.c.b16.start [1/4] (short) (narrow) %v3035_v55, 48  ;;  %v19154_v25 = vpop.eup %19153  ;;  %v24650_v55 = vld [vmem:[#allocation48_spill] sm:$0xff]  ;;  %v24651_v52 = vld [vmem:[#allocation46_spill] sm:$0xff] }
 0x63c   : > { %19159 = vrcp.f32 %v4343_v9  ;;  %v24646_v9 = vld [vmem:[#allocation44_spill] sm:$0xff]  ;;  %v3038_v11 = vsel %vm2782_vm1, %v24651_v52, %v24650_v55 }
 0x63d   : > { %v4376_v26 = vpop.xlane.xlu1 %4375  ;;  %v4361_v12 = vpop.xlane.xlu0 %4360  ;;  %19161 = vrcp.f32 %v4340_v1  ;;  %v3037_v1 = vsel %vm2782_vm1, %v24647_v24, %v24646_v9  ;;  %v24654_v9 = vld [vmem:[#allocation54_spill] sm:$0xff] }
 0x63e   : > { %19163 = vrcp.f32 %v4361_v12 }
 0x63f   : > { %4715 = vxpose.xlu1.c.b16.end [4/4] (short) (narrow) %v24645_v0, 48  ;;  %4729 = vxpose.xlu0.c.b16.cont [2/4] (short) (narrow) %v3036_v51, 48  ;;  %19165 = vrcp.f32 %v4367_v59  ;;  %v24649_v59 = vld [vmem:[#allocation52_spill] sm:$0xff] }
 0x640   : > { %16905 = vmatpush3.bf16.xpose.msra.mxu1 %v4945_v41  ;;  %19167 = vrcp.f32 %v4364_v15  ;;  %v4564_v22 = vmul.f32 %v19154_v25, %v24649_v59  ;;  %v24652_v15 = vld [vmem:[#allocation57_spill] sm:$0xff]  ;;  %v24657_v59 = vld [vmem:[#allocation47_spill] sm:$0xff] }
 0x641   : > { %v4370_v13 = vpop.xlane.xlu1 %4369  ;;  %v4379_v8 = vpop.xlane.xlu0 %4378  ;;  %16906 = vmatprep.subr.bf16.mxu1 %v24634_v43 }
 0x642   : > { %19169 = vrcp.f32 %v4370_v13  ;;  %v24653_v13 = vld [vmem:[#allocation56_spill] sm:$0xff] }
 0x643   : > { %4744 = vxpose.xlu1.c.b16.start [1/4] (short) (narrow) %v24648_v60, 48  ;;  %4730 = vxpose.xlu0.c.b16.cont [3/4] (short) (narrow) %v3037_v1, 48  ;;  %v24655_v60 = vld [vmem:[#allocation64_spill] sm:$0xff] }
 0x644   : > { %v19156_v6 = vpop.eup %19155 }
 0x645   : > { %v4400_v4 = vpop.xlane.xlu1 %4399  ;;  %v4373_v34 = vpop.xlane.xlu0 %4372  ;;  %v4565_v61 = vmul.f32 %v19156_v6, %v21494_v33  ;;  %v24656_v6 = vld [vmem:[#allocation51_spill] sm:$0xff] }
 0x646   : > { %v19158_v37 = vpop.eup %19157  ;;  %19171 = vrcp.f32 %v4373_v34 }
 0x647   : > { %v19160_v32 = vpop.eup %19159  ;;  %4745 = vxpose.xlu1.c.b16.cont [2/4] (short) (narrow) %v24652_v15, 48  ;;  %4731 = vxpose.xlu0.c.b16.end [4/4] (short) (narrow) %v3038_v11, 48  ;;  %v4622_v42 = vpack.c.bf16 %v4565_v61, %v4564_v22  ;;  %v4572_v25 = vmul.f32 %v19158_v37, %v24653_v13  ;;  %19173 = vrcp.f32 %v4379_v8  ;;  %v24659_v11 = vld [vmem:[#allocation59_spill] sm:$0xff] }
 0x648   : > { %v19162_v12 = vpop.eup %19161  ;;  %v4567_v24 = vmul.f32 %v19160_v32, %v24654_v9  ;;  %v24658_v32 = vld [vmem:[#allocation58_spill] sm:$0xff]  ;;  %v24660_v15 = vld [vmem:[#allocation55_spill] sm:$0xff] }
 0x649   : > { %v19164_v48 = vpop.eup %19163  ;;  %v4403_v51 = vpop.xlane.xlu0 %4402  ;;  %v4870_v41 = vsel %vm3911_vm4, %v4622_v42, 0  ;;  %v4566_v22 = vmul.f32 %v19162_v12, %v24657_v59  ;;  %v24661_v42 = vld [vmem:[#allocation50_spill] sm:$0xff] }
 0x64a   : > { %v4394_v0 = vpop.xlane.xlu1 %4393  ;;  %v4573_v33 = vmul.f32 %v19164_v48, %v21504_v39  ;;  %v19166_v1 = vpop.eup %19165  ;;  %16887 = vmatpush3.bf16.xpose.msra.mxu0 %v4870_v41  ;;  %v24663_v9 = vld [vmem:[#allocation62_spill] sm:$0xff] }
 0x64b   : > { %4746 = vxpose.xlu1.c.b16.cont [3/4] (short) (narrow) %v24655_v60, 48  ;;  %4760 = vxpose.xlu0.c.b16.start [1/4] (short) (narrow) %v24656_v6, 48  ;;  %v19168_v61 = vpop.eup %19167  ;;  %19175 = vrcp.f32 %v4394_v0  ;;  %v4623_v37 = vpack.c.bf16 %v4567_v24, %v4566_v22  ;;  %v4575_v52 = vmul.f32 %v19166_v1, %v24658_v32 }
 0x64c   : > { %v4626_v34 = vpack.c.bf16 %v4573_v33, %v4572_v25  ;;  %16888 = vmatprep.subr.bf16.mxu0 %v24634_v43  ;;  %19177 = vrcp.f32 %v4376_v26  ;;  %v19170_v8 = vpop.eup %19169  ;;  %v4574_v12 = vmul.f32 %v19168_v61, %v24661_v42  ;;  %v24662_v33 = vld [vmem:[#allocation68_spill] sm:$0xff]  ;;  %v24664_v61 = vld [vmem:[#allocation74_spill] sm:$0xff] }
 0x64d   : > { %v4397_v55 = vpop.xlane.xlu0 %4396  ;;  %v4873_v26 = vsel %vm3911_vm4, %v4623_v37, 0  ;;  %v4576_v24 = vmul.f32 %v19170_v8, %v24663_v9 }
 0x64e   : > { %v4948_v39 = vsel %vm3911_vm4, %v4626_v34, 0  ;;  %19179 = vrcp.f32 %v4397_v55  ;;  %v4382_v0 = vpop.xlane.xlu1 %4381  ;;  %v4627_v13 = vpack.c.bf16 %v4575_v52, %v4574_v12  ;;  %v24665_v55 = vld [vmem:[#allocation63_spill] sm:$0xff]  ;;  %v24666_v52 = vld [vmem:[#allocation61_spill] sm:$0xff]  ;;  %v24667_v12 = vld [vmem:[#allocation60_spill] sm:$0xff] }
 0x64f   : > { %16907 = vmatpush3.bf16.xpose.msra.mxu1 %v4948_v39  ;;  %4747 = vxpose.xlu1.c.b16.end [4/4] (short) (narrow) %v24659_v11, 48  ;;  %19181 = vrcp.f32 %v4403_v51 }
 0x650   : > { %4761 = vxpose.xlu0.c.b16.cont [2/4] (short) (narrow) %v24660_v15, 48  ;;  %v19172_v48 = vpop.eup %19171  ;;  %16908 = vmatprep.subr.bf16.mxu1 %v24634_v43  ;;  %19183 = vrcp.f32 %v4400_v4  ;;  %v4951_v6 = vsel %vm3911_vm4, %v4627_v13, 0 }
 0x651   : > { %v4388_v41 = vpop.xlane.xlu0 %4387  ;;  %v4577_v25 = vmul.f32 %v19172_v48, %v21523_v29  ;;  %v19174_v51 = vpop.eup %19173  ;;  %19185 = vrcp.f32 %v4382_v0 }
 0x652   : > { %16889 = vmatpush3.bf16.xpose.msra.mxu0 %v4873_v26  ;;  %v4579_v8 = vmul.f32 %v19174_v51, %v24666_v52  ;;  %v24669_v51 = vld [vmem:[#allocation67_spill] sm:$0xff] }
 0x653   : > { %16922 = vmatprep.subr.bf16.mxu0 %v24634_v43  ;;  %v4628_v34 = vpack.c.bf16 %v4577_v25, %v4576_v24  ;;  %v24668_v25 = vld [vmem:[#allocation76_spill] sm:$0xff] }
 0x654   : > { %4762 = vxpose.xlu0.c.b16.cont [3/4] (short) (narrow) %v24662_v33, 48 }
 0x655   : > { %v4406_v1 = vpop.xlane.xlu1 %4405  ;;  %v4412_v60 = vpop.xlane.xlu0 %4411  ;;  %v5020_v39 = vsel %vm3911_vm4, %v4628_v34, 0 }
 0x656   : > { %v19176_v59 = vpop.eup %19175 }
 0x657   : > { %16909 = vmatpush3.bf16.xpose.msra.mxu1 %v4951_v6  ;;  %v19178_v22 = vpop.eup %19177  ;;  %v4584_v37 = vmul.f32 %v19176_v59, %v21540_v56 }
 0x658   : > { %4763 = vxpose.xlu0.c.b16.end [4/4] (short) (narrow) %v24664_v61, 48  ;;  %16942 = vmatprep.subr.bf16.mxu1 %v24634_v43  ;;  %v19180_v29 = vpop.eup %19179  ;;  %v4578_v48 = vmul.f32 %v19178_v22, %v24667_v12 }
 0x659   : > { %v4391_v4 = vpop.xlane.xlu0 %4390  ;;  %16891 = vmatmul.mubr.msk.bf16.vlgmr.msra.gmra.mrb[64].mxu0 %vm3911_vm4, %v24665_v55  ;;  %v4585_v32 = vmul.f32 %v19180_v29, %v21548_v21  ;;  %v19182_v11 = vpop.eup %19181 }
 0x65a   : > { %v4415_v15 = vpop.xlane.xlu1 %4414  ;;  %16923 = vmatpush3.bf16.xpose.msra.mxu0 %v5020_v39  ;;  %16894 = vmatprep.mubr.msk.bf16.mxu0 %vm19764_vm12, %v24634_v43  ;;  %v19184_v26 = vpop.eup %19183  ;;  %v4629_v21 = vpack.c.bf16 %v4579_v8, %v4578_v48  ;;  %v4587_v33 = vmul.f32 %v19182_v11, %v21533_v31 }
 0x65b   : > { %v4632_v42 = vpack.c.bf16 %v4585_v32, %v4584_v37  ;;  %16924 = vmatprep.subr.bf16.mxu0 %v24634_v43  ;;  %v4586_v9 = vmul.f32 %v19184_v26, %v21529_v58  ;;  %v24670_v58 = vld [vmem:[#allocation78_spill] sm:$0xff]  ;;  %v19186_v34 = vpop.eup %19185 }
 0x65c   : > { %v5023_v6 = vsel %vm3911_vm4, %v4629_v21, 0  ;;  %v4580_v55 = vmul.f32 %v19186_v34, %v21552_v14 }
 0x65d   : > { %v4385_v13 = vpop.xlane.xlu0 %4384  ;;  %v5098_v56 = vsel %vm3911_vm4, %v4632_v42, 0  ;;  %v4633_v31 = vpack.c.bf16 %v4587_v33, %v4586_v9  ;;  %v24673_v9 = vld [vmem:[#allocation65_spill] sm:$0xff] }
 0x65e   : > { %16911 = vmatmul.mubr.msk.bf16.vlgmr.msra.gmra.mrb[100].mxu1 %vm3911_vm4, %v24668_v25  ;;  %19187 = vrcp.f32 %v4385_v13  ;;  %v4424_v0 = vpop.xlane.xlu1 %4423 }
 0x65f   : > { %16943 = vmatpush3.bf16.xpose.msra.mxu1 %v5098_v56  ;;  %16914 = vmatprep.mubr.msk.bf16.mxu1 %vm19764_vm12, %v24634_v43  ;;  %19189 = vrcp.f32 %v4406_v1 }
 0x660   : > { %16944 = vmatprep.subr.bf16.mxu1 %v24634_v43  ;;  %19191 = vrcp.f32 %v4391_v4  ;;  %v24671_v4 = vld [vmem:[#allocation73_spill] sm:$0xff] }
 0x661   : > { %v4409_v24 = vpop.xlane.xlu0 %4408  ;;  %19193 = vrcp.f32 %v4388_v41  ;;  %16895 = vmatmul.mubr.msk.bf16.gmra.mrb[68].mxu0 %vm3911_vm4, %v24669_v51  ;;  %v5101_v41 = vsel %vm3911_vm4, %v4633_v31, 0 }
 0x662   : > { %19195 = vrcp.f32 %v4409_v24  ;;  %16925 = vmatpush3.bf16.xpose.msra.mxu0 %v5023_v6  ;;  %16898 = vmatprep.mubr.msk.bf16.mxu0 %vm19764_vm12, %v24634_v43  ;;  %v4418_v59 = vpop.xlane.xlu1 %4417 }
 0x663   : > { %16926 = vmatprep.subr.bf16.mxu0 %v24634_v43  ;;  %19197 = vrcp.f32 %v4415_v15  ;;  %v24672_v15 = vld [vmem:[#allocation80_spill] sm:$0xff] }
 0x664   : > { %19199 = vrcp.f32 %v4412_v60 }
 0x665   : > { %v4427_v1 = vpop.xlane.xlu0 %4426  ;;  %19201 = vrcp.f32 %v4418_v59 }
 0x666   : > { %16915 = vmatmul.mubr.msk.bf16.gmra.mrb[104].mxu1 %vm3911_vm4, %v24670_v58  ;;  %v21827_v8 = vpop.xlane.xlu1 %4447 }
 0x667   : > { %16945 = vmatpush3.bf16.xpose.msra.mxu1 %v5101_v41  ;;  %16918 = vmatprep.mubr.msk.bf16.mxu1 %vm19764_vm12, %v24634_v43 }
 0x668   : > { %16946 = vmatprep.subr.bf16.mxu1 %v24634_v43  ;;  %v19188_v22 = vpop.eup %19187 }
 0x669   : > { %v4421_v61 = vpop.xlane.xlu0 %4420  ;;  %v19190_v29 = vpop.eup %19189  ;;  %16899 = vmatmul.mubr.msk.bf16.gmra.mrb[72].mxu0 %vm3911_vm4, %v24671_v4  ;;  %v4581_v39 = vmul.f32 %v19188_v22, %v21580_v40 }
 0x66a   : > { %v19192_v37 = vpop.eup %19191  ;;  %19203 = vrcp.f32 %v4421_v61  ;;  %16930 = vmatprep.mubr.msk.bf16.mxu0 %vm19764_vm12, %v24634_v43  ;;  %v4588_v14 = vmul.f32 %v19190_v29, %v21568_v49  ;;  %v24674_v29 = vld [vmem:[#allocation77_spill] sm:$0xff] }
 0x66b   : > { %v19194_v60 = vpop.eup %19193  ;;  %v4630_v32 = vpack.c.bf16 %v4581_v39, %v4580_v55  ;;  %v4583_v12 = vmul.f32 %v19192_v37, %v21570_v16  ;;  %19205 = vrcp.f32 %v4427_v1  ;;  %v4442_v16 = vpop.xlane.xlu1 %4441  ;;  %v24675_v55 = vld [vmem:[#allocation66_spill] sm:$0xff] }
 0x66c   : > { %v19196_v52 = vpop.eup %19195  ;;  %v4582_v13 = vmul.f32 %v19194_v60, %v21558_v50  ;;  %19207 = vrcp.f32 %v4424_v0 }
 0x66d   : > { %v21829_v11 = vpop.xlane.xlu0 %4450  ;;  %v5026_v42 = vsel %vm3911_vm4, %v4630_v32, 0  ;;  %v4589_v40 = vmul.f32 %v19196_v52, %v21589_v46  ;;  %v19198_v48 = vpop.eup %19197 }
 0x66e   : > { %16919 = vmatmul.mubr.msk.bf16.gmra.mrb[108].mxu1 %vm3911_vm4, %v24672_v15  ;;  %16927 = vmatpush3.bf16.xpose.msra.mxu0 %v5026_v42  ;;  %v19200_v25 = vpop.eup %19199  ;;  %v4631_v49 = vpack.c.bf16 %v4583_v12, %v4582_v13  ;;  %v4591_v46 = vmul.f32 %v19198_v48, %v21576_v10  ;;  %v24676_v15 = vld [vmem:[#allocation79_spill] sm:$0xff]  ;;  %v24677_v13 = vld [vmem:[#allocation81_spill] sm:$0xff] }
 0x66f   : > { %16950 = vmatprep.mubr.msk.bf16.mxu1 %vm19764_vm12, %v24634_v43  ;;  %v4634_v26 = vpack.c.bf16 %v4589_v40, %v4588_v14  ;;  %16928 = vmatprep.subr.bf16.mxu0 %v24634_v43  ;;  %v19202_v33 = vpop.eup %19201  ;;  %v4590_v24 = vmul.f32 %v19200_v25, %v24673_v9  ;;  %v4430_v0 = vpop.xlane.xlu1 %4429 }
 0x670   : > { %v5029_v50 = vsel %vm3911_vm4, %v4631_v49, 0  ;;  %v4592_v10 = vmul.f32 %v19202_v33, %v21595_v18  ;;  %19209 = vrcp.f32 %v4430_v0 }
 0x671   : > { %v4445_v56 = vpop.xlane.xlu0 %4444  ;;  %v5104_v21 = vsel %vm3911_vm4, %v4634_v26, 0  ;;  %v4635_v31 = vpack.c.bf16 %v4591_v46, %v4590_v24 }
 0x672   : > { %16947 = vmatpush3.bf16.xpose.msra.mxu1 %v5104_v21 }
 0x673   : > { %16948 = vmatprep.subr.bf16.mxu1 %v24634_v43  ;;  %v5107_v41 = vsel %vm3911_vm4, %v4635_v31, 0  ;;  %v4454_v18 = vpop.xlane.xlu1 %4453 }
 0x674   : > { %v19204_v51 = vpop.eup %19203 }
 0x675   : > { %v4436_v6 = vpop.xlane.xlu0 %4435  ;;  %v4593_v1 = vmul.f32 %v19204_v51, %v21609_v62  ;;  %v19206_v59 = vpop.eup %19205 }
 0x676   : > { %16929 = vmatpush3.bf16.xpose.msra.mxu0 %v5029_v50  ;;  %v19208_v22 = vpop.eup %19207  ;;  %v4595_v4 = vmul.f32 %v19206_v59, %v21599_v57 }
 0x677   : > { %16962 = vmatprep.subr.bf16.mxu0 %v24634_v43  ;;  %v4636_v34 = vpack.c.bf16 %v4593_v1, %v4592_v10  ;;  %v4594_v39 = vmul.f32 %v19208_v22, %v24675_v55  ;;  %v21861_v32 = vpop.xlane.xlu1 %4462 }
 0x679   : > { %v21849_v58 = vpop.xlane.xlu0 %4459  ;;  %v5176_v62 = vsel %vm3911_vm4, %v4636_v34, 0  ;;  %v4637_v60 = vpack.c.bf16 %v4595_v4, %v4594_v39 }
 0x67a   : > { %16949 = vmatpush3.bf16.xpose.msra.mxu1 %v5107_v41  ;;  %v19210_v40 = vpop.eup %19209 }
 0x67b   : > { %16982 = vmatprep.subr.bf16.mxu1 %v24634_v43  ;;  %v5179_v57 = vsel %vm3911_vm4, %v4637_v60, 0  ;;  %v4596_v25 = vmul.f32 %v19210_v40, %v21625_v38 }
 0x67d   : > { %v4439_v61 = vpop.xlane.xlu0 %4438  ;;  %16931 = vmatmul.mubr.msk.bf16.vlgmr.msra.gmra.mrb[76].mxu0 %vm3911_vm4, %v24674_v29 }
 0x67e   : > { %16963 = vmatpush3.bf16.xpose.msra.mxu0 %v5176_v62  ;;  %16934 = vmatprep.mubr.msk.bf16.mxu0 %vm19764_vm12, %v24634_v43 }
 0x67f   : > { %16964 = vmatprep.subr.bf16.mxu0 %v24634_v43 }
 0x681   : > { %v4433_v37 = vpop.xlane.xlu0 %4432  ;;  %v4472_v42 = vpop.xlane.xlu1 %4471 }
 0x682   : > { %19211 = vrcp.f32 %v4433_v37 }
 0x683   : > { %19213 = vrcp.f32 %v4439_v61 }
 0x684   : > { %19215 = vrcp.f32 %v4445_v56 }
 0x685   : > { %v4457_v52 = vpop.xlane.xlu0 %4456  ;;  %16935 = vmatmul.mubr.msk.bf16.gmra.mrb[80].mxu0 %vm3911_vm4, %v24676_v15  ;;  %19217 = vrcp.f32 %v4436_v6  ;;  %v4466_v48 = vpop.xlane.xlu1 %4465 }
 0x686   : > { %16965 = vmatpush3.bf16.xpose.msra.mxu0 %v5179_v57  ;;  %16938 = vmatprep.mubr.msk.bf16.mxu0 %vm19764_vm12, %v24634_v43  ;;  %19219 = vrcp.f32 %v4442_v16 }
 0x687   : > { %16966 = vmatprep.subr.bf16.mxu0 %v24634_v43  ;;  %19221 = vrcp.f32 %v21829_v11 }
 0x689   : > { %v4475_v14 = vpop.xlane.xlu0 %4474 }
 0x68c   : > { %v19212_v12 = vpop.eup %19211 }
 0x68d   : > { %v4469_v26 = vpop.xlane.xlu0 %4468  ;;  %16939 = vmatmul.mubr.msk.bf16.gmra.mrb[84].mxu0 %vm3911_vm4, %v24677_v13  ;;  %v4597_v56 = vmul.f32 %v19212_v12, %v21663_v63  ;;  %v19214_v21 = vpop.eup %19213 }
 0x68e   : > { %19223 = vrcp.f32 %v4469_v26  ;;  %16970 = vmatprep.mubr.msk.bf16.mxu0 %vm19764_vm12, %v24634_v43  ;;  %v19216_v49 = vpop.eup %19215  ;;  %v4599_v9 = vmul.f32 %v19214_v21, %v21657_v19 }
 0x68f   : > { %19225 = vrcp.f32 %v21827_v8  ;;  %v4638_v46 = vpack.c.bf16 %v4597_v56, %v4596_v25  ;;  %v19218_v11 = vpop.eup %19217  ;;  %v4601_v38 = vmul.f32 %v19216_v49, %v21632_v17 }
 0x690   : > { %19227 = vrcp.f32 %v4466_v48  ;;  %v19220_v16 = vpop.eup %19219  ;;  %v4598_v63 = vmul.f32 %v19218_v11, %v21641_v3 }
 0x691   : > { %v5182_v33 = vsel %vm3911_vm4, %v4638_v46, 0  ;;  %v4484_v24 = vpop.xlane.xlu0 %4483  ;;  %19229 = vrcp.f32 %v4457_v52  ;;  %v4600_v8 = vmul.f32 %v19220_v16, %v21615_v23  ;;  %v19222_v50 = vpop.eup %19221 }
 0x692   : > { %16967 = vmatpush3.bf16.xpose.msra.mxu0 %v5182_v33  ;;  %19231 = vrcp.f32 %v4475_v14  ;;  %v4639_v6 = vpack.c.bf16 %v4599_v9, %v4598_v63  ;;  %v4603_v23 = vmul.f32 %v19222_v50, %v21623_v20 }
 0x693   : > { %16968 = vmatprep.subr.bf16.mxu0 %v24634_v43  ;;  %v4478_v51 = vpop.xlane.xlu1 %4477  ;;  %19233 = vrcp.f32 %v4454_v18  ;;  %v4640_v31 = vpack.c.bf16 %v4601_v38, %v4600_v8 }
 0x694   : > { %19235 = vrcp.f32 %v4472_v42  ;;  %v5185_v41 = vsel %vm3911_vm4, %v4639_v6, 0 }
 0x695   : > { %v5254_v3 = vsel %vm3911_vm4, %v4640_v31, 0  ;;  %19237 = vrcp.f32 %v21849_v58 }
 0x697   : > { %v4487_v19 = vpop.xlane.xlu0 %4486 }
 0x698   : > { %v19224_v1 = vpop.eup %19223 }
 0x699   : > { %v19226_v10 = vpop.eup %19225  ;;  %v4720_v17 = vpop.trf.xlu1  ;;  %v4609_v34 = vmul.f32 %v19224_v1, %v21691_v7 }
 0x69a   : > { %v19228_v0 = vpop.eup %19227  ;;  %16951 = vmatmul.mubr.msk.bf16.vlgmr.msra.gmra.mrb[112].mxu1 %vm3911_vm4, %v4720_v17  ;;  %16969 = vmatpush3.bf16.xpose.msra.mxu0 %v5185_v41  ;;  %v4602_v22 = vmul.f32 %v19226_v10, %v21606_v36 }
 0x69b   : > { %16983 = vmatpush3.bf16.xpose.msra.mxu1 %v5254_v3  ;;  %v4481_v59 = vpop.xlane.xlu0 %4480  ;;  %16954 = vmatprep.mubr.msk.bf16.mxu1 %vm19764_vm12, %v24634_v43  ;;  %v4608_v61 = vmul.f32 %v19228_v0, %v21678_v2  ;;  %v19230_v29 = vpop.eup %19229 }
 0x69c   : > { %16984 = vmatprep.subr.bf16.mxu1 %v24634_v43  ;;  %17002 = vmatprep.subr.bf16.mxu0 %v24634_v43  ;;  %19239 = vrcp.f32 %v4481_v59  ;;  %v4641_v20 = vpack.c.bf16 %v4603_v23, %v4602_v22  ;;  %v19232_v62 = vpop.eup %19231  ;;  %v4605_v39 = vmul.f32 %v19230_v29, %v21673_v28 }
 0x69d   : > { %19241 = vrcp.f32 %v21861_v32  ;;  %v4644_v7 = vpack.c.bf16 %v4609_v34, %v4608_v61  ;;  %v4721_v4 = vpop.trf.xlu1  ;;  %v19234_v18 = vpop.eup %19233  ;;  %v4611_v37 = vmul.f32 %v19232_v62, %v21685_v44 }
 0x69e   : > { %19243 = vrcp.f32 %v4478_v51  ;;  %v19236_v55 = vpop.eup %19235  ;;  %v5257_v36 = vsel %vm3911_vm4, %v4641_v20, 0  ;;  %v4604_v60 = vmul.f32 %v19234_v18, %v21634_v35 }
 0x69f   : > { %v5332_v2 = vsel %vm3911_vm4, %v4644_v7, 0  ;;  %v4610_v32 = vmul.f32 %v19236_v55, %v21665_v27  ;;  %19245 = vrcp.f32 %v4487_v19  ;;  %v19238_v28 = vpop.eup %19237 }
 0x6a0   : > { %v4642_v52 = vpack.c.bf16 %v4605_v39, %v4604_v60  ;;  %19247 = vrcp.f32 %v4484_v24  ;;  %v4606_v12 = vmul.f32 %v19238_v28, %v21647_v47 }
 0x6a1   : > { %v4736_v58 = vpop.trf.xlu0  ;;  %v4645_v44 = vpack.c.bf16 %v4611_v37, %v4610_v32  ;;  %v4722_v57 = vpop.trf.xlu1 }
 0x6a2   : > { %16955 = vmatmul.mubr.msk.bf16.gmra.mrb[116].mxu1 %vm3911_vm4, %v4721_v4  ;;  %16971 = vmatmul.mubr.msk.bf16.vlgmr.msra.gmra.mrb[88].mxu0 %vm3911_vm4, %v4736_v58  ;;  %v5260_v35 = vsel %vm3911_vm4, %v4642_v52, 0 }
 0x6a3   : > { %16985 = vmatpush3.bf16.xpose.msra.mxu1 %v5257_v36  ;;  %17003 = vmatpush3.bf16.xpose.msra.mxu0 %v5332_v2  ;;  %v5335_v27 = vsel %vm3911_vm4, %v4645_v44, 0 }
 0x6a4   : > { %16958 = vmatprep.mubr.msk.bf16.mxu1 %vm19764_vm12, %v24634_v43  ;;  %16974 = vmatprep.mubr.msk.bf16.mxu0 %vm19764_vm12, %v24634_v43 }
 0x6a5   : > { %16986 = vmatprep.subr.bf16.mxu1 %v24634_v43  ;;  %17004 = vmatprep.subr.bf16.mxu0 %v24634_v43  ;;  %v4737_v42 = vpop.trf.xlu0 }
 0x6a6   : > { %v19240_v15 = vpop.eup %19239 }
 0x6a7   : > { %v19242_v14 = vpop.eup %19241  ;;  %v4613_v48 = vmul.f32 %v19240_v15, %v21717_v5 }
 0x6a8   : > { %v19244_v40 = vpop.eup %19243  ;;  %v4607_v26 = vmul.f32 %v19242_v14, %v21650_v54 }
 0x6a9   : > { %v4612_v13 = vmul.f32 %v19244_v40, %v21707_v30  ;;  %v19246_v56 = vpop.eup %19245  ;;  %v4738_v5 = vpop.trf.xlu0 }
 0x6aa   : > { %16959 = vmatmul.mubr.msk.bf16.gmra.mrb[120].mxu1 %vm3911_vm4, %v4722_v57  ;;  %16975 = vmatmul.mubr.msk.bf16.gmra.mrb[92].mxu0 %vm3911_vm4, %v4737_v42  ;;  %v4643_v25 = vpack.c.bf16 %v4607_v26, %v4606_v12  ;;  %v19248_v21 = vpop.eup %19247  ;;  %v4615_v54 = vmul.f32 %v19246_v56, %v21711_v53  ;;  %v4752_v16 = vpop.trf.xlu1 }
 0x6ab   : > { %16987 = vmatpush3.bf16.xpose.msra.mxu1 %v5260_v35  ;;  %17005 = vmatpush3.bf16.xpose.msra.mxu0 %v5335_v27  ;;  %v4646_v47 = vpack.c.bf16 %v4613_v48, %v4612_v13  ;;  %v4614_v30 = vmul.f32 %v19248_v21, %v21699_v45 }
 0x6ac   : > { %16978 = vmatprep.mubr.msk.bf16.mxu0 %vm19764_vm12, %v24634_v43  ;;  %16988 = vmatprep.subr.bf16.mxu1 %v24634_v43  ;;  %v5263_v49 = vsel %vm3911_vm4, %v4643_v25, 0 }
 0x6ad   : > { %17006 = vmatprep.subr.bf16.mxu0 %v24634_v43  ;;  %16990 = vmatprep.mubr.msk.bf16.mxu1 %vm19764_vm12, %v24634_v43  ;;  %v5338_v46 = vsel %vm3911_vm4, %v4646_v47, 0  ;;  %v4647_v11 = vpack.c.bf16 %v4615_v54, %v4614_v30 }
 0x6ae   : > { %v4753_v53 = vpop.trf.xlu1 }
 0x6af   : > { %v5341_v33 = vsel %vm3911_vm4, %v4647_v11, 0 }
 0x6b2   : > { %16979 = vmatmul.mubr.msk.bf16.gmra.mrb[96].mxu0 %vm3911_vm4, %v4738_v5  ;;  %v4768_v9 = vpop.trf.xlu0  ;;  %v4754_v45 = vpop.trf.xlu1 }
 0x6b3   : > { %16989 = vmatpush3.bf16.xpose.msra.mxu1 %v5263_v49  ;;  %17007 = vmatpush3.bf16.xpose.msra.mxu0 %v5338_v46 }
 0x6b4   : > { %17008 = vmatprep.subr.bf16.mxu0 %v24634_v43  ;;  %17010 = vmatprep.mubr.msk.bf16.mxu0 %vm19764_vm12, %v24634_v43 }
 0x6b6   : > { %v4769_v38 = vpop.trf.xlu0 }
 0x6ba   : > { %16991 = vmatmul.mubr.msk.bf16.vlgmr.msra.gmra.mrb[124].mxu1 %vm3911_vm4, %v4752_v16  ;;  %v4770_v24 = vpop.trf.xlu0 }
 0x6bb   : > { %17009 = vmatpush3.bf16.xpose.msra.mxu0 %v5341_v33  ;;  %16994 = vmatprep.mubr.msk.bf16.mxu1 %vm19764_vm12, %v24634_v43 }
 0x6c2   : > { %16995 = vmatmul.mubr.msk.bf16.gmra.mrb[128].mxu1 %vm3911_vm4, %v4753_v53  ;;  %17011 = vmatmul.mubr.msk.bf16.vlgmr.msra.gmra.mrb[100].mxu0 %vm3911_vm4, %v4768_v9 }
 0x6c3   : > { %16998 = vmatprep.mubr.msk.bf16.mxu1 %vm19764_vm12, %v24634_v43  ;;  %17014 = vmatprep.mubr.msk.bf16.mxu0 %vm19764_vm12, %v24634_v43 }
 0x6ca   : > { %16999 = vmatmul.mubr.msk.bf16.gmra.mrb[132].mxu1 %vm3911_vm4, %v4754_v45  ;;  %17015 = vmatmul.mubr.msk.bf16.gmra.mrb[104].mxu0 %vm3911_vm4, %v4769_v38 }
 0x6cb   : > { %17018 = vmatprep.mubr.msk.bf16.mxu0 %vm19764_vm12, %v24634_v43 }
 0x6d2   : > { %17019 = vmatmul.mubr.msk.bf16.gmra.mrb[108].mxu0 %vm3911_vm4, %v4770_v24 }
 0x6e4   : > { %v4831_v63 = vpop.f32.mrb[88].mxu1 }
 0x6e5   : > { %v16872_v8 = vpop.f32.mrb[89].mxu1  ;;  %5400 = vxpose.xlu1.b32.start [1/6] (short) (narrow) %v4831_v63, 64 }
 0x6e6   : > { %v4834_v51 = vpop.f32.mrb[90].mxu1 }
 0x6e7   : > { %v16873_v6 = vpop.f32.mrb[91].mxu1 }
 0x6e9   : > { %5401 = vxpose.xlu1.b32.cont [2/6] (short) (narrow) %v4834_v51, 64 }
 0x6ec   : > { %v4839_v50 = vpop.f32.mrb[92].mxu1 }
 0x6ed   : > { %v16876_v31 = vpop.f32.mrb[93].mxu1  ;;  %5402 = vxpose.xlu1.b32.cont [3/6] (short) (narrow) %v4839_v50, 64 }
 0x6ee   : > { %v4842_v1 = vpop.f32.mrb[94].mxu1 }
 0x6ef   : > { %v16877_v19 = vpop.f32.mrb[95].mxu1 }
 0x6f1   : > { %5403 = vxpose.xlu1.b32.cont [4/6] (short) (narrow) %v4842_v1, 64 }
 0x6f4   : > { %v4847_v10 = vpop.f32.mrb[96].mxu1 }
 0x6f5   : > { %v16880_v0 = vpop.f32.mrb[97].mxu1  ;;  %5404 = vxpose.xlu1.b32.cont [5/6] (short) (narrow) %v4847_v10, 64 }
 0x6f6   : > { %v4850_v17 = vpop.f32.mrb[98].mxu1 }
 0x6f7   : > { %v16881_v43 = vpop.f32.mrb[99].mxu1 }
 0x6f9   : > { %5405 = vxpose.xlu1.b32.end [6/6] (short) (narrow) %v4850_v17, 64 }
 0x72c   : > { %v4909_v41 = vpop.f32.mrb[64].mxu0 }
 0x72d   : > { %5432 = vxpose.xlu0.b32.start [1/6] (short) (narrow) %v4909_v41, 64  ;;  %v16892_v3 = vpop.f32.mrb[65].mxu0 }
 0x72e   : > { %v4912_v23 = vpop.f32.mrb[66].mxu0 }
 0x72f   : > { %v16893_v34 = vpop.f32.mrb[67].mxu0 }
 0x731   : > { %v4987_v59 = vpop.f32.mrb[100].mxu1  ;;  %5433 = vxpose.xlu0.b32.cont [2/6] (short) (narrow) %v4912_v23, 64 }
 0x732   : > { %v16912_v22 = vpop.f32.mrb[101].mxu1 }
 0x733   : > { %v4990_v61 = vpop.f32.mrb[102].mxu1 }
 0x734   : > { %v16913_v29 = vpop.f32.mrb[103].mxu1  ;;  %v4917_v20 = vpop.f32.mrb[68].mxu0 }
 0x735   : > { %5434 = vxpose.xlu0.b32.cont [3/6] (short) (narrow) %v4917_v20, 64  ;;  %v16896_v7 = vpop.f32.mrb[69].mxu0 }
 0x736   : > { %v4920_v62 = vpop.f32.mrb[70].mxu0 }
 0x737   : > { %v16897_v4 = vpop.f32.mrb[71].mxu0 }
 0x739   : > { %v4995_v18 = vpop.f32.mrb[104].mxu1  ;;  %5435 = vxpose.xlu0.b32.cont [4/6] (short) (narrow) %v4920_v62, 64 }
 0x73a   : > { %v16916_v55 = vpop.f32.mrb[105].mxu1 }
 0x73b   : > { %v4998_v58 = vpop.f32.mrb[106].mxu1 }
 0x73c   : > { %v16917_v36 = vpop.f32.mrb[107].mxu1  ;;  %v4925_v2 = vpop.f32.mrb[72].mxu0 }
 0x73d   : > { %5436 = vxpose.xlu0.b32.cont [5/6] (short) (narrow) %v4925_v2, 64  ;;  %v16900_v39 = vpop.f32.mrb[73].mxu0 }
 0x73e   : > { %v4928_v37 = vpop.f32.mrb[74].mxu0 }
 0x73f   : > { %v16901_v60 = vpop.f32.mrb[75].mxu0 }
 0x741   : > { %v5003_v32 = vpop.f32.mrb[108].mxu1  ;;  %5437 = vxpose.xlu0.b32.end [6/6] (short) (narrow) %v4928_v37, 64 }
 0x742   : > { %v16920_v28 = vpop.f32.mrb[109].mxu1 }
 0x743   : > { %v5006_v52 = vpop.f32.mrb[110].mxu1 }
 0x744   : > { %v16921_v44 = vpop.f32.mrb[111].mxu1 }
 0x74a   : > { %5464 = vxpose.xlu0.b32.start [1/6] (short) (narrow) %v4987_v59, 64 }
 0x74e   : > { %5465 = vxpose.xlu0.b32.cont [2/6] (short) (narrow) %v4990_v61, 64 }
 0x750   : > { %v5065_v15 = vpop.f32.mrb[76].mxu0 }
 0x751   : > { %5496 = vxpose.xlu1.b32.start [1/6] (short) (narrow) %v5065_v15, 64  ;;  %v16932_v57 = vpop.f32.mrb[77].mxu0 }
 0x752   : > { %5466 = vxpose.xlu0.b32.cont [3/6] (short) (narrow) %v4995_v18, 64  ;;  %v5068_v42 = vpop.f32.mrb[78].mxu0 }
 0x753   : > { %v16933_v14 = vpop.f32.mrb[79].mxu0 }
 0x755   : > { %5497 = vxpose.xlu1.b32.cont [2/6] (short) (narrow) %v5068_v42, 64 }
 0x756   : > { %5467 = vxpose.xlu0.b32.cont [4/6] (short) (narrow) %v4998_v58, 64 }
 0x758   : > { %v5073_v40 = vpop.f32.mrb[80].mxu0 }
 0x759   : > { %5498 = vxpose.xlu1.b32.cont [3/6] (short) (narrow) %v5073_v40, 64  ;;  %v16936_v35 = vpop.f32.mrb[81].mxu0 }
 0x75a   : > { %5468 = vxpose.xlu0.b32.cont [5/6] (short) (narrow) %v5003_v32, 64  ;;  %v5076_v27 = vpop.f32.mrb[82].mxu0 }
 0x75b   : > { %v16937_v12 = vpop.f32.mrb[83].mxu0 }
 0x75d   : > { %5499 = vxpose.xlu1.b32.cont [4/6] (short) (narrow) %v5076_v27, 64 }
 0x75e   : > { %5469 = vxpose.xlu0.b32.end [6/6] (short) (narrow) %v5006_v52, 64 }
 0x760   : > { %v5081_v48 = vpop.f32.mrb[84].mxu0 }
 0x761   : > { %5500 = vxpose.xlu1.b32.cont [5/6] (short) (narrow) %v5081_v48, 64  ;;  %v16940_v26 = vpop.f32.mrb[85].mxu0 }
 0x762   : > { %v5084_v13 = vpop.f32.mrb[86].mxu0 }
 0x763   : > { %v16941_v25 = vpop.f32.mrb[87].mxu0 }
 0x765   : > { %5501 = vxpose.xlu1.b32.end [6/6] (short) (narrow) %v5084_v13, 64  ;;  %v5416_v2 = vpop.trf.xlu1  ;;  %v19765_v13 = vmov 1983009808  }
 0x766   : > { %v5659_v25 = vunpack.c.l.s4 %v19765_v13 }
 0x769   : > { %v5417_v32 = vpop.trf.xlu1 }
 0x76d   : > { %v5143_v47 = vpop.f32.mrb[112].mxu1  ;;  %v21947_v44 = vpop.trf.xlu1 }
 0x76e   : > { %5528 = vxpose.xlu0.b32.start [1/6] (short) (narrow) %v5143_v47, 64  ;;  %v16952_v56 = vpop.f32.mrb[113].mxu1 }
 0x76f   : > { %v5146_v5 = vpop.f32.mrb[114].mxu1 }
 0x770   : > { %v16953_v21 = vpop.f32.mrb[115].mxu1 }
 0x771   : > { %v21949_v57 = vpop.trf.xlu1 }
 0x772   : > { %5529 = vxpose.xlu0.b32.cont [2/6] (short) (narrow) %v5146_v5, 64  ;;  %v19766_v5 = vmov 1934713408  }
 0x773   : > { %v5723_v21 = vunpack.c.l.s4 %v19766_v5 }
 0x775   : > { %v5151_v49 = vpop.f32.mrb[116].mxu1  ;;  %v5221_v46 = vpop.f32.mrb[88].mxu0 }
 0x776   : > { %5530 = vxpose.xlu0.b32.cont [3/6] (short) (narrow) %v5151_v49, 64  ;;  %5560 = vxpose.xlu1.b32.start [1/6] (short) (narrow) %v5221_v46, 64  ;;  %v16972_v54 = vpop.f32.mrb[89].mxu0  ;;  %v16956_v30 = vpop.f32.mrb[117].mxu1  ;;  %v5660_v49 = vunpack.c.0.s8 %v5659_v25 }
 0x777   : > { %v5224_v11 = vpop.f32.mrb[90].mxu0  ;;  %v5154_v16 = vpop.f32.mrb[118].mxu1  ;;  %v5724_v54 = vunpack.c.0.s8 %v5723_v21  ;;  %v24678_v30 = vld [vmem:[#allocation33_spill] sm:$0xff] }
 0x778   : > { %v16973_v33 = vpop.f32.mrb[91].mxu0  ;;  %v16957_v53 = vpop.f32.mrb[119].mxu1 }
 0x779   : > { %v21955_v40 = vpop.trf.xlu1 }
 0x77a   : > { %5531 = vxpose.xlu0.b32.cont [4/6] (short) (narrow) %v5154_v16, 64  ;;  %5561 = vxpose.xlu1.b32.cont [2/6] (short) (narrow) %v5224_v11, 64  ;;  %v21972_v11 = vsub.s32 %v5660_v49, %v24678_v30 }
 0x77d   : > { %v5159_v9 = vpop.f32.mrb[120].mxu1  ;;  %v5229_v45 = vpop.f32.mrb[92].mxu0 }
 0x77e   : > { %5532 = vxpose.xlu0.b32.cont [5/6] (short) (narrow) %v5159_v9, 64  ;;  %5562 = vxpose.xlu1.b32.cont [3/6] (short) (narrow) %v5229_v45, 64  ;;  %v16976_v38 = vpop.f32.mrb[93].mxu0  ;;  %v16960_v24 = vpop.f32.mrb[121].mxu1 }
 0x77f   : > { %v5232_v63 = vpop.f32.mrb[94].mxu0  ;;  %v5162_v8 = vpop.f32.mrb[122].mxu1  ;;  %v21975_v24 = vsub.s32 %v5724_v54, %v24678_v30 }
 0x780   : > { %v16977_v51 = vpop.f32.mrb[95].mxu0  ;;  %v16961_v6 = vpop.f32.mrb[123].mxu1 }
 0x781   : > { %v21959_v27 = vpop.trf.xlu1 }
 0x782   : > { %5533 = vxpose.xlu0.b32.end [6/6] (short) (narrow) %v5162_v8, 64  ;;  %5563 = vxpose.xlu1.b32.cont [4/6] (short) (narrow) %v5232_v63, 64 }
 0x785   : > { %v5237_v50 = vpop.f32.mrb[96].mxu0  ;;  %v21965_v26 = vpop.trf.xlu1 }
 0x786   : > { %5564 = vxpose.xlu1.b32.cont [5/6] (short) (narrow) %v5237_v50, 64  ;;  %v16980_v31 = vpop.f32.mrb[97].mxu0 }
 0x787   : > { %v5240_v1 = vpop.f32.mrb[98].mxu0 }
 0x788   : > { %v16981_v19 = vpop.f32.mrb[99].mxu0 }
 0x789   : > { %v21969_v56 = vpop.trf.xlu1 }
 0x78a   : > { %5565 = vxpose.xlu1.b32.end [6/6] (short) (narrow) %v5240_v1, 64 }
 0x78d   : > { %v5299_v10 = vpop.f32.mrb[124].mxu1 }
 0x78e   : > { %5592 = vxpose.xlu0.b32.start [1/6] (short) (narrow) %v5299_v10, 64  ;;  %v16992_v0 = vpop.f32.mrb[125].mxu1 }
 0x78f   : > { %v5302_v17 = vpop.f32.mrb[126].mxu1 }
 0x790   : > { %v16993_v43 = vpop.f32.mrb[127].mxu1 }
 0x792   : > { %5593 = vxpose.xlu0.b32.cont [2/6] (short) (narrow) %v5302_v17, 64 }
 0x795   : > { %v5307_v41 = vpop.f32.mrb[128].mxu1  ;;  %v5377_v3 = vpop.f32.mrb[100].mxu0 }
 0x796   : > { %5594 = vxpose.xlu0.b32.cont [3/6] (short) (narrow) %v5307_v41, 64  ;;  %5624 = vxpose.xlu1.b32.start [1/6] (short) (narrow) %v5377_v3, 64  ;;  %v17012_v23 = vpop.f32.mrb[101].mxu0  ;;  %v16996_v34 = vpop.f32.mrb[129].mxu1 }
 0x797   : > { %v5380_v59 = vpop.f32.mrb[102].mxu0  ;;  %v5310_v22 = vpop.f32.mrb[130].mxu1 }
 0x798   : > { %v17013_v61 = vpop.f32.mrb[103].mxu0  ;;  %v16997_v29 = vpop.f32.mrb[131].mxu1 }
 0x79a   : > { %5595 = vxpose.xlu0.b32.cont [4/6] (short) (narrow) %v5310_v22, 64  ;;  %5625 = vxpose.xlu1.b32.cont [2/6] (short) (narrow) %v5380_v59, 64 }
 0x79d   : > { %v5315_v20 = vpop.f32.mrb[132].mxu1  ;;  %v5385_v7 = vpop.f32.mrb[104].mxu0 }
 0x79e   : > { %5596 = vxpose.xlu0.b32.cont [5/6] (short) (narrow) %v5315_v20, 64  ;;  %5626 = vxpose.xlu1.b32.cont [3/6] (short) (narrow) %v5385_v7, 64  ;;  %v17016_v62 = vpop.f32.mrb[105].mxu0  ;;  %v17000_v4 = vpop.f32.mrb[133].mxu1 }
 0x79f   : > { %v5388_v18 = vpop.f32.mrb[106].mxu0  ;;  %v5318_v55 = vpop.f32.mrb[134].mxu1 }
 0x7a0   : > { %v17017_v58 = vpop.f32.mrb[107].mxu0  ;;  %v17001_v36 = vpop.f32.mrb[135].mxu1 }
 0x7a2   : > { %5597 = vxpose.xlu0.b32.end [6/6] (short) (narrow) %v5318_v55, 64  ;;  %5627 = vxpose.xlu1.b32.cont [4/6] (short) (narrow) %v5388_v18, 64 }
 0x7a5   : > { %v5393_v39 = vpop.f32.mrb[108].mxu0 }
 0x7a6   : > { %5628 = vxpose.xlu1.b32.cont [5/6] (short) (narrow) %v5393_v39, 64  ;;  %v17020_v37 = vpop.f32.mrb[109].mxu0 }
 0x7a7   : > { %v5396_v60 = vpop.f32.mrb[110].mxu0 }
 0x7a8   : > { %v17021_v28 = vpop.f32.mrb[111].mxu0 }
 0x7aa   : > { %5629 = vxpose.xlu1.b32.end [6/6] (short) (narrow) %v5396_v60, 64 }
 0x7ad   : > { %v5448_v52 = vpop.trf.xlu0 }
 0x7b1   : > { %v5449_v15 = vpop.trf.xlu0 }
 0x7b5   : > { %v21951_v42 = vpop.trf.xlu0 }
 0x7b9   : > { %v21953_v14 = vpop.trf.xlu0 }
 0x7bd   : > { %v21957_v35 = vpop.trf.xlu0 }
 0x7c1   : > { %v21961_v12 = vpop.trf.xlu0 }
 0x7c5   : > { %v21963_v48 = vpop.trf.xlu0 }
 0x7c9   : > { %v21967_v47 = vpop.trf.xlu0 }
 0x7cd   : > { %v5480_v46 = vpop.trf.xlu0 }
 0x7ce   : > { %v5656_v16 = vcombine.low %v5416_v2, %v5480_v46  ;;  %v5657_v33 = vcombine.high %v5416_v2, %v5480_v46 }
 0x7d0   : > { %v5664_v63 = vrot.slane %v5656_v16, %v21972_v11  ;;  %v5671_v8 = vrot.slane %v5657_v33, %v21972_v11 }
 0x7d1   : > { %v5512_v53 = vpop.trf.xlu1  ;;  %v5481_v9 = vpop.trf.xlu0 }
 0x7d2   : > { %v5672_v45 = vcombine.low %v5448_v52, %v5512_v53  ;;  %v5673_v38 = vcombine.high %v5448_v52, %v5512_v53  ;;  %v5792_v50 = vcombine.low %v5417_v32, %v5481_v9  ;;  %v5793_v31 = vcombine.high %v5417_v32, %v5481_v9 }
 0x7d4   : > { %v5680_v51 = vrot.slane %v5672_v45, %v21972_v11  ;;  %v5687_v6 = vrot.slane %v5673_v38, %v21972_v11  ;;  %v5800_v29 = vrot.slane %v5792_v50, %v21972_v11  ;;  %v5807_v20 = vrot.slane %v5793_v31, %v21972_v11 }
 0x7d5   : > { %v5513_v1 = vpop.trf.xlu1  ;;  %v5482_v19 = vpop.trf.xlu0 }
 0x7d6   : > { %v5720_v10 = vcombine.low %v5664_v63, %v5680_v51  ;;  %v5721_v0 = vcombine.high %v5664_v63, %v5680_v51  ;;  %v5736_v17 = vcombine.low %v5671_v8, %v5687_v6  ;;  %v5737_v43 = vcombine.high %v5671_v8, %v5687_v6 }
 0x7d7   : > { %v5808_v41 = vcombine.low %v5449_v15, %v5513_v1  ;;  %v5809_v3 = vcombine.high %v5449_v15, %v5513_v1  ;;  %v5928_v23 = vcombine.low %v21947_v44, %v5482_v19  ;;  %v5929_v2 = vcombine.high %v21947_v44, %v5482_v19 }
 0x7d8   : > { %v5728_v34 = vrot.slane %v5720_v10, %v21975_v24  ;;  %v5735_v59 = vrot.slane %v5721_v0, %v21975_v24  ;;  %v5744_v22 = vrot.slane %v5736_v17, %v21975_v24  ;;  %v5751_v61 = vrot.slane %v5737_v43, %v21975_v24 }
 0x7d9   : > { %v5816_v7 = vrot.slane %v5808_v41, %v21972_v11  ;;  %v5823_v62 = vrot.slane %v5809_v3, %v21972_v11  ;;  %v5514_v4 = vpop.trf.xlu1  ;;  %v5483_v18 = vpop.trf.xlu0  ;;  %v5936_v52 = vrot.slane %v5928_v23, %v21972_v11  ;;  %v5943_v46 = vrot.slane %v5929_v2, %v21972_v11 }
 0x7da   : > { %v15555_v55 = vcombine.low %v5728_v34, %v5735_v59  ;;  %v15557_v58 = vcombine.high %v5728_v34, %v5735_v59  ;;  %v15559_v36 = vcombine.low %v5744_v22, %v5751_v61  ;;  %v15561_v28 = vcombine.high %v5744_v22, %v5751_v61 }
 0x7db   : > { %v5856_v39 = vcombine.low %v5800_v29, %v5816_v7  ;;  %v5857_v37 = vcombine.high %v5800_v29, %v5816_v7  ;;  %v5872_v60 = vcombine.low %v5807_v20, %v5823_v62  ;;  %v5873_v32 = vcombine.high %v5807_v20, %v5823_v62 }
 0x7dc   : > { %v5944_v44 = vcombine.low %v21951_v42, %v5514_v4  ;;  %v5945_v54 = vcombine.high %v21951_v42, %v5514_v4  ;;  %v6064_v16 = vcombine.low %v21949_v57, %v5483_v18  ;;  %v22001_v33 = vrot.slane %v15555_v55, %v21972_v11 }
 0x7dd   : > { %v5864_v15 = vrot.slane %v5856_v39, %v21975_v24  ;;  %v5871_v13 = vrot.slane %v5857_v37, %v21975_v24  ;;  %v5880_v25 = vrot.slane %v5872_v60, %v21975_v24  ;;  %v5887_v5 = vrot.slane %v5873_v32, %v21975_v24  ;;  %v5515_v21 = vpop.trf.xlu1  ;;  %v5484_v49 = vpop.trf.xlu0 }
 0x7de   : > { %v22004_v53 = vrot.slane %v15557_v58, %v21972_v11  ;;  %v22007_v9 = vrot.slane %v15559_v36, %v21972_v11  ;;  %v6065_v45 = vcombine.high %v21949_v57, %v5483_v18  ;;  %v22011_v38 = vrot.slane %v15561_v28, %v21972_v11 }
 0x7df   : > { %v15563_v63 = vcombine.low %v5864_v15, %v5871_v13  ;;  %v5952_v8 = vrot.slane %v5944_v44, %v21972_v11  ;;  %v5959_v42 = vrot.slane %v5945_v54, %v21972_v11  ;;  %v15565_v51 = vcombine.high %v5864_v15, %v5871_v13 }
 0x7e0   : > { %v15567_v6 = vcombine.low %v5880_v25, %v5887_v5  ;;  %v15569_v50 = vcombine.high %v5880_v25, %v5887_v5  ;;  %v6072_v31 = vrot.slane %v6064_v16, %v21972_v11  ;;  %v6079_v57 = vrot.slane %v6065_v45, %v21972_v11 }
 0x7e1   : > { %v5516_v1 = vpop.trf.xlu1  ;;  %v5485_v19 = vpop.trf.xlu0  ;;  %v5992_v10 = vcombine.low %v5936_v52, %v5952_v8  ;;  %v5993_v0 = vcombine.high %v5936_v52, %v5952_v8  ;;  %v6008_v17 = vcombine.low %v5943_v46, %v5959_v42  ;;  %v6009_v43 = vcombine.high %v5943_v46, %v5959_v42 }
 0x7e2   : > { %v6080_v41 = vcombine.low %v21953_v14, %v5515_v21  ;;  %v6081_v3 = vcombine.high %v21953_v14, %v5515_v21  ;;  %v6200_v23 = vcombine.low %v21955_v40, %v5484_v49  ;;  %v22025_v29 = vrot.slane %v15563_v63, %v21972_v11 }
 0x7e3   : > { %v6000_v34 = vrot.slane %v5992_v10, %v21975_v24  ;;  %v6007_v59 = vrot.slane %v5993_v0, %v21975_v24  ;;  %v6016_v22 = vrot.slane %v6008_v17, %v21975_v24  ;;  %v6023_v61 = vrot.slane %v6009_v43, %v21975_v24 }
 0x7e4   : > { %v22028_v20 = vrot.slane %v15565_v51, %v21972_v11  ;;  %v6088_v7 = vrot.slane %v6080_v41, %v21972_v11  ;;  %v6095_v14 = vrot.slane %v6081_v3, %v21972_v11  ;;  %v6201_v58 = vcombine.high %v21955_v40, %v5484_v49 }
 0x7e5   : > { %v22032_v62 = vpop.trf.xlu0  ;;  %v15571_v4 = vcombine.low %v6000_v34, %v6007_v59  ;;  %v15573_v18 = vcombine.high %v6000_v34, %v6007_v59  ;;  %v15575_v55 = vcombine.low %v6016_v22, %v6023_v61  ;;  %v5517_v36 = vpop.trf.xlu1  ;;  %v22036_v32 = vrot.slane %v15567_v6, %v21972_v11 }
 0x7e6   : > { %v6128_v2 = vcombine.low %v6072_v31, %v6088_v7  ;;  %v6129_v39 = vcombine.high %v6072_v31, %v6088_v7  ;;  %v6144_v37 = vcombine.low %v6079_v57, %v6095_v14  ;;  %v6145_v60 = vcombine.high %v6079_v57, %v6095_v14 }
 0x7e7   : > { %v22039_v28 = vrot.slane %v15569_v50, %v21972_v11  ;;  %v15577_v52 = vcombine.high %v6016_v22, %v6023_v61  ;;  %v6208_v15 = vrot.slane %v6200_v23, %v21972_v11  ;;  %v6215_v49 = vrot.slane %v6201_v58, %v21972_v11 }
 0x7e8   : > { %v6136_v13 = vrot.slane %v6128_v2, %v21975_v24  ;;  %v6143_v25 = vrot.slane %v6129_v39, %v21975_v24  ;;  %v6152_v40 = vrot.slane %v6144_v37, %v21975_v24  ;;  %v6159_v5 = vrot.slane %v6145_v60, %v21975_v24 }
 0x7e9   : > { %v22046_v21 = vpop.trf.xlu0  ;;  %v6216_v46 = vcombine.low %v21957_v35, %v5516_v1  ;;  %v6217_v44 = vcombine.high %v21957_v35, %v5516_v1  ;;  %v6336_v54 = vcombine.low %v21959_v27, %v5485_v19  ;;  %v22053_v16 = vrot.slane %v15571_v4, %v21972_v11  ;;  %v5518_v50 = vpop.trf.xlu1 }
 0x7ea   : > { %v22056_v45 = vrot.slane %v15573_v18, %v21972_v11  ;;  %v22059_v63 = vrot.slane %v15575_v55, %v21972_v11  ;;  %v6337_v8 = vcombine.high %v21959_v27, %v5485_v19  ;;  %v22063_v42 = vrot.slane %v15577_v52, %v21972_v11 }
 0x7eb   : > { %v15579_v51 = vcombine.low %v6136_v13, %v6143_v25  ;;  %v6224_v6 = vrot.slane %v6216_v46, %v21972_v11  ;;  %v6231_v35 = vrot.slane %v6217_v44, %v21972_v11  ;;  %v15581_v31 = vcombine.high %v6136_v13, %v6143_v25 }
 0x7ec   : > { %v15583_v1 = vcombine.low %v6152_v40, %v6159_v5  ;;  %v15585_v10 = vcombine.high %v6152_v40, %v6159_v5  ;;  %v6344_v0 = vrot.slane %v6336_v54, %v21972_v11  ;;  %v6351_v27 = vrot.slane %v6337_v8, %v21972_v11 }
 0x7ed   : > { %v6264_v17 = vcombine.low %v6208_v15, %v6224_v6  ;;  %v6265_v43 = vcombine.high %v6208_v15, %v6224_v6  ;;  %v6280_v57 = vcombine.low %v6215_v49, %v6231_v35  ;;  %v6281_v41 = vcombine.high %v6215_v49, %v6231_v35  ;;  %v22086_v39 = vpop.trf.xlu1 }
 0x7ee   : > { %v22068_v3 = vpop.trf.xlu0  ;;  %v6352_v19 = vcombine.low %v21961_v12, %v5517_v36  ;;  %v6353_v23 = vcombine.high %v21961_v12, %v5517_v36  ;;  %v6472_v34 = vcombine.low %v21965_v26, %v22032_v62  ;;  %v22080_v14 = vrot.slane %v15579_v51, %v21972_v11 }
 0x7ef   : > { %v6272_v59 = vrot.slane %v6264_v17, %v21975_v24  ;;  %v6279_v22 = vrot.slane %v6265_v43, %v21975_v24  ;;  %v6288_v61 = vrot.slane %v6280_v57, %v21975_v24  ;;  %v6295_v7 = vrot.slane %v6281_v41, %v21975_v24 }
 0x7f0   : > { %v6360_v4 = vrot.slane %v6352_v19, %v21972_v11  ;;  %v6367_v18 = vrot.slane %v6353_v23, %v21972_v11  ;;  %v6473_v12 = vcombine.high %v21965_v26, %v22032_v62  ;;  %v22091_v25 = vrot.slane %v15581_v31, %v21972_v11 }
 0x7f1   : > { %v15587_v55 = vcombine.low %v6272_v59, %v6279_v22  ;;  %v15589_v58 = vcombine.high %v6272_v59, %v6279_v22  ;;  %v15591_v36 = vcombine.low %v6288_v61, %v6295_v7  ;;  %v15593_v2 = vcombine.high %v6288_v61, %v6295_v7 }
 0x7f2   : > { %v22088_v37 = vpop.trf.xlu0  ;;  %v6400_v60 = vcombine.low %v6344_v0, %v6360_v4  ;;  %v6401_v52 = vcombine.high %v6344_v0, %v6360_v4  ;;  %v6416_v15 = vcombine.low %v6351_v27, %v6367_v18  ;;  %v6417_v13 = vcombine.high %v6351_v27, %v6367_v18 }
 0x7f3   : > { %v22094_v40 = vrot.slane %v15583_v1, %v21972_v11  ;;  %v22097_v26 = vrot.slane %v15585_v10, %v21972_v11  ;;  %v6480_v62 = vrot.slane %v6472_v34, %v21972_v11  ;;  %v6487_v54 = vrot.slane %v6473_v12, %v21972_v11 }
 0x7f4   : > { %v6408_v5 = vrot.slane %v6400_v60, %v21975_v24  ;;  %v6415_v49 = vrot.slane %v6401_v52, %v21975_v24  ;;  %v22103_v46 = vrot.slane %v6416_v15, %v21975_v24  ;;  %v22106_v44 = vrot.slane %v6417_v13, %v21975_v24 }
 0x7f5   : > { %v6488_v8 = vcombine.low %v21963_v48, %v5518_v50  ;;  %v6489_v51 = vcombine.high %v21963_v48, %v5518_v50  ;;  %v6608_v6 = vcombine.low %v21969_v56, %v22046_v21  ;;  %v22118_v1 = vrot.slane %v15587_v55, %v21972_v11 }
 0x7f6   : > { %v22113_v35 = vpop.trf.xlu1  ;;  %v22115_v31 = vpop.trf.xlu0  ;;  %v22121_v10 = vrot.slane %v15589_v58, %v21972_v11  ;;  %v22124_v0 = vrot.slane %v15591_v36, %v21972_v11  ;;  %v22127_v17 = vrot.slane %v15593_v2, %v21972_v11  ;;  %v15595_v48 = vcombine.low %v6408_v5, %v6415_v49 }
 0x7f7   : > { %v6496_v50 = vrot.slane %v6488_v8, %v21972_v11  ;;  %v6503_v43 = vrot.slane %v6489_v51, %v21972_v11  ;;  %v6609_v57 = vcombine.high %v21969_v56, %v22046_v21  ;;  %v15597_v41 = vcombine.high %v6408_v5, %v6415_v49 }
 0x7f8   : > { %v15599_v27 = vcombine.low %v22103_v46, %v22106_v44  ;;  %v15601_v19 = vcombine.high %v22103_v46, %v22106_v44  ;;  %v22138_v23 = vrot.slane %v6608_v6, %v21972_v11  ;;  %v6809_v56 = vcombine.high %v22001_v33, %v22004_v53 }
 0x7f9   : > { %v6536_v34 = vcombine.low %v6480_v62, %v6496_v50  ;;  %v6537_v59 = vcombine.high %v6480_v62, %v6496_v50  ;;  %v6552_v22 = vcombine.low %v6487_v54, %v6503_v43  ;;  %v6553_v61 = vcombine.high %v6487_v54, %v6503_v43 }
 0x7fa   : > { %v22140_v7 = vpop.trf.xlu1  ;;  %v22142_v4 = vpop.trf.xlu0  ;;  %v6841_v21 = vcombine.high %v22007_v9, %v22011_v38  ;;  %v6945_v18 = vcombine.high %v22025_v29, %v22028_v20  ;;  %v6977_v12 = vcombine.high %v22036_v32, %v22039_v28  ;;  %v6823_v60 = vrot.slane %v6809_v56, %v21975_v24 }
 0x7fb   : > { %v22153_v55 = vrot.slane %v6536_v34, %v21975_v24  ;;  %v22156_v58 = vrot.slane %v6537_v59, %v21975_v24  ;;  %v22159_v36 = vrot.slane %v6552_v22, %v21975_v24  ;;  %v22162_v2 = vrot.slane %v6553_v61, %v21975_v24 }
 0x7fc   : > { %v6855_v52 = vrot.slane %v6841_v21, %v21975_v24  ;;  %v6959_v15 = vrot.slane %v6945_v18, %v21975_v24  ;;  %v6991_v13 = vrot.slane %v6977_v12, %v21975_v24  ;;  %v22181_v59 = vrot.slane %v15595_v48, %v21972_v11 }
 0x7fd   : > { %v15603_v62 = vcombine.low %v22153_v55, %v22156_v58  ;;  %v15605_v5 = vcombine.high %v22153_v55, %v22156_v58  ;;  %v15607_v49 = vcombine.low %v22159_v36, %v22162_v2  ;;  %v22184_v22 = vrot.slane %v15597_v41, %v21972_v11 }
 0x7fe   : > { %v22176_v8 = vpop.trf.xlu1  ;;  %v22178_v51 = vpop.trf.xlu0  ;;  %v6875_v6 = vcombine.high %v6823_v60, %v6855_v52  ;;  %v7011_v50 = vcombine.high %v6959_v15, %v6991_v13  ;;  %v6874_v43 = vcombine.low %v6823_v60, %v6855_v52  ;;  %v7010_v34 = vcombine.low %v6959_v15, %v6991_v13  ;;  %v18081_v15 = vld [vmem:[#allocation7] ss:$12 sps:$4 sm:$0xff]   ;;  %v18083_v13 = vld [vmem:[#allocation7 + $0x4] ss:$12 sps:$4 sm:$0xff]  }
 0x7ff   : > { %v22187_v61 = vrot.slane %v15599_v27, %v21972_v11  ;;  %v6623_v56 = vrot.slane %v6609_v57, %v21972_v11  ;;  %v6624_v12 = vcombine.low %v21967_v47, %v22086_v39  ;;  %v6625_v55 = vcombine.high %v21967_v47, %v22086_v39  ;;  %8626 = vmatprep.subr.bf16.mxu1 %v18083_v13 }
 0x800   : > { %v17634_v21 = vpack.i.bf16 %v7011_v50, %v6875_v6  ;;  %v17629_v18 = vpack.i.bf16 %v7010_v34, %v6874_v43  ;;  %v6808_v48 = vcombine.low %v22001_v33, %v22004_v53  ;;  %v6840_v41 = vcombine.low %v22007_v9, %v22011_v38  ;;  %8627 = vmatpush1.bf16.msra.mxu1 %v18081_v15 }
 0x801   : > { %v6944_v27 = vcombine.low %v22025_v29, %v22028_v20  ;;  %v6976_v57 = vcombine.low %v22036_v32, %v22039_v28  ;;  %v6632_v47 = vrot.slane %v6624_v12, %v21972_v11  ;;  %v6639_v33 = vrot.slane %v6625_v55, %v21972_v11 }
 0x802   : > { %v22202_v58 = vpop.trf.xlu1  ;;  %v22204_v60 = vpop.trf.xlu0  ;;  %17635 = vrot.lane.b32.xlu1 %v17634_v21, %s19758_s28  ;;  %17630 = vrot.lane.b32.xlu0 %v17629_v18, %s19761_s2  ;;  %v7081_v53 = vcombine.high %v22053_v16, %v22056_v45  ;;  %v22213_v9 = vrot.slane %v6808_v48, %v21975_v24  ;;  %v22216_v38 = vrot.slane %v6840_v41, %v21975_v24 }
 0x803   : > { %v22219_v29 = vrot.slane %v6944_v27, %v21975_v24  ;;  %v22222_v20 = vrot.slane %v6976_v57, %v21975_v24  ;;  %v6672_v32 = vcombine.low %v22138_v23, %v6632_v47  ;;  %v6673_v28 = vcombine.high %v22138_v23, %v6632_v47  ;;  %v18086_v23 = vld [vmem:[#allocation7 + $0x1c] ss:$12 sps:$4 sm:$0xff]  }
 0x804   : > { %24679 = vst [vmem:[#allocation69_spill] sm:$0xff] %v22213_v9  ;;  %24680 = vst [vmem:[#allocation70_spill] sm:$0xff] %v22216_v38  ;;  %v6688_v39 = vcombine.low %v6623_v56, %v6639_v33  ;;  %v6689_v52 = vcombine.high %v6623_v56, %v6639_v33  ;;  %v6873_v6 = vcombine.high %v22213_v9, %v22216_v38  ;;  %v18084_v33 = vld [vmem:[#allocation7 + $0x18] ss:$12 sps:$4 sm:$0xff]   ;;  %8628 = vmatprep.subr.bf16.mxu1 %v18086_v23  ;;  %v18109_v23 = vld [vmem:[#allocation7 + $0x8] ss:$12 sps:$4 sm:$0xff]  }
 0x805   : > { %24681 = vst [vmem:[#allocation71_spill] sm:$0xff] %v22219_v29  ;;  %24682 = vst [vmem:[#allocation72_spill] sm:$0xff] %v22222_v20  ;;  %v7009_v50 = vcombine.high %v22219_v29, %v22222_v20  ;;  %v7095_v43 = vrot.slane %v7081_v53, %v21975_v24  ;;  %v7113_v34 = vcombine.high %v22059_v63, %v22063_v42  ;;  %8629 = vmatpush1.bf16.msra.mxu1 %v18084_v33  ;;  %v18139_v9 = vld [vmem:[#allocation7 + $0x98] ss:$12 sps:$4 sm:$0xff]  }
 0x806   : > { %v22233_v21 = vpop.trf.xlu1  ;;  %v22235_v18 = vpop.trf.xlu0  ;;  %v6680_v56 = vrot.slane %v6672_v32, %v21975_v24  ;;  %v6687_v12 = vrot.slane %v6673_v28, %v21975_v24  ;;  %v22240_v55 = vrot.slane %v6688_v39, %v21975_v24  ;;  %v22243_v48 = vrot.slane %v6689_v52, %v21975_v24  ;;  %v18089_v52 = vld [vmem:[#allocation7 + $0x34] ss:$12 sps:$4 sm:$0xff]  }
 0x807   : > { %v17639_v41 = vpack.i.bf16 %v7009_v50, %v6873_v6  ;;  %v7127_v27 = vrot.slane %v7113_v34, %v21975_v24  ;;  %v7217_v57 = vcombine.high %v22080_v14, %v22091_v25  ;;  %v7249_v47 = vcombine.high %v22094_v40, %v22097_v26  ;;  %v18108_v34 = vld [vmem:[#allocation7 + $0xc8] ss:$12 sps:$4 sm:$0xff]   ;;  %8630 = vmatprep.subr.bf16.mxu1 %v18089_v52 }
 0x808   : > { %v22254_v53 = vrot.slane %v15601_v19, %v21972_v11  ;;  %v22257_v32 = vrot.slane %v15603_v62, %v21972_v11  ;;  %v22260_v28 = vrot.slane %v15605_v5, %v21972_v11  ;;  %v22263_v39 = vrot.slane %v15607_v49, %v21972_v11  ;;  %16434 = vmatprep.subr.bf16.mxu0 %v18108_v34 }
 0x809   : > { %v15611_v13 = vcombine.low %v6680_v56, %v6687_v12  ;;  %v15613_v15 = vcombine.high %v6680_v56, %v6687_v12  ;;  %17640 = vrot.lane.b32.xlu1 %v17639_v41, %s19760_s27  ;;  %v7231_v6 = vrot.slane %v7217_v57, %v21975_v24  ;;  %v7263_v46 = vrot.slane %v7249_v47, %v21975_v24 }
 0x80a   : > { %v22268_v44 = vpop.trf.xlu1  ;;  %v22270_v19 = vpop.trf.xlu0  ;;  %v15615_v62 = vcombine.low %v22240_v55, %v22243_v48  ;;  %v15617_v5 = vcombine.high %v22240_v55, %v22243_v48  ;;  %v7147_v49 = vcombine.high %v7095_v43, %v7127_v27  ;;  %v7146_v50 = vcombine.low %v7095_v43, %v7127_v27  ;;  %v18087_v48 = vld [vmem:[#allocation7 + $0x30] ss:$12 sps:$4 sm:$0xff]   ;;  %16435 = vmatpush3.bf16.msra.mxu0 %v18109_v23 }
 0x80b   : > { %v7283_v56 = vcombine.high %v7231_v6, %v7263_v46  ;;  %v7282_v12 = vcombine.low %v7231_v6, %v7263_v46  ;;  %v7080_v41 = vcombine.low %v22053_v16, %v22056_v45  ;;  %v7112_v57 = vcombine.low %v22059_v63, %v22063_v42  ;;  %v18113_v46 = vld [vmem:[#allocation7 + $0xe0] ss:$12 sps:$4 sm:$0xff]   ;;  %8631 = vmatpush1.bf16.msra.mxu1 %v18087_v48 }
 0x80c   : > { %v7216_v47 = vcombine.low %v22080_v14, %v22091_v25  ;;  %v7248_v54 = vcombine.low %v22094_v40, %v22097_v26  ;;  %v7353_v43 = vcombine.high %v22118_v1, %v22121_v10  ;;  %v7385_v55 = vcombine.high %v22124_v0, %v22127_v17  ;;  %v18092_v25 = vld [vmem:[#allocation7 + $0x4c] ss:$12 sps:$4 sm:$0xff]   ;;  %16436 = vmatprep.subr.bf16.mxu0 %v18113_v46 }
 0x80d   : > { %v17649_v27 = vpack.i.bf16 %v7283_v56, %v7147_v49  ;;  %v17644_v16 = vpack.i.bf16 %v7282_v12, %v7146_v50  ;;  %v22291_v42 = vrot.slane %v7080_v41, %v21975_v24  ;;  %v22294_v14 = vrot.slane %v7112_v57, %v21975_v24  ;;  %8632 = vmatprep.subr.bf16.mxu1 %v18092_v25 }
 0x80e   : > { %v22288_v45 = vpop.trf.xlu1  ;;  %v5608_v63 = vpop.trf.xlu0  ;;  %v24685_v40 = vcombine.high %v22159_v36, %v22162_v2  ;;  %v22304_v52 = vrot.slane %v7216_v47, %v21975_v24  ;;  %v22307_v6 = vrot.slane %v7248_v54, %v21975_v24  ;;  %v22310_v49 = vrot.slane %v15611_v13, %v21972_v11  ;;  %v18114_v2 = vld [vmem:[#allocation7 + $0x20] ss:$12 sps:$4 sm:$0xff]   ;;  %v18095_v47 = vld [vmem:[#allocation7 + $0x64] ss:$12 sps:$4 sm:$0xff]  }
 0x80f   : > { %24683 = vst [vmem:[#allocation75_spill] sm:$0xff] %v22291_v42  ;;  %24684 = vst [vmem:[#allocation82_spill] sm:$0xff] %v22294_v14  ;;  %v5688_v33 = vcombine.low %v22068_v3, %v5608_v63  ;;  %v22313_v50 = vrot.slane %v15613_v15, %v21972_v11  ;;  %v22316_v36 = vrot.slane %v15615_v62, %v21972_v11  ;;  %17650 = vrot.lane.b32.xlu0 %v17649_v27, %s19758_s28  ;;  %v18090_v15 = vld [vmem:[#allocation7 + $0x48] ss:$12 sps:$4 sm:$0xff]   ;;  %v18118_v27 = vld [vmem:[#allocation7 + $0xf8] ss:$12 sps:$4 sm:$0xff]  }
 0x810   : > { %v22300_v26 = vrot.slane %v24685_v40, %v21972_v11  ;;  %24686 = vst [vmem:[#allocation83_spill] sm:$0xff] %v22304_v52  ;;  %24687 = vst [vmem:[#allocation34_spill] sm:$0xff] %v22307_v6  ;;  %17645 = vrot.lane.b32.xlu1 %v17644_v16, %s19761_s2  ;;  %v5689_v34 = vcombine.high %v22068_v3, %v5608_v63  ;;  %v7367_v54 = vrot.slane %v7353_v43, %v21975_v24 }
 0x811   : > { %v7399_v23 = vrot.slane %v7385_v55, %v21975_v24  ;;  %v7489_v13 = vcombine.high %v22181_v59, %v22184_v22  ;;  %v22326_v56 = vrot.slane %v15617_v5, %v21972_v11  ;;  %v7145_v41 = vcombine.high %v22291_v42, %v22294_v14  ;;  %16437 = vmatpush3.bf16.msra.mxu0 %v18114_v2 }
 0x812   : > { %v22328_v62 = vpop.trf.xlu1  ;;  %v5609_v12 = vpop.trf.xlu0  ;;  %v7281_v3 = vcombine.high %v22304_v52, %v22307_v6  ;;  %v7521_v57 = vcombine.high %v22187_v61, %v22254_v53  ;;  %v22337_v43 = vrot.slane %v5688_v33, %v21972_v11  ;;  %v7352_v48 = vcombine.low %v22118_v1, %v22121_v10  ;;  %v18119_v33 = vld [vmem:[#allocation7 + $0x38] ss:$12 sps:$4 sm:$0xff]   ;;  %8633 = vmatpush1.bf16.msra.mxu1 %v18090_v15  ;;  %v18093_v10 = vld [vmem:[#allocation7 + $0x60] ss:$12 sps:$4 sm:$0xff]  }
 0x813   : > { %v5824_v5 = vcombine.low %v22088_v37, %v5609_v12  ;;  %v7503_v55 = vrot.slane %v7489_v13, %v21975_v24  ;;  %v5825_v16 = vcombine.high %v22088_v37, %v5609_v12  ;;  %v7384_v25 = vcombine.low %v22124_v0, %v22127_v17  ;;  %8634 = vmatprep.subr.bf16.mxu1 %v18095_v47 }
 0x814   : > { %v7535_v63 = vrot.slane %v7521_v57, %v21975_v24  ;;  %v7488_v40 = vcombine.low %v22181_v59, %v22184_v22  ;;  %v5703_v30 = vrot.slane %v5689_v34, %v21972_v11  ;;  %v7419_v13 = vcombine.high %v7367_v54, %v7399_v23  ;;  %v18098_v59 = vld [vmem:[#allocation7 + $0x7c] ss:$12 sps:$4 sm:$0xff]   ;;  %16438 = vmatprep.subr.bf16.mxu0 %v18118_v27 }
 0x815   : > { %v7418_v52 = vcombine.low %v7367_v54, %v7399_v23  ;;  %v7625_v1 = vcombine.high %v22257_v32, %v22260_v28  ;;  %v22352_v12 = vpack.i.bf16 %v7281_v3, %v7145_v41  ;;  %v7520_v17 = vcombine.low %v22187_v61, %v22254_v53  ;;  %v18123_v23 = vld [vmem:[#allocation7 + $0x110] ss:$12 sps:$4 sm:$0xff]   ;;  %16439 = vmatpush3.bf16.msra.mxu0 %v18119_v33 }
 0x816   : > { %v5640_v37 = vpop.trf.xlu1  ;;  %v5610_v46 = vpop.trf.xlu0  ;;  %v7555_v57 = vcombine.high %v7503_v55, %v7535_v63  ;;  %v7554_v0 = vcombine.low %v7503_v55, %v7535_v63  ;;  %v22360_v54 = vrot.slane %v7352_v48, %v21975_v24  ;;  %v22363_v15 = vrot.slane %v5824_v5, %v21972_v11  ;;  %8635 = vmatpush1.bf16.msra.mxu1 %v18093_v10  ;;  %v18096_v5 = vld [vmem:[#allocation7 + $0x78] ss:$12 sps:$4 sm:$0xff]  }
 0x817   : > { %v5704_v22 = vcombine.low %v22113_v35, %v5640_v37  ;;  %v5705_v2 = vcombine.high %v22113_v35, %v5640_v37  ;;  %v5960_v34 = vcombine.low %v22115_v31, %v5610_v46  ;;  %v22366_v41 = vrot.slane %v5825_v16, %v21972_v11  ;;  %v18124_v35 = vld [vmem:[#allocation7 + $0x50] ss:$12 sps:$4 sm:$0xff]   ;;  %8636 = vmatprep.subr.bf16.mxu1 %v18098_v59  ;;  %v18101_v37 = vld [vmem:[#allocation7 + $0x94] ss:$12 sps:$4 sm:$0xff]  }
 0x818   : > { %v22369_v61 = vrot.slane %v7384_v25, %v21975_v24  ;;  %v22372_v53 = vrot.slane %v7488_v40, %v21975_v24  ;;  %v5961_v55 = vcombine.high %v22115_v31, %v5610_v46  ;;  %v22377_v48 = vpack.i.bf16 %v7555_v57, %v7419_v13  ;;  %16440 = vmatprep.subr.bf16.mxu0 %v18123_v23  ;;  %v18128_v57 = vld [vmem:[#allocation7 + $0x128] ss:$12 sps:$4 sm:$0xff]   ;;  %v18099_v23 = vld [vmem:[#allocation7 + $0x90] ss:$12 sps:$4 sm:$0xff]  }
 0x819   : > { %v5712_v3 = vrot.slane %v5704_v22, %v21972_v11  ;;  %v5719_v47 = vrot.slane %v5705_v2, %v21972_v11  ;;  %v22380_v27 = vrot.slane %v5960_v34, %v21972_v11  ;;  %v22382_v25 = vpack.i.bf16 %v7554_v0, %v7418_v52  ;;  %16441 = vmatpush3.bf16.msra.mxu0 %v18124_v35  ;;  %v18129_v2 = vld [vmem:[#allocation7 + $0x68] ss:$12 sps:$4 sm:$0xff]   ;;  %v18104_v35 = vld [vmem:[#allocation7 + $0xac] ss:$12 sps:$4 sm:$0xff]  }
 0x81a   : > { %24688 = vst [vmem:[#allocation35_spill] sm:$0xff] %v22372_v53  ;;  %v5641_v16 = vpop.trf.xlu1  ;;  %v5611_v63 = vpop.trf.xlu0  ;;  %v22385_v40 = vrot.slane %v7520_v17, %v21975_v24  ;;  %8637 = vmatpush1.bf16.msra.mxu1 %v18096_v5  ;;  %16442 = vmatprep.subr.bf16.mxu0 %v18128_v57  ;;  %v18133_v5 = vld [vmem:[#allocation7 + $0x140] ss:$12 sps:$4 sm:$0xff]  }
 0x81b   : > { %v5752_v31 = vcombine.low %v22337_v43, %v5712_v3  ;;  %v5753_v13 = vcombine.high %v22337_v43, %v5712_v3  ;;  %v5768_v10 = vcombine.low %v5703_v30, %v5719_v47  ;;  %v5769_v46 = vcombine.high %v5703_v30, %v5719_v47  ;;  %8638 = vmatprep.subr.bf16.mxu1 %v18101_v37 }
 0x81c   : > { %24689 = vst [vmem:[#allocation36_spill] sm:$0xff] %v22385_v40  ;;  %v5840_v22 = vcombine.low %v22140_v7, %v5641_v16  ;;  %v5841_v52 = vcombine.high %v22140_v7, %v5641_v16  ;;  %v6096_v0 = vcombine.low %v22142_v4, %v5611_v63  ;;  %v6097_v17 = vcombine.high %v22142_v4, %v5611_v63 }
 0x81d   : > { %v5760_v59 = vrot.slane %v5752_v31, %v21975_v24  ;;  %v5767_v34 = vrot.slane %v5753_v13, %v21975_v24  ;;  %v5776_v43 = vrot.slane %v5768_v10, %v21975_v24  ;;  %v5783_v30 = vrot.slane %v5769_v46, %v21975_v24  ;;  %16443 = vmatpush3.bf16.msra.mxu0 %v18129_v2 }
 0x81e   : > { %v22400_v3 = vrot.slane %v5961_v55, %v21972_v11  ;;  %v5848_v7 = vrot.slane %v5840_v22, %v21972_v11  ;;  %v5855_v47 = vrot.slane %v5841_v52, %v21972_v11  ;;  %v22405_v4 = vrot.slane %v7625_v1, %v21975_v24  ;;  %v5642_v10 = vpop.trf.xlu1  ;;  %v5612_v46 = vpop.trf.xlu0  ;;  %v18134_v1 = vld [vmem:[#allocation7 + $0x80] ss:$12 sps:$4 sm:$0xff]   ;;  %8639 = vmatpush1.bf16.msra.mxu1 %v18099_v23  ;;  %v18138_v23 = vld [vmem:[#allocation7 + $0x158] ss:$12 sps:$4 sm:$0xff]  }
 0x81f   : > { %v15556_v16 = vcombine.low %v5760_v59, %v5767_v34  ;;  %v15558_v63 = vcombine.high %v5760_v59, %v5767_v34  ;;  %v15560_v31 = vcombine.low %v5776_v43, %v5783_v30  ;;  %v15562_v13 = vcombine.high %v5776_v43, %v5783_v30  ;;  %8640 = vmatprep.subr.bf16.mxu1 %v18104_v35 }
 0x820   : > { %v5888_v55 = vcombine.low %v22363_v15, %v5848_v7  ;;  %v5889_v33 = vcombine.high %v22363_v15, %v5848_v7  ;;  %v5904_v22 = vcombine.low %v22366_v41, %v5855_v47  ;;  %v5905_v52 = vcombine.high %v22366_v41, %v5855_v47  ;;  %v18102_v15 = vld [vmem:[#allocation7 + $0xa8] ss:$12 sps:$4 sm:$0xff]   ;;  %v18107_v7 = vld [vmem:[#allocation7 + $0xc4] ss:$12 sps:$4 sm:$0xff]   ;;  %16444 = vmatprep.subr.bf16.mxu0 %v18133_v5  ;;  %v18105_v5 = vld [vmem:[#allocation7 + $0xc0] ss:$12 sps:$4 sm:$0xff]  }
 0x821   : > { %v22412_v37 = vrot.slane %v15556_v16, %v21972_v11  ;;  %v22415_v59 = vrot.slane %v6096_v0, %v21972_v11  ;;  %v22418_v34 = vrot.slane %v6097_v17, %v21972_v11  ;;  %v5976_v0 = vcombine.low %v22176_v8, %v5642_v10  ;;  %16445 = vmatpush3.bf16.msra.mxu0 %v18134_v1  ;;  %v18112_v1 = vld [vmem:[#allocation7 + $0xdc] ss:$12 sps:$4 sm:$0xff]  }
 0x822   : > { %v5896_v43 = vrot.slane %v5888_v55, %v21975_v24  ;;  %v5903_v41 = vrot.slane %v5889_v33, %v21975_v24  ;;  %v5912_v2 = vrot.slane %v5904_v22, %v21975_v24  ;;  %v5919_v30 = vrot.slane %v5905_v52, %v21975_v24  ;;  %8641 = vmatpush1.bf16.msra.mxu1 %v18102_v15 }
 0x823   : > { %24690 = vst [vmem:[#allocation38_spill] sm:$0xff] %v22412_v37  ;;  %v5977_v17 = vcombine.high %v22176_v8, %v5642_v10  ;;  %v6232_v47 = vcombine.low %v22178_v51, %v5612_v46  ;;  %v6233_v16 = vcombine.high %v22178_v51, %v5612_v46  ;;  %v22431_v55 = vrot.slane %v15558_v63, %v21972_v11  ;;  %v5643_v51 = vpop.trf.xlu1  ;;  %v5613_v46 = vpop.trf.xlu0 }
 0x824   : > { %v22434_v33 = vrot.slane %v15560_v31, %v21972_v11  ;;  %v22437_v22 = vrot.slane %v15562_v13, %v21972_v11  ;;  %v15564_v35 = vcombine.low %v5896_v43, %v5903_v41  ;;  %v15566_v52 = vcombine.high %v5896_v43, %v5903_v41  ;;  %8642 = vmatprep.subr.bf16.mxu1 %v18107_v7 }
 0x825   : > { %24691 = vst [vmem:[#allocation42_spill] sm:$0xff] %v22431_v55  ;;  %v15568_v57 = vcombine.low %v5912_v2, %v5919_v30  ;;  %v5984_v8 = vrot.slane %v5976_v0, %v21972_v11  ;;  %v5991_v10 = vrot.slane %v5977_v17, %v21972_v11  ;;  %v15570_v31 = vcombine.high %v5912_v2, %v5919_v30 }
 0x826   : > { %24692 = vst [vmem:[#allocation39_spill] sm:$0xff] %v22434_v33  ;;  %24693 = vst [vmem:[#allocation37_spill] sm:$0xff] %v22437_v22  ;;  %v22442_v63 = vrot.slane %v15564_v35, %v21972_v11  ;;  %v22445_v6 = vrot.slane %v6232_v47, %v21972_v11  ;;  %v22448_v13 = vrot.slane %v6233_v16, %v21972_v11  ;;  %16446 = vmatprep.subr.bf16.mxu0 %v18138_v23 }
 0x827   : > { %v6024_v43 = vcombine.low %v22380_v27, %v5984_v8  ;;  %v6025_v41 = vcombine.high %v22380_v27, %v5984_v8  ;;  %v6040_v0 = vcombine.low %v22400_v3, %v5991_v10  ;;  %v6041_v15 = vcombine.high %v22400_v3, %v5991_v10  ;;  %8643 = vmatpush1.bf16.msra.mxu1 %v18105_v5  ;;  %v18110_v8 = vld [vmem:[#allocation7 + $0xd8] ss:$12 sps:$4 sm:$0xff]   ;;  %v18117_v10 = vld [vmem:[#allocation7 + $0xf4] ss:$12 sps:$4 sm:$0xff]  }
 0x828   : > { %v6112_v17 = vcombine.low %v22202_v58, %v5643_v51  ;;  %v6113_v2 = vcombine.high %v22202_v58, %v5643_v51  ;;  %v6368_v30 = vcombine.low %v22204_v60, %v5613_v46  ;;  %v6369_v47 = vcombine.high %v22204_v60, %v5613_v46  ;;  %8644 = vmatprep.subr.bf16.mxu1 %v18112_v1 }
 0x829   : > { %v6032_v7 = vrot.slane %v6024_v43, %v21975_v24  ;;  %v6039_v16 = vrot.slane %v6025_v41, %v21975_v24  ;;  %v6048_v35 = vrot.slane %v6040_v0, %v21975_v24  ;;  %v6055_v27 = vrot.slane %v6041_v15, %v21975_v24  ;;  %v5644_v0 = vpop.trf.xlu1  ;;  %v5614_v15 = vpop.trf.xlu0  ;;  %16447 = vmatpush3.bf16.msra.mxu0 %v18139_v9 }
 0x82a   : > { %v22463_v3 = vrot.slane %v15566_v52, %v21972_v11  ;;  %v22466_v23 = vrot.slane %v15568_v57, %v21972_v11  ;;  %v6120_v58 = vrot.slane %v6112_v17, %v21972_v11  ;;  %v6127_v60 = vrot.slane %v6113_v2, %v21972_v11 }
 0x82b   : > { %v15572_v51 = vcombine.low %v6032_v7, %v6039_v16  ;;  %v15574_v46 = vcombine.high %v6032_v7, %v6039_v16  ;;  %v15576_v43 = vcombine.low %v6048_v35, %v6055_v27  ;;  %v15578_v41 = vcombine.high %v6048_v35, %v6055_v27  ;;  %8645 = vmatpush1.bf16.msra.mxu1 %v18110_v8  ;;  %v18115_v16 = vld [vmem:[#allocation7 + $0xf0] ss:$12 sps:$4 sm:$0xff]   ;;  %v18122_v27 = vld [vmem:[#allocation7 + $0x10c] ss:$12 sps:$4 sm:$0xff]  }
 0x82c   : > { %24694 = vst [vmem:[#allocation45_spill] sm:$0xff] %v22466_v23  ;;  %v6160_v5 = vcombine.low %v22415_v59, %v6120_v58  ;;  %v6161_v52 = vcombine.high %v22415_v59, %v6120_v58  ;;  %v6176_v42 = vcombine.low %v22418_v34, %v6127_v60  ;;  %v6177_v57 = vcombine.high %v22418_v34, %v6127_v60 }
 0x82d   : > { %v22475_v17 = vrot.slane %v15570_v31, %v21972_v11  ;;  %v22478_v1 = vrot.slane %v15572_v51, %v21972_v11  ;;  %v22481_v2 = vrot.slane %v6368_v30, %v21972_v11  ;;  %v22484_v7 = vrot.slane %v6369_v47, %v21972_v11  ;;  %8646 = vmatprep.subr.bf16.mxu1 %v18117_v10  ;;  %v5615_v14 = vpop.trf.xlu0 }
 0x82e   : > { %v6168_v59 = vrot.slane %v6160_v5, %v21975_v24  ;;  %v6175_v35 = vrot.slane %v6161_v52, %v21975_v24  ;;  %v6184_v34 = vrot.slane %v6176_v42, %v21975_v24  ;;  %v6191_v31 = vrot.slane %v6177_v57, %v21975_v24 }
 0x82f   : > { %24695 = vst [vmem:[#allocation40_spill] sm:$0xff] %v22475_v17  ;;  %v6248_v58 = vcombine.low %v22233_v21, %v5644_v0  ;;  %v6249_v30 = vcombine.high %v22233_v21, %v5644_v0  ;;  %v6504_v60 = vcombine.low %v22235_v18, %v5614_v15  ;;  %v6505_v47 = vcombine.high %v22235_v18, %v5614_v15  ;;  %v5645_v0 = vpop.trf.xlu1  ;;  %v18120_v18 = vld [vmem:[#allocation7 + $0x108] ss:$12 sps:$4 sm:$0xff]  }
 0x830   : > { %v22495_v8 = vrot.slane %v15574_v46, %v21972_v11  ;;  %v22498_v51 = vrot.slane %v15576_v43, %v21972_v11  ;;  %v22501_v42 = vrot.slane %v15578_v41, %v21972_v11  ;;  %v15580_v5 = vcombine.low %v6168_v59, %v6175_v35  ;;  %8647 = vmatpush1.bf16.msra.mxu1 %v18115_v16 }
 0x831   : > { %v15582_v10 = vcombine.high %v6168_v59, %v6175_v35  ;;  %v15584_v52 = vcombine.low %v6184_v34, %v6191_v31  ;;  %v6256_v57 = vrot.slane %v6248_v58, %v21972_v11  ;;  %v6263_v21 = vrot.slane %v6249_v30, %v21972_v11  ;;  %8648 = vmatprep.subr.bf16.mxu1 %v18122_v27  ;;  %v18127_v59 = vld [vmem:[#allocation7 + $0x124] ss:$12 sps:$4 sm:$0xff]  }
 0x832   : > { %v22506_v46 = vrot.slane %v15580_v5, %v21972_v11  ;;  %v15586_v15 = vcombine.high %v6184_v34, %v6191_v31  ;;  %v22509_v43 = vrot.slane %v6504_v60, %v21972_v11  ;;  %v22512_v41 = vrot.slane %v6505_v47, %v21972_v11 }
 0x833   : > { %v6296_v35 = vcombine.low %v22445_v6, %v6256_v57  ;;  %v6297_v58 = vcombine.high %v22445_v6, %v6256_v57  ;;  %v6312_v30 = vcombine.low %v22448_v13, %v6263_v21  ;;  %v6313_v16 = vcombine.high %v22448_v13, %v6263_v21  ;;  %v18125_v57 = vld [vmem:[#allocation7 + $0x120] ss:$12 sps:$4 sm:$0xff]  }
 0x834   : > { %v6384_v5 = vcombine.low %v22268_v44, %v5645_v0  ;;  %v6385_v34 = vcombine.high %v22268_v44, %v5645_v0  ;;  %v6640_v31 = vcombine.low %v22270_v19, %v5615_v14  ;;  %v6641_v60 = vcombine.high %v22270_v19, %v5615_v14  ;;  %8649 = vmatpush1.bf16.msra.mxu1 %v18120_v18  ;;  %v18132_v14 = vld [vmem:[#allocation7 + $0x13c] ss:$12 sps:$4 sm:$0xff]  }
 0x835   : > { %v6304_v47 = vrot.slane %v6296_v35, %v21975_v24  ;;  %v6311_v27 = vrot.slane %v6297_v58, %v21975_v24  ;;  %v6320_v29 = vrot.slane %v6312_v30, %v21975_v24  ;;  %v6327_v6 = vrot.slane %v6313_v16, %v21975_v24  ;;  %8650 = vmatprep.subr.bf16.mxu1 %v18127_v59 }
 0x836   : > { %v22527_v13 = vrot.slane %v15582_v10, %v21972_v11  ;;  %v22530_v21 = vrot.slane %v15584_v52, %v21972_v11  ;;  %v6392_v44 = vrot.slane %v6384_v5, %v21972_v11  ;;  %v6399_v19 = vrot.slane %v6385_v34, %v21972_v11  ;;  %v5646_v5 = vpop.trf.xlu1 }
 0x837   : > { %v22535_v0 = vrot.slane %v15586_v15, %v21972_v11  ;;  %v15588_v35 = vcombine.low %v6304_v47, %v6311_v27  ;;  %v15590_v58 = vcombine.high %v6304_v47, %v6311_v27  ;;  %v22538_v18 = vrot.slane %v6640_v31, %v21972_v11  ;;  %v18130_v31 = vld [vmem:[#allocation7 + $0x138] ss:$12 sps:$4 sm:$0xff]  }
 0x838   : > { %v6432_v10 = vcombine.low %v22481_v2, %v6392_v44  ;;  %v6433_v30 = vcombine.high %v22481_v2, %v6392_v44  ;;  %v6448_v52 = vcombine.low %v22484_v7, %v6399_v19  ;;  %v6449_v16 = vcombine.high %v22484_v7, %v6399_v19  ;;  %8651 = vmatpush1.bf16.msra.mxu1 %v18125_v57  ;;  %v18137_v7 = vld [vmem:[#allocation7 + $0x154] ss:$12 sps:$4 sm:$0xff]  }
 0x839   : > { %v22545_v59 = vrot.slane %v15588_v35, %v21972_v11  ;;  %v15592_v34 = vcombine.low %v6320_v29, %v6327_v6  ;;  %v15594_v15 = vcombine.high %v6320_v29, %v6327_v6  ;;  %v22548_v20 = vrot.slane %v6641_v60, %v21972_v11  ;;  %8652 = vmatprep.subr.bf16.mxu1 %v18132_v14 }
 0x83a   : > { %v6440_v47 = vrot.slane %v6432_v10, %v21975_v24  ;;  %v6447_v27 = vrot.slane %v6433_v30, %v21975_v24  ;;  %v6456_v2 = vrot.slane %v6448_v52, %v21975_v24  ;;  %v6463_v44 = vrot.slane %v6449_v16, %v21975_v24 }
 0x83b   : > { %v6520_v19 = vcombine.low %v22288_v45, %v5646_v5  ;;  %v6521_v35 = vcombine.high %v22288_v45, %v5646_v5  ;;  %v6824_v29 = vcombine.low %v22412_v37, %v22431_v55  ;;  %v6856_v60 = vcombine.low %v22434_v33, %v22437_v22  ;;  %v18135_v5 = vld [vmem:[#allocation7 + $0x150] ss:$12 sps:$4 sm:$0xff]   ;;  %v5647_v22 = vpop.trf.xlu1 }
 0x83c   : > { %v22561_v6 = vrot.slane %v15590_v58, %v21972_v11  ;;  %v15596_v57 = vcombine.low %v6440_v47, %v6447_v27  ;;  %v15598_v10 = vcombine.high %v6440_v47, %v6447_v27  ;;  %v15600_v30 = vcombine.low %v6456_v2, %v6463_v44  ;;  %8653 = vmatpush1.bf16.msra.mxu1 %v18130_v31  ;;  %v18143_v33 = vld [vmem:[#allocation7 + $0x170] ss:$12 sps:$4 sm:$0xff]  }
 0x83d   : > { %v22564_v52 = vrot.slane %v15592_v34, %v21972_v11  ;;  %v22567_v14 = vrot.slane %v15594_v15, %v21972_v11  ;;  %v6528_v45 = vrot.slane %v6520_v19, %v21972_v11  ;;  %v6535_v16 = vrot.slane %v6521_v35, %v21972_v11  ;;  %8654 = vmatprep.subr.bf16.mxu1 %v18137_v7  ;;  %v18142_v34 = vld [vmem:[#allocation7 + $0x16c] ss:$12 sps:$4 sm:$0xff]  }
 0x83e   : > { %v22572_v38 = vrot.slane %v15596_v57, %v21972_v11  ;;  %v15602_v58 = vcombine.high %v6456_v2, %v6463_v44  ;;  %v6832_v47 = vrot.slane %v6824_v29, %v21975_v24  ;;  %v6864_v27 = vrot.slane %v6856_v60, %v21975_v24  ;;  %16448 = vmatprep.subr.bf16.mxu0 %v18143_v33  ;;  %v18140_v60 = vld [vmem:[#allocation7 + $0x168] ss:$12 sps:$4 sm:$0xff]  }
 0x83f   : > { %v6568_v15 = vcombine.low %v22509_v43, %v6528_v45  ;;  %v6569_v19 = vcombine.high %v22509_v43, %v6528_v45  ;;  %v6584_v35 = vcombine.low %v22512_v41, %v6535_v16  ;;  %v6585_v31 = vcombine.high %v22512_v41, %v6535_v16 }
 0x840   : > { %v22581_v57 = vrot.slane %v15598_v10, %v21972_v11  ;;  %v22584_v2 = vrot.slane %v15600_v30, %v21972_v11  ;;  %v6960_v44 = vcombine.low %v22442_v63, %v22463_v3  ;;  %v6992_v7 = vcombine.low %v22466_v23, %v22475_v17  ;;  %8655 = vmatpush1.bf16.msra.mxu1 %v18135_v5  ;;  %v18144_v10 = vld [vmem:[#allocation7 + $0xb0] ss:$12 sps:$4 sm:$0xff]  }
 0x841   : > { %v6576_v43 = vrot.slane %v6568_v15, %v21975_v24  ;;  %v6583_v29 = vrot.slane %v6569_v19, %v21975_v24  ;;  %v6592_v41 = vrot.slane %v6584_v35, %v21975_v24  ;;  %v6599_v9 = vrot.slane %v6585_v31, %v21975_v24  ;;  %8656 = vmatprep.subr.bf16.mxu1 %v18142_v34 }
 0x842   : > { %v6968_v30 = vrot.slane %v6960_v44, %v21975_v24  ;;  %v7000_v45 = vrot.slane %v6992_v7, %v21975_v24  ;;  %v6656_v16 = vcombine.low %v22328_v62, %v5647_v22  ;;  %v6657_v23 = vcombine.high %v22328_v62, %v5647_v22  ;;  %16449 = vmatpush3.bf16.msra.mxu0 %v18144_v10 }
 0x843   : > { %v22599_v33 = vrot.slane %v15602_v58, %v21972_v11  ;;  %v15604_v15 = vcombine.low %v6576_v43, %v6583_v29  ;;  %v6877_v19 = vcombine.high %v6832_v47, %v6864_v27  ;;  %v6876_v35 = vcombine.low %v6832_v47, %v6864_v27 }
 0x844   : > { %v7013_v31 = vcombine.high %v6968_v30, %v7000_v45  ;;  %v7012_v5 = vcombine.low %v6968_v30, %v7000_v45  ;;  %v6664_v17 = vrot.slane %v6656_v16, %v21972_v11  ;;  %v6671_v44 = vrot.slane %v6657_v23, %v21972_v11  ;;  %8657 = vmatpush1.bf16.msra.mxu1 %v18140_v60 }
 0x845   : > { %v22604_v7 = vrot.slane %v15604_v15, %v21972_v11  ;;  %v15606_v37 = vcombine.high %v6576_v43, %v6583_v29  ;;  %v15608_v55 = vcombine.low %v6592_v41, %v6599_v9  ;;  %v15610_v62 = vcombine.high %v6592_v41, %v6599_v9  ;;  %v18147_v43 = vld [vmem:[#allocation7 + $0x184] ss:$12 sps:$4 sm:$0xff]   ;;  %v22614_v29 = vld [vmem:[#allocation7 + $0x188] ss:$12 sps:$4 sm:$0xff]  }
 0x846   : > { %v17659_v22 = vpack.i.bf16 %v7013_v31, %v6877_v19  ;;  %v17654_v58 = vpack.i.bf16 %v7012_v5, %v6876_v35  ;;  %v6704_v34 = vcombine.low %v22538_v18, %v6664_v17  ;;  %v6705_v47 = vcombine.high %v22538_v18, %v6664_v17  ;;  %8699 = vmatprep.subr.bf16.mxu1 %v18147_v43 }
 0x847   : > { %v6720_v27 = vcombine.low %v22548_v20, %v6671_v44  ;;  %v6721_v10 = vcombine.high %v22548_v20, %v6671_v44  ;;  %v7096_v23 = vcombine.low %v22478_v1, %v22495_v8  ;;  %v7128_v30 = vcombine.low %v22498_v51, %v22501_v42  ;;  %17022 = vmatprep.subr.bf16.mxu0 %v22614_v29 }
 0x848   : > { %17660 = vrot.lane.b32.xlu0 %v17659_v22, %s19756_s0  ;;  %17655 = vrot.lane.b32.xlu1 %v17654_v58, %s19759_s29  ;;  %v6712_v41 = vrot.slane %v6704_v34, %v21975_v24  ;;  %v6719_v17 = vrot.slane %v6705_v47, %v21975_v24  ;;  %v7232_v20 = vcombine.low %v22506_v46, %v22527_v13 }
 0x849   : > { %v6728_v18 = vrot.slane %v6720_v27, %v21975_v24  ;;  %v6735_v9 = vrot.slane %v6721_v10, %v21975_v24  ;;  %v7104_v60 = vrot.slane %v7096_v23, %v21975_v24  ;;  %v7136_v45 = vrot.slane %v7128_v30, %v21975_v24 }
 0x84a   : > { %v15612_v16 = vcombine.low %v6712_v41, %v6719_v17  ;;  %v15614_v15 = vcombine.high %v6712_v41, %v6719_v17  ;;  %v7240_v19 = vrot.slane %v7232_v20, %v21975_v24  ;;  %v7264_v35 = vcombine.low %v22530_v21, %v22535_v0 }
 0x84b   : > { %v22631_v31 = vrot.slane %v15606_v37, %v21972_v11  ;;  %v22634_v5 = vrot.slane %v15608_v55, %v21972_v11  ;;  %v22637_v44 = vrot.slane %v15610_v62, %v21972_v11  ;;  %v15616_v22 = vcombine.low %v6728_v18, %v6735_v9 }
 0x84c   : > { %v15618_v58 = vcombine.high %v6728_v18, %v6735_v9  ;;  %17665 = vrot.lane.b32.xlu0 %v22352_v12, %s19760_s27  ;;  %17675 = vrot.lane.b32.xlu1 %v22377_v48, %s19758_s28  ;;  %v7148_v34 = vcombine.low %v7104_v60, %v7136_v45  ;;  %v7272_v47 = vrot.slane %v7264_v35, %v21975_v24 }
 0x84d   : > { %v22645_v37 = vrot.slane %v15612_v16, %v21972_v11  ;;  %v22648_v55 = vrot.slane %v15614_v15, %v21972_v11  ;;  %v7149_v27 = vcombine.high %v7104_v60, %v7136_v45  ;;  %v7368_v62 = vcombine.low %v22545_v59, %v22561_v6 }
 0x84e   : > { %v7284_v10 = vcombine.low %v7240_v19, %v7272_v47  ;;  %v7285_v23 = vcombine.high %v7240_v19, %v7272_v47  ;;  %v7400_v12 = vcombine.low %v22564_v52, %v22567_v14  ;;  %v7504_v48 = vcombine.low %v22572_v38, %v22581_v57 }
 0x84f   : > { %v22657_v30 = vrot.slane %v15616_v22, %v21972_v11  ;;  %v7376_v43 = vrot.slane %v7368_v62, %v21975_v24  ;;  %v7536_v41 = vcombine.low %v22584_v2, %v22599_v33  ;;  %v24696_v17 = vcombine.high %v22263_v39, %v22300_v26 }
 0x850   : > { %v22667_v18 = vrot.slane %v15618_v58, %v21972_v11  ;;  %17670 = vrot.lane.b32.xlu0 %v22382_v25, %s19761_s2  ;;  %v17679_v9 = vpack.i.bf16 %v7284_v10, %v7148_v34  ;;  %v7408_v60 = vrot.slane %v7400_v12, %v21975_v24  ;;  %v7512_v45 = vrot.slane %v7504_v48, %v21975_v24 }
 0x851   : > { %v7671_v20 = vrot.slane %v24696_v17, %v21975_v24  ;;  %v7544_v16 = vrot.slane %v7536_v41, %v21975_v24  ;;  %v7793_v19 = vcombine.high %v22316_v36, %v22326_v56  ;;  %v17684_v11 = vpack.i.bf16 %v7285_v23, %v7149_v27 }
 0x852   : > { %17680 = vrot.lane.b32.xlu1 %v17679_v9, %s19759_s29  ;;  %v7417_v25 = vcombine.high %v22360_v54, %v22369_v61  ;;  %v7553_v22 = vcombine.high %v22372_v53, %v22385_v40  ;;  %v24697_v58 = vcombine.high %v22310_v49, %v22313_v50  ;;  %v7420_v47 = vcombine.low %v7376_v43, %v7408_v60 }
 0x853   : > { %v7690_v15 = vcombine.low %v22405_v4, %v7671_v20  ;;  %v7691_v35 = vcombine.high %v22405_v4, %v7671_v20  ;;  %v7556_v62 = vcombine.low %v7512_v45, %v7544_v16  ;;  %v7640_v10 = vcombine.low %v22604_v7, %v22631_v31 }
 0x854   : > { %v7775_v34 = vrot.slane %v24697_v58, %v21975_v24  ;;  %v7776_v4 = vcombine.low %v22645_v37, %v22648_v55  ;;  %v7807_v27 = vrot.slane %v7793_v19, %v21975_v24  ;;  %v7672_v23 = vcombine.low %v22634_v5, %v22637_v44 }
 0x855   : > { %v7808_v12 = vcombine.low %v22657_v30, %v22667_v18  ;;  %v7624_v48 = vcombine.low %v22257_v32, %v22260_v28  ;;  %v17699_v41 = vpack.i.bf16 %v7556_v62, %v7420_v47  ;;  %v7557_v17 = vcombine.high %v7512_v45, %v7544_v16  ;;  %v24700_v47 = vld [vmem:[#allocation37_spill] sm:$0xff]  ;;  %v24701_v62 = vld [vmem:[#allocation39_spill] sm:$0xff] }
 0x856   : > { %17685 = vrot.lane.b32.xlu1 %v17684_v11, %s19756_s0  ;;  %v17689_v20 = vpack.i.bf16 %v7553_v22, %v7417_v25  ;;  %v7421_v9 = vcombine.high %v7376_v43, %v7408_v60  ;;  %v7784_v58 = vrot.slane %v7776_v4, %v21975_v24  ;;  %v7648_v19 = vrot.slane %v7640_v10, %v21975_v24  ;;  %v24702_v4 = vld [vmem:[#allocation40_spill] sm:$0xff] }
 0x857   : > { %v7816_v53 = vrot.slane %v7808_v12, %v21975_v24  ;;  %17700 = vrot.lane.b32.xlu0 %v17699_v41, %s19759_s29  ;;  %v22704_v40 = vrot.slane %v7624_v48, %v21975_v24  ;;  %v7656_v32 = vcombine.low %v22263_v39, %v22300_v26  ;;  %v7760_v28 = vcombine.low %v22310_v49, %v22313_v50 }
 0x858   : > { %v7826_v45 = vcombine.low %v7775_v34, %v7807_v27  ;;  %v7827_v16 = vcombine.high %v7775_v34, %v7807_v27  ;;  %v7680_v43 = vrot.slane %v7672_v23, %v21975_v24  ;;  %v7792_v60 = vcombine.low %v22316_v36, %v22326_v56  ;;  %v24698_v36 = vld [vmem:[#allocation42_spill] sm:$0xff]  ;;  %v24703_v27 = vld [vmem:[#allocation45_spill] sm:$0xff] }
 0x859   : > { %v17704_v11 = vpack.i.bf16 %v7557_v17, %v7421_v9  ;;  %v22714_v25 = vrot.slane %v7656_v32, %v21975_v24  ;;  %v22717_v22 = vrot.slane %v7760_v28, %v21975_v24  ;;  %v7828_v39 = vcombine.low %v7784_v58, %v7816_v53  ;;  %v24699_v56 = vld [vmem:[#allocation38_spill] sm:$0xff] }
 0x85a   : > { %17690 = vrot.lane.b32.xlu1 %v17689_v20, %s19760_s27  ;;  %v22721_v26 = vrot.slane %v7792_v60, %v21975_v24  ;;  %v6961_v49 = vcombine.high %v22442_v63, %v22463_v3  ;;  %v6825_v34 = vcombine.high %v24699_v56, %v24698_v36  ;;  %v6857_v10 = vcombine.high %v24701_v62, %v24700_v47 }
 0x85b   : > { %17705 = vrot.lane.b32.xlu0 %v17704_v11, %s19756_s0  ;;  %v7689_v50 = vcombine.high %v22704_v40, %v22714_v25  ;;  %v6993_v23 = vcombine.high %v24703_v27, %v24702_v4  ;;  %v17694_v12 = vpack.i.bf16 %v7826_v45, %v7690_v15  ;;  %v17709_v48 = vpack.i.bf16 %v7827_v16, %v7691_v35 }
 0x85c   : > { %v7692_v41 = vcombine.low %v7648_v19, %v7680_v43  ;;  %v7825_v63 = vcombine.high %v22717_v22, %v22721_v26  ;;  %v6975_v3 = vrot.slane %v6961_v49, %v21975_v24  ;;  %v7233_v20 = vcombine.high %v22506_v46, %v22527_v13 }
 0x85d   : > { %v7007_v17 = vrot.slane %v6993_v23, %v21975_v24  ;;  %v7097_v32 = vcombine.high %v22478_v1, %v22495_v8  ;;  %v7129_v15 = vcombine.high %v22498_v51, %v22501_v42  ;;  %v7265_v35 = vcombine.high %v22530_v21, %v22535_v0 }
 0x85e   : > { %17695 = vrot.lane.b32.xlu1 %v17694_v12, %s19761_s2  ;;  %v17719_v9 = vpack.i.bf16 %v7828_v39, %v7692_v41  ;;  %v6839_v28 = vrot.slane %v6825_v34, %v21975_v24  ;;  %v6871_v45 = vrot.slane %v6857_v10, %v21975_v24  ;;  %v7829_v16 = vcombine.high %v7784_v58, %v7816_v53 }
 0x85f   : > { %17710 = vrot.lane.b32.xlu0 %v17709_v48, %s19758_s28  ;;  %v7247_v46 = vrot.slane %v7233_v20, %v21975_v24  ;;  %v7279_v13 = vrot.slane %v7265_v35, %v21975_v24  ;;  %v17714_v60 = vpack.i.bf16 %v7825_v63, %v7689_v50  ;;  %v7014_v11 = vcombine.low %v6975_v3, %v7007_v17  ;;  %s19643_s28 = scalar_lea.vmem %s24354_s26, 3072 }
 0x860   : > { %v7505_v1 = vcombine.high %v22572_v38, %v22581_v57  ;;  %v7693_v8 = vcombine.high %v7648_v19, %v7680_v43  ;;  %v7111_v51 = vrot.slane %v7097_v32, %v21975_v24  ;;  %v7143_v42 = vrot.slane %v7129_v15, %v21975_v24  ;;  %p19644_p2 = scmp.ne.s32.totalorder %s24354_s26, %s19643_s28 }
 0x861   : > { %v7537_v21 = vcombine.high %v22584_v2, %v22599_v33  ;;  %v6878_v53 = vcombine.low %v6839_v28, %v6871_v45  ;;  %v7369_v0 = vcombine.high %v22545_v59, %v22561_v6  ;;  %v7401_v58 = vcombine.high %v22564_v52, %v22567_v14 }
 0x862   : > { %17720 = vrot.lane.b32.xlu1 %v17719_v9, %s19759_s29  ;;  %v17724_v38 = vpack.i.bf16 %v7829_v16, %v7693_v8  ;;  %v7015_v57 = vcombine.high %v6975_v3, %v7007_v17  ;;  %v7286_v39 = vcombine.low %v7247_v46, %v7279_v13  ;;  %v7777_v19 = vcombine.high %v22645_v37, %v22648_v55  ;;  %v24704_v16 = vld [vmem:[#allocation70_spill] sm:$0xff]  ;;  %p19645_p6 = pnand %p19644_p2, %p24762_p8  ;;  %s19767_s29 = smov [#allocation22]  }
 0x863   : > { %17715 = vrot.lane.b32.xlu0 %v17714_v60, %s19760_s27  ;;  %v17729_v43 = vpack.i.bf16 %v7014_v11, %v6878_v53  ;;  %v7519_v49 = vrot.slane %v7505_v1, %v21975_v24  ;;  %v7551_v2 = vrot.slane %v7537_v21, %v21975_v24  ;;  %v6879_v33 = vcombine.high %v6839_v28, %v6871_v45  ;;  %v24706_v60 = vld [vmem:[#allocation72_spill] sm:$0xff]  ;;  %v24707_v11 = vld [vmem:[#allocation71_spill] sm:$0xff]  ;;  %s19647_s27 = sshll.u32 %s19767_s29, 4  ;;  %s19648_s27 = int_to_ptr.vmem [resolvable:$false] %s19647_s27 }
 0x864   : > { %v7150_v50 = vcombine.low %v7111_v51, %v7143_v42  ;;  %v7809_v59 = vcombine.high %v22657_v30, %v22667_v18  ;;  %v7383_v6 = vrot.slane %v7369_v0, %v21975_v24  ;;  %v7415_v52 = vrot.slane %v7401_v58, %v21975_v24  ;;  %p19646_p10 = pneg %p19645_p6  ;;  %s19649_s2 = scalar_lea.vmem %s19648_s27, 6144 }
 0x865   : > { %v7641_v14 = vcombine.high %v22604_v7, %v22631_v31  ;;  %v7673_v37 = vcombine.high %v22634_v5, %v22637_v44  ;;  %v17734_v55 = vpack.i.bf16 %v7015_v57, %v6879_v33  ;;  %v7287_v56 = vcombine.high %v7247_v46, %v7279_v13  ;;  %v24705_v46 = vld [vmem:[#allocation69_spill] sm:$0xff]  ;;  %p19650_p11 = scmp.lt.s32.totalorder %s24354_s26, %s19648_s27  ;;  %p19651_p0 = scmp.lt.s32.totalorder %s19649_s2, %s19643_s28 }
 0x866   : > { %17725 = vrot.lane.b32.xlu1 %v17724_v38, %s19756_s0  ;;  %v17739_v36 = vpack.i.bf16 %v7286_v39, %v7150_v50  ;;  %v7791_v34 = vrot.slane %v7777_v19, %v21975_v24  ;;  %v7558_v47 = vcombine.low %v7519_v49, %v7551_v2  ;;  %v7823_v30 = vrot.slane %v7809_v59, %v21975_v24  ;;  %s24349_s0 = scalar_lea.hbm %s24761_s18, %s17449_s16 }
 0x867   : > { %17730 = vrot.lane.b32.xlu0 %v17729_v43, %s19757_s25  ;;  %v7688_v18 = vcombine.low %v22704_v40, %v22714_v25  ;;  %v7824_v62 = vcombine.low %v22717_v22, %v22721_v26  ;;  %v7151_v7 = vcombine.high %v7111_v51, %v7143_v42  ;;  %v7422_v31 = vcombine.low %v7383_v6, %v7415_v52  ;;  %v18175_v26 = vld [vmem:[#allocation7 + $0x22c] ss:$12 sps:$4 sm:$0xff]   ;;  %v18176_v40 = vld [vmem:[#allocation7 + $0x230] ss:$12 sps:$4 sm:$0xff]   ;;  %p19652_p5 = por %p19651_p0, %p19650_p11 }
 0x868   : > { %v7655_v5 = vrot.slane %v7641_v14, %v21975_v24  ;;  %v7687_v44 = vrot.slane %v7673_v37, %v21975_v24  ;;  %v7559_v4 = vcombine.high %v7519_v49, %v7551_v2  ;;  %v7830_v23 = vcombine.low %v7791_v34, %v7823_v30 }
 0x869   : > { %v17744_v10 = vpack.i.bf16 %v7287_v56, %v7151_v7  ;;  %v17749_v27 = vpack.i.bf16 %v7558_v47, %v7422_v31  ;;  %v7423_v12 = vcombine.high %v7383_v6, %v7415_v52  ;;  %v7831_v63 = vcombine.high %v7791_v34, %v7823_v30  ;;  %v18145_v56 = vld [vmem:[#allocation7 + $0x180] ss:$12 sps:$4 sm:$0xff]   ;;  %v18151_v30 = vld [vmem:[#allocation7 + $0x19c] ss:$12 sps:$4 sm:$0xff]   ;;  %p19653_p9 = pnand %p19652_p5, %p19646_p10 }
 0x86a   : > { %17735 = vrot.lane.b32.xlu1 %v17734_v55, %s19762_s1  ;;  %v7694_v48 = vcombine.low %v7655_v5, %v7687_v44  ;;  %v7695_v17 = vcombine.high %v7655_v5, %v7687_v44  ;;  %v6872_v13 = vcombine.low %v24705_v46, %v24704_v16  ;;  %v7008_v1 = vcombine.low %v24707_v11, %v24706_v60  ;;  %v18152_v7 = vld [vmem:[#allocation7 + $0x1a0] ss:$12 sps:$4 sm:$0xff]   ;;  %v24709_v44 = vld [vmem:[#allocation75_spill] sm:$0xff] }
 0x86b   : > { %17740 = vrot.lane.b32.xlu0 %v17739_v36, %s19757_s25  ;;  %v17754_v41 = vpack.i.bf16 %v7559_v4, %v7423_v12  ;;  %v24708_v5 = vld [vmem:[#allocation82_spill] sm:$0xff] }
 0x86c   : > { %v17759_v3 = vpack.i.bf16 %v7830_v23, %v7694_v48  ;;  %v17764_v20 = vpack.i.bf16 %v7831_v63, %v7695_v17  ;;  %v24710_v4 = vld [vmem:[#allocation34_spill] sm:$0xff]  ;;  %v18149_v17 = vld [vmem:[#allocation7 + $0x198] ss:$12 sps:$4 sm:$0xff]  }
 0x86e   : > { %17745 = vrot.lane.b32.xlu1 %v17744_v10, %s19762_s1  ;;  %v7144_v10 = vcombine.low %v24709_v44, %v24708_v5  ;;  %v18164_v5 = vld [vmem:[#allocation7 + $0x1e8] ss:$12 sps:$4 sm:$0xff]  }
 0x86f   : > { %17750 = vrot.lane.b32.xlu0 %v17749_v27, %s19757_s25  ;;  %v24711_v27 = vld [vmem:[#allocation83_spill] sm:$0xff] }
 0x870   : > { %v7280_v23 = vcombine.low %v24711_v27, %v24710_v4 }
 0x872   : > { %17755 = vrot.lane.b32.xlu1 %v17754_v41, %s19762_s1 }
 0x873   : > { %17760 = vrot.lane.b32.xlu0 %v17759_v3, %s19757_s25  ;;  %s15065_s25 = scalar_lea.sflag [#allocation4], %s20197_s14 }
 0x874   : > { %v17636_v24 = vpop.permute.xlu1 %17635  ;;  %v17631_v32 = vpop.permute.xlu0 %17630 }
 0x875   : > { %v17638_v8 = vunpack.i.h.bf16 %v17636_v24  ;;  %v17637_v51 = vunpack.i.l.bf16 %v17636_v24  ;;  %v17633_v42 = vunpack.i.h.bf16 %v17631_v32  ;;  %v17632_v21 = vunpack.i.l.bf16 %v17631_v32  ;;  %v18156_v32 = vld [vmem:[#allocation7 + $0x1b8] ss:$12 sps:$4 sm:$0xff]  }
 0x876   : > { %17765 = vrot.lane.b32.xlu1 %v17764_v20, %s19762_s1 }
 0x877   : > { %v8075_v49 = vsel %vm2782_vm1, %v17633_v42, %v17638_v8  ;;  %v8074_v2 = vsel %vm2782_vm1, %v17632_v21, %v17637_v51 }
 0x87b   : > { %v17641_v9 = vpop.permute.xlu1 %17640 }
 0x87c   : > { %v17643_v15 = vunpack.i.h.bf16 %v17641_v9  ;;  %v17642_v35 = vunpack.i.l.bf16 %v17641_v9  ;;  %v18155_v9 = vld [vmem:[#allocation7 + $0x1b4] ss:$12 sps:$4 sm:$0xff]  }
 0x87e   : > { %v8056_v53 = vsel %vm3195_vm0, %v6872_v13, %v17642_v35  ;;  %v8057_v0 = vsel %vm3195_vm0, %v7008_v1, %v17643_v15  ;;  %v18153_v13 = vld [vmem:[#allocation7 + $0x1b0] ss:$12 sps:$4 sm:$0xff]  }
 0x87f   : > { %v8065_v59 = vsel %vm8064_vm13, %v8056_v53, %v17632_v21  ;;  %v8066_v6 = vsel %vm8064_vm13, %v8057_v0, %v17633_v42  ;;  %v18159_v42 = vld [vmem:[#allocation7 + $0x1cc] ss:$12 sps:$4 sm:$0xff]   ;;  %v18160_v21 = vld [vmem:[#allocation7 + $0x1d0] ss:$12 sps:$4 sm:$0xff]  }
 0x880   : > { %v8117_v34 = vpack.c.bf16 %v8066_v6, %v8065_v59  ;;  %v7416_v59 = vcombine.low %v22360_v54, %v22369_v61  ;;  %v24712_v6 = vld [vmem:[#allocation36_spill] sm:$0xff] }
 0x881   : > { %v17651_v45 = vpop.permute.xlu0 %17650 }
 0x882   : > { %v22793_v28 = vpop.permute.xlu1 %17645  ;;  %v17653_v41 = vunpack.i.h.bf16 %v17651_v45  ;;  %v17652_v63 = vunpack.i.l.bf16 %v17651_v45 }
 0x883   : > { %v17648_v12 = vunpack.i.h.bf16 %v22793_v28  ;;  %v17647_v48 = vunpack.i.l.bf16 %v22793_v28 }
 0x885   : > { %v8077_v28 = vsel %vm2782_vm1, %v17648_v12, %v17653_v41  ;;  %v8076_v45 = vsel %vm2782_vm1, %v17647_v48, %v17652_v63  ;;  %v18161_v63 = vld [vmem:[#allocation7 + $0x1e0] ss:$12 sps:$4 sm:$0xff]  }
 0x8ba   : > { %v17656_v58 = vpop.permute.xlu1 %17655  ;;  %v22801_v38 = vpop.permute.xlu0 %17660 }
 0x8bb   : > { %v17658_v57 = vunpack.i.h.bf16 %v17656_v58  ;;  %v17657_v39 = vunpack.i.l.bf16 %v17656_v58  ;;  %v17663_v19 = vunpack.i.h.bf16 %v22801_v38  ;;  %v17662_v43 = vunpack.i.l.bf16 %v22801_v38 }
 0x8bd   : > { %v8082_v33 = vsel %vm3911_vm4, %v8074_v2, %v17657_v39  ;;  %v8083_v50 = vsel %vm3911_vm4, %v8075_v49, %v17658_v57 }
 0x8be   : > { %v22811_v52 = vpop.permute.xlu1 %17675  ;;  %v17666_v14 = vpop.permute.xlu0 %17665  ;;  %v8091_v37 = vsel %vm8090_vm14, %v8082_v33, %v17662_v43  ;;  %v8092_v55 = vsel %vm8090_vm14, %v8083_v50, %v17663_v19 }
 0x8bf   : > { %v8118_v36 = vpack.c.bf16 %v8092_v55, %v8091_v37  ;;  %v17667_v47 = vunpack.i.l.bf16 %v17666_v14  ;;  %v17668_v31 = vunpack.i.h.bf16 %v17666_v14  ;;  %v17677_v39 = vunpack.i.l.bf16 %v22811_v52  ;;  %v24713_v14 = vld [vmem:[#allocation35_spill] sm:$0xff] }
 0x8c0   : > { %v17678_v50 = vunpack.i.h.bf16 %v22811_v52  ;;  %v7552_v37 = vcombine.low %v24713_v14, %v24712_v6  ;;  %v18163_v52 = vld [vmem:[#allocation7 + $0x1e4] ss:$12 sps:$4 sm:$0xff]  }
 0x8c1   : > { %8658 = vmatprep.mubr.bf16.mxu1 %v8118_v36  ;;  %8804 = vmatprep.mubr.bf16.mxu0 %v8118_v36  ;;  %v8058_v20 = vsel %vm3195_vm0, %v7144_v10, %v17667_v47  ;;  %v8059_v15 = vsel %vm3195_vm0, %v7280_v23, %v17668_v31 }
 0x8c2   : > { %8659 = vmatmul.mubr.bf16.vlgmr.msra.gmra.mrb[136].mxu1 %v8117_v34  ;;  %8805 = vmatmul.mubr.bf16.vlgmr.msra.gmra.mrb[112].mxu0 %v8117_v34  ;;  %v22827_v24 = vpop.permute.xlu0 %17670  ;;  %v8068_v51 = vsel %vm8064_vm13, %v8059_v15, %v17648_v12 }
 0x8c3   : > { %8700 = vmatpush1.bf16.msra.mxu1 %v18145_v56  ;;  %17023 = vmatpush3.bf16.msra.mxu0 %v22614_v29  ;;  %v8067_v29 = vsel %vm8064_vm13, %v8058_v20, %v17647_v48  ;;  %v17672_v60 = vunpack.i.l.bf16 %v22827_v24  ;;  %v17673_v58 = vunpack.i.h.bf16 %v22827_v24  ;;  %v18157_v56 = vld [vmem:[#allocation7 + $0x1c8] ss:$12 sps:$4 sm:$0xff]   ;;  %v18168_v24 = vld [vmem:[#allocation7 + $0x200] ss:$12 sps:$4 sm:$0xff]  }
 0x8c4   : > { %v17681_v3 = vpop.permute.xlu1 %17680  ;;  %8701 = vmatprep.subr.bf16.mxu1 %v18151_v30  ;;  %17024 = vmatprep.subr.bf16.mxu0 %v18152_v7  ;;  %v18167_v20 = vld [vmem:[#allocation7 + $0x1fc] ss:$12 sps:$4 sm:$0xff]  }
 0x8c5   : > { %v17683_v35 = vunpack.i.h.bf16 %v17681_v3  ;;  %v17682_v16 = vunpack.i.l.bf16 %v17681_v3  ;;  %v8078_v34 = vsel %vm2782_vm1, %v17672_v60, %v17677_v39  ;;  %v8079_v54 = vsel %vm2782_vm1, %v17673_v58, %v17678_v50  ;;  %v18169_v50 = vld [vmem:[#allocation7 + $0x210] ss:$12 sps:$4 sm:$0xff]  }
 0x8c7   : > { %8702 = vmatpush1.bf16.msra.mxu1 %v18149_v17  ;;  %17025 = vmatpush3.bf16.msra.mxu0 %v18152_v7  ;;  %v8084_v53 = vsel %vm3911_vm4, %v8076_v45, %v17682_v16  ;;  %v8085_v0 = vsel %vm3911_vm4, %v8077_v28, %v17683_v35  ;;  %v8120_v7 = vpack.c.bf16 %v8068_v51, %v8067_v29  ;;  %v18165_v45 = vld [vmem:[#allocation7 + $0x1f8] ss:$12 sps:$4 sm:$0xff]  }
 0x8c8   : > { %v22832_v46 = vpop.permute.xlu1 %17685  ;;  %8703 = vmatprep.subr.bf16.mxu1 %v18155_v9  ;;  %17026 = vmatprep.subr.bf16.mxu0 %v18156_v32 }
 0x8c9   : > { %v17688_v11 = vunpack.i.h.bf16 %v22832_v46  ;;  %v17687_v1 = vunpack.i.l.bf16 %v22832_v46  ;;  %v17701_v8 = vpop.permute.xlu0 %17700 }
 0x8ca   : > { %v17702_v57 = vunpack.i.l.bf16 %v17701_v8  ;;  %v17703_v49 = vunpack.i.h.bf16 %v17701_v8 }
 0x8cb   : > { %v8093_v2 = vsel %vm8090_vm14, %v8084_v53, %v17687_v1  ;;  %v8094_v33 = vsel %vm8090_vm14, %v8085_v0, %v17688_v11  ;;  %8704 = vmatpush1.bf16.msra.mxu1 %v18153_v13  ;;  %17027 = vmatpush3.bf16.msra.mxu0 %v18156_v32 }
 0x8cc   : > { %v17691_v55 = vpop.permute.xlu1 %17690  ;;  %v8121_v36 = vpack.c.bf16 %v8094_v33, %v8093_v2  ;;  %8705 = vmatprep.subr.bf16.mxu1 %v18159_v42  ;;  %17028 = vmatprep.subr.bf16.mxu0 %v18160_v21  ;;  %v8086_v61 = vsel %vm3911_vm4, %v8078_v34, %v17702_v57  ;;  %v8087_v23 = vsel %vm3911_vm4, %v8079_v54, %v17703_v49 }
 0x8cd   : > { %v17693_v47 = vunpack.i.h.bf16 %v17691_v55  ;;  %v17692_v30 = vunpack.i.l.bf16 %v17691_v55  ;;  %v22855_v31 = vpop.permute.xlu0 %17705 }
 0x8ce   : > { %8668 = vmatprep.mubr.bf16.mxu1 %v8121_v36  ;;  %8812 = vmatprep.mubr.bf16.mxu0 %v8121_v36  ;;  %v17708_v44 = vunpack.i.h.bf16 %v22855_v31  ;;  %v17707_v10 = vunpack.i.l.bf16 %v22855_v31 }
 0x8cf   : > { %v8061_v4 = vsel %vm3195_vm0, %v7552_v37, %v17693_v47  ;;  %v8060_v27 = vsel %vm3195_vm0, %v7416_v59, %v17692_v30  ;;  %8669 = vmatmul.mubr.bf16.gmra.mrb[140].mxu1 %v8120_v7  ;;  %8813 = vmatmul.mubr.bf16.gmra.mrb[116].mxu0 %v8120_v7 }
 0x8d0   : > { %v17696_v12 = vpop.permute.xlu1 %17695  ;;  %8706 = vmatpush1.bf16.msra.mxu1 %v18157_v56  ;;  %17029 = vmatpush3.bf16.msra.mxu0 %v18160_v21  ;;  %v8095_v48 = vsel %vm8090_vm14, %v8086_v61, %v17707_v10  ;;  %v8096_v41 = vsel %vm8090_vm14, %v8087_v23, %v17708_v44  ;;  %v8069_v32 = vsel %vm8064_vm13, %v8060_v27, %v17672_v60  ;;  %v18171_v21 = vld [vmem:[#allocation7 + $0x214] ss:$12 sps:$4 sm:$0xff]   ;;  %v18172_v60 = vld [vmem:[#allocation7 + $0x218] ss:$12 sps:$4 sm:$0xff]  }
 0x8d1   : > { %v17711_v3 = vpop.permute.xlu0 %17710  ;;  %v8124_v17 = vpack.c.bf16 %v8096_v41, %v8095_v48  ;;  %8707 = vmatprep.subr.bf16.mxu1 %v18163_v52  ;;  %17030 = vmatprep.subr.bf16.mxu0 %v18164_v5  ;;  %v8070_v15 = vsel %vm8064_vm13, %v8061_v4, %v17673_v58  ;;  %v17697_v35 = vunpack.i.l.bf16 %v17696_v12  ;;  %v17698_v29 = vunpack.i.h.bf16 %v17696_v12  ;;  %v18173_v52 = vld [vmem:[#allocation7 + $0x228] ss:$12 sps:$4 sm:$0xff]  }
 0x8d2   : > { %v17712_v9 = vunpack.i.l.bf16 %v17711_v3  ;;  %v17713_v16 = vunpack.i.h.bf16 %v17711_v3  ;;  %v8123_v51 = vpack.c.bf16 %v8070_v15, %v8069_v32 }
 0x8d3   : > { %8678 = vmatprep.mubr.bf16.mxu1 %v8124_v17  ;;  %8820 = vmatprep.mubr.bf16.mxu0 %v8124_v17  ;;  %v24714_v17 = vmov 0  }
 0x8d4   : > { %v17721_v28 = vpop.permute.xlu1 %17720  ;;  %8708 = vmatpush1.bf16.msra.mxu1 %v18161_v63  ;;  %17031 = vmatpush3.bf16.msra.mxu0 %v18164_v5  ;;  %v8080_v8 = vsel %vm2782_vm1, %v17697_v35, %v17712_v9  ;;  %v8081_v57 = vsel %vm2782_vm1, %v17698_v29, %v17713_v16 }
 0x8d5   : > { %v17722_v13 = vunpack.i.l.bf16 %v17721_v28  ;;  %v17716_v42 = vpop.permute.xlu0 %17715  ;;  %8709 = vmatprep.subr.bf16.mxu1 %v18167_v20  ;;  %17032 = vmatprep.subr.bf16.mxu0 %v18168_v24  ;;  %v17723_v53 = vunpack.i.h.bf16 %v17721_v28 }
 0x8d6   : > { %v17718_v0 = vunpack.i.h.bf16 %v17716_v42  ;;  %v17717_v58 = vunpack.i.l.bf16 %v17716_v42 }
 0x8d7   : > { %8679 = vmatmul.mubr.bf16.gmra.mrb[144].mxu1 %v8123_v51  ;;  %8821 = vmatmul.mubr.bf16.gmra.mrb[120].mxu0 %v8123_v51  ;;  %v8088_v33 = vsel %vm3911_vm4, %v8080_v8, %v17722_v13 }
 0x8d8   : > { %v22874_v39 = vpop.permute.xlu1 %17725  ;;  %v8063_v49 = vsel %vm3195_vm0, %v7824_v62, %v17718_v0  ;;  %v8062_v2 = vsel %vm3195_vm0, %v7688_v18, %v17717_v58  ;;  %8710 = vmatpush1.bf16.msra.mxu1 %v18165_v45  ;;  %17033 = vmatpush3.bf16.msra.mxu0 %v18168_v24  ;;  %v8089_v62 = vsel %vm3911_vm4, %v8081_v57, %v17723_v53 }
 0x8d9   : > { %v17728_v59 = vunpack.i.h.bf16 %v22874_v39  ;;  %v17727_v6 = vunpack.i.l.bf16 %v22874_v39  ;;  %v17731_v14 = vpop.permute.xlu0 %17730  ;;  %v8071_v37 = vsel %vm8064_vm13, %v8062_v2, %v17697_v35  ;;  %v8072_v22 = vsel %vm8064_vm13, %v8063_v49, %v17698_v29  ;;  %8711 = vmatprep.subr.bf16.mxu1 %v18171_v21  ;;  %17034 = vmatprep.subr.bf16.mxu0 %v18172_v60 }
 0x8da   : > { %v17733_v25 = vunpack.i.h.bf16 %v17731_v14  ;;  %v17732_v18 = vunpack.i.l.bf16 %v17731_v14  ;;  %v8126_v55 = vpack.c.bf16 %v8072_v22, %v8071_v37 }
 0x8db   : > { %v8097_v36 = vsel %vm8090_vm14, %v8088_v33, %v17727_v6  ;;  %v8098_v56 = vsel %vm8090_vm14, %v8089_v62, %v17728_v59 }
 0x8dc   : > { %v17736_v34 = vpop.permute.xlu1 %17735  ;;  %v8100_v47 = vsel %vm2741_vm2, %v17662_v43, %v17732_v18  ;;  %v8101_v30 = vsel %vm2741_vm2, %v17663_v19, %v17733_v25  ;;  %v8127_v7 = vpack.c.bf16 %v8098_v56, %v8097_v36  ;;  %8712 = vmatpush1.bf16.msra.mxu1 %v18169_v50  ;;  %17035 = vmatpush3.bf16.msra.mxu0 %v18172_v60  ;;  %v24715_v56 = vld [vmem:[#allocation33_spill] sm:$0xff] }
 0x8dd   : > { %v17738_v5 = vunpack.i.h.bf16 %v17736_v34  ;;  %v17737_v54 = vunpack.i.l.bf16 %v17736_v34  ;;  %v17741_v61 = vpop.permute.xlu0 %17740  ;;  %8713 = vmatprep.subr.bf16.mxu1 %v18175_v26  ;;  %17036 = vmatprep.subr.bf16.mxu0 %v18176_v40  ;;  %v22935_v34 = vsub.s32 2, %v24715_v56 }
 0x8de   : > { %8688 = vmatprep.mubr.bf16.mxu1 %v8127_v7  ;;  %8828 = vmatprep.mubr.bf16.mxu0 %v8127_v7  ;;  %v17743_v4 = vunpack.i.h.bf16 %v17741_v61  ;;  %v17742_v27 = vunpack.i.l.bf16 %v17741_v61  ;;  %v22938_v7 = vsub.s32 0, %v24715_v56 }
 0x8df   : > { %8689 = vmatmul.mubr.bf16.gmra.mrb[148].mxu1 %v8126_v55  ;;  %8829 = vmatmul.mubr.bf16.gmra.mrb[124].mxu0 %v8126_v55  ;;  %v8109_v38 = vsel %vm8108_vm15, %v8100_v47, %v17737_v54  ;;  %v8110_v19 = vsel %vm8108_vm15, %v8101_v30, %v17738_v5  ;;  %24716 = vst [vmem:[#allocation41_spill] sm:$0xff] %v22935_v34  ;;  %v8225_v30 = vld [vmem:[#allocation8] sm:$0x7]  ;;  %v22941_v54 = vsub.s32 1, %v24715_v56 }
 0x8e0   : > { %v17746_v43 = vpop.permute.xlu1 %17745  ;;  %v8103_v23 = vsel %vm2741_vm2, %v17688_v11, %v17743_v4  ;;  %v8102_v12 = vsel %vm2741_vm2, %v17687_v1, %v17742_v27  ;;  %v8119_v48 = vpack.c.bf16 %v8110_v19, %v8109_v38  ;;  %8714 = vmatpush1.bf16.msra.mxu1 %v18173_v52  ;;  %17037 = vmatpush3.bf16.msra.mxu0 %v18176_v40 }
 0x8e1   : > { %v17748_v41 = vunpack.i.h.bf16 %v17746_v43  ;;  %v17747_v63 = vunpack.i.l.bf16 %v17746_v43  ;;  %v17751_v3 = vpop.permute.xlu0 %17750  ;;  %8731 = vmatprep.mubr.bf16.mxu1 %v24714_v17  ;;  %v8238_v27 = vrot.slane %v8225_v30, %v22935_v34  ;;  %v22945_v38 = vrot.slane %v8225_v30, %v22938_v7 }
 0x8e2   : > { %17038 = vmatprep.mubr.bf16.mxu0 %v8119_v48  ;;  %v17753_v20 = vunpack.i.h.bf16 %v17751_v3  ;;  %v17752_v24 = vunpack.i.l.bf16 %v17751_v3  ;;  %v22948_v19 = vrot.slane %v8225_v30, %v22941_v54  ;;  %v19287_v30 = vld [vmem:[%s20203_s19 + $0x30] sm:$0xff] }
 0x8e3   : > { %v8112_v9 = vsel %vm8108_vm15, %v8103_v23, %v17748_v41  ;;  %v8111_v32 = vsel %vm8108_vm15, %v8102_v12, %v17747_v63 }
 0x8e4   : > { %v8122_v11 = vpack.c.bf16 %v8112_v9, %v8111_v32  ;;  %v17756_v15 = vpop.permute.xlu1 %17755  ;;  %v8104_v46 = vsel %vm2741_vm2, %v17707_v10, %v17752_v24  ;;  %v8105_v1 = vsel %vm2741_vm2, %v17708_v44, %v17753_v20 }
 0x8e5   : > { %v17758_v35 = vunpack.i.h.bf16 %v17756_v15  ;;  %v17757_v16 = vunpack.i.l.bf16 %v17756_v15  ;;  %v17761_v28 = vpop.permute.xlu0 %17760 }
 0x8e6   : > { %v17763_v45 = vunpack.i.h.bf16 %v17761_v28  ;;  %v17762_v29 = vunpack.i.l.bf16 %v17761_v28 }
 0x8e7   : > { %8732 = vmatmul.mubr.bf16.vlgmr.msra.gmra.mrb[136].mxu1 %v8119_v48  ;;  %17039 = vmatmul.mubr.bf16.vlgmr.msra.gmra.mrb[128].mxu0 %v8122_v11  ;;  %v8113_v13 = vsel %vm8108_vm15, %v8104_v46, %v17757_v16  ;;  %v8114_v8 = vsel %vm8108_vm15, %v8105_v1, %v17758_v35  ;;  %v19281_v1 = vld [vmem:[%s20203_s19] sm:$0xff] }
 0x8e8   : > { %v17766_v51 = vpop.permute.xlu1 %17765  ;;  %v8107_v10 = vsel %vm2741_vm2, %v17728_v59, %v17763_v45  ;;  %v8106_v31 = vsel %vm2741_vm2, %v17727_v6, %v17762_v29  ;;  %v8125_v44 = vpack.c.bf16 %v8114_v8, %v8113_v13  ;;  %8741 = vmatprep.mubr.bf16.mxu1 %v24714_v17  ;;  %v19282_v13 = vld [vmem:[%s20203_s19 + $0x8] sm:$0xff] }
 0x8e9   : > { %v17768_v42 = vunpack.i.h.bf16 %v17766_v51  ;;  %v17767_v21 = vunpack.i.l.bf16 %v17766_v51 }
 0x8ea   : > { %17042 = vmatprep.mubr.bf16.mxu0 %v8125_v44 }
 0x8eb   : > { %v8115_v60 = vsel %vm8108_vm15, %v8106_v31, %v17767_v21  ;;  %v8116_v53 = vsel %vm8108_vm15, %v8107_v10, %v17768_v42  ;;  %v19283_v31 = vld [vmem:[%s20203_s19 + $0x18] sm:$0xff]  ;;  %v19284_v21 = vld [vmem:[%s20203_s19 + $0x10] sm:$0xff] }
 0x8ec   : > { %v8128_v0 = vpack.c.bf16 %v8116_v53, %v8115_v60  ;;  %v19285_v53 = vld [vmem:[%s20203_s19 + $0x20] sm:$0xff] }
 0x8ef   : > { %8742 = vmatmul.mubr.bf16.gmra.mrb[140].mxu1 %v8122_v11  ;;  %17043 = vmatmul.mubr.bf16.gmra.mrb[132].mxu0 %v8128_v0 }
 0x8f0   : > { %8751 = vmatprep.mubr.bf16.mxu1 %v24714_v17 }
 0x8f7   : > { %8752 = vmatmul.mubr.bf16.gmra.mrb[144].mxu1 %v8125_v44 }
 0x8f8   : > { %8761 = vmatprep.mubr.bf16.mxu1 %v24714_v17 }
 0x8ff   : > { %8762 = vmatmul.mubr.bf16.gmra.mrb[148].mxu1 %v8128_v0 }
 0x995   : > { %v16450_v58 = vpop.f32.mrb[112].mxu0 }
 0x996   : > { %v16451_v57 = vpop.f32.mrb[113].mxu0 }
 0x997   : > { %v16452_v39 = vadd.f32 %v16451_v57, %v16450_v58  ;;  %v16453_v49 = vpop.f32.mrb[114].mxu0 }
 0x998   : > { %v16454_v2 = vpop.f32.mrb[115].mxu0 }
 0x999   : > { %v16455_v33 = vadd.f32 %v16454_v2, %v16453_v49  ;;  %v8807_v48 = vadd.f32 %v16452_v39, %v8238_v27  ;;  %v19286_v39 = vld [vmem:[%s20203_s19 + $0x28] sm:$0xff] }
 0x99b   : > { %v8810_v46 = vadd.f32 %v16455_v33, %v8238_v27 }
 0x9a2   : > { %v16456_v50 = vpop.f32.mrb[116].mxu0 }
 0x9a3   : > { %v16457_v59 = vpop.f32.mrb[117].mxu0 }
 0x9a4   : > { %v16458_v6 = vadd.f32 %v16457_v59, %v16456_v50  ;;  %v16459_v14 = vpop.f32.mrb[118].mxu0 }
 0x9a5   : > { %v16460_v37 = vpop.f32.mrb[119].mxu0 }
 0x9a6   : > { %v16461_v22 = vadd.f32 %v16460_v37, %v16459_v14  ;;  %v8815_v43 = vadd.f32 %v16458_v6, %v8238_v27 }
 0x9a8   : > { %v8818_v24 = vadd.f32 %v16461_v22, %v8238_v27 }
 0x9aa   : > { %v16462_v26 = vpop.f32.mrb[120].mxu0 }
 0x9ab   : > { %v16463_v40 = vpop.f32.mrb[121].mxu0 }
 0x9ac   : > { %v16464_v25 = vadd.f32 %v16463_v40, %v16462_v26  ;;  %v16465_v18 = vpop.f32.mrb[122].mxu0 }
 0x9ad   : > { %v16466_v62 = vpop.f32.mrb[123].mxu0 }
 0x9ae   : > { %v22932_v55 = vadd.f32 %v16466_v62, %v16465_v18  ;;  %v8823_v50 = vadd.f32 %v16464_v25, %v8238_v27 }
 0x9b0   : > { %v8826_v25 = vadd.f32 %v22932_v55, %v8238_v27  ;;  %v19289_v55 = vld [vmem:[%s20203_s19 + $0x48] sm:$0xff] }
 0x9b2   : > { %v16468_v36 = vpop.f32.mrb[124].mxu0 }
 0x9b3   : > { %v16469_v47 = vpop.f32.mrb[125].mxu0 }
 0x9b4   : > { %v16470_v52 = vadd.f32 %v16469_v47, %v16468_v36  ;;  %v16471_v5 = vpop.f32.mrb[126].mxu0 }
 0x9b5   : > { %v16472_v61 = vpop.f32.mrb[127].mxu0 }
 0x9b6   : > { %v16473_v4 = vadd.f32 %v16472_v61, %v16471_v5  ;;  %v8831_v58 = vadd.f32 %v16470_v52, %v8238_v27 }
 0x9b8   : > { %v8834_v26 = vadd.f32 %v16473_v4, %v8238_v27 }
 0x9ba   : > { %v8733_v23 = vpop.f32.mrb[136].mxu1  ;;  %v17040_v12 = vpop.f32.mrb[128].mxu0 }
 0x9bb   : > { %v17062_v41 = vadd.f32 %v8733_v23, %v22945_v38  ;;  %v8880_v63 = vadd.f32 %v17040_v12, %v8815_v43  ;;  %v8735_v3 = vpop.f32.mrb[137].mxu1  ;;  %v8871_v20 = vpop.f32.mrb[129].mxu0  ;;  %v19288_v23 = vld [vmem:[%s20203_s19 + $0x38] sm:$0xff] }
 0x9bc   : > { %v17063_v9 = vadd.f32 %v8735_v3, %v22948_v19  ;;  %v8872_v32 = vadd.f32 %v8871_v20, %v8807_v48  ;;  %v8737_v11 = vpop.f32.mrb[138].mxu1  ;;  %v17041_v15 = vpop.f32.mrb[130].mxu0  ;;  %v19290_v3 = vld [vmem:[%s20203_s19 + $0x40] sm:$0xff] }
 0x9bd   : > { %v22953_v35 = vadd.f32 %v19281_v1, %v17062_v41  ;;  %v17064_v16 = vadd.f32 %v8737_v11, %v22945_v38  ;;  %v8883_v28 = vadd.f32 %v17041_v15, %v8818_v24  ;;  %v8739_v45 = vpop.f32.mrb[139].mxu1  ;;  %v8874_v29 = vpop.f32.mrb[131].mxu0  ;;  %v22997_v20 = vadd.f32 %v19290_v3, %v8880_v63  ;;  %v19292_v63 = vld [vmem:[%s20203_s19 + $0x58] sm:$0xff]  ;;  %v19301_v3 = vld [vmem:[%s20203_s19 + $0xa8] sm:$0xff] }
 0x9be   : > { %v22957_v8 = vadd.f32 %v19282_v13, %v17063_v9  ;;  %v17065_v51 = vadd.f32 %v8739_v45, %v22948_v19  ;;  %v8875_v10 = vadd.f32 %v8874_v29, %v8810_v46  ;;  %v22966_v60 = vadd.f32 %v19284_v21, %v8872_v32  ;;  %v19291_v9 = vld [vmem:[%s20203_s19 + $0x50] sm:$0xff]  ;;  %v19294_v21 = vld [vmem:[%s20203_s19 + $0x68] sm:$0xff] }
 0x9bf   : > { %v22961_v44 = vadd.f32 %v19283_v31, %v17064_v16  ;;  %v23009_v45 = vadd.f32 %v19292_v63, %v8883_v28 }
 0x9c0   : > { %v8928_v42 = vadd.f32 %v22957_v8, %v22953_v35  ;;  %v22969_v0 = vadd.f32 %v19285_v53, %v17065_v51  ;;  %v22974_v49 = vadd.f32 %v19286_v39, %v8875_v10  ;;  %v19293_v51 = vld [vmem:[%s20203_s19 + $0x60] sm:$0xff] }
 0x9c2   : > { %v8932_v57 = vadd.f32 %v22969_v0, %v22961_v44  ;;  %v8743_v2 = vpop.f32.mrb[140].mxu1  ;;  %v17044_v33 = vpop.f32.mrb[132].mxu0  ;;  %v8929_v59 = vadd.f32 %v8928_v42, %v22966_v60 }
 0x9c3   : > { %v17066_v6 = vadd.f32 %v8743_v2, %v22945_v38  ;;  %v22978_v14 = vadd.f32 %v17044_v33, %v8831_v58  ;;  %v8745_v37 = vpop.f32.mrb[141].mxu1  ;;  %v8887_v22 = vpop.f32.mrb[133].mxu0  ;;  %v19296_v2 = vld [vmem:[%s20203_s19 + $0x70] sm:$0xff] }
 0x9c4   : > { %v17067_v40 = vadd.f32 %v8745_v37, %v22948_v19  ;;  %v8888_v18 = vadd.f32 %v8887_v22, %v8823_v50  ;;  %v8747_v62 = vpop.f32.mrb[142].mxu1  ;;  %v17045_v36 = vpop.f32.mrb[134].mxu0  ;;  %8930 = vadd.xlane.f32.xlu0 %v8929_v59  ;;  %v8933_v47 = vadd.f32 %v8932_v57, %v22974_v49  ;;  %v19295_v57 = vld [vmem:[%s20203_s19 + $0x78] sm:$0xff]  ;;  %v19297_v59 = vld [vmem:[%s20203_s19 + $0x80] sm:$0xff]  ;;  %v19298_v37 = vld [vmem:[%s20203_s19 + $0x88] sm:$0xff] }
 0x9c5   : > { %v22984_v52 = vadd.f32 %v19287_v30, %v17066_v6  ;;  %v17068_v5 = vadd.f32 %v8747_v62, %v22945_v38  ;;  %v22987_v61 = vadd.f32 %v17045_v36, %v8834_v26  ;;  %v8749_v4 = vpop.f32.mrb[143].mxu1  ;;  %v8890_v43 = vpop.f32.mrb[135].mxu0 }
 0x9c6   : > { %v22990_v12 = vadd.f32 %v19288_v23, %v17067_v40  ;;  %v17069_v48 = vadd.f32 %v8749_v4, %v22948_v19  ;;  %v8891_v41 = vadd.f32 %v8890_v43, %v8826_v25  ;;  %8934 = vadd.xlane.f32.xlu1 %v8933_v47  ;;  %v23025_v33 = vadd.f32 %v19296_v2, %v8888_v18  ;;  %v18189_v2 = vld [vmem:[#allocation13 + $0xc0] ss:$48 sps:$4 sm:$0xff]  }
 0x9c7   : > { %v22994_v27 = vadd.f32 %v19289_v55, %v17068_v5  ;;  %v19299_v5 = vld [vmem:[%s20203_s19 + $0x90] sm:$0xff] }
 0x9c8   : > { %v8936_v24 = vadd.f32 %v22990_v12, %v22984_v52  ;;  %v23002_v32 = vadd.f32 %v19291_v9, %v17069_v48  ;;  %v23033_v22 = vadd.f32 %v19298_v37, %v8891_v41  ;;  %v19300_v48 = vld [vmem:[%s20203_s19 + $0x98] sm:$0xff]  ;;  %v19302_v9 = vld [vmem:[%s20203_s19 + $0xa0] sm:$0xff] }
 0x9c9   : > { %v18200_v37 = vld [vmem:[#allocation13 + $0x12c] ss:$48 sps:$4 sm:$0xff]  }
 0x9ca   : > { %v8940_v11 = vadd.f32 %v23002_v32, %v22994_v27  ;;  %v8753_v15 = vpop.f32.mrb[144].mxu1  ;;  %v8937_v46 = vadd.f32 %v8936_v24, %v22997_v20 }
 0x9cb   : > { %v17070_v1 = vadd.f32 %v8753_v15, %v22945_v38  ;;  %v8755_v16 = vpop.f32.mrb[145].mxu1 }
 0x9cc   : > { %v17071_v29 = vadd.f32 %v8755_v16, %v22948_v19  ;;  %v8757_v13 = vpop.f32.mrb[146].mxu1  ;;  %8938 = vadd.xlane.f32.xlu0 %v8937_v46  ;;  %v8941_v28 = vadd.f32 %v8940_v11, %v23009_v45  ;;  %v23054_v11 = vadd.f32 %v19302_v9, %v22978_v14  ;;  %v19303_v46 = vld [vmem:[%s20203_s19 + $0xb0] sm:$0xff]  ;;  %v18177_v14 = vld [vmem:[#allocation13] ss:$48 sps:$4 sm:$0xff]  }
 0x9cd   : > { %v23013_v10 = vadd.f32 %v19293_v51, %v17070_v1  ;;  %v17072_v31 = vadd.f32 %v8757_v13, %v22945_v38  ;;  %v8759_v42 = vpop.f32.mrb[147].mxu1  ;;  %v18179_v13 = vld [vmem:[#allocation13 + $0x4] ss:$48 sps:$4 sm:$0xff]   ;;  %v18180_v51 = vld [vmem:[#allocation13 + $0x8] ss:$48 sps:$4 sm:$0xff]  }
 0x9ce   : > { %v23017_v53 = vadd.f32 %v19294_v21, %v17071_v29  ;;  %v17073_v58 = vadd.f32 %v8759_v42, %v22948_v19  ;;  %v18185_v42 = vld [vmem:[#allocation13 + $0x64] ss:$48 sps:$4 sm:$0xff]   ;;  %10981 = vmatprep.subr.bf16.mxu0 %v18179_v13  ;;  %v18188_v21 = vld [vmem:[#allocation13 + $0x6c] ss:$48 sps:$4 sm:$0xff]  }
 0x9cf   : > { %v23022_v39 = vadd.f32 %v19295_v57, %v17072_v31  ;;  %v18182_v31 = vld [vmem:[#allocation13 + $0xc] ss:$48 sps:$4 sm:$0xff]   ;;  %10982 = vmatpush1.bf16.msra.mxu0 %v18177_v14  ;;  %v18221_v9 = vld [vmem:[#allocation13 + $0x2a4] ss:$48 sps:$4 sm:$0xff]   ;;  %v18228_v14 = vld [vmem:[#allocation13 + $0x308] ss:$48 sps:$4 sm:$0xff]  }
 0x9d0   : > { %v8944_v50 = vadd.f32 %v23017_v53, %v23013_v10  ;;  %v23030_v6 = vadd.f32 %v19297_v59, %v17073_v58  ;;  %8942 = vadd.xlane.f32.xlu0 %v8941_v28  ;;  %11127 = vmatprep.subr.bf16.mxu1 %v18182_v31  ;;  %v18186_v58 = vld [vmem:[#allocation13 + $0x68] ss:$48 sps:$4 sm:$0xff]   ;;  %v18191_v28 = vld [vmem:[#allocation13 + $0xc4] ss:$48 sps:$4 sm:$0xff]   ;;  %v18194_v57 = vld [vmem:[#allocation13 + $0xcc] ss:$48 sps:$4 sm:$0xff]  }
 0x9d1   : > { %11128 = vmatpush1.bf16.msra.mxu1 %v18180_v51  ;;  %10983 = vmatprep.subr.bf16.mxu0 %v18185_v42  ;;  %v18197_v59 = vld [vmem:[#allocation13 + $0x124] ss:$48 sps:$4 sm:$0xff]   ;;  %v18236_v51 = vld [vmem:[#allocation13 + $0x36c] ss:$48 sps:$4 sm:$0xff]   ;;  %v18231_v31 = vld [vmem:[#allocation13 + $0x360] ss:$48 sps:$4 sm:$0xff]  }
 0x9d2   : > { %v8948_v26 = vadd.f32 %v23030_v6, %v23022_v39  ;;  %v8763_v40 = vpop.f32.mrb[148].mxu1  ;;  %v8945_v18 = vadd.f32 %v8944_v50, %v23025_v33  ;;  %11129 = vmatprep.subr.bf16.mxu1 %v18188_v21  ;;  %v18192_v50 = vld [vmem:[#allocation13 + $0xc8] ss:$48 sps:$4 sm:$0xff]   ;;  %v18233_v13 = vld [vmem:[#allocation13 + $0x364] ss:$48 sps:$4 sm:$0xff]  }
 0x9d3   : > { %v17074_v62 = vadd.f32 %v8763_v40, %v22945_v38  ;;  %v8765_v36 = vpop.f32.mrb[149].mxu1  ;;  %v18198_v40 = vld [vmem:[#allocation13 + $0x128] ss:$48 sps:$4 sm:$0xff]  }
 0x9d4   : > { %v17075_v25 = vadd.f32 %v8765_v36, %v22948_v19  ;;  %v8767_v47 = vpop.f32.mrb[150].mxu1  ;;  %8946 = vadd.xlane.f32.xlu1 %v8945_v18  ;;  %v8949_v30 = vadd.f32 %v8948_v26, %v23033_v22  ;;  %v18195_v26 = vld [vmem:[#allocation13 + $0x120] ss:$48 sps:$4 sm:$0xff]   ;;  %v18203_v18 = vld [vmem:[#allocation13 + $0x184] ss:$48 sps:$4 sm:$0xff]  }
 0x9d5   : > { %v23042_v4 = vadd.f32 %v19299_v5, %v17074_v62  ;;  %v17076_v43 = vadd.f32 %v8767_v47, %v22945_v38  ;;  %v8769_v23 = vpop.f32.mrb[151].mxu1  ;;  %v19304_v38 = vld [vmem:[%s20203_s19 + $0xb8] sm:$0xff]  ;;  %11130 = vmatpush1.bf16.msra.mxu1 %v18186_v58  ;;  %v18209_v47 = vld [vmem:[#allocation13 + $0x1e4] ss:$48 sps:$4 sm:$0xff]   ;;  %v18234_v42 = vld [vmem:[#allocation13 + $0x368] ss:$48 sps:$4 sm:$0xff]  }
 0x9d6   : > { %v23046_v41 = vadd.f32 %v19300_v48, %v17075_v25  ;;  %v17077_v55 = vadd.f32 %v8769_v23, %v22948_v19  ;;  %8950 = vadd.xlane.f32.xlu0 %v8949_v30  ;;  %v23063_v16 = vadd.f32 %v19304_v38, %v22987_v61  ;;  %v18183_v61 = vld [vmem:[#allocation13 + $0x60] ss:$48 sps:$4 sm:$0xff]   ;;  %11131 = vmatprep.subr.bf16.mxu1 %v18194_v57  ;;  %v18206_v62 = vld [vmem:[#allocation13 + $0x18c] ss:$48 sps:$4 sm:$0xff]   ;;  %v18204_v25 = vld [vmem:[#allocation13 + $0x188] ss:$48 sps:$4 sm:$0xff]  }
 0x9d7   : > { %v23050_v24 = vadd.f32 %v19301_v3, %v17076_v43  ;;  %10984 = vmatpush1.bf16.msra.mxu0 %v18183_v61  ;;  %v18201_v36 = vld [vmem:[#allocation13 + $0x180] ss:$48 sps:$4 sm:$0xff]   ;;  %v18212_v30 = vld [vmem:[#allocation13 + $0x1ec] ss:$48 sps:$4 sm:$0xff]   ;;  %v18210_v43 = vld [vmem:[#allocation13 + $0x1e8] ss:$48 sps:$4 sm:$0xff]  }
 0x9d8   : > { %v8952_v15 = vadd.f32 %v23046_v41, %v23042_v4  ;;  %v23059_v1 = vadd.f32 %v19303_v46, %v17077_v55  ;;  %10985 = vmatprep.subr.bf16.mxu0 %v18191_v28  ;;  %v18207_v5 = vld [vmem:[#allocation13 + $0x1e0] ss:$48 sps:$4 sm:$0xff]   ;;  %v18215_v23 = vld [vmem:[#allocation13 + $0x244] ss:$48 sps:$4 sm:$0xff]   ;;  %v18218_v48 = vld [vmem:[#allocation13 + $0x24c] ss:$48 sps:$4 sm:$0xff]  }
 0x9d9   : > { %11132 = vmatpush1.bf16.msra.mxu1 %v18192_v50  ;;  %v18213_v55 = vld [vmem:[#allocation13 + $0x240] ss:$48 sps:$4 sm:$0xff]   ;;  %v18216_v3 = vld [vmem:[#allocation13 + $0x248] ss:$48 sps:$4 sm:$0xff]  }
 0x9da   : > { %v8956_v19 = vadd.f32 %v23059_v1, %v23050_v24  ;;  %v8953_v63 = vadd.f32 %v8952_v15, %v23054_v11  ;;  %11133 = vmatprep.subr.bf16.mxu1 %v18200_v37  ;;  %v18224_v15 = vld [vmem:[#allocation13 + $0x2ac] ss:$48 sps:$4 sm:$0xff]   ;;  %v18219_v46 = vld [vmem:[#allocation13 + $0x2a0] ss:$48 sps:$4 sm:$0xff]   ;;  %v18222_v38 = vld [vmem:[#allocation13 + $0x2a8] ss:$48 sps:$4 sm:$0xff]  }
 0x9db   : > { %10986 = vmatpush1.bf16.msra.mxu0 %v18189_v2 }
 0x9dc   : > { %8954 = vadd.xlane.f32.xlu1 %v8953_v63  ;;  %v8957_v29 = vadd.f32 %v8956_v19, %v23063_v16  ;;  %10987 = vmatprep.subr.bf16.mxu0 %v18197_v59  ;;  %v18227_v19 = vld [vmem:[#allocation13 + $0x304] ss:$48 sps:$4 sm:$0xff]   ;;  %v18230_v63 = vld [vmem:[#allocation13 + $0x30c] ss:$48 sps:$4 sm:$0xff]  }
 0x9dd   : > { %11134 = vmatpush1.bf16.msra.mxu1 %v18198_v40 }
 0x9de   : > { %8958 = vadd.xlane.f32.xlu0 %v8957_v29  ;;  %11135 = vmatprep.subr.bf16.mxu1 %v18206_v62  ;;  %v18225_v29 = vld [vmem:[#allocation13 + $0x300] ss:$48 sps:$4 sm:$0xff]  }
 0x9df   : > { %10988 = vmatpush1.bf16.msra.mxu0 %v18195_v26 }
 0x9e0   : > { %10989 = vmatprep.subr.bf16.mxu0 %v18203_v18 }
 0x9e1   : > { %11136 = vmatpush1.bf16.msra.mxu1 %v18204_v25 }
 0x9e2   : > { %11137 = vmatprep.subr.bf16.mxu1 %v18212_v30 }
 0x9e3   : > { %10990 = vmatpush1.bf16.msra.mxu0 %v18201_v36 }
 0x9e4   : > { %10991 = vmatprep.subr.bf16.mxu0 %v18209_v47 }
 0x9e5   : > { %11138 = vmatpush1.bf16.msra.mxu1 %v18210_v43 }
 0x9e6   : > { %11139 = vmatprep.subr.bf16.mxu1 %v18218_v48 }
 0x9e7   : > { %10992 = vmatpush1.bf16.msra.mxu0 %v18207_v5 }
 0x9e8   : > { %10993 = vmatprep.subr.bf16.mxu0 %v18215_v23 }
 0x9e9   : > { %11140 = vmatpush1.bf16.msra.mxu1 %v18216_v3 }
 0x9ea   : > { %11141 = vmatprep.subr.bf16.mxu1 %v18224_v15 }
 0x9eb   : > { %10994 = vmatpush1.bf16.msra.mxu0 %v18213_v55 }
 0x9ec   : > { %10995 = vmatprep.subr.bf16.mxu0 %v18221_v9 }
 0x9ed   : > { %11142 = vmatpush1.bf16.msra.mxu1 %v18222_v38 }
 0x9ee   : > { %11143 = vmatprep.subr.bf16.mxu1 %v18230_v63 }
 0x9ef   : > { %10996 = vmatpush1.bf16.msra.mxu0 %v18219_v46 }
 0x9f0   : > { %10997 = vmatprep.subr.bf16.mxu0 %v18227_v19 }
 0x9f1   : > { %11144 = vmatpush1.bf16.msra.mxu1 %v18228_v14 }
 0x9f2   : > { %11145 = vmatprep.subr.bf16.mxu1 %v18236_v51 }
 0x9f3   : > { %10998 = vmatpush1.bf16.msra.mxu0 %v18225_v29 }
 0x9f4   : > { %10999 = vmatprep.subr.bf16.mxu0 %v18233_v13 }
 0x9f5   : > { %11146 = vmatpush1.bf16.msra.mxu1 %v18234_v42 }
 0x9f7   : > { %11000 = vmatpush1.bf16.msra.mxu0 %v18231_v31 }
 0xa51   : > { %v8931_v21 = vpop.xlane.xlu0 %8930 }
 0xa52   : > { %v8961_v61 = vmul.f32 0.0026041667, %v8931_v21 }
 0xa53   : > { %v8935_v58 = vpop.xlane.xlu1 %8934 }
 0xa54   : > { %v23070_v28 = vsub.f32 %v22953_v35, %v8961_v61  ;;  %v23073_v57 = vsub.f32 %v22957_v8, %v8961_v61  ;;  %v23076_v2 = vsub.f32 %v22966_v60, %v8961_v61  ;;  %v8962_v50 = vmul.f32 0.0026041667, %v8935_v58 }
 0xa56   : > { %v8993_v59 = vmul.f32 %v23070_v28, %v23070_v28  ;;  %v8994_v37 = vmul.f32 %v23073_v57, %v23073_v57  ;;  %v23083_v26 = vsub.f32 %v22961_v44, %v8962_v50  ;;  %v23086_v40 = vsub.f32 %v22969_v0, %v8962_v50 }
 0xa57   : > { %v23089_v35 = vsub.f32 %v22974_v49, %v8962_v50  ;;  %v8995_v18 = vmul.f32 %v23076_v2, %v23076_v2 }
 0xa58   : > { %v8996_v8 = vmul.f32 %v23083_v26, %v23083_v26  ;;  %v8997_v60 = vmul.f32 %v23086_v40, %v23086_v40  ;;  %v9017_v62 = vadd.f32 %v8994_v37, %v8993_v59 }
 0xa59   : > { %v8939_v36 = vpop.xlane.xlu0 %8938  ;;  %v8998_v0 = vmul.f32 %v23089_v35, %v23089_v35 }
 0xa5a   : > { %v8963_v25 = vmul.f32 0.0026041667, %v8939_v36  ;;  %v9018_v44 = vadd.f32 %v9017_v62, %v8995_v18  ;;  %v9021_v47 = vadd.f32 %v8997_v60, %v8996_v8 }
 0xa5c   : > { %v23100_v49 = vsub.f32 %v22984_v52, %v8963_v25  ;;  %v23103_v30 = vsub.f32 %v22990_v12, %v8963_v25  ;;  %v23106_v5 = vsub.f32 %v22997_v20, %v8963_v25  ;;  %9019 = vadd.xlane.f32.xlu1 %v9018_v44  ;;  %v9022_v43 = vadd.f32 %v9021_v47, %v8998_v0 }
 0xa5d   : > { %v8943_v23 = vpop.xlane.xlu0 %8942 }
 0xa5e   : > { %v8999_v48 = vmul.f32 %v23100_v49, %v23100_v49  ;;  %v9000_v55 = vmul.f32 %v23103_v30, %v23103_v30  ;;  %v8964_v3 = vmul.f32 0.0026041667, %v8943_v23  ;;  %9023 = vadd.xlane.f32.xlu0 %v9022_v43  ;;  %v9001_v20 = vmul.f32 %v23106_v5, %v23106_v5 }
 0xa60   : > { %v23113_v52 = vsub.f32 %v22994_v27, %v8964_v3  ;;  %v23116_v12 = vsub.f32 %v23002_v32, %v8964_v3  ;;  %v9025_v9 = vadd.f32 %v9000_v55, %v8999_v48  ;;  %v23121_v15 = vsub.f32 %v23009_v45, %v8964_v3 }
 0xa61   : > { %v8947_v46 = vpop.xlane.xlu1 %8946 }
 0xa62   : > { %v9002_v38 = vmul.f32 %v23113_v52, %v23113_v52  ;;  %v9003_v19 = vmul.f32 %v23116_v12, %v23116_v12  ;;  %v8965_v63 = vmul.f32 0.0026041667, %v8947_v46  ;;  %v9026_v27 = vadd.f32 %v9025_v9, %v9001_v20  ;;  %v18237_v20 = vld [vmem:[#allocation13 + $0x3c0] ss:$48 sps:$4 sm:$0xff]   ;;  %v18240_v9 = vld [vmem:[#allocation13 + $0x3c8] ss:$48 sps:$4 sm:$0xff]  }
 0xa63   : > { %v8951_v29 = vpop.xlane.xlu0 %8950  ;;  %v9004_v51 = vmul.f32 %v23121_v15, %v23121_v15  ;;  %v18242_v46 = vld [vmem:[#allocation13 + $0x3cc] ss:$48 sps:$4 sm:$0xff]  }
 0xa64   : > { %v23128_v32 = vsub.f32 %v23013_v10, %v8965_v63  ;;  %v23131_v14 = vsub.f32 %v23017_v53, %v8965_v63  ;;  %v23134_v13 = vsub.f32 %v23025_v33, %v8965_v63  ;;  %v8966_v45 = vmul.f32 0.0026041667, %v8951_v29  ;;  %9027 = vadd.xlane.f32.xlu1 %v9026_v27  ;;  %v18248_v63 = vld [vmem:[#allocation13 + $0x42c] ss:$48 sps:$4 sm:$0xff]   ;;  %11147 = vmatprep.subr.bf16.mxu1 %v18242_v46  ;;  %v18243_v27 = vld [vmem:[#allocation13 + $0x420] ss:$48 sps:$4 sm:$0xff]  }
 0xa65   : > { %v9029_v31 = vadd.f32 %v9003_v19, %v9002_v38  ;;  %11148 = vmatpush1.bf16.msra.mxu1 %v18240_v9 }
 0xa66   : > { %v9005_v42 = vmul.f32 %v23128_v32, %v23128_v32  ;;  %v9006_v21 = vmul.f32 %v23131_v14, %v23131_v14  ;;  %v23143_v10 = vsub.f32 %v23022_v39, %v8966_v45  ;;  %v23146_v53 = vsub.f32 %v23030_v6, %v8966_v45  ;;  %11149 = vmatprep.subr.bf16.mxu1 %v18248_v63 }
 0xa67   : > { %v23149_v33 = vsub.f32 %v23033_v22, %v8966_v45  ;;  %v9030_v61 = vadd.f32 %v9029_v31, %v9004_v51  ;;  %v9007_v59 = vmul.f32 %v23134_v13, %v23134_v13  ;;  %v18246_v45 = vld [vmem:[#allocation13 + $0x428] ss:$48 sps:$4 sm:$0xff]   ;;  %v18251_v51 = vld [vmem:[#allocation13 + $0x484] ss:$48 sps:$4 sm:$0xff]   ;;  %v18249_v31 = vld [vmem:[#allocation13 + $0x480] ss:$48 sps:$4 sm:$0xff]  }
 0xa68   : > { %v9008_v58 = vmul.f32 %v23143_v10, %v23143_v10  ;;  %v9009_v50 = vmul.f32 %v23146_v53, %v23146_v53  ;;  %v9033_v37 = vadd.f32 %v9006_v21, %v9005_v42  ;;  %v18254_v42 = vld [vmem:[#allocation13 + $0x48c] ss:$48 sps:$4 sm:$0xff]   ;;  %v18252_v21 = vld [vmem:[#allocation13 + $0x488] ss:$48 sps:$4 sm:$0xff]  }
 0xa69   : > { %9031 = vadd.xlane.f32.xlu0 %v9030_v61  ;;  %v8955_v39 = vpop.xlane.xlu1 %8954  ;;  %v9010_v22 = vmul.f32 %v23149_v33, %v23149_v33  ;;  %11150 = vmatpush1.bf16.msra.mxu1 %v18246_v45  ;;  %v18255_v61 = vld [vmem:[#allocation13 + $0x4e0] ss:$48 sps:$4 sm:$0xff]  }
 0xa6a   : > { %v8967_v8 = vmul.f32 0.0026041667, %v8955_v39  ;;  %v9034_v60 = vadd.f32 %v9033_v37, %v9007_v59  ;;  %v9037_v6 = vadd.f32 %v9009_v50, %v9008_v58  ;;  %11151 = vmatprep.subr.bf16.mxu1 %v18254_v42  ;;  %v18257_v58 = vld [vmem:[#allocation13 + $0x4e4] ss:$48 sps:$4 sm:$0xff]   ;;  %v18258_v50 = vld [vmem:[#allocation13 + $0x4e8] ss:$48 sps:$4 sm:$0xff]  }
 0xa6b   : > { %v8959_v18 = vpop.xlane.xlu0 %8958  ;;  %v18260_v59 = vld [vmem:[#allocation13 + $0x4ec] ss:$48 sps:$4 sm:$0xff]   ;;  %v18261_v37 = vld [vmem:[#allocation13 + $0x540] ss:$48 sps:$4 sm:$0xff]   ;;  %v18263_v39 = vld [vmem:[#allocation13 + $0x544] ss:$48 sps:$4 sm:$0xff]  }
 0xa6c   : > { %v23160_v62 = vsub.f32 %v23042_v4, %v8967_v8  ;;  %v23163_v36 = vsub.f32 %v23046_v41, %v8967_v8  ;;  %v23166_v25 = vsub.f32 %v23054_v11, %v8967_v8  ;;  %v8968_v44 = vmul.f32 0.0026041667, %v8959_v18  ;;  %9035 = vadd.xlane.f32.xlu1 %v9034_v60  ;;  %v18264_v8 = vld [vmem:[#allocation13 + $0x548] ss:$48 sps:$4 sm:$0xff]   ;;  %v18266_v60 = vld [vmem:[#allocation13 + $0x54c] ss:$48 sps:$4 sm:$0xff]  }
 0xa6d   : > { %v9038_v0 = vadd.f32 %v9037_v6, %v9010_v22  ;;  %11152 = vmatpush1.bf16.msra.mxu1 %v18252_v21  ;;  %v18269_v6 = vld [vmem:[#allocation13 + $0x5a4] ss:$48 sps:$4 sm:$0xff]   ;;  %v18272_v18 = vld [vmem:[#allocation13 + $0x5ac] ss:$48 sps:$4 sm:$0xff]   ;;  %v18267_v22 = vld [vmem:[#allocation13 + $0x5a0] ss:$48 sps:$4 sm:$0xff]  }
 0xa6e   : > { %v9011_v47 = vmul.f32 %v23160_v62, %v23160_v62  ;;  %v9012_v43 = vmul.f32 %v23163_v36, %v23163_v36  ;;  %v23173_v23 = vsub.f32 %v23050_v24, %v8968_v44  ;;  %v23176_v4 = vsub.f32 %v23059_v1, %v8968_v44  ;;  %v18239_v24 = vld [vmem:[#allocation13 + $0x3c4] ss:$48 sps:$4 sm:$0xff]   ;;  %11153 = vmatprep.subr.bf16.mxu1 %v18260_v59 }
 0xa6f   : > { %v23179_v41 = vsub.f32 %v23063_v16, %v8968_v44  ;;  %9039 = vadd.xlane.f32.xlu0 %v9038_v0  ;;  %v9013_v55 = vmul.f32 %v23166_v25, %v23166_v25  ;;  %v18245_v1 = vld [vmem:[#allocation13 + $0x424] ss:$48 sps:$4 sm:$0xff]   ;;  %11001 = vmatprep.subr.bf16.mxu0 %v18239_v24  ;;  %v18270_v44 = vld [vmem:[#allocation13 + $0x5a8] ss:$48 sps:$4 sm:$0xff]  }
 0xa70   : > { %v9014_v11 = vmul.f32 %v23173_v23, %v23173_v23  ;;  %v9015_v48 = vmul.f32 %v23176_v4, %v23176_v4  ;;  %v9041_v3 = vadd.f32 %v9012_v43, %v9011_v47  ;;  %11002 = vmatpush1.bf16.msra.mxu0 %v18237_v20  ;;  %v18275_v0 = vld [vmem:[#allocation13 + $0x604] ss:$48 sps:$4 sm:$0xff]   ;;  %v18278_v47 = vld [vmem:[#allocation13 + $0x60c] ss:$48 sps:$4 sm:$0xff]  }
 0xa71   : > { %v9016_v16 = vmul.f32 %v23179_v41, %v23179_v41  ;;  %11003 = vmatprep.subr.bf16.mxu0 %v18245_v1  ;;  %11154 = vmatpush1.bf16.msra.mxu1 %v18258_v50  ;;  %v23189_v1 = vld [vmem:[#allocation10] sm:$0x7] }
 0xa72   : > { %v9042_v38 = vadd.f32 %v9041_v3, %v9013_v55  ;;  %v9045_v19 = vadd.f32 %v9015_v48, %v9014_v11  ;;  %11155 = vmatprep.subr.bf16.mxu1 %v18266_v60  ;;  %v23195_v63 = vrot.slane %v23189_v1, %v22941_v54 }
 0xa74   : > { %9043 = vadd.xlane.f32.xlu1 %v9042_v38  ;;  %v9046_v29 = vadd.f32 %v9045_v19, %v9016_v16  ;;  %11004 = vmatpush1.bf16.msra.mxu0 %v18243_v27  ;;  %v23191_v19 = vld [vmem:[#allocation11] sm:$0x7] }
 0xa75   : > { %11005 = vmatprep.subr.bf16.mxu0 %v18251_v51  ;;  %11156 = vmatpush1.bf16.msra.mxu1 %v18264_v8  ;;  %v23215_v50 = vrot.slane %v23191_v19, %v22938_v7 }
 0xa76   : > { %9047 = vadd.xlane.f32.xlu0 %v9046_v29  ;;  %11157 = vmatprep.subr.bf16.mxu1 %v18272_v18  ;;  %v23201_v29 = vrot.slane %v23189_v1, %v22938_v7 }
 0xa78   : > { %11006 = vmatpush1.bf16.msra.mxu0 %v18249_v31 }
 0xa79   : > { %11007 = vmatprep.subr.bf16.mxu0 %v18257_v58  ;;  %11158 = vmatpush1.bf16.msra.mxu1 %v18270_v44  ;;  %v23211_v58 = vrot.slane %v23191_v19, %v22941_v54 }
 0xa7a   : > { %11200 = vmatprep.subr.bf16.mxu1 %v18278_v47 }
 0xa7c   : > { %11008 = vmatpush1.bf16.msra.mxu0 %v18255_v61 }
 0xa7d   : > { %11009 = vmatprep.subr.bf16.mxu0 %v18263_v39 }
 0xa80   : > { %11010 = vmatpush1.bf16.msra.mxu0 %v18261_v37 }
 0xa81   : > { %11011 = vmatprep.subr.bf16.mxu0 %v18269_v6 }
 0xa84   : > { %11012 = vmatpush1.bf16.msra.mxu0 %v18267_v22 }
 0xa85   : > { %11054 = vmatprep.subr.bf16.mxu0 %v18275_v0 }
 0xae9   : > { %v9020_v43 = vpop.xlane.xlu1 %9019 }
 0xaea   : > { %v9049_v11 = vmul.f32 0.0026041667, %v9020_v43 }
 0xaeb   : > { %v9024_v48 = vpop.xlane.xlu0 %9023 }
 0xaec   : > { %v9057_v55 = vadd.f32 1e-05, %v9049_v11  ;;  %v9050_v3 = vmul.f32 0.0026041667, %v9024_v48 }
 0xaee   : > { %19249 = vrsqrt.f32 %v9057_v55  ;;  %v9058_v20 = vadd.f32 1e-05, %v9050_v3  ;;  %v18273_v55 = vld [vmem:[#allocation13 + $0x600] ss:$48 sps:$4 sm:$0xff]   ;;  %v18276_v3 = vld [vmem:[#allocation13 + $0x608] ss:$48 sps:$4 sm:$0xff]  }
 0xaf0   : > { %19251 = vrsqrt.f32 %v9058_v20 }
 0xaf1   : > { %v9028_v24 = vpop.xlane.xlu1 %9027 }
 0xaf2   : > { %v9051_v9 = vmul.f32 0.0026041667, %v9028_v24 }
 0xaf4   : > { %v9059_v46 = vadd.f32 1e-05, %v9051_v9  ;;  %v18281_v9 = vld [vmem:[#allocation13 + $0x664] ss:$48 sps:$4 sm:$0xff]  }
 0xaf6   : > { %19253 = vrsqrt.f32 %v9059_v46  ;;  %v9032_v38 = vpop.xlane.xlu0 %9031  ;;  %v18284_v46 = vld [vmem:[#allocation13 + $0x66c] ss:$48 sps:$4 sm:$0xff]  }
 0xaf7   : > { %v9052_v16 = vmul.f32 0.0026041667, %v9032_v38 }
 0xaf8   : > { %v23197_v27 = vpop.eup %19249 }
 0xaf9   : > { %v9060_v45 = vadd.f32 1e-05, %v9052_v16  ;;  %v9036_v51 = vpop.xlane.xlu1 %9035  ;;  %v9074_v31 = vmul.f32 %v23197_v27, %v23073_v57  ;;  %v9073_v42 = vmul.f32 %v23197_v27, %v23070_v28 }
 0xafa   : > { %v23207_v21 = vpop.eup %19251  ;;  %v9053_v61 = vmul.f32 0.0026041667, %v9036_v51 }
 0xafb   : > { %19255 = vrsqrt.f32 %v9060_v45  ;;  %v9077_v59 = vmul.f32 %v23207_v21, %v23086_v40  ;;  %v9114_v57 = vmul.f32 %v23195_v63, %v9074_v31  ;;  %v9076_v28 = vmul.f32 %v23207_v21, %v23083_v26 }
 0xafc   : > { %v9061_v37 = vadd.f32 1e-05, %v9053_v61  ;;  %v9040_v39 = vpop.xlane.xlu0 %9039  ;;  %v9113_v8 = vmul.f32 %v23201_v29, %v9073_v42  ;;  %v18282_v42 = vld [vmem:[#allocation13 + $0x668] ss:$48 sps:$4 sm:$0xff]  }
 0xafd   : > { %v9054_v60 = vmul.f32 0.0026041667, %v9040_v39  ;;  %v9117_v6 = vmul.f32 %v23195_v63, %v9077_v59  ;;  %v9116_v18 = vmul.f32 %v23201_v29, %v9076_v28  ;;  %v23226_v22 = vadd.f32 %v23211_v58, %v9114_v57  ;;  %v18287_v28 = vld [vmem:[#allocation13 + $0x6c4] ss:$48 sps:$4 sm:$0xff]  }
 0xafe   : > { %19257 = vrsqrt.f32 %v9061_v37  ;;  %v23232_v0 = vadd.f32 %v23215_v50, %v9113_v8  ;;  %v18290_v37 = vld [vmem:[#allocation13 + $0x6cc] ss:$48 sps:$4 sm:$0xff]  }
 0xaff   : > { %24717 = vst [vmem:[#allocation49_spill] sm:$0xff] %v23226_v22  ;;  %v9062_v44 = vadd.f32 1e-05, %v9054_v60  ;;  %v23229_v40 = vadd.f32 %v23211_v58, %v9117_v6  ;;  %v23235_v26 = vadd.f32 %v23215_v50, %v9116_v18 }
 0xb00   : > { %24719 = vst [vmem:[#allocation43_spill] sm:$0xff] %v23232_v0  ;;  %v23237_v47 = vpop.eup %19253 }
 0xb01   : > { %24718 = vst [vmem:[#allocation44_spill] sm:$0xff] %v23229_v40  ;;  %24720 = vst [vmem:[#allocation53_spill] sm:$0xff] %v23235_v26  ;;  %19259 = vrsqrt.f32 %v9062_v44  ;;  %v9044_v43 = vpop.xlane.xlu1 %9043  ;;  %v23241_v11 = vpack.c.bf16 %v23229_v40, %v23226_v22  ;;  %v23245_v48 = vpack.c.bf16 %v23235_v26, %v23232_v0  ;;  %v9080_v20 = vmul.f32 %v23237_v47, %v23103_v30  ;;  %v18279_v30 = vld [vmem:[#allocation13 + $0x660] ss:$48 sps:$4 sm:$0xff]  }
 0xb02   : > { %v9055_v24 = vmul.f32 0.0026041667, %v9044_v43  ;;  %v9079_v38 = vmul.f32 %v23237_v47, %v23100_v49  ;;  %v18285_v44 = vld [vmem:[#allocation13 + $0x6c0] ss:$48 sps:$4 sm:$0xff]   ;;  %v18288_v43 = vld [vmem:[#allocation13 + $0x6c8] ss:$48 sps:$4 sm:$0xff]  }
 0xb03   : > { %11013 = vmatprep.mubr.bf16.mxu0 %v23241_v11  ;;  %11159 = vmatprep.mubr.bf16.mxu1 %v23241_v11  ;;  %v9048_v16 = vpop.xlane.xlu0 %9047  ;;  %v9120_v61 = vmul.f32 %v23195_v63, %v9080_v20 }
 0xb04   : > { %v9063_v45 = vadd.f32 1e-05, %v9055_v24  ;;  %v9056_v51 = vmul.f32 0.0026041667, %v9048_v16  ;;  %11014 = vmatmul.mubr.bf16.vlgmr.msra.gmra.mrb[136].mxu0 %v23245_v48  ;;  %11160 = vmatmul.mubr.bf16.vlgmr.msra.gmra.mrb[152].mxu1 %v23245_v48  ;;  %v9119_v49 = vmul.f32 %v23201_v29, %v9079_v38  ;;  %v18293_v38 = vld [vmem:[#allocation13 + $0x724] ss:$48 sps:$4 sm:$0xff]  }
 0xb05   : > { %v23255_v31 = vpop.eup %19255  ;;  %11055 = vmatpush1.bf16.msra.mxu0 %v18273_v55  ;;  %11201 = vmatpush1.bf16.msra.mxu1 %v18276_v3  ;;  %v23268_v18 = vadd.f32 %v23211_v58, %v9120_v61  ;;  %v18296_v16 = vld [vmem:[#allocation13 + $0x72c] ss:$48 sps:$4 sm:$0xff]   ;;  %v18299_v61 = vld [vmem:[#allocation13 + $0x784] ss:$48 sps:$4 sm:$0xff]  }
 0xb06   : > { %19261 = vrsqrt.f32 %v9063_v45  ;;  %v9064_v59 = vadd.f32 1e-05, %v9056_v51  ;;  %11056 = vmatprep.subr.bf16.mxu0 %v18281_v9  ;;  %11202 = vmatprep.subr.bf16.mxu1 %v18284_v46  ;;  %v9083_v57 = vmul.f32 %v23255_v31, %v23116_v12  ;;  %v9082_v39 = vmul.f32 %v23255_v31, %v23113_v52  ;;  %v18291_v51 = vld [vmem:[#allocation13 + $0x720] ss:$48 sps:$4 sm:$0xff]  }
 0xb07   : > { %v23271_v12 = vadd.f32 %v23215_v50, %v9119_v49  ;;  %v18302_v49 = vld [vmem:[#allocation13 + $0x78c] ss:$48 sps:$4 sm:$0xff]  }
 0xb08   : > { %v23263_v8 = vpop.eup %19257  ;;  %19263 = vrsqrt.f32 %v9064_v59  ;;  %v9123_v60 = vmul.f32 %v23195_v63, %v9083_v57  ;;  %v9122_v6 = vmul.f32 %v23201_v29, %v9082_v39  ;;  %v18300_v39 = vld [vmem:[#allocation13 + $0x788] ss:$48 sps:$4 sm:$0xff]  }
 0xb09   : > { %11057 = vmatpush1.bf16.msra.mxu0 %v18279_v30  ;;  %11203 = vmatpush1.bf16.msra.mxu1 %v18282_v42  ;;  %v9086_v52 = vmul.f32 %v23263_v8, %v23131_v14  ;;  %v9085_v20 = vmul.f32 %v23263_v8, %v23128_v32  ;;  %v18294_v30 = vld [vmem:[#allocation13 + $0x728] ss:$48 sps:$4 sm:$0xff]  }
 0xb0a   : > { %v23276_v55 = vadd.f32 %v23211_v58, %v9123_v60  ;;  %11058 = vmatprep.subr.bf16.mxu0 %v18287_v28  ;;  %11204 = vmatprep.subr.bf16.mxu1 %v18290_v37  ;;  %v23279_v3 = vadd.f32 %v23215_v50, %v9122_v6  ;;  %v18297_v37 = vld [vmem:[#allocation13 + $0x780] ss:$48 sps:$4 sm:$0xff]  }
 0xb0b   : > { %v23283_v24 = vpop.eup %19259  ;;  %v9126_v9 = vmul.f32 %v23195_v63, %v9086_v52  ;;  %v9125_v59 = vmul.f32 %v23201_v29, %v9085_v20  ;;  %v18305_v20 = vld [vmem:[#allocation13 + $0x7e4] ss:$48 sps:$4 sm:$0xff]  }
 0xb0c   : > { %24721 = vst [vmem:[#allocation52_spill] sm:$0xff] %v23276_v55  ;;  %v23288_v46 = vpack.c.bf16 %v23276_v55, %v23268_v18  ;;  %v23292_v14 = vpack.c.bf16 %v23279_v3, %v23271_v12  ;;  %v9089_v45 = vmul.f32 %v23283_v24, %v23146_v53  ;;  %v9088_v32 = vmul.f32 %v23283_v24, %v23143_v10 }
 0xb0d   : > { %11059 = vmatpush1.bf16.msra.mxu0 %v18285_v44  ;;  %11205 = vmatpush1.bf16.msra.mxu1 %v18288_v43  ;;  %v23308_v53 = vadd.f32 %v23211_v58, %v9126_v9  ;;  %v23325_v52 = vadd.f32 %v23215_v50, %v9125_v59  ;;  %v18308_v9 = vld [vmem:[#allocation13 + $0x7ec] ss:$48 sps:$4 sm:$0xff]  }
 0xb0e   : > { %11023 = vmatprep.mubr.bf16.mxu0 %v23288_v46  ;;  %11169 = vmatprep.mubr.bf16.mxu1 %v23288_v46  ;;  %v9129_v42 = vmul.f32 %v23195_v63, %v9089_v45  ;;  %v9128_v57 = vmul.f32 %v23201_v29, %v9088_v32 }
 0xb0f   : > { %11024 = vmatmul.mubr.bf16.gmra.mrb[140].mxu0 %v23292_v14  ;;  %11170 = vmatmul.mubr.bf16.gmra.mrb[156].mxu1 %v23292_v14  ;;  %24722 = vst [vmem:[#allocation48_spill] sm:$0xff] %v23308_v53  ;;  %24725 = vst [vmem:[#allocation56_spill] sm:$0xff] %v23325_v52 }
 0xb10   : > { %v23305_v10 = vpop.eup %19261  ;;  %11060 = vmatprep.subr.bf16.mxu0 %v18293_v38  ;;  %11206 = vmatprep.subr.bf16.mxu1 %v18296_v16  ;;  %v23311_v28 = vadd.f32 %v23211_v58, %v9129_v42  ;;  %v23314_v60 = vadd.f32 %v23215_v50, %v9128_v57  ;;  %v18309_v57 = vld [vmem:[#allocation13 + $0x840] ss:$48 sps:$4 sm:$0xff]  }
 0xb11   : > { %11061 = vmatpush1.bf16.msra.mxu0 %v18291_v51  ;;  %11207 = vmatpush1.bf16.msra.mxu1 %v18294_v30  ;;  %v9092_v6 = vmul.f32 %v23305_v10, %v23163_v36  ;;  %v9091_v36 = vmul.f32 %v23305_v10, %v23160_v62  ;;  %v18303_v51 = vld [vmem:[#allocation13 + $0x7e0] ss:$48 sps:$4 sm:$0xff]   ;;  %v18311_v62 = vld [vmem:[#allocation13 + $0x844] ss:$48 sps:$4 sm:$0xff]  }
 0xb12   : > { %24723 = vst [vmem:[#allocation46_spill] sm:$0xff] %v23311_v28  ;;  %24724 = vst [vmem:[#allocation57_spill] sm:$0xff] %v23314_v60  ;;  %v23318_v44 = vpop.eup %19263  ;;  %v23322_v43 = vpack.c.bf16 %v23311_v28, %v23308_v53  ;;  %11062 = vmatprep.subr.bf16.mxu0 %v18299_v61  ;;  %11208 = vmatprep.subr.bf16.mxu1 %v18302_v49  ;;  %v23338_v32 = vpack.c.bf16 %v23314_v60, %v23325_v52  ;;  %v18886_v28 = vld [vmem:[#allocation16 + $0x5bc] ss:$12 sps:$4 sm:$0xff]  }
 0xb13   : > { %v9095_v38 = vmul.f32 %v23318_v44, %v23176_v4  ;;  %v9132_v16 = vmul.f32 %v23195_v63, %v9092_v6  ;;  %v9094_v45 = vmul.f32 %v23318_v44, %v23173_v23  ;;  %v18306_v4 = vld [vmem:[#allocation13 + $0x7e8] ss:$48 sps:$4 sm:$0xff]   ;;  %v18314_v23 = vld [vmem:[#allocation13 + $0x84c] ss:$48 sps:$4 sm:$0xff]   ;;  %v9131_v59 = vmul.f32 %v23201_v29, %v9091_v36 }
 0xb14   : > { %11033 = vmatprep.mubr.bf16.mxu0 %v23322_v43  ;;  %11179 = vmatprep.mubr.bf16.mxu1 %v23322_v43  ;;  %v9078_v6 = vmul.f32 %v23207_v21, %v23089_v35  ;;  %v18315_v21 = vld [vmem:[#allocation13 + $0x8a0] ss:$48 sps:$4 sm:$0xff]  }
 0xb15   : > { %11063 = vmatpush1.bf16.msra.mxu0 %v18297_v37  ;;  %11209 = vmatpush1.bf16.msra.mxu1 %v18300_v39  ;;  %v9135_v30 = vmul.f32 %v23195_v63, %v9095_v38  ;;  %v9134_v42 = vmul.f32 %v23201_v29, %v9094_v45  ;;  %v23345_v61 = vadd.f32 %v23211_v58, %v9132_v16  ;;  %v18312_v37 = vld [vmem:[#allocation13 + $0x848] ss:$48 sps:$4 sm:$0xff]   ;;  %v18326_v45 = vld [vmem:[#allocation13 + $0x1c] ss:$48 sps:$4 sm:$0xff]  }
 0xb16   : > { %11064 = vmatprep.subr.bf16.mxu0 %v18305_v20  ;;  %11210 = vmatprep.subr.bf16.mxu1 %v18308_v9  ;;  %v18320_v20 = vld [vmem:[#allocation13 + $0x8ac] ss:$48 sps:$4 sm:$0xff]   ;;  %v23363_v29 = vadd.f32 %v23215_v50, %v9131_v59  ;;  %v9075_v9 = vmul.f32 %v23197_v27, %v23076_v2  ;;  %v23369_v38 = vrot.slane %v23189_v1, %v22935_v34  ;;  %v18318_v16 = vld [vmem:[#allocation13 + $0x8a8] ss:$48 sps:$4 sm:$0xff]  }
 0xb17   : > { %11034 = vmatmul.mubr.bf16.gmra.mrb[144].mxu0 %v23338_v32  ;;  %11180 = vmatmul.mubr.bf16.gmra.mrb[160].mxu1 %v23338_v32  ;;  %24726 = vst [vmem:[#allocation54_spill] sm:$0xff] %v23345_v61  ;;  %v23348_v49 = vadd.f32 %v23211_v58, %v9135_v30  ;;  %v23356_v39 = vadd.f32 %v23215_v50, %v9134_v42  ;;  %v18317_v58 = vld [vmem:[#allocation13 + $0x8a4] ss:$48 sps:$4 sm:$0xff]   ;;  %v18321_v30 = vld [vmem:[#allocation13 + $0x10] ss:$48 sps:$4 sm:$0xff]  }
 0xb18   : > { %24729 = vst [vmem:[#allocation47_spill] sm:$0xff] %v23363_v29  ;;  %v9118_v36 = vmul.f32 %v23369_v38, %v9078_v6  ;;  %v18323_v50 = vld [vmem:[#allocation13 + $0x14] ss:$48 sps:$4 sm:$0xff]   ;;  %v9115_v2 = vmul.f32 %v23369_v38, %v9075_v9  ;;  %v23381_v1 = vrot.slane %v23191_v19, %v22935_v34  ;;  %v9081_v19 = vmul.f32 %v23237_v47, %v23106_v5  ;;  %v18324_v42 = vld [vmem:[#allocation13 + $0x18] ss:$48 sps:$4 sm:$0xff]  }
 0xb19   : > { %24727 = vst [vmem:[#allocation64_spill] sm:$0xff] %v23348_v49  ;;  %11065 = vmatpush1.bf16.msra.mxu0 %v18303_v51  ;;  %11211 = vmatpush1.bf16.msra.mxu1 %v18306_v4  ;;  %v23353_v63 = vpack.c.bf16 %v23348_v49, %v23345_v61  ;;  %24728 = vst [vmem:[#allocation51_spill] sm:$0xff] %v23356_v39  ;;  %v23373_v35 = vpack.c.bf16 %v23356_v39, %v23363_v29  ;;  %v18332_v59 = vld [vmem:[#allocation13 + $0x7c] ss:$48 sps:$4 sm:$0xff]   ;;  %v18330_v5 = vld [vmem:[#allocation13 + $0x78] ss:$48 sps:$4 sm:$0xff]  }
 0xb1a   : > { %11066 = vmatprep.subr.bf16.mxu0 %v18311_v62  ;;  %11212 = vmatprep.subr.bf16.mxu1 %v18314_v23  ;;  %v23386_v27 = vadd.f32 %v23381_v1, %v9118_v36  ;;  %v9084_v51 = vmul.f32 %v23255_v31, %v23121_v15  ;;  %v23391_v4 = vadd.f32 %v23381_v1, %v9115_v2  ;;  %v18329_v23 = vld [vmem:[#allocation13 + $0x74] ss:$48 sps:$4 sm:$0xff]   ;;  %v18327_v31 = vld [vmem:[#allocation13 + $0x70] ss:$48 sps:$4 sm:$0xff]  }
 0xb1b   : > { %11043 = vmatprep.mubr.bf16.mxu0 %v23353_v63  ;;  %11189 = vmatprep.mubr.bf16.mxu1 %v23353_v63  ;;  %v9121_v15 = vmul.f32 %v23369_v38, %v9081_v19  ;;  %v18335_v47 = vld [vmem:[#allocation13 + $0xd4] ss:$48 sps:$4 sm:$0xff]   ;;  %v9087_v9 = vmul.f32 %v23263_v8, %v23134_v13  ;;  %v18339_v8 = vld [vmem:[#allocation13 + $0x130] ss:$48 sps:$4 sm:$0xff]  }
 0xb1c   : > { %24730 = vst [vmem:[#allocation58_spill] sm:$0xff] %v23386_v27  ;;  %24731 = vst [vmem:[#allocation59_spill] sm:$0xff] %v23391_v4  ;;  %v23397_v62 = vpack.c.bf16 %v23386_v27, %v23391_v4  ;;  %v18347_v2 = vld [vmem:[#allocation13 + $0x194] ss:$48 sps:$4 sm:$0xff]  }
 0xb1d   : > { %11067 = vmatpush1.bf16.msra.mxu0 %v18309_v57  ;;  %11213 = vmatpush1.bf16.msra.mxu1 %v18312_v37  ;;  %v9124_v57 = vmul.f32 %v23369_v38, %v9084_v51  ;;  %v18338_v37 = vld [vmem:[#allocation13 + $0xdc] ss:$48 sps:$4 sm:$0xff]   ;;  %v9127_v13 = vmul.f32 %v23369_v38, %v9087_v9  ;;  %v18773_v39 = vld [vmem:[#allocation16 + $0x5a8] ss:$12 sps:$4 sm:$0xff]   ;;  %v18783_v61 = vld [vmem:[#allocation16 + $0x5d8] ss:$12 sps:$4 sm:$0xff]  }
 0xb1e   : > { %11068 = vmatprep.subr.bf16.mxu0 %v18317_v58  ;;  %11214 = vmatprep.subr.bf16.mxu1 %v18320_v20  ;;  %v9090_v58 = vmul.f32 %v23283_v24, %v23149_v33  ;;  %v23411_v20 = vadd.f32 %v23381_v1, %v9121_v15  ;;  %v18341_v33 = vld [vmem:[#allocation13 + $0x134] ss:$48 sps:$4 sm:$0xff]   ;;  %v18344_v24 = vld [vmem:[#allocation13 + $0x13c] ss:$48 sps:$4 sm:$0xff]  }
 0xb1f   : > { %11044 = vmatmul.mubr.bf16.gmra.mrb[148].mxu0 %v23373_v35  ;;  %11190 = vmatmul.mubr.bf16.gmra.mrb[164].mxu1 %v23373_v35  ;;  %v23404_v6 = vadd.f32 %v23381_v1, %v9124_v57  ;;  %v18350_v51 = vld [vmem:[#allocation13 + $0x19c] ss:$48 sps:$4 sm:$0xff]   ;;  %v18348_v57 = vld [vmem:[#allocation13 + $0x198] ss:$48 sps:$4 sm:$0xff]  }
 0xb20   : > { %11086 = vmatprep.mubr.bf16.mxu0 %v24714_v17  ;;  %11232 = vmatprep.mubr.bf16.mxu1 %v24714_v17  ;;  %24733 = vst [vmem:[#allocation50_spill] sm:$0xff] %v23411_v20 }
 0xb21   : > { %11069 = vmatpush1.bf16.msra.mxu0 %v18315_v21  ;;  %11215 = vmatpush1.bf16.msra.mxu1 %v18318_v16  ;;  %24732 = vst [vmem:[#allocation55_spill] sm:$0xff] %v23404_v6  ;;  %v18333_v21 = vld [vmem:[#allocation13 + $0xd0] ss:$48 sps:$4 sm:$0xff]   ;;  %v18336_v16 = vld [vmem:[#allocation13 + $0xd8] ss:$48 sps:$4 sm:$0xff]   ;;  %v23417_v36 = vpack.c.bf16 %v23404_v6, %v23411_v20 }
 0xb22   : > { %11273 = vmatprep.subr.bf16.mxu0 %v18323_v50  ;;  %11419 = vmatprep.subr.bf16.mxu1 %v18326_v45  ;;  %v9130_v50 = vmul.f32 %v23369_v38, %v9090_v58  ;;  %v18342_v45 = vld [vmem:[#allocation13 + $0x138] ss:$48 sps:$4 sm:$0xff]  }
 0xb23   : > { %v18920_v6 = vld [vmem:[#allocation16 + $0x6ac] ss:$12 sps:$4 sm:$0xff]  }
 0xb24   : > { %v23424_v19 = vadd.f32 %v23381_v1, %v9130_v50  ;;  %v18366_v50 = vld [vmem:[#allocation13 + $0x2b8] ss:$48 sps:$4 sm:$0xff]  }
 0xb26   : > { %24734 = vst [vmem:[#allocation68_spill] sm:$0xff] %v23424_v19 }
 0xb27   : > { %11087 = vmatmul.mubr.bf16.vlgmr.msra.gmra.mrb[136].mxu0 %v23397_v62  ;;  %11233 = vmatmul.mubr.bf16.vlgmr.msra.gmra.mrb[152].mxu1 %v23397_v62 }
 0xb28   : > { %11274 = vmatpush1.bf16.msra.mxu0 %v18321_v30  ;;  %11420 = vmatpush1.bf16.msra.mxu1 %v18324_v42  ;;  %v9096_v30 = vmul.f32 %v23318_v44, %v23179_v41  ;;  %v23431_v42 = vadd.f32 %v23381_v1, %v9127_v13  ;;  %v18353_v41 = vld [vmem:[#allocation13 + $0x1f4] ss:$48 sps:$4 sm:$0xff]   ;;  %v18356_v44 = vld [vmem:[#allocation13 + $0x1fc] ss:$48 sps:$4 sm:$0xff]  }
 0xb29   : > { %11275 = vmatprep.subr.bf16.mxu0 %v18329_v23  ;;  %11421 = vmatprep.subr.bf16.mxu1 %v18332_v59  ;;  %v9093_v23 = vmul.f32 %v23305_v10, %v23166_v25  ;;  %v18345_v59 = vld [vmem:[#allocation13 + $0x190] ss:$48 sps:$4 sm:$0xff]   ;;  %v18371_v13 = vld [vmem:[#allocation13 + $0x314] ss:$48 sps:$4 sm:$0xff]  }
 0xb2a   : > { %11096 = vmatprep.mubr.bf16.mxu0 %v24714_v17  ;;  %11242 = vmatprep.mubr.bf16.mxu1 %v24714_v17  ;;  %24735 = vst [vmem:[#allocation62_spill] sm:$0xff] %v23431_v42  ;;  %v23437_v15 = vpack.c.bf16 %v23424_v19, %v23431_v42  ;;  %v18351_v10 = vld [vmem:[#allocation13 + $0x1f0] ss:$48 sps:$4 sm:$0xff]  }
 0xb2b   : > { %v9133_v25 = vmul.f32 %v23369_v38, %v9093_v23  ;;  %v18375_v23 = vld [vmem:[#allocation13 + $0x370] ss:$48 sps:$4 sm:$0xff]  }
 0xb2c   : > { %11276 = vmatpush1.bf16.msra.mxu0 %v18327_v31  ;;  %11422 = vmatpush1.bf16.msra.mxu1 %v18330_v5  ;;  %v9136_v31 = vmul.f32 %v23369_v38, %v9096_v30  ;;  %v18354_v5 = vld [vmem:[#allocation13 + $0x1f8] ss:$48 sps:$4 sm:$0xff]   ;;  %v18357_v38 = vld [vmem:[#allocation13 + $0x250] ss:$48 sps:$4 sm:$0xff]   ;;  %v18380_v30 = vld [vmem:[#allocation13 + $0x37c] ss:$48 sps:$4 sm:$0xff]  }
 0xb2d   : > { %11277 = vmatprep.subr.bf16.mxu0 %v18335_v47  ;;  %11423 = vmatprep.subr.bf16.mxu1 %v18338_v37  ;;  %v18359_v47 = vld [vmem:[#allocation13 + $0x254] ss:$48 sps:$4 sm:$0xff]   ;;  %v18362_v37 = vld [vmem:[#allocation13 + $0x25c] ss:$48 sps:$4 sm:$0xff]   ;;  %v23449_v9 = vadd.f32 %v23381_v1, %v9133_v25 }
 0xb2e   : > { %v23444_v58 = vadd.f32 %v23381_v1, %v9136_v31  ;;  %v18363_v1 = vld [vmem:[#allocation13 + $0x2b0] ss:$48 sps:$4 sm:$0xff]   ;;  %v18384_v31 = vld [vmem:[#allocation13 + $0x3d8] ss:$48 sps:$4 sm:$0xff]   ;;  %v18389_v25 = vld [vmem:[#allocation13 + $0x434] ss:$48 sps:$4 sm:$0xff]  }
 0xb2f   : > { %11097 = vmatmul.mubr.bf16.gmra.mrb[140].mxu0 %v23417_v36  ;;  %11243 = vmatmul.mubr.bf16.gmra.mrb[156].mxu1 %v23417_v36  ;;  %24737 = vst [vmem:[#allocation63_spill] sm:$0xff] %v23449_v9 }
 0xb30   : > { %11278 = vmatpush1.bf16.msra.mxu0 %v18333_v21  ;;  %11424 = vmatpush1.bf16.msra.mxu1 %v18336_v16  ;;  %24736 = vst [vmem:[#allocation74_spill] sm:$0xff] %v23444_v58  ;;  %v18360_v21 = vld [vmem:[#allocation13 + $0x258] ss:$48 sps:$4 sm:$0xff]   ;;  %v23453_v16 = vpack.c.bf16 %v23444_v58, %v23449_v9 }
 0xb31   : > { %11279 = vmatprep.subr.bf16.mxu0 %v18341_v33  ;;  %11425 = vmatprep.subr.bf16.mxu1 %v18344_v24  ;;  %v18365_v33 = vld [vmem:[#allocation13 + $0x2b4] ss:$48 sps:$4 sm:$0xff]   ;;  %v18368_v24 = vld [vmem:[#allocation13 + $0x2bc] ss:$48 sps:$4 sm:$0xff]  }
 0xb32   : > { %11106 = vmatprep.mubr.bf16.mxu0 %v24714_v17  ;;  %11252 = vmatprep.mubr.bf16.mxu1 %v24714_v17 }
 0xb34   : > { %11280 = vmatpush1.bf16.msra.mxu0 %v18339_v8  ;;  %11426 = vmatpush1.bf16.msra.mxu1 %v18342_v45  ;;  %v18374_v8 = vld [vmem:[#allocation13 + $0x31c] ss:$48 sps:$4 sm:$0xff]   ;;  %v18369_v45 = vld [vmem:[#allocation13 + $0x310] ss:$48 sps:$4 sm:$0xff]  }
 0xb35   : > { %11281 = vmatprep.subr.bf16.mxu0 %v18347_v2  ;;  %11427 = vmatprep.subr.bf16.mxu1 %v18350_v51  ;;  %v18372_v2 = vld [vmem:[#allocation13 + $0x318] ss:$48 sps:$4 sm:$0xff]   ;;  %v18377_v51 = vld [vmem:[#allocation13 + $0x374] ss:$48 sps:$4 sm:$0xff]  }
 0xb37   : > { %11107 = vmatmul.mubr.bf16.gmra.mrb[144].mxu0 %v23437_v15  ;;  %11253 = vmatmul.mubr.bf16.gmra.mrb[160].mxu1 %v23437_v15 }
 0xb38   : > { %11282 = vmatpush1.bf16.msra.mxu0 %v18345_v59  ;;  %11428 = vmatpush1.bf16.msra.mxu1 %v18348_v57  ;;  %v18378_v59 = vld [vmem:[#allocation13 + $0x378] ss:$48 sps:$4 sm:$0xff]   ;;  %v18383_v57 = vld [vmem:[#allocation13 + $0x3d4] ss:$48 sps:$4 sm:$0xff]  }
 0xb39   : > { %11283 = vmatprep.subr.bf16.mxu0 %v18353_v41  ;;  %11429 = vmatprep.subr.bf16.mxu1 %v18356_v44  ;;  %v18386_v41 = vld [vmem:[#allocation13 + $0x3dc] ss:$48 sps:$4 sm:$0xff]   ;;  %v18381_v44 = vld [vmem:[#allocation13 + $0x3d0] ss:$48 sps:$4 sm:$0xff]  }
 0xb3a   : > { %11116 = vmatprep.mubr.bf16.mxu0 %v24714_v17  ;;  %11262 = vmatprep.mubr.bf16.mxu1 %v24714_v17 }
 0xb3c   : > { %11284 = vmatpush1.bf16.msra.mxu0 %v18351_v10  ;;  %11430 = vmatpush1.bf16.msra.mxu1 %v18354_v5  ;;  %v18392_v10 = vld [vmem:[#allocation13 + $0x43c] ss:$48 sps:$4 sm:$0xff]   ;;  %v18387_v5 = vld [vmem:[#allocation13 + $0x430] ss:$48 sps:$4 sm:$0xff]  }
 0xb3d   : > { %11285 = vmatprep.subr.bf16.mxu0 %v18359_v47  ;;  %11431 = vmatprep.subr.bf16.mxu1 %v18362_v37  ;;  %v18390_v47 = vld [vmem:[#allocation13 + $0x438] ss:$48 sps:$4 sm:$0xff]   ;;  %v18395_v37 = vld [vmem:[#allocation13 + $0x494] ss:$48 sps:$4 sm:$0xff]  }
 0xb3f   : > { %11117 = vmatmul.mubr.bf16.gmra.mrb[148].mxu0 %v23453_v16  ;;  %11263 = vmatmul.mubr.bf16.gmra.mrb[164].mxu1 %v23453_v16 }
 0xb40   : > { %11286 = vmatpush1.bf16.msra.mxu0 %v18357_v38  ;;  %11432 = vmatpush1.bf16.msra.mxu1 %v18360_v21  ;;  %v18398_v38 = vld [vmem:[#allocation13 + $0x49c] ss:$48 sps:$4 sm:$0xff]   ;;  %v18393_v21 = vld [vmem:[#allocation13 + $0x490] ss:$48 sps:$4 sm:$0xff]  }
 0xb41   : > { %11305 = vmatprep.mubr.bf16.mxu0 %v23241_v11  ;;  %11451 = vmatprep.mubr.bf16.mxu1 %v23241_v11 }
 0xb42   : > { %11287 = vmatprep.subr.bf16.mxu0 %v18365_v33  ;;  %11433 = vmatprep.subr.bf16.mxu1 %v18368_v24  ;;  %v18396_v33 = vld [vmem:[#allocation13 + $0x498] ss:$48 sps:$4 sm:$0xff]   ;;  %v18401_v24 = vld [vmem:[#allocation13 + $0x4f4] ss:$48 sps:$4 sm:$0xff]  }
 0xb44   : > { %11288 = vmatpush1.bf16.msra.mxu0 %v18363_v1  ;;  %11434 = vmatpush1.bf16.msra.mxu1 %v18366_v50  ;;  %v18404_v1 = vld [vmem:[#allocation13 + $0x4fc] ss:$48 sps:$4 sm:$0xff]   ;;  %v18399_v50 = vld [vmem:[#allocation13 + $0x4f0] ss:$48 sps:$4 sm:$0xff]  }
 0xb45   : > { %11289 = vmatprep.subr.bf16.mxu0 %v18371_v13  ;;  %11435 = vmatprep.subr.bf16.mxu1 %v18374_v8  ;;  %v18402_v13 = vld [vmem:[#allocation13 + $0x4f8] ss:$48 sps:$4 sm:$0xff]   ;;  %v18407_v8 = vld [vmem:[#allocation13 + $0x554] ss:$48 sps:$4 sm:$0xff]  }
 0xb48   : > { %11290 = vmatpush1.bf16.msra.mxu0 %v18369_v45  ;;  %11436 = vmatpush1.bf16.msra.mxu1 %v18372_v2  ;;  %v18410_v45 = vld [vmem:[#allocation13 + $0x55c] ss:$48 sps:$4 sm:$0xff]   ;;  %v18405_v2 = vld [vmem:[#allocation13 + $0x550] ss:$48 sps:$4 sm:$0xff]  }
 0xb49   : > { %11291 = vmatprep.subr.bf16.mxu0 %v18377_v51  ;;  %11437 = vmatprep.subr.bf16.mxu1 %v18380_v30  ;;  %v18408_v51 = vld [vmem:[#allocation13 + $0x558] ss:$48 sps:$4 sm:$0xff]   ;;  %v18413_v30 = vld [vmem:[#allocation13 + $0x5b4] ss:$48 sps:$4 sm:$0xff]  }
 0xb4c   : > { %11292 = vmatpush1.bf16.msra.mxu0 %v18375_v23  ;;  %11438 = vmatpush1.bf16.msra.mxu1 %v18378_v59  ;;  %v18416_v23 = vld [vmem:[#allocation13 + $0x5bc] ss:$48 sps:$4 sm:$0xff]   ;;  %v18411_v59 = vld [vmem:[#allocation13 + $0x5b0] ss:$48 sps:$4 sm:$0xff]  }
 0xb4d   : > { %11293 = vmatprep.subr.bf16.mxu0 %v18383_v57  ;;  %11439 = vmatprep.subr.bf16.mxu1 %v18386_v41  ;;  %v18414_v57 = vld [vmem:[#allocation13 + $0x5b8] ss:$48 sps:$4 sm:$0xff]   ;;  %v18419_v41 = vld [vmem:[#allocation13 + $0x614] ss:$48 sps:$4 sm:$0xff]  }
 0xb50   : > { %11294 = vmatpush1.bf16.msra.mxu0 %v18381_v44  ;;  %11440 = vmatpush1.bf16.msra.mxu1 %v18384_v31  ;;  %v18422_v44 = vld [vmem:[#allocation13 + $0x61c] ss:$48 sps:$4 sm:$0xff]   ;;  %v18417_v31 = vld [vmem:[#allocation13 + $0x610] ss:$48 sps:$4 sm:$0xff]  }
 0xb51   : > { %11295 = vmatprep.subr.bf16.mxu0 %v18389_v25  ;;  %11441 = vmatprep.subr.bf16.mxu1 %v18392_v10  ;;  %v18420_v25 = vld [vmem:[#allocation13 + $0x618] ss:$48 sps:$4 sm:$0xff]   ;;  %v18425_v10 = vld [vmem:[#allocation13 + $0x674] ss:$48 sps:$4 sm:$0xff]  }
 0xb54   : > { %11296 = vmatpush1.bf16.msra.mxu0 %v18387_v5  ;;  %11442 = vmatpush1.bf16.msra.mxu1 %v18390_v47  ;;  %v18428_v5 = vld [vmem:[#allocation13 + $0x67c] ss:$48 sps:$4 sm:$0xff]   ;;  %v18423_v47 = vld [vmem:[#allocation13 + $0x670] ss:$48 sps:$4 sm:$0xff]  }
 0xb55   : > { %11297 = vmatprep.subr.bf16.mxu0 %v18395_v37  ;;  %11443 = vmatprep.subr.bf16.mxu1 %v18398_v38  ;;  %v18426_v37 = vld [vmem:[#allocation13 + $0x678] ss:$48 sps:$4 sm:$0xff]   ;;  %v18431_v38 = vld [vmem:[#allocation13 + $0x6d4] ss:$48 sps:$4 sm:$0xff]  }
 0xb58   : > { %11298 = vmatpush1.bf16.msra.mxu0 %v18393_v21  ;;  %11444 = vmatpush1.bf16.msra.mxu1 %v18396_v33  ;;  %v18434_v21 = vld [vmem:[#allocation13 + $0x6dc] ss:$48 sps:$4 sm:$0xff]   ;;  %v18429_v33 = vld [vmem:[#allocation13 + $0x6d0] ss:$48 sps:$4 sm:$0xff]  }
 0xb59   : > { %11299 = vmatprep.subr.bf16.mxu0 %v18401_v24  ;;  %11445 = vmatprep.subr.bf16.mxu1 %v18404_v1  ;;  %v18432_v24 = vld [vmem:[#allocation13 + $0x6d8] ss:$48 sps:$4 sm:$0xff]   ;;  %v18437_v1 = vld [vmem:[#allocation13 + $0x734] ss:$48 sps:$4 sm:$0xff]  }
 0xb5c   : > { %11300 = vmatpush1.bf16.msra.mxu0 %v18399_v50  ;;  %11446 = vmatpush1.bf16.msra.mxu1 %v18402_v13  ;;  %v18440_v50 = vld [vmem:[#allocation13 + $0x73c] ss:$48 sps:$4 sm:$0xff]   ;;  %v18435_v13 = vld [vmem:[#allocation13 + $0x730] ss:$48 sps:$4 sm:$0xff]  }
 0xb5d   : > { %11301 = vmatprep.subr.bf16.mxu0 %v18407_v8  ;;  %11447 = vmatprep.subr.bf16.mxu1 %v18410_v45  ;;  %v18438_v8 = vld [vmem:[#allocation13 + $0x738] ss:$48 sps:$4 sm:$0xff]   ;;  %v18443_v45 = vld [vmem:[#allocation13 + $0x794] ss:$48 sps:$4 sm:$0xff]  }
 0xb60   : > { %11302 = vmatpush1.bf16.msra.mxu0 %v18405_v2  ;;  %11448 = vmatpush1.bf16.msra.mxu1 %v18408_v51  ;;  %v18446_v2 = vld [vmem:[#allocation13 + $0x79c] ss:$48 sps:$4 sm:$0xff]   ;;  %v18441_v51 = vld [vmem:[#allocation13 + $0x790] ss:$48 sps:$4 sm:$0xff]  }
 0xb61   : > { %11303 = vmatprep.subr.bf16.mxu0 %v18413_v30  ;;  %11449 = vmatprep.subr.bf16.mxu1 %v18416_v23  ;;  %v18444_v30 = vld [vmem:[#allocation13 + $0x798] ss:$48 sps:$4 sm:$0xff]   ;;  %v18449_v23 = vld [vmem:[#allocation13 + $0x7f4] ss:$48 sps:$4 sm:$0xff]  }
 0xb64   : > { %11304 = vmatpush1.bf16.msra.mxu0 %v18411_v59  ;;  %11450 = vmatpush1.bf16.msra.mxu1 %v18414_v57  ;;  %v18452_v59 = vld [vmem:[#allocation13 + $0x7fc] ss:$48 sps:$4 sm:$0xff]   ;;  %v18447_v57 = vld [vmem:[#allocation13 + $0x7f0] ss:$48 sps:$4 sm:$0xff]  }
 0xb65   : > { %11346 = vmatprep.subr.bf16.mxu0 %v18419_v41  ;;  %11492 = vmatprep.subr.bf16.mxu1 %v18422_v44  ;;  %v18450_v41 = vld [vmem:[#allocation13 + $0x7f8] ss:$48 sps:$4 sm:$0xff]   ;;  %v18455_v44 = vld [vmem:[#allocation13 + $0x854] ss:$48 sps:$4 sm:$0xff]  }
 0xb67   : > { %11306 = vmatmul.mubr.bf16.vlgmr.msra.gmra.mrb[152].mxu0 %v23245_v48  ;;  %11452 = vmatmul.mubr.bf16.vlgmr.msra.gmra.mrb[168].mxu1 %v23245_v48 }
 0xb68   : > { %11315 = vmatprep.mubr.bf16.mxu0 %v23288_v46  ;;  %11347 = vmatpush1.bf16.msra.mxu0 %v18417_v31  ;;  %v18458_v31 = vld [vmem:[#allocation13 + $0x85c] ss:$48 sps:$4 sm:$0xff]  }
 0xb69   : > { %11461 = vmatprep.mubr.bf16.mxu1 %v23288_v46  ;;  %11493 = vmatpush1.bf16.msra.mxu1 %v18420_v25  ;;  %v18453_v25 = vld [vmem:[#allocation13 + $0x850] ss:$48 sps:$4 sm:$0xff]  }
 0xb6a   : > { %11348 = vmatprep.subr.bf16.mxu0 %v18425_v10  ;;  %11494 = vmatprep.subr.bf16.mxu1 %v18428_v5  ;;  %v18456_v10 = vld [vmem:[#allocation13 + $0x858] ss:$48 sps:$4 sm:$0xff]   ;;  %v18461_v5 = vld [vmem:[#allocation13 + $0x8b4] ss:$48 sps:$4 sm:$0xff]  }
 0xb6c   : > { %11349 = vmatpush1.bf16.msra.mxu0 %v18423_v47  ;;  %v18464_v47 = vld [vmem:[#allocation13 + $0x8bc] ss:$48 sps:$4 sm:$0xff]  }
 0xb6d   : > { %11495 = vmatpush1.bf16.msra.mxu1 %v18426_v37  ;;  %11350 = vmatprep.subr.bf16.mxu0 %v18431_v38  ;;  %v18459_v37 = vld [vmem:[#allocation13 + $0x8b0] ss:$48 sps:$4 sm:$0xff]   ;;  %v18462_v38 = vld [vmem:[#allocation13 + $0x8b8] ss:$48 sps:$4 sm:$0xff]  }
 0xb6e   : > { %11496 = vmatprep.subr.bf16.mxu1 %v18434_v21  ;;  %v18467_v21 = vld [vmem:[#allocation13 + $0x24] ss:$48 sps:$4 sm:$0xff]  }
 0xb6f   : > { %11316 = vmatmul.mubr.bf16.gmra.mrb[156].mxu0 %v23292_v14  ;;  %11462 = vmatmul.mubr.bf16.gmra.mrb[172].mxu1 %v23292_v14 }
 0xb70   : > { %11325 = vmatprep.mubr.bf16.mxu0 %v23322_v43  ;;  %11351 = vmatpush1.bf16.msra.mxu0 %v18429_v33  ;;  %v18470_v33 = vld [vmem:[#allocation13 + $0x2c] ss:$48 sps:$4 sm:$0xff]  }
 0xb71   : > { %11471 = vmatprep.mubr.bf16.mxu1 %v23322_v43  ;;  %11497 = vmatpush1.bf16.msra.mxu1 %v18432_v24  ;;  %v18465_v24 = vld [vmem:[#allocation13 + $0x20] ss:$48 sps:$4 sm:$0xff]  }
 0xb72   : > { %11352 = vmatprep.subr.bf16.mxu0 %v18437_v1  ;;  %11498 = vmatprep.subr.bf16.mxu1 %v18440_v50  ;;  %v18468_v1 = vld [vmem:[#allocation13 + $0x28] ss:$48 sps:$4 sm:$0xff]   ;;  %v18473_v50 = vld [vmem:[#allocation13 + $0x84] ss:$48 sps:$4 sm:$0xff]  }
 0xb74   : > { %11353 = vmatpush1.bf16.msra.mxu0 %v18435_v13  ;;  %v18476_v13 = vld [vmem:[#allocation13 + $0x8c] ss:$48 sps:$4 sm:$0xff]  }
 0xb75   : > { %11499 = vmatpush1.bf16.msra.mxu1 %v18438_v8  ;;  %11354 = vmatprep.subr.bf16.mxu0 %v18443_v45  ;;  %v18471_v8 = vld [vmem:[#allocation13 + $0x80] ss:$48 sps:$4 sm:$0xff]   ;;  %v18474_v45 = vld [vmem:[#allocation13 + $0x88] ss:$48 sps:$4 sm:$0xff]  }
 0xb76   : > { %11500 = vmatprep.subr.bf16.mxu1 %v18446_v2  ;;  %v18479_v2 = vld [vmem:[#allocation13 + $0xe4] ss:$48 sps:$4 sm:$0xff]  }
 0xb77   : > { %11326 = vmatmul.mubr.bf16.gmra.mrb[160].mxu0 %v23338_v32  ;;  %11472 = vmatmul.mubr.bf16.gmra.mrb[176].mxu1 %v23338_v32 }
 0xb78   : > { %11335 = vmatprep.mubr.bf16.mxu0 %v23353_v63  ;;  %11355 = vmatpush1.bf16.msra.mxu0 %v18441_v51  ;;  %v18482_v51 = vld [vmem:[#allocation13 + $0xec] ss:$48 sps:$4 sm:$0xff]  }
 0xb79   : > { %11481 = vmatprep.mubr.bf16.mxu1 %v23353_v63  ;;  %11501 = vmatpush1.bf16.msra.mxu1 %v18444_v30  ;;  %v18477_v30 = vld [vmem:[#allocation13 + $0xe0] ss:$48 sps:$4 sm:$0xff]  }
 0xb7a   : > { %11356 = vmatprep.subr.bf16.mxu0 %v18449_v23  ;;  %11502 = vmatprep.subr.bf16.mxu1 %v18452_v59  ;;  %v18480_v23 = vld [vmem:[#allocation13 + $0xe8] ss:$48 sps:$4 sm:$0xff]   ;;  %v18485_v59 = vld [vmem:[#allocation13 + $0x144] ss:$48 sps:$4 sm:$0xff]  }
 0xb7c   : > { %11357 = vmatpush1.bf16.msra.mxu0 %v18447_v57  ;;  %v18488_v57 = vld [vmem:[#allocation13 + $0x14c] ss:$48 sps:$4 sm:$0xff]  }
 0xb7d   : > { %11503 = vmatpush1.bf16.msra.mxu1 %v18450_v41  ;;  %11358 = vmatprep.subr.bf16.mxu0 %v18455_v44  ;;  %v18483_v41 = vld [vmem:[#allocation13 + $0x140] ss:$48 sps:$4 sm:$0xff]   ;;  %v18486_v44 = vld [vmem:[#allocation13 + $0x148] ss:$48 sps:$4 sm:$0xff]  }
 0xb7e   : > { %11504 = vmatprep.subr.bf16.mxu1 %v18458_v31  ;;  %v18491_v31 = vld [vmem:[#allocation13 + $0x1a4] ss:$48 sps:$4 sm:$0xff]  }
 0xb7f   : > { %11336 = vmatmul.mubr.bf16.gmra.mrb[164].mxu0 %v23373_v35  ;;  %11482 = vmatmul.mubr.bf16.gmra.mrb[180].mxu1 %v23373_v35 }
 0xb80   : > { %11359 = vmatpush1.bf16.msra.mxu0 %v18453_v25  ;;  %11378 = vmatprep.mubr.bf16.mxu0 %v24714_v17  ;;  %v18494_v25 = vld [vmem:[#allocation13 + $0x1ac] ss:$48 sps:$4 sm:$0xff]  }
 0xb81   : > { %11505 = vmatpush1.bf16.msra.mxu1 %v18456_v10  ;;  %11360 = vmatprep.subr.bf16.mxu0 %v18461_v5  ;;  %v18489_v10 = vld [vmem:[#allocation13 + $0x1a0] ss:$48 sps:$4 sm:$0xff]   ;;  %v18492_v5 = vld [vmem:[#allocation13 + $0x1a8] ss:$48 sps:$4 sm:$0xff]  }
 0xb82   : > { %11506 = vmatprep.subr.bf16.mxu1 %v18464_v47  ;;  %11524 = vmatprep.mubr.bf16.mxu1 %v24714_v17  ;;  %v18497_v47 = vld [vmem:[#allocation13 + $0x204] ss:$48 sps:$4 sm:$0xff]  }
 0xb84   : > { %11361 = vmatpush1.bf16.msra.mxu0 %v18459_v37  ;;  %v18500_v37 = vld [vmem:[#allocation13 + $0x20c] ss:$48 sps:$4 sm:$0xff]  }
 0xb85   : > { %11507 = vmatpush1.bf16.msra.mxu1 %v18462_v38  ;;  %11565 = vmatprep.subr.bf16.mxu0 %v18467_v21  ;;  %v18495_v38 = vld [vmem:[#allocation13 + $0x200] ss:$48 sps:$4 sm:$0xff]   ;;  %v18498_v21 = vld [vmem:[#allocation13 + $0x208] ss:$48 sps:$4 sm:$0xff]  }
 0xb86   : > { %11711 = vmatprep.subr.bf16.mxu1 %v18470_v33  ;;  %v18503_v33 = vld [vmem:[#allocation13 + $0x264] ss:$48 sps:$4 sm:$0xff]  }
 0xb87   : > { %11379 = vmatmul.mubr.bf16.vlgmr.msra.gmra.mrb[152].mxu0 %v23397_v62 }
 0xb88   : > { %11525 = vmatmul.mubr.bf16.vlgmr.msra.gmra.mrb[168].mxu1 %v23397_v62  ;;  %11566 = vmatpush1.bf16.msra.mxu0 %v18465_v24  ;;  %v18506_v24 = vld [vmem:[#allocation13 + $0x26c] ss:$48 sps:$4 sm:$0xff]  }
 0xb89   : > { %11712 = vmatpush1.bf16.msra.mxu1 %v18468_v1  ;;  %11567 = vmatprep.subr.bf16.mxu0 %v18473_v50  ;;  %v18501_v1 = vld [vmem:[#allocation13 + $0x260] ss:$48 sps:$4 sm:$0xff]   ;;  %v18504_v50 = vld [vmem:[#allocation13 + $0x268] ss:$48 sps:$4 sm:$0xff]  }
 0xb8a   : > { %11713 = vmatprep.subr.bf16.mxu1 %v18476_v13  ;;  %11388 = vmatprep.mubr.bf16.mxu0 %v24714_v17  ;;  %v18509_v13 = vld [vmem:[#allocation13 + $0x2c4] ss:$48 sps:$4 sm:$0xff]  }
 0xb8b   : > { %11534 = vmatprep.mubr.bf16.mxu1 %v24714_v17 }
 0xb8c   : > { %11568 = vmatpush1.bf16.msra.mxu0 %v18471_v8  ;;  %v18512_v8 = vld [vmem:[#allocation13 + $0x2cc] ss:$48 sps:$4 sm:$0xff]  }
 0xb8d   : > { %11714 = vmatpush1.bf16.msra.mxu1 %v18474_v45  ;;  %11569 = vmatprep.subr.bf16.mxu0 %v18479_v2  ;;  %v18507_v45 = vld [vmem:[#allocation13 + $0x2c0] ss:$48 sps:$4 sm:$0xff]   ;;  %v18510_v2 = vld [vmem:[#allocation13 + $0x2c8] ss:$48 sps:$4 sm:$0xff]  }
 0xb8e   : > { %11715 = vmatprep.subr.bf16.mxu1 %v18482_v51  ;;  %v18515_v51 = vld [vmem:[#allocation13 + $0x324] ss:$48 sps:$4 sm:$0xff]  }
 0xb8f   : > { %11389 = vmatmul.mubr.bf16.gmra.mrb[156].mxu0 %v23417_v36 }
 0xb90   : > { %11535 = vmatmul.mubr.bf16.gmra.mrb[172].mxu1 %v23417_v36  ;;  %11570 = vmatpush1.bf16.msra.mxu0 %v18477_v30  ;;  %v18518_v30 = vld [vmem:[#allocation13 + $0x32c] ss:$48 sps:$4 sm:$0xff]  }
 0xb91   : > { %11716 = vmatpush1.bf16.msra.mxu1 %v18480_v23  ;;  %11571 = vmatprep.subr.bf16.mxu0 %v18485_v59  ;;  %v18513_v23 = vld [vmem:[#allocation13 + $0x320] ss:$48 sps:$4 sm:$0xff]   ;;  %v18516_v59 = vld [vmem:[#allocation13 + $0x328] ss:$48 sps:$4 sm:$0xff]  }
 0xb92   : > { %11717 = vmatprep.subr.bf16.mxu1 %v18488_v57  ;;  %11398 = vmatprep.mubr.bf16.mxu0 %v24714_v17  ;;  %v18521_v57 = vld [vmem:[#allocation13 + $0x384] ss:$48 sps:$4 sm:$0xff]  }
 0xb93   : > { %11544 = vmatprep.mubr.bf16.mxu1 %v24714_v17 }
 0xb94   : > { %11572 = vmatpush1.bf16.msra.mxu0 %v18483_v41  ;;  %v18524_v41 = vld [vmem:[#allocation13 + $0x38c] ss:$48 sps:$4 sm:$0xff]  }
 0xb95   : > { %11718 = vmatpush1.bf16.msra.mxu1 %v18486_v44  ;;  %11573 = vmatprep.subr.bf16.mxu0 %v18491_v31  ;;  %v18519_v44 = vld [vmem:[#allocation13 + $0x380] ss:$48 sps:$4 sm:$0xff]   ;;  %v18522_v31 = vld [vmem:[#allocation13 + $0x388] ss:$48 sps:$4 sm:$0xff]  }
 0xb96   : > { %11719 = vmatprep.subr.bf16.mxu1 %v18494_v25  ;;  %v18527_v25 = vld [vmem:[#allocation13 + $0x3e4] ss:$48 sps:$4 sm:$0xff]  }
 0xb97   : > { %11399 = vmatmul.mubr.bf16.gmra.mrb[160].mxu0 %v23437_v15 }
 0xb98   : > { %11545 = vmatmul.mubr.bf16.gmra.mrb[176].mxu1 %v23437_v15  ;;  %11574 = vmatpush1.bf16.msra.mxu0 %v18489_v10  ;;  %v18530_v10 = vld [vmem:[#allocation13 + $0x3ec] ss:$48 sps:$4 sm:$0xff]  }
 0xb99   : > { %11720 = vmatpush1.bf16.msra.mxu1 %v18492_v5  ;;  %11575 = vmatprep.subr.bf16.mxu0 %v18497_v47  ;;  %v18528_v5 = vld [vmem:[#allocation13 + $0x3e8] ss:$48 sps:$4 sm:$0xff]   ;;  %v18533_v47 = vld [vmem:[#allocation13 + $0x444] ss:$48 sps:$4 sm:$0xff]  }
 0xb9a   : > { %11721 = vmatprep.subr.bf16.mxu1 %v18500_v37  ;;  %11408 = vmatprep.mubr.bf16.mxu0 %v24714_v17  ;;  %v18536_v37 = vld [vmem:[#allocation13 + $0x44c] ss:$48 sps:$4 sm:$0xff]  }
 0xb9b   : > { %11554 = vmatprep.mubr.bf16.mxu1 %v24714_v17 }
 0xb9c   : > { %11576 = vmatpush1.bf16.msra.mxu0 %v18495_v38  ;;  %v18531_v38 = vld [vmem:[#allocation13 + $0x440] ss:$48 sps:$4 sm:$0xff]  }
 0xb9d   : > { %11722 = vmatpush1.bf16.msra.mxu1 %v18498_v21  ;;  %11577 = vmatprep.subr.bf16.mxu0 %v18503_v33  ;;  %v18534_v21 = vld [vmem:[#allocation13 + $0x448] ss:$48 sps:$4 sm:$0xff]   ;;  %v18539_v33 = vld [vmem:[#allocation13 + $0x4a4] ss:$48 sps:$4 sm:$0xff]  }
 0xb9e   : > { %11723 = vmatprep.subr.bf16.mxu1 %v18506_v24  ;;  %v18542_v24 = vld [vmem:[#allocation13 + $0x4ac] ss:$48 sps:$4 sm:$0xff]  }
 0xb9f   : > { %11409 = vmatmul.mubr.bf16.gmra.mrb[164].mxu0 %v23453_v16 }
 0xba0   : > { %11555 = vmatmul.mubr.bf16.gmra.mrb[180].mxu1 %v23453_v16  ;;  %11578 = vmatpush1.bf16.msra.mxu0 %v18501_v1  ;;  %v18537_v1 = vld [vmem:[#allocation13 + $0x4a0] ss:$48 sps:$4 sm:$0xff]  }
 0xba1   : > { %11597 = vmatprep.mubr.bf16.mxu0 %v23241_v11  ;;  %11724 = vmatpush1.bf16.msra.mxu1 %v18504_v50  ;;  %v18540_v50 = vld [vmem:[#allocation13 + $0x4a8] ss:$48 sps:$4 sm:$0xff]  }
 0xba2   : > { %11743 = vmatprep.mubr.bf16.mxu1 %v23241_v11  ;;  %11579 = vmatprep.subr.bf16.mxu0 %v18509_v13  ;;  %v18525_v11 = vld [vmem:[#allocation13 + $0x3e0] ss:$48 sps:$4 sm:$0xff]   ;;  %v18545_v13 = vld [vmem:[#allocation13 + $0x504] ss:$48 sps:$4 sm:$0xff]  }
 0xba3   : > { %11725 = vmatprep.subr.bf16.mxu1 %v18512_v8  ;;  %v18548_v8 = vld [vmem:[#allocation13 + $0x50c] ss:$48 sps:$4 sm:$0xff]  }
 0xba4   : > { %11580 = vmatpush1.bf16.msra.mxu0 %v18507_v45  ;;  %v18543_v45 = vld [vmem:[#allocation13 + $0x500] ss:$48 sps:$4 sm:$0xff]  }
 0xba5   : > { %11726 = vmatpush1.bf16.msra.mxu1 %v18510_v2  ;;  %11581 = vmatprep.subr.bf16.mxu0 %v18515_v51  ;;  %v18546_v2 = vld [vmem:[#allocation13 + $0x508] ss:$48 sps:$4 sm:$0xff]   ;;  %v18551_v51 = vld [vmem:[#allocation13 + $0x564] ss:$48 sps:$4 sm:$0xff]  }
 0xba6   : > { %11727 = vmatprep.subr.bf16.mxu1 %v18518_v30  ;;  %v18554_v30 = vld [vmem:[#allocation13 + $0x56c] ss:$48 sps:$4 sm:$0xff]  }
 0xba8   : > { %11582 = vmatpush1.bf16.msra.mxu0 %v18513_v23  ;;  %v18549_v23 = vld [vmem:[#allocation13 + $0x560] ss:$48 sps:$4 sm:$0xff]  }
 0xba9   : > { %11728 = vmatpush1.bf16.msra.mxu1 %v18516_v59  ;;  %11583 = vmatprep.subr.bf16.mxu0 %v18521_v57  ;;  %v18552_v59 = vld [vmem:[#allocation13 + $0x568] ss:$48 sps:$4 sm:$0xff]   ;;  %v18557_v57 = vld [vmem:[#allocation13 + $0x5c4] ss:$48 sps:$4 sm:$0xff]  }
 0xbaa   : > { %11729 = vmatprep.subr.bf16.mxu1 %v18524_v41  ;;  %v18560_v41 = vld [vmem:[#allocation13 + $0x5cc] ss:$48 sps:$4 sm:$0xff]  }
 0xbac   : > { %11584 = vmatpush1.bf16.msra.mxu0 %v18519_v44  ;;  %v18555_v44 = vld [vmem:[#allocation13 + $0x5c0] ss:$48 sps:$4 sm:$0xff]  }
 0xbad   : > { %11730 = vmatpush1.bf16.msra.mxu1 %v18522_v31  ;;  %11585 = vmatprep.subr.bf16.mxu0 %v18527_v25  ;;  %v18558_v31 = vld [vmem:[#allocation13 + $0x5c8] ss:$48 sps:$4 sm:$0xff]   ;;  %v18563_v25 = vld [vmem:[#allocation13 + $0x624] ss:$48 sps:$4 sm:$0xff]  }
 0xbae   : > { %11731 = vmatprep.subr.bf16.mxu1 %v18530_v10  ;;  %v18566_v10 = vld [vmem:[#allocation13 + $0x62c] ss:$48 sps:$4 sm:$0xff]  }
 0xbb0   : > { %11586 = vmatpush1.bf16.msra.mxu0 %v18525_v11  ;;  %v18561_v11 = vld [vmem:[#allocation13 + $0x620] ss:$48 sps:$4 sm:$0xff]  }
 0xbb1   : > { %11732 = vmatpush1.bf16.msra.mxu1 %v18528_v5  ;;  %11587 = vmatprep.subr.bf16.mxu0 %v18533_v47  ;;  %v18564_v5 = vld [vmem:[#allocation13 + $0x628] ss:$48 sps:$4 sm:$0xff]   ;;  %v18569_v47 = vld [vmem:[#allocation13 + $0x684] ss:$48 sps:$4 sm:$0xff]  }
 0xbb2   : > { %11733 = vmatprep.subr.bf16.mxu1 %v18536_v37  ;;  %v18572_v37 = vld [vmem:[#allocation13 + $0x68c] ss:$48 sps:$4 sm:$0xff]  }
 0xbb4   : > { %11588 = vmatpush1.bf16.msra.mxu0 %v18531_v38  ;;  %v18567_v38 = vld [vmem:[#allocation13 + $0x680] ss:$48 sps:$4 sm:$0xff]  }
 0xbb5   : > { %11734 = vmatpush1.bf16.msra.mxu1 %v18534_v21  ;;  %11589 = vmatprep.subr.bf16.mxu0 %v18539_v33  ;;  %v18570_v21 = vld [vmem:[#allocation13 + $0x688] ss:$48 sps:$4 sm:$0xff]   ;;  %v18575_v33 = vld [vmem:[#allocation13 + $0x6e4] ss:$48 sps:$4 sm:$0xff]  }
 0xbb6   : > { %11735 = vmatprep.subr.bf16.mxu1 %v18542_v24  ;;  %v18578_v24 = vld [vmem:[#allocation13 + $0x6ec] ss:$48 sps:$4 sm:$0xff]  }
 0xbb8   : > { %11590 = vmatpush1.bf16.msra.mxu0 %v18537_v1  ;;  %v18573_v1 = vld [vmem:[#allocation13 + $0x6e0] ss:$48 sps:$4 sm:$0xff]  }
 0xbb9   : > { %11736 = vmatpush1.bf16.msra.mxu1 %v18540_v50  ;;  %11591 = vmatprep.subr.bf16.mxu0 %v18545_v13  ;;  %v18576_v50 = vld [vmem:[#allocation13 + $0x6e8] ss:$48 sps:$4 sm:$0xff]   ;;  %v18581_v13 = vld [vmem:[#allocation13 + $0x744] ss:$48 sps:$4 sm:$0xff]  }
 0xbba   : > { %11737 = vmatprep.subr.bf16.mxu1 %v18548_v8  ;;  %v18582_v8 = vld [vmem:[#allocation13 + $0x748] ss:$48 sps:$4 sm:$0xff]  }
 0xbbc   : > { %11592 = vmatpush1.bf16.msra.mxu0 %v18543_v45  ;;  %v18587_v45 = vld [vmem:[#allocation13 + $0x7a4] ss:$48 sps:$4 sm:$0xff]  }
 0xbbd   : > { %11738 = vmatpush1.bf16.msra.mxu1 %v18546_v2  ;;  %11593 = vmatprep.subr.bf16.mxu0 %v18551_v51  ;;  %v18590_v2 = vld [vmem:[#allocation13 + $0x7ac] ss:$48 sps:$4 sm:$0xff]   ;;  %v18585_v51 = vld [vmem:[#allocation13 + $0x7a0] ss:$48 sps:$4 sm:$0xff]  }
 0xbbe   : > { %11739 = vmatprep.subr.bf16.mxu1 %v18554_v30  ;;  %v18588_v30 = vld [vmem:[#allocation13 + $0x7a8] ss:$48 sps:$4 sm:$0xff]  }
 0xbc0   : > { %11594 = vmatpush1.bf16.msra.mxu0 %v18549_v23  ;;  %v18593_v23 = vld [vmem:[#allocation13 + $0x804] ss:$48 sps:$4 sm:$0xff]  }
 0xbc1   : > { %11740 = vmatpush1.bf16.msra.mxu1 %v18552_v59  ;;  %11595 = vmatprep.subr.bf16.mxu0 %v18557_v57  ;;  %v18594_v59 = vld [vmem:[#allocation13 + $0x808] ss:$48 sps:$4 sm:$0xff]   ;;  %v18599_v57 = vld [vmem:[#allocation13 + $0x864] ss:$48 sps:$4 sm:$0xff]  }
 0xbc2   : > { %11741 = vmatprep.subr.bf16.mxu1 %v18560_v41  ;;  %v18602_v41 = vld [vmem:[#allocation13 + $0x86c] ss:$48 sps:$4 sm:$0xff]  }
 0xbc4   : > { %11596 = vmatpush1.bf16.msra.mxu0 %v18555_v44  ;;  %v18597_v44 = vld [vmem:[#allocation13 + $0x860] ss:$48 sps:$4 sm:$0xff]  }
 0xbc5   : > { %11742 = vmatpush1.bf16.msra.mxu1 %v18558_v31  ;;  %11638 = vmatprep.subr.bf16.mxu0 %v18563_v25  ;;  %v18600_v31 = vld [vmem:[#allocation13 + $0x868] ss:$48 sps:$4 sm:$0xff]   ;;  %v18605_v25 = vld [vmem:[#allocation13 + $0x8c4] ss:$48 sps:$4 sm:$0xff]  }
 0xbc6   : > { %11784 = vmatprep.subr.bf16.mxu1 %v18566_v10  ;;  %v18606_v10 = vld [vmem:[#allocation13 + $0x8c8] ss:$48 sps:$4 sm:$0xff]  }
 0xbc7   : > { %11598 = vmatmul.mubr.bf16.vlgmr.msra.gmra.mrb[168].mxu0 %v23245_v48 }
 0xbc8   : > { %11744 = vmatmul.mubr.bf16.vlgmr.msra.gmra.mrb[184].mxu1 %v23245_v48  ;;  %11607 = vmatprep.mubr.bf16.mxu0 %v23288_v46  ;;  %v18584_v48 = vld [vmem:[#allocation13 + $0x74c] ss:$48 sps:$4 sm:$0xff]  }
 0xbc9   : > { %11639 = vmatpush1.bf16.msra.mxu0 %v18561_v11  ;;  %11753 = vmatprep.mubr.bf16.mxu1 %v23288_v46  ;;  %v18579_v46 = vld [vmem:[#allocation13 + $0x740] ss:$48 sps:$4 sm:$0xff]  }
 0xbca   : > { %11785 = vmatpush1.bf16.msra.mxu1 %v18564_v5  ;;  %11640 = vmatprep.subr.bf16.mxu0 %v18569_v47  ;;  %v18611_v11 = vld [vmem:[#allocation16 + $0x4] ss:$12 sps:$4 sm:$0xff]   ;;  %v18612_v5 = vld [vmem:[#allocation16 + $0xc8] ss:$12 sps:$4 sm:$0xff]   ;;  %v18609_v47 = vld [vmem:[#allocation16] ss:$12 sps:$4 sm:$0xff]  }
 0xbcb   : > { %11786 = vmatprep.subr.bf16.mxu1 %v18572_v37  ;;  %v18613_v37 = vld [vmem:[#allocation16 + $0x8] ss:$12 sps:$4 sm:$0xff]  }
 0xbcd   : > { %11641 = vmatpush1.bf16.msra.mxu0 %v18567_v38  ;;  %v18616_v38 = vld [vmem:[#allocation16 + $0x1c] ss:$12 sps:$4 sm:$0xff]  }
 0xbce   : > { %11787 = vmatpush1.bf16.msra.mxu1 %v18570_v21  ;;  %11642 = vmatprep.subr.bf16.mxu0 %v18575_v33  ;;  %v18614_v21 = vld [vmem:[#allocation16 + $0x18] ss:$12 sps:$4 sm:$0xff]   ;;  %v18618_v33 = vld [vmem:[#allocation16 + $0x20] ss:$12 sps:$4 sm:$0xff]  }
 0xbcf   : > { %11608 = vmatmul.mubr.bf16.gmra.mrb[172].mxu0 %v23292_v14  ;;  %11788 = vmatprep.subr.bf16.mxu1 %v18578_v24  ;;  %v18621_v24 = vld [vmem:[#allocation16 + $0x34] ss:$12 sps:$4 sm:$0xff]  }
 0xbd0   : > { %11754 = vmatmul.mubr.bf16.gmra.mrb[188].mxu1 %v23292_v14  ;;  %11617 = vmatprep.mubr.bf16.mxu0 %v23322_v43  ;;  %v18596_v14 = vld [vmem:[#allocation13 + $0x80c] ss:$48 sps:$4 sm:$0xff]  }
 0xbd1   : > { %11643 = vmatpush1.bf16.msra.mxu0 %v18573_v1  ;;  %11763 = vmatprep.mubr.bf16.mxu1 %v23322_v43  ;;  %v18591_v43 = vld [vmem:[#allocation13 + $0x800] ss:$48 sps:$4 sm:$0xff]  }
 0xbd2   : > { %11789 = vmatpush1.bf16.msra.mxu1 %v18576_v50  ;;  %11644 = vmatprep.subr.bf16.mxu0 %v18581_v13  ;;  %v18622_v1 = vld [vmem:[#allocation16 + $0xf8] ss:$12 sps:$4 sm:$0xff]   ;;  %v18619_v50 = vld [vmem:[#allocation16 + $0x30] ss:$12 sps:$4 sm:$0xff]  }
 0xbd3   : > { %11790 = vmatprep.subr.bf16.mxu1 %v18584_v48  ;;  %v18623_v13 = vld [vmem:[#allocation16 + $0x38] ss:$12 sps:$4 sm:$0xff]  }
 0xbd4   : > { %v18626_v48 = vld [vmem:[#allocation16 + $0x4c] ss:$12 sps:$4 sm:$0xff]  }
 0xbd5   : > { %11645 = vmatpush1.bf16.msra.mxu0 %v18579_v46  ;;  %v18624_v46 = vld [vmem:[#allocation16 + $0x48] ss:$12 sps:$4 sm:$0xff]  }
 0xbd6   : > { %11791 = vmatpush1.bf16.msra.mxu1 %v18582_v8  ;;  %11646 = vmatprep.subr.bf16.mxu0 %v18587_v45  ;;  %v18628_v8 = vld [vmem:[#allocation16 + $0x50] ss:$12 sps:$4 sm:$0xff]  }
 0xbd7   : > { %11618 = vmatmul.mubr.bf16.gmra.mrb[176].mxu0 %v23338_v32  ;;  %11792 = vmatprep.subr.bf16.mxu1 %v18590_v2  ;;  %v18631_v45 = vld [vmem:[#allocation16 + $0x64] ss:$12 sps:$4 sm:$0xff]   ;;  %v18632_v2 = vld [vmem:[#allocation16 + $0x128] ss:$12 sps:$4 sm:$0xff]  }
 0xbd8   : > { %11764 = vmatmul.mubr.bf16.gmra.mrb[192].mxu1 %v23338_v32  ;;  %11627 = vmatprep.mubr.bf16.mxu0 %v23353_v63  ;;  %v18608_v32 = vld [vmem:[#allocation13 + $0x8cc] ss:$48 sps:$4 sm:$0xff]  }
 0xbd9   : > { %11647 = vmatpush1.bf16.msra.mxu0 %v18585_v51  ;;  %11773 = vmatprep.mubr.bf16.mxu1 %v23353_v63  ;;  %v18603_v63 = vld [vmem:[#allocation13 + $0x8c0] ss:$48 sps:$4 sm:$0xff]  }
 0xbda   : > { %11793 = vmatpush1.bf16.msra.mxu1 %v18588_v30  ;;  %11648 = vmatprep.subr.bf16.mxu0 %v18593_v23  ;;  %v23515_v51 = vld [vmem:[#allocation14] sm:$0xff]  ;;  %v24475_v30 = vsub.s32 3, %v24715_v56  ;;  %v18629_v23 = vld [vmem:[#allocation16 + $0x60] ss:$12 sps:$4 sm:$0xff]  }
 0xbdb   : > { %11794 = vmatprep.subr.bf16.mxu1 %v18596_v14  ;;  %v18636_v14 = vld [vmem:[#allocation16 + $0x7c] ss:$12 sps:$4 sm:$0xff]  }
 0xbdd   : > { %11649 = vmatpush1.bf16.msra.mxu0 %v18591_v43  ;;  %v23520_v43 = vrot.slane %v23515_v51, %v22938_v7 }
 0xbde   : > { %11795 = vmatpush1.bf16.msra.mxu1 %v18594_v59  ;;  %11650 = vmatprep.subr.bf16.mxu0 %v18599_v57  ;;  %v23524_v59 = vrot.slane %v23515_v51, %v22935_v34  ;;  %v18637_v57 = vld [vmem:[#allocation16 + $0x140] ss:$12 sps:$4 sm:$0xff]  }
 0xbdf   : > { %11628 = vmatmul.mubr.bf16.gmra.mrb[180].mxu0 %v23373_v35  ;;  %11796 = vmatprep.subr.bf16.mxu1 %v18602_v41  ;;  %v23529_v41 = vrot.slane %v23515_v51, %v22941_v54 }
 0xbe0   : > { %11774 = vmatmul.mubr.bf16.gmra.mrb[196].mxu1 %v23373_v35  ;;  %11670 = vmatprep.mubr.bf16.mxu0 %v24714_v17  ;;  %v18617_v35 = vld [vmem:[#allocation16 + $0xe0] ss:$12 sps:$4 sm:$0xff]  }
 0xbe1   : > { %11651 = vmatpush1.bf16.msra.mxu0 %v18597_v44  ;;  %11816 = vmatprep.mubr.bf16.mxu1 %v24714_v17  ;;  %v23534_v44 = vrot.slane %v23515_v51, %v24475_v30 }
 0xbe2   : > { %11797 = vmatpush1.bf16.msra.mxu1 %v18600_v31  ;;  %11652 = vmatprep.subr.bf16.mxu0 %v18605_v25  ;;  %v18634_v31 = vld [vmem:[#allocation16 + $0x78] ss:$12 sps:$4 sm:$0xff]  }
 0xbe3   : > { %11798 = vmatprep.subr.bf16.mxu1 %v18608_v32 }
 0xbe5   : > { %11653 = vmatpush1.bf16.msra.mxu0 %v18603_v63  ;;  %v18638_v63 = vld [vmem:[#allocation16 + $0x80] ss:$12 sps:$4 sm:$0xff]  }
 0xbe6   : > { %11799 = vmatpush1.bf16.msra.mxu1 %v18606_v10  ;;  %13938 = vmatprep.subr.bf16.mxu0 %v18611_v11  ;;  %v18641_v10 = vld [vmem:[#allocation16 + $0x94] ss:$12 sps:$4 sm:$0xff]  }
 0xbe7   : > { %16486 = vmatprep.subr.bf16.mxu1 %v18612_v5 }
 0xbe8   : > { %11671 = vmatmul.mubr.bf16.vlgmr.msra.gmra.mrb[168].mxu0 %v23397_v62 }
 0xbe9   : > { %11817 = vmatmul.mubr.bf16.vlgmr.msra.gmra.mrb[184].mxu1 %v23397_v62  ;;  %13939 = vmatpush1.bf16.msra.mxu0 %v18609_v47  ;;  %v18627_v62 = vld [vmem:[#allocation16 + $0x110] ss:$12 sps:$4 sm:$0xff]  }
 0xbea   : > { %16487 = vmatpush3.bf16.msra.mxu1 %v18613_v37  ;;  %13940 = vmatprep.subr.bf16.mxu0 %v18616_v38  ;;  %v18642_v38 = vld [vmem:[#allocation16 + $0x158] ss:$12 sps:$4 sm:$0xff]  }
 0xbeb   : > { %16488 = vmatprep.subr.bf16.mxu1 %v18617_v35  ;;  %11680 = vmatprep.mubr.bf16.mxu0 %v24714_v17 }
 0xbec   : > { %11826 = vmatprep.mubr.bf16.mxu1 %v24714_v17 }
 0xbed   : > { %13941 = vmatpush1.bf16.msra.mxu0 %v18614_v21 }
 0xbee   : > { %16489 = vmatpush3.bf16.msra.mxu1 %v18618_v33  ;;  %13942 = vmatprep.subr.bf16.mxu0 %v18621_v24 }
 0xbef   : > { %16490 = vmatprep.subr.bf16.mxu1 %v18622_v1 }
 0xbf0   : > { %11681 = vmatmul.mubr.bf16.gmra.mrb[172].mxu0 %v23417_v36 }
 0xbf1   : > { %11827 = vmatmul.mubr.bf16.gmra.mrb[188].mxu1 %v23417_v36  ;;  %13943 = vmatpush1.bf16.msra.mxu0 %v18619_v50  ;;  %v18633_v36 = vld [vmem:[#allocation16 + $0x68] ss:$12 sps:$4 sm:$0xff]  }
 0xbf2   : > { %16491 = vmatpush3.bf16.msra.mxu1 %v18623_v13  ;;  %13944 = vmatprep.subr.bf16.mxu0 %v18626_v48  ;;  %v18639_v48 = vld [vmem:[#allocation16 + $0x90] ss:$12 sps:$4 sm:$0xff]  }
 0xbf3   : > { %16492 = vmatprep.subr.bf16.mxu1 %v18627_v62  ;;  %11690 = vmatprep.mubr.bf16.mxu0 %v24714_v17 }
 0xbf4   : > { %11836 = vmatprep.mubr.bf16.mxu1 %v24714_v17 }
 0xbf5   : > { %13945 = vmatpush1.bf16.msra.mxu0 %v18624_v46 }
 0xbf6   : > { %16493 = vmatpush3.bf16.msra.mxu1 %v18628_v8  ;;  %13946 = vmatprep.subr.bf16.mxu0 %v18631_v45  ;;  %v18643_v8 = vld [vmem:[#allocation16 + $0x98] ss:$12 sps:$4 sm:$0xff]  }
 0xbf7   : > { %16494 = vmatprep.subr.bf16.mxu1 %v18632_v2  ;;  %v18646_v45 = vld [vmem:[#allocation16 + $0xac] ss:$12 sps:$4 sm:$0xff]  }
 0xbf8   : > { %11691 = vmatmul.mubr.bf16.gmra.mrb[176].mxu0 %v23437_v15 }
 0xbf9   : > { %11837 = vmatmul.mubr.bf16.gmra.mrb[192].mxu1 %v23437_v15  ;;  %13947 = vmatpush1.bf16.msra.mxu0 %v18629_v23 }
 0xbfa   : > { %16495 = vmatpush3.bf16.msra.mxu1 %v18633_v36  ;;  %v11088_v25 = vpop.f32.mrb[136].mxu0  ;;  %v11234_v32 = vpop.f32.mrb[152].mxu1  ;;  %13948 = vmatprep.subr.bf16.mxu0 %v18636_v14  ;;  %v18647_v14 = vld [vmem:[#allocation16 + $0x170] ss:$12 sps:$4 sm:$0xff]  }
 0xbfb   : > { %v17078_v11 = vadd.f32 %v11088_v25, %v23520_v43  ;;  %v17094_v5 = vadd.f32 %v11234_v32, %v23524_v59  ;;  %16496 = vmatprep.subr.bf16.mxu1 %v18637_v57  ;;  %v11090_v47 = vpop.f32.mrb[137].mxu0  ;;  %v11236_v37 = vpop.f32.mrb[153].mxu1  ;;  %11700 = vmatprep.mubr.bf16.mxu0 %v24714_v17 }
 0xbfc   : > { %v17079_v15 = vadd.f32 %v11090_v47, %v23529_v41  ;;  %v17095_v35 = vadd.f32 %v11236_v37, %v23534_v44  ;;  %v11092_v21 = vpop.f32.mrb[138].mxu0  ;;  %v11238_v33 = vpop.f32.mrb[154].mxu1  ;;  %11846 = vmatprep.mubr.bf16.mxu1 %v24714_v17 }
 0xbfd   : > { %13949 = vmatpush1.bf16.msra.mxu0 %v18634_v31  ;;  %v17080_v24 = vadd.f32 %v11092_v21, %v23520_v43  ;;  %v17096_v1 = vadd.f32 %v11238_v33, %v23524_v59  ;;  %v11094_v50 = vpop.f32.mrb[139].mxu0  ;;  %v11240_v13 = vpop.f32.mrb[155].mxu1  ;;  %v11857_v2 = vmax.f32 %v17078_v11, 0.0  ;;  %v11859_v23 = vmax.f32 %v17094_v5, 0.0 }
 0xbfe   : > { %16497 = vmatpush3.bf16.msra.mxu1 %v18638_v63  ;;  %v17081_v62 = vadd.f32 %v11094_v50, %v23529_v41  ;;  %v17097_v46 = vadd.f32 %v11240_v13, %v23534_v44  ;;  %13950 = vmatprep.subr.bf16.mxu0 %v18641_v10  ;;  %v11858_v57 = vmax.f32 %v17079_v15, 0.0  ;;  %v11860_v31 = vmax.f32 %v17095_v35, 0.0  ;;  %v18644_v10 = vld [vmem:[#allocation16 + $0xa8] ss:$12 sps:$4 sm:$0xff]   ;;  %v18648_v15 = vld [vmem:[#allocation16 + $0xb0] ss:$12 sps:$4 sm:$0xff]  }
 0xbff   : > { %v11869_v36 = vmax.f32 %v17080_v24, 0.0  ;;  %v11871_v17 = vmax.f32 %v17096_v1, 0.0  ;;  %16498 = vmatprep.subr.bf16.mxu1 %v18642_v38  ;;  %v18651_v35 = vld [vmem:[#allocation16 + $0xc4] ss:$12 sps:$4 sm:$0xff]   ;;  %v18652_v50 = vld [vmem:[#allocation16 + $0x248] ss:$12 sps:$4 sm:$0xff]  }
 0xc00   : > { %v11870_v25 = vmax.f32 %v17081_v62, 0.0  ;;  %v11872_v32 = vmax.f32 %v17097_v46, 0.0  ;;  %11701 = vmatmul.mubr.bf16.gmra.mrb[180].mxu0 %v23453_v16 }
 0xc01   : > { %v23548_v63 = vpack.c.bf16 %v11869_v36, %v11857_v2  ;;  %v23550_v47 = vpack.c.bf16 %v11871_v17, %v11859_v23  ;;  %11847 = vmatmul.mubr.bf16.gmra.mrb[196].mxu1 %v23453_v16  ;;  %13951 = vmatpush1.bf16.msra.mxu0 %v18639_v48  ;;  %v18649_v23 = vld [vmem:[#allocation16 + $0xc0] ss:$12 sps:$4 sm:$0xff]  }
 0xc02   : > { %v11954_v11 = vpack.c.bf16 %v11870_v25, %v11858_v57  ;;  %v23553_v5 = vpack.c.bf16 %v11872_v32, %v11860_v31  ;;  %16499 = vmatpush3.bf16.msra.mxu1 %v18643_v8  ;;  %v11098_v37 = vpop.f32.mrb[140].mxu0  ;;  %v11244_v38 = vpop.f32.mrb[156].mxu1  ;;  %13952 = vmatprep.subr.bf16.mxu0 %v18646_v45  ;;  %v18656_v57 = vld [vmem:[#allocation16 + $0xdc] ss:$12 sps:$4 sm:$0xff]  }
 0xc03   : > { %v17082_v21 = vadd.f32 %v11098_v37, %v23520_v43  ;;  %v17098_v33 = vadd.f32 %v11244_v38, %v23524_v59  ;;  %16500 = vmatprep.subr.bf16.mxu1 %v18647_v14  ;;  %v11100_v24 = vpop.f32.mrb[141].mxu0  ;;  %v11246_v1 = vpop.f32.mrb[157].mxu1  ;;  %v18653_v14 = vld [vmem:[#allocation16 + $0x188] ss:$12 sps:$4 sm:$0xff]  }
 0xc04   : > { %v17083_v16 = vadd.f32 %v11100_v24, %v23529_v41  ;;  %v17099_v13 = vadd.f32 %v11246_v1, %v23534_v44  ;;  %v11102_v48 = vpop.f32.mrb[142].mxu0  ;;  %v11248_v62 = vpop.f32.mrb[158].mxu1  ;;  %13970 = vmatprep.mubr.bf16.mxu0 %v11954_v11  ;;  %14408 = vmatprep.mubr.bf16.mxu1 %v11954_v11 }
 0xc05   : > { %13953 = vmatpush1.bf16.msra.mxu0 %v18644_v10  ;;  %v17084_v46 = vadd.f32 %v11102_v48, %v23520_v43  ;;  %v17100_v8 = vadd.f32 %v11248_v62, %v23524_v59  ;;  %v11104_v45 = vpop.f32.mrb[143].mxu0  ;;  %v11250_v2 = vpop.f32.mrb[159].mxu1  ;;  %v11881_v31 = vmax.f32 %v17082_v21, 0.0  ;;  %v11883_v25 = vmax.f32 %v17098_v33, 0.0  ;;  %v18657_v10 = vld [vmem:[#allocation16 + $0x260] ss:$12 sps:$4 sm:$0xff]  }
 0xc06   : > { %16501 = vmatpush3.bf16.msra.mxu1 %v18648_v15  ;;  %v17085_v36 = vadd.f32 %v11104_v45, %v23529_v41  ;;  %v17101_v17 = vadd.f32 %v11250_v2, %v23534_v44  ;;  %13954 = vmatprep.subr.bf16.mxu0 %v18651_v35  ;;  %v11882_v37 = vmax.f32 %v17083_v16, 0.0  ;;  %v11884_v38 = vmax.f32 %v17099_v13, 0.0  ;;  %v18654_v35 = vld [vmem:[#allocation16 + $0xd8] ss:$12 sps:$4 sm:$0xff]   ;;  %v18658_v16 = vld [vmem:[#allocation16 + $0x1a0] ss:$12 sps:$4 sm:$0xff]  }
 0xc07   : > { %v11893_v32 = vmax.f32 %v17084_v46, 0.0  ;;  %v11895_v11 = vmax.f32 %v17100_v8, 0.0  ;;  %16526 = vmatprep.subr.bf16.mxu1 %v18652_v50  ;;  %v18661_v13 = vld [vmem:[#allocation16 + $0xf4] ss:$12 sps:$4 sm:$0xff]  }
 0xc08   : > { %v11894_v24 = vmax.f32 %v17085_v36, 0.0  ;;  %v11896_v1 = vmax.f32 %v17101_v17, 0.0  ;;  %v18662_v36 = vld [vmem:[#allocation16 + $0x278] ss:$12 sps:$4 sm:$0xff]  }
 0xc09   : > { %v23563_v48 = vpack.c.bf16 %v11893_v32, %v11881_v31  ;;  %v23565_v15 = vpack.c.bf16 %v11895_v11, %v11883_v25  ;;  %14409 = vmatmul.mubr.bf16.vlgmr.msra.gmra.mrb[200].mxu1 %v23548_v63  ;;  %13955 = vmatpush1.bf16.msra.mxu0 %v18649_v23 }
 0xc0a   : > { %v23568_v62 = vpack.c.bf16 %v11894_v24, %v11882_v37  ;;  %v23570_v21 = vpack.c.bf16 %v11896_v1, %v11884_v38  ;;  %16527 = vmatpush3.bf16.msra.mxu1 %v18653_v14  ;;  %v11108_v33 = vpop.f32.mrb[144].mxu0  ;;  %v11254_v50 = vpop.f32.mrb[160].mxu1  ;;  %13956 = vmatprep.subr.bf16.mxu0 %v18656_v57  ;;  %v18659_v37 = vld [vmem:[#allocation16 + $0xf0] ss:$12 sps:$4 sm:$0xff]   ;;  %v18663_v24 = vld [vmem:[#allocation16 + $0x1b8] ss:$12 sps:$4 sm:$0xff]  }
 0xc0b   : > { %v17086_v46 = vadd.f32 %v11108_v33, %v23520_v43  ;;  %v17102_v8 = vadd.f32 %v11254_v50, %v23524_v59  ;;  %16528 = vmatprep.subr.bf16.mxu1 %v18657_v10  ;;  %v11110_v45 = vpop.f32.mrb[145].mxu0  ;;  %v11256_v2 = vpop.f32.mrb[161].mxu1  ;;  %v18666_v1 = vld [vmem:[#allocation16 + $0x10c] ss:$12 sps:$4 sm:$0xff]  }
 0xc0c   : > { %v17087_v23 = vadd.f32 %v11110_v45, %v23529_v41  ;;  %v17103_v17 = vadd.f32 %v11256_v2, %v23534_v44  ;;  %v11112_v31 = vpop.f32.mrb[146].mxu0  ;;  %v11258_v25 = vpop.f32.mrb[162].mxu1  ;;  %14416 = vmatprep.mubr.bf16.mxu1 %v23568_v62 }
 0xc0d   : > { %13957 = vmatpush1.bf16.msra.mxu0 %v18654_v35  ;;  %v17088_v14 = vadd.f32 %v11112_v31, %v23520_v43  ;;  %v17104_v57 = vadd.f32 %v11258_v25, %v23524_v59  ;;  %v11114_v32 = vpop.f32.mrb[147].mxu0  ;;  %v11260_v11 = vpop.f32.mrb[163].mxu1  ;;  %v11905_v33 = vmax.f32 %v17086_v46, 0.0  ;;  %v11907_v50 = vmax.f32 %v17102_v8, 0.0  ;;  %v18667_v35 = vld [vmem:[#allocation16 + $0x290] ss:$12 sps:$4 sm:$0xff]  }
 0xc0e   : > { %16529 = vmatpush3.bf16.msra.mxu1 %v18658_v16  ;;  %v17089_v10 = vadd.f32 %v11114_v32, %v23529_v41  ;;  %v17105_v38 = vadd.f32 %v11260_v11, %v23534_v44  ;;  %13958 = vmatprep.subr.bf16.mxu0 %v18661_v13  ;;  %v11906_v31 = vmax.f32 %v17087_v23, 0.0  ;;  %v11908_v30 = vmax.f32 %v17103_v17, 0.0  ;;  %v18664_v13 = vld [vmem:[#allocation16 + $0x108] ss:$12 sps:$4 sm:$0xff]   ;;  %v18668_v23 = vld [vmem:[#allocation16 + $0x1d0] ss:$12 sps:$4 sm:$0xff]  }
 0xc0f   : > { %v11917_v45 = vmax.f32 %v17088_v14, 0.0  ;;  %v11919_v2 = vmax.f32 %v17104_v57, 0.0  ;;  %16530 = vmatprep.subr.bf16.mxu1 %v18662_v36  ;;  %v18671_v17 = vld [vmem:[#allocation16 + $0x124] ss:$12 sps:$4 sm:$0xff]  }
 0xc10   : > { %v11918_v25 = vmax.f32 %v17089_v10, 0.0  ;;  %v11920_v58 = vmax.f32 %v17105_v38, 0.0  ;;  %v18672_v38 = vld [vmem:[#allocation16 + $0x2a8] ss:$12 sps:$4 sm:$0xff]  }
 0xc11   : > { %v23581_v9 = vpack.c.bf16 %v11917_v45, %v11905_v33  ;;  %v23583_v16 = vpack.c.bf16 %v11919_v2, %v11907_v50  ;;  %14417 = vmatmul.mubr.bf16.gmra.mrb[204].mxu1 %v23563_v48  ;;  %13959 = vmatpush1.bf16.msra.mxu0 %v18659_v37  ;;  %v18669_v2 = vld [vmem:[#allocation16 + $0x120] ss:$12 sps:$4 sm:$0xff]  }
 0xc12   : > { %v23586_v32 = vpack.c.bf16 %v11918_v25, %v11906_v31  ;;  %v23588_v46 = vpack.c.bf16 %v11920_v58, %v11908_v30  ;;  %16531 = vmatpush3.bf16.msra.mxu1 %v18663_v24  ;;  %v11118_v8 = vpop.f32.mrb[148].mxu0  ;;  %v11264_v36 = vpop.f32.mrb[164].mxu1  ;;  %13960 = vmatprep.subr.bf16.mxu0 %v18666_v1  ;;  %v18673_v25 = vld [vmem:[#allocation16 + $0x1e8] ss:$12 sps:$4 sm:$0xff]  }
 0xc13   : > { %v17090_v14 = vadd.f32 %v11118_v8, %v23520_v43  ;;  %v17106_v57 = vadd.f32 %v11264_v36, %v23524_v59  ;;  %16532 = vmatprep.subr.bf16.mxu1 %v18667_v35  ;;  %v11120_v11 = vpop.f32.mrb[149].mxu0  ;;  %v11266_v10 = vpop.f32.mrb[165].mxu1  ;;  %v18676_v8 = vld [vmem:[#allocation16 + $0x13c] ss:$12 sps:$4 sm:$0xff]  }
 0xc14   : > { %v17091_v37 = vadd.f32 %v11120_v11, %v23529_v41  ;;  %v17107_v33 = vadd.f32 %v11266_v10, %v23534_v44  ;;  %v11122_v58 = vpop.f32.mrb[150].mxu0  ;;  %v11268_v30 = vpop.f32.mrb[166].mxu1  ;;  %14424 = vmatprep.mubr.bf16.mxu1 %v23586_v32 }
 0xc15   : > { %13961 = vmatpush1.bf16.msra.mxu0 %v18664_v13  ;;  %v17092_v24 = vadd.f32 %v11122_v58, %v23520_v43  ;;  %v17108_v1 = vadd.f32 %v11268_v30, %v23524_v59  ;;  %v11124_v50 = vpop.f32.mrb[151].mxu0  ;;  %v11270_v45 = vpop.f32.mrb[167].mxu1  ;;  %v11929_v36 = vmax.f32 %v17090_v14, 0.0  ;;  %v11931_v11 = vmax.f32 %v17106_v57, 0.0  ;;  %v18677_v13 = vld [vmem:[#allocation16 + $0x2c0] ss:$12 sps:$4 sm:$0xff]  }
 0xc16   : > { %16533 = vmatpush3.bf16.msra.mxu1 %v18668_v23  ;;  %v17093_v35 = vadd.f32 %v11124_v50, %v23529_v41  ;;  %v17109_v31 = vadd.f32 %v11270_v45, %v23534_v44  ;;  %13962 = vmatprep.subr.bf16.mxu0 %v18671_v17  ;;  %v11930_v43 = vmax.f32 %v17091_v37, 0.0  ;;  %v11932_v58 = vmax.f32 %v17107_v33, 0.0  ;;  %v18674_v41 = vld [vmem:[#allocation16 + $0x138] ss:$12 sps:$4 sm:$0xff]   ;;  %v18678_v14 = vld [vmem:[#allocation16 + $0x200] ss:$12 sps:$4 sm:$0xff]  }
 0xc17   : > { %v11941_v10 = vmax.f32 %v17092_v24, 0.0  ;;  %v11943_v27 = vmax.f32 %v17108_v1, 0.0  ;;  %16534 = vmatprep.subr.bf16.mxu1 %v18672_v38  ;;  %v18681_v57 = vld [vmem:[#allocation16 + $0x154] ss:$12 sps:$4 sm:$0xff]   ;;  %v18682_v38 = vld [vmem:[#allocation16 + $0x2d8] ss:$12 sps:$4 sm:$0xff]  }
 0xc18   : > { %v11942_v59 = vmax.f32 %v17093_v35, 0.0  ;;  %v11944_v30 = vmax.f32 %v17109_v31, 0.0  ;;  %v18679_v37 = vld [vmem:[#allocation16 + $0x150] ss:$12 sps:$4 sm:$0xff]   ;;  %v18686_v33 = vld [vmem:[#allocation16 + $0x16c] ss:$12 sps:$4 sm:$0xff]  }
 0xc19   : > { %v23599_v4 = vpack.c.bf16 %v11941_v10, %v11929_v36  ;;  %v23601_v23 = vpack.c.bf16 %v11943_v27, %v11931_v11  ;;  %14425 = vmatmul.mubr.bf16.gmra.mrb[208].mxu1 %v23581_v9  ;;  %13963 = vmatpush1.bf16.msra.mxu0 %v18669_v2  ;;  %v18683_v27 = vld [vmem:[#allocation16 + $0x218] ss:$12 sps:$4 sm:$0xff]   ;;  %v18687_v24 = vld [vmem:[#allocation16 + $0x2f0] ss:$12 sps:$4 sm:$0xff]   ;;  %v18684_v1 = vld [vmem:[#allocation16 + $0x168] ss:$12 sps:$4 sm:$0xff]  }
 0xc1a   : > { %v23604_v44 = vpack.c.bf16 %v11942_v59, %v11930_v43  ;;  %v23606_v17 = vpack.c.bf16 %v11944_v30, %v11932_v58  ;;  %16535 = vmatpush3.bf16.msra.mxu1 %v18673_v25  ;;  %13964 = vmatprep.subr.bf16.mxu0 %v18676_v8  ;;  %v18688_v50 = vld [vmem:[#allocation16 + $0x230] ss:$12 sps:$4 sm:$0xff]   ;;  %v18713_v2 = vld [vmem:[#allocation16 + $0x3c8] ss:$12 sps:$4 sm:$0xff]   ;;  %v18689_v35 = vld [vmem:[#allocation16 + $0x180] ss:$12 sps:$4 sm:$0xff]  }
 0xc1b   : > { %16536 = vmatprep.subr.bf16.mxu1 %v18677_v13  ;;  %v18691_v45 = vld [vmem:[#allocation16 + $0x184] ss:$12 sps:$4 sm:$0xff]   ;;  %v18694_v31 = vld [vmem:[#allocation16 + $0x19c] ss:$12 sps:$4 sm:$0xff]   ;;  %v18718_v8 = vld [vmem:[#allocation16 + $0x3e0] ss:$12 sps:$4 sm:$0xff]  }
 0xc1c   : > { %14432 = vmatprep.mubr.bf16.mxu1 %v23604_v44  ;;  %v18714_v25 = vld [vmem:[#allocation16 + $0x308] ss:$12 sps:$4 sm:$0xff]   ;;  %v18692_v36 = vld [vmem:[#allocation16 + $0x198] ss:$12 sps:$4 sm:$0xff]   ;;  %v18719_v10 = vld [vmem:[#allocation16 + $0x320] ss:$12 sps:$4 sm:$0xff]  }
 0xc1d   : > { %13965 = vmatpush1.bf16.msra.mxu0 %v18674_v41  ;;  %v18697_v11 = vld [vmem:[#allocation16 + $0x1b4] ss:$12 sps:$4 sm:$0xff]   ;;  %v18723_v13 = vld [vmem:[#allocation16 + $0x3f8] ss:$12 sps:$4 sm:$0xff]   ;;  %v18695_v43 = vld [vmem:[#allocation16 + $0x1b0] ss:$12 sps:$4 sm:$0xff]  }
 0xc1e   : > { %16537 = vmatpush3.bf16.msra.mxu1 %v18678_v14  ;;  %13966 = vmatprep.subr.bf16.mxu0 %v18681_v57  ;;  %v18700_v58 = vld [vmem:[#allocation16 + $0x1cc] ss:$12 sps:$4 sm:$0xff]   ;;  %v18698_v59 = vld [vmem:[#allocation16 + $0x1c8] ss:$12 sps:$4 sm:$0xff]   ;;  %v18703_v30 = vld [vmem:[#allocation16 + $0x1e4] ss:$12 sps:$4 sm:$0xff]  }
 0xc1f   : > { %16538 = vmatprep.subr.bf16.mxu1 %v18682_v38  ;;  %v18729_v41 = vld [vmem:[#allocation16 + $0x350] ss:$12 sps:$4 sm:$0xff]   ;;  %v18733_v14 = vld [vmem:[#allocation16 + $0x428] ss:$12 sps:$4 sm:$0xff]   ;;  %v18701_v57 = vld [vmem:[#allocation16 + $0x1e0] ss:$12 sps:$4 sm:$0xff]  }
 0xc20   : > { %v18734_v38 = vld [vmem:[#allocation16 + $0x368] ss:$12 sps:$4 sm:$0xff]  }
 0xc21   : > { %14433 = vmatmul.mubr.bf16.gmra.mrb[212].mxu1 %v23599_v4  ;;  %13967 = vmatpush1.bf16.msra.mxu0 %v18679_v37  ;;  %v18704_v37 = vld [vmem:[#allocation16 + $0x1f8] ss:$12 sps:$4 sm:$0xff]  }
 0xc22   : > { %16539 = vmatpush3.bf16.msra.mxu1 %v18683_v27  ;;  %14473 = vmatprep.mubr.bf16.mxu1 %v23553_v5  ;;  %v18709_v27 = vld [vmem:[#allocation16 + $0x214] ss:$12 sps:$4 sm:$0xff]  }
 0xc23   : > { %13968 = vmatprep.subr.bf16.mxu0 %v18686_v33  ;;  %16540 = vmatprep.subr.bf16.mxu1 %v18687_v24  ;;  %v18739_v33 = vld [vmem:[#allocation16 + $0x380] ss:$12 sps:$4 sm:$0xff]   ;;  %v18743_v24 = vld [vmem:[#allocation16 + $0x458] ss:$12 sps:$4 sm:$0xff]  }
 0xc25   : > { %13969 = vmatpush1.bf16.msra.mxu0 %v18684_v1  ;;  %v18707_v1 = vld [vmem:[#allocation16 + $0x210] ss:$12 sps:$4 sm:$0xff]  }
 0xc26   : > { %16541 = vmatpush3.bf16.msra.mxu1 %v18688_v50  ;;  %14011 = vmatprep.subr.bf16.mxu0 %v18691_v45  ;;  %v18744_v50 = vld [vmem:[#allocation16 + $0x398] ss:$12 sps:$4 sm:$0xff]   ;;  %v18710_v45 = vld [vmem:[#allocation16 + $0x228] ss:$12 sps:$4 sm:$0xff]  }
 0xc27   : > { %16566 = vmatprep.subr.bf16.mxu1 %v18713_v2  ;;  %v18717_v2 = vld [vmem:[#allocation16 + $0x244] ss:$12 sps:$4 sm:$0xff]  }
 0xc28   : > { %13971 = vmatmul.mubr.bf16.vlgmr.msra.gmra.mrb[184].mxu0 %v23548_v63  ;;  %v18724_v63 = vld [vmem:[#allocation16 + $0x338] ss:$12 sps:$4 sm:$0xff]  }
 0xc29   : > { %14474 = vmatmul.mubr.bf16.vlgmr.msra.gmra.mrb[216].mxu1 %v23550_v47  ;;  %13980 = vmatprep.mubr.bf16.mxu0 %v23568_v62  ;;  %v18728_v62 = vld [vmem:[#allocation16 + $0x410] ss:$12 sps:$4 sm:$0xff]  }
 0xc2a   : > { %14012 = vmatpush1.bf16.msra.mxu0 %v18689_v35  ;;  %14481 = vmatprep.mubr.bf16.mxu1 %v23570_v21  ;;  %v18749_v35 = vld [vmem:[#allocation16 + $0x3b0] ss:$12 sps:$4 sm:$0xff]  }
 0xc2b   : > { %14013 = vmatprep.subr.bf16.mxu0 %v18694_v31  ;;  %16567 = vmatpush3.bf16.msra.mxu1 %v18714_v25  ;;  %v18753_v31 = vld [vmem:[#allocation16 + $0x548] ss:$12 sps:$4 sm:$0xff]   ;;  %v18715_v25 = vld [vmem:[#allocation16 + $0x240] ss:$12 sps:$4 sm:$0xff]  }
 0xc2c   : > { %16568 = vmatprep.subr.bf16.mxu1 %v18718_v8  ;;  %v18722_v8 = vld [vmem:[#allocation16 + $0x25c] ss:$12 sps:$4 sm:$0xff]  }
 0xc2e   : > { %14014 = vmatpush1.bf16.msra.mxu0 %v18692_v36  ;;  %v18727_v36 = vld [vmem:[#allocation16 + $0x274] ss:$12 sps:$4 sm:$0xff]  }
 0xc2f   : > { %14015 = vmatprep.subr.bf16.mxu0 %v18697_v11  ;;  %16569 = vmatpush3.bf16.msra.mxu1 %v18719_v10  ;;  %v18732_v11 = vld [vmem:[#allocation16 + $0x28c] ss:$12 sps:$4 sm:$0xff]   ;;  %v18730_v10 = vld [vmem:[#allocation16 + $0x288] ss:$12 sps:$4 sm:$0xff]  }
 0xc30   : > { %13981 = vmatmul.mubr.bf16.gmra.mrb[188].mxu0 %v23563_v48  ;;  %16570 = vmatprep.subr.bf16.mxu1 %v18723_v13  ;;  %v18706_v48 = vld [vmem:[#allocation16 + $0x1fc] ss:$12 sps:$4 sm:$0xff]   ;;  %v18737_v13 = vld [vmem:[#allocation16 + $0x2a4] ss:$12 sps:$4 sm:$0xff]  }
 0xc31   : > { %14482 = vmatmul.mubr.bf16.gmra.mrb[220].mxu1 %v23565_v15  ;;  %13990 = vmatprep.mubr.bf16.mxu0 %v23586_v32  ;;  %v18738_v32 = vld [vmem:[#allocation16 + $0x440] ss:$12 sps:$4 sm:$0xff]  }
 0xc32   : > { %14016 = vmatpush1.bf16.msra.mxu0 %v18695_v43  ;;  %14489 = vmatprep.mubr.bf16.mxu1 %v23588_v46  ;;  %v9499_v43 = vsub.s32 4, %v24715_v56 }
 0xc33   : > { %14017 = vmatprep.subr.bf16.mxu0 %v18700_v58  ;;  %16571 = vmatpush3.bf16.msra.mxu1 %v18724_v63  ;;  %v9507_v58 = vsub.s32 6, %v24715_v56  ;;  %v9503_v63 = vsub.s32 5, %v24715_v56 }
 0xc34   : > { %16572 = vmatprep.subr.bf16.mxu1 %v18728_v62  ;;  %v9511_v62 = vsub.s32 7, %v24715_v56 }
 0xc36   : > { %14018 = vmatpush1.bf16.msra.mxu0 %v18698_v59  ;;  %v18735_v59 = vld [vmem:[#allocation16 + $0x2a0] ss:$12 sps:$4 sm:$0xff]  }
 0xc37   : > { %14019 = vmatprep.subr.bf16.mxu0 %v18703_v30  ;;  %16573 = vmatpush3.bf16.msra.mxu1 %v18729_v41  ;;  %v23631_v30 = vrot.slane %v23515_v51, %v9499_v43  ;;  %v18742_v41 = vld [vmem:[#allocation16 + $0x2bc] ss:$12 sps:$4 sm:$0xff]  }
 0xc38   : > { %13991 = vmatmul.mubr.bf16.gmra.mrb[192].mxu0 %v23581_v9  ;;  %16574 = vmatprep.subr.bf16.mxu1 %v18733_v14  ;;  %v18712_v9 = vld [vmem:[#allocation16 + $0x22c] ss:$12 sps:$4 sm:$0xff]   ;;  %v23634_v14 = vrot.slane %v23515_v51, %v9507_v58 }
 0xc39   : > { %14490 = vmatmul.mubr.bf16.gmra.mrb[224].mxu1 %v23583_v16  ;;  %14000 = vmatprep.mubr.bf16.mxu0 %v23604_v44  ;;  %v18748_v44 = vld [vmem:[#allocation16 + $0x470] ss:$12 sps:$4 sm:$0xff]  }
 0xc3a   : > { %14020 = vmatpush1.bf16.msra.mxu0 %v18701_v57  ;;  %14497 = vmatprep.mubr.bf16.mxu1 %v23606_v17  ;;  %v23637_v57 = vrot.slane %v23515_v51, %v9503_v63 }
 0xc3b   : > { %14021 = vmatprep.subr.bf16.mxu0 %v18706_v48  ;;  %16575 = vmatpush3.bf16.msra.mxu1 %v18734_v38  ;;  %v23640_v48 = vrot.slane %v23515_v51, %v9511_v62 }
 0xc3c   : > { %16576 = vmatprep.subr.bf16.mxu1 %v18738_v32  ;;  %v18740_v32 = vld [vmem:[#allocation16 + $0x2b8] ss:$12 sps:$4 sm:$0xff]  }
 0xc3e   : > { %14022 = vmatpush1.bf16.msra.mxu0 %v18704_v37 }
 0xc3f   : > { %14023 = vmatprep.subr.bf16.mxu0 %v18709_v27  ;;  %16577 = vmatpush3.bf16.msra.mxu1 %v18739_v33 }
 0xc40   : > { %14001 = vmatmul.mubr.bf16.gmra.mrb[196].mxu0 %v23599_v4  ;;  %16578 = vmatprep.subr.bf16.mxu1 %v18743_v24  ;;  %v18720_v4 = vld [vmem:[#allocation16 + $0x258] ss:$12 sps:$4 sm:$0xff]   ;;  %v18747_v24 = vld [vmem:[#allocation16 + $0x2d4] ss:$12 sps:$4 sm:$0xff]  }
 0xc41   : > { %14498 = vmatmul.mubr.bf16.gmra.mrb[228].mxu1 %v23601_v23  ;;  %14043 = vmatprep.mubr.bf16.mxu0 %v23553_v5  ;;  %v18725_v5 = vld [vmem:[#allocation16 + $0x270] ss:$12 sps:$4 sm:$0xff]  }
 0xc42   : > { %14024 = vmatpush1.bf16.msra.mxu0 %v18707_v1 }
 0xc43   : > { %14025 = vmatprep.subr.bf16.mxu0 %v18712_v9  ;;  %16579 = vmatpush3.bf16.msra.mxu1 %v18744_v50 }
 0xc44   : > { %16580 = vmatprep.subr.bf16.mxu1 %v18748_v44 }
 0xc46   : > { %14026 = vmatpush1.bf16.msra.mxu0 %v18710_v45 }
 0xc47   : > { %14027 = vmatprep.subr.bf16.mxu0 %v18717_v2  ;;  %16581 = vmatpush3.bf16.msra.mxu1 %v18749_v35 }
 0xc48   : > { %16606 = vmatprep.subr.bf16.mxu1 %v18753_v31 }
 0xc4a   : > { %14028 = vmatpush1.bf16.msra.mxu0 %v18715_v25 }
 0xc4b   : > { %14029 = vmatprep.subr.bf16.mxu0 %v18722_v8 }
 0xc4e   : > { %14030 = vmatpush1.bf16.msra.mxu0 %v18720_v4  ;;  %v18745_v4 = vld [vmem:[#allocation16 + $0x2d0] ss:$12 sps:$4 sm:$0xff]  }
 0xc4f   : > { %14031 = vmatprep.subr.bf16.mxu0 %v18727_v36 }
 0xc52   : > { %14032 = vmatpush1.bf16.msra.mxu0 %v18725_v5 }
 0xc53   : > { %14033 = vmatprep.subr.bf16.mxu0 %v18732_v11 }
 0xc56   : > { %14034 = vmatpush1.bf16.msra.mxu0 %v18730_v10  ;;  %v18752_v10 = vld [vmem:[#allocation16 + $0x2ec] ss:$12 sps:$4 sm:$0xff]  }
 0xc57   : > { %14035 = vmatprep.subr.bf16.mxu0 %v18737_v13 }
 0xc5a   : > { %14036 = vmatpush1.bf16.msra.mxu0 %v18735_v59  ;;  %v11380_v38 = vpop.f32.mrb[152].mxu0 }
 0xc5b   : > { %v17110_v37 = vadd.f32 %v11380_v38, %v23631_v30  ;;  %v11526_v27 = vpop.f32.mrb[168].mxu1  ;;  %v11382_v33 = vpop.f32.mrb[153].mxu0  ;;  %14037 = vmatprep.subr.bf16.mxu0 %v18742_v41 }
 0xc5c   : > { %v17126_v1 = vadd.f32 %v11526_v27, %v23634_v14  ;;  %v17111_v9 = vadd.f32 %v11382_v33, %v23637_v57  ;;  %v11528_v50 = vpop.f32.mrb[169].mxu1  ;;  %v11384_v44 = vpop.f32.mrb[154].mxu0  ;;  %v18754_v33 = vld [vmem:[#allocation16 + $0x488] ss:$12 sps:$4 sm:$0xff]  }
 0xc5d   : > { %v17127_v45 = vadd.f32 %v11528_v50, %v23640_v48  ;;  %v17112_v51 = vadd.f32 %v11384_v44, %v23631_v30  ;;  %v11530_v2 = vpop.f32.mrb[170].mxu1  ;;  %v11386_v35 = vpop.f32.mrb[155].mxu0  ;;  %v11861_v36 = vmax.f32 %v17110_v37, 0.0  ;;  %v18750_v37 = vld [vmem:[#allocation16 + $0x2e8] ss:$12 sps:$4 sm:$0xff]  }
 0xc5e   : > { %v17128_v31 = vadd.f32 %v11530_v2, %v23634_v14  ;;  %14038 = vmatpush1.bf16.msra.mxu0 %v18740_v32  ;;  %v17113_v25 = vadd.f32 %v11386_v35, %v23637_v57  ;;  %v11532_v8 = vpop.f32.mrb[171].mxu1  ;;  %v11863_v13 = vmax.f32 %v17126_v1, 0.0  ;;  %v11862_v43 = vmax.f32 %v17111_v9, 0.0  ;;  %v18757_v44 = vld [vmem:[#allocation16 + $0x304] ss:$12 sps:$4 sm:$0xff]  }
 0xc5f   : > { %v11873_v5 = vmax.f32 %v17112_v51, 0.0  ;;  %v17129_v11 = vadd.f32 %v11532_v8, %v23640_v48  ;;  %14039 = vmatprep.subr.bf16.mxu0 %v18747_v24  ;;  %v11864_v62 = vmax.f32 %v17127_v45, 0.0  ;;  %v18758_v45 = vld [vmem:[#allocation16 + $0x560] ss:$12 sps:$4 sm:$0xff]  }
 0xc60   : > { %v11875_v58 = vmax.f32 %v17128_v31, 0.0  ;;  %v11874_v63 = vmax.f32 %v17113_v25, 0.0 }
 0xc61   : > { %v23650_v59 = vpack.c.bf16 %v11873_v5, %v11861_v36  ;;  %v11876_v41 = vmax.f32 %v17129_v11, 0.0 }
 0xc62   : > { %v23652_v38 = vpack.c.bf16 %v11875_v58, %v11863_v13  ;;  %v23654_v32 = vpack.c.bf16 %v11874_v63, %v11862_v43  ;;  %14040 = vmatpush1.bf16.msra.mxu0 %v18745_v4  ;;  %v11390_v27 = vpop.f32.mrb[156].mxu0  ;;  %v18755_v13 = vld [vmem:[#allocation16 + $0x300] ss:$12 sps:$4 sm:$0xff]  }
 0xc63   : > { %v23656_v50 = vpack.c.bf16 %v11876_v41, %v11864_v62  ;;  %v17114_v24 = vadd.f32 %v11390_v27, %v23631_v30  ;;  %v11536_v1 = vpop.f32.mrb[172].mxu1  ;;  %v11392_v9 = vpop.f32.mrb[157].mxu0  ;;  %14041 = vmatprep.subr.bf16.mxu0 %v18752_v10  ;;  %v18759_v62 = vld [vmem:[#allocation16 + $0x4a0] ss:$12 sps:$4 sm:$0xff]   ;;  %v18762_v41 = vld [vmem:[#allocation16 + $0x31c] ss:$12 sps:$4 sm:$0xff]  }
 0xc64   : > { %v17130_v51 = vadd.f32 %v11536_v1, %v23634_v14  ;;  %v17115_v2 = vadd.f32 %v11392_v9, %v23637_v57  ;;  %v11538_v35 = vpop.f32.mrb[173].mxu1  ;;  %v11394_v31 = vpop.f32.mrb[158].mxu0  ;;  %14538 = vmatprep.mubr.bf16.mxu1 %v23654_v32 }
 0xc65   : > { %v17131_v25 = vadd.f32 %v11538_v35, %v23640_v48  ;;  %v17116_v8 = vadd.f32 %v11394_v31, %v23631_v30  ;;  %v11540_v4 = vpop.f32.mrb[174].mxu1  ;;  %v11396_v36 = vpop.f32.mrb[159].mxu0  ;;  %14539 = vmatmul.mubr.bf16.vlgmr.msra.gmra.mrb[232].mxu1 %v23650_v59  ;;  %v11885_v43 = vmax.f32 %v17114_v24, 0.0  ;;  %v18763_v31 = vld [vmem:[#allocation16 + $0x578] ss:$12 sps:$4 sm:$0xff]  }
 0xc66   : > { %v17132_v5 = vadd.f32 %v11540_v4, %v23634_v14  ;;  %14042 = vmatpush1.bf16.msra.mxu0 %v18750_v37  ;;  %v17117_v11 = vadd.f32 %v11396_v36, %v23637_v57  ;;  %v11542_v10 = vpop.f32.mrb[175].mxu1  ;;  %16607 = vmatpush3.bf16.msra.mxu1 %v18754_v33  ;;  %v11887_v27 = vmax.f32 %v17130_v51, 0.0  ;;  %v11886_v1 = vmax.f32 %v17115_v2, 0.0 }
 0xc67   : > { %v11897_v58 = vmax.f32 %v17116_v8, 0.0  ;;  %v17133_v63 = vadd.f32 %v11542_v10, %v23640_v48  ;;  %14084 = vmatprep.subr.bf16.mxu0 %v18757_v44  ;;  %16608 = vmatprep.subr.bf16.mxu1 %v18758_v45  ;;  %v11888_v4 = vmax.f32 %v17131_v25, 0.0  ;;  %v18760_v45 = vld [vmem:[#allocation16 + $0x318] ss:$12 sps:$4 sm:$0xff]  }
 0xc68   : > { %v11899_v9 = vmax.f32 %v17132_v5, 0.0  ;;  %v11898_v35 = vmax.f32 %v17117_v11, 0.0  ;;  %v18764_v5 = vld [vmem:[#allocation16 + $0x4b8] ss:$12 sps:$4 sm:$0xff]   ;;  %v18767_v11 = vld [vmem:[#allocation16 + $0x334] ss:$12 sps:$4 sm:$0xff]  }
 0xc69   : > { %v23668_v37 = vpack.c.bf16 %v11897_v58, %v11885_v43  ;;  %v11900_v36 = vmax.f32 %v17133_v63, 0.0  ;;  %14044 = vmatmul.mubr.bf16.vlgmr.msra.gmra.mrb[184].mxu0 %v23550_v47 }
 0xc6a   : > { %v23671_v33 = vpack.c.bf16 %v11899_v9, %v11887_v27  ;;  %v23673_v24 = vpack.c.bf16 %v11898_v35, %v11886_v1  ;;  %14053 = vmatprep.mubr.bf16.mxu0 %v23570_v21  ;;  %14085 = vmatpush1.bf16.msra.mxu0 %v18755_v13  ;;  %v11400_v44 = vpop.f32.mrb[160].mxu0  ;;  %v18768_v21 = vld [vmem:[#allocation16 + $0x590] ss:$12 sps:$4 sm:$0xff]  }
 0xc6b   : > { %v23676_v51 = vpack.c.bf16 %v11900_v36, %v11888_v4  ;;  %v17118_v2 = vadd.f32 %v11400_v44, %v23631_v30  ;;  %v11546_v8 = vpop.f32.mrb[176].mxu1  ;;  %16609 = vmatpush3.bf16.msra.mxu1 %v18759_v62  ;;  %v11402_v25 = vpop.f32.mrb[161].mxu0  ;;  %14086 = vmatprep.subr.bf16.mxu0 %v18762_v41  ;;  %v18765_v35 = vld [vmem:[#allocation16 + $0x330] ss:$12 sps:$4 sm:$0xff]  }
 0xc6c   : > { %v17134_v47 = vadd.f32 %v11546_v8, %v23634_v14  ;;  %v17119_v10 = vadd.f32 %v11402_v25, %v23637_v57  ;;  %v11548_v43 = vpop.f32.mrb[177].mxu1  ;;  %v11404_v58 = vpop.f32.mrb[162].mxu0  ;;  %14546 = vmatprep.mubr.bf16.mxu1 %v23673_v24  ;;  %16610 = vmatprep.subr.bf16.mxu1 %v18763_v31  ;;  %v18769_v44 = vld [vmem:[#allocation16 + $0x4d0] ss:$12 sps:$4 sm:$0xff]   ;;  %v18772_v8 = vld [vmem:[#allocation16 + $0x34c] ss:$12 sps:$4 sm:$0xff]  }
 0xc6d   : > { %v17135_v13 = vadd.f32 %v11548_v43, %v23640_v48  ;;  %v17120_v63 = vadd.f32 %v11404_v58, %v23631_v30  ;;  %v11550_v27 = vpop.f32.mrb[178].mxu1  ;;  %v11406_v62 = vpop.f32.mrb[163].mxu0  ;;  %14547 = vmatmul.mubr.bf16.gmra.mrb[236].mxu1 %v23668_v37  ;;  %v11909_v4 = vmax.f32 %v17118_v2, 0.0 }
 0xc6e   : > { %v17136_v41 = vadd.f32 %v11550_v27, %v23634_v14  ;;  %14087 = vmatpush1.bf16.msra.mxu0 %v18760_v45  ;;  %v17121_v1 = vadd.f32 %v11406_v62, %v23637_v57  ;;  %v11552_v9 = vpop.f32.mrb[179].mxu1  ;;  %v11911_v25 = vmax.f32 %v17134_v47, 0.0  ;;  %v11910_v43 = vmax.f32 %v17119_v10, 0.0 }
 0xc6f   : > { %v11921_v36 = vmax.f32 %v17120_v63, 0.0  ;;  %v17137_v31 = vadd.f32 %v11552_v9, %v23640_v48  ;;  %16611 = vmatpush3.bf16.msra.mxu1 %v18764_v5  ;;  %14088 = vmatprep.subr.bf16.mxu0 %v18767_v11  ;;  %v11912_v27 = vmax.f32 %v17135_v13, 0.0  ;;  %v18770_v11 = vld [vmem:[#allocation16 + $0x348] ss:$12 sps:$4 sm:$0xff]  }
 0xc70   : > { %v11923_v58 = vmax.f32 %v17136_v41, 0.0  ;;  %v11922_v49 = vmax.f32 %v17121_v1, 0.0  ;;  %16612 = vmatprep.subr.bf16.mxu1 %v18768_v21  ;;  %v18774_v41 = vld [vmem:[#allocation16 + $0x4e8] ss:$12 sps:$4 sm:$0xff]   ;;  %v18777_v1 = vld [vmem:[#allocation16 + $0x364] ss:$12 sps:$4 sm:$0xff]  }
 0xc71   : > { %v23688_v45 = vpack.c.bf16 %v11921_v36, %v11909_v4  ;;  %v11924_v62 = vmax.f32 %v17137_v31, 0.0  ;;  %14054 = vmatmul.mubr.bf16.gmra.mrb[188].mxu0 %v23565_v15 }
 0xc72   : > { %v23691_v2 = vpack.c.bf16 %v11923_v58, %v11911_v25  ;;  %v23693_v63 = vpack.c.bf16 %v11922_v49, %v11910_v43  ;;  %14063 = vmatprep.mubr.bf16.mxu0 %v23588_v46  ;;  %14089 = vmatpush1.bf16.msra.mxu0 %v18765_v35  ;;  %v11410_v5 = vpop.f32.mrb[164].mxu0  ;;  %v18778_v46 = vld [vmem:[#allocation16 + $0x5c0] ss:$12 sps:$4 sm:$0xff]  }
 0xc73   : > { %v23696_v47 = vpack.c.bf16 %v11924_v62, %v11912_v27  ;;  %v17122_v10 = vadd.f32 %v11410_v5, %v23631_v30  ;;  %v11556_v21 = vpop.f32.mrb[180].mxu1  ;;  %16613 = vmatpush3.bf16.msra.mxu1 %v18769_v44  ;;  %v11412_v13 = vpop.f32.mrb[165].mxu0  ;;  %14090 = vmatprep.subr.bf16.mxu0 %v18772_v8  ;;  %v18775_v58 = vld [vmem:[#allocation16 + $0x360] ss:$12 sps:$4 sm:$0xff]  }
 0xc74   : > { %v17138_v15 = vadd.f32 %v11556_v21, %v23634_v14  ;;  %v17123_v49 = vadd.f32 %v11412_v13, %v23637_v57  ;;  %v11558_v9 = vpop.f32.mrb[181].mxu1  ;;  %v11414_v4 = vpop.f32.mrb[166].mxu0  ;;  %14554 = vmatprep.mubr.bf16.mxu1 %v23693_v63  ;;  %16614 = vmatprep.subr.bf16.mxu1 %v18773_v39  ;;  %v18779_v5 = vld [vmem:[#allocation16 + $0x500] ss:$12 sps:$4 sm:$0xff]   ;;  %v18782_v21 = vld [vmem:[#allocation16 + $0x37c] ss:$12 sps:$4 sm:$0xff]  }
 0xc75   : > { %v17139_v35 = vadd.f32 %v11558_v9, %v23640_v48  ;;  %v17124_v36 = vadd.f32 %v11414_v4, %v23631_v30  ;;  %v11560_v31 = vpop.f32.mrb[182].mxu1  ;;  %v11416_v44 = vpop.f32.mrb[167].mxu0  ;;  %14555 = vmatmul.mubr.bf16.gmra.mrb[240].mxu1 %v23688_v45  ;;  %v11933_v27 = vmax.f32 %v17122_v10, 0.0 }
 0xc76   : > { %v17140_v8 = vadd.f32 %v11560_v31, %v23634_v14  ;;  %14091 = vmatpush1.bf16.msra.mxu0 %v18770_v11  ;;  %v17125_v25 = vadd.f32 %v11416_v44, %v23637_v57  ;;  %v11562_v43 = vpop.f32.mrb[183].mxu1  ;;  %v11935_v30 = vmax.f32 %v17138_v15, 0.0  ;;  %v11934_v13 = vmax.f32 %v17123_v49, 0.0  ;;  %v18787_v15 = vld [vmem:[#allocation16 + $0x394] ss:$12 sps:$4 sm:$0xff]  }
 0xc77   : > { %v11945_v62 = vmax.f32 %v17124_v36, 0.0  ;;  %v17141_v39 = vadd.f32 %v11562_v43, %v23640_v48  ;;  %16615 = vmatpush3.bf16.msra.mxu1 %v18774_v41  ;;  %14092 = vmatprep.subr.bf16.mxu0 %v18777_v1  ;;  %v11936_v14 = vmax.f32 %v17139_v35, 0.0  ;;  %v18780_v48 = vld [vmem:[#allocation16 + $0x378] ss:$12 sps:$4 sm:$0xff]   ;;  %v18788_v49 = vld [vmem:[#allocation16 + $0x5f0] ss:$12 sps:$4 sm:$0xff]  }
 0xc78   : > { %v11947_v9 = vmax.f32 %v17140_v8, 0.0  ;;  %v11946_v4 = vmax.f32 %v17125_v25, 0.0  ;;  %16616 = vmatprep.subr.bf16.mxu1 %v18778_v46  ;;  %v18784_v1 = vld [vmem:[#allocation16 + $0x518] ss:$12 sps:$4 sm:$0xff]   ;;  %v18817_v35 = vld [vmem:[#allocation16 + $0x6c8] ss:$12 sps:$4 sm:$0xff]  }
 0xc79   : > { %v23708_v11 = vpack.c.bf16 %v11945_v62, %v11933_v27  ;;  %v11948_v57 = vmax.f32 %v17141_v39, 0.0  ;;  %14064 = vmatmul.mubr.bf16.gmra.mrb[192].mxu0 %v23583_v16  ;;  %v18785_v16 = vld [vmem:[#allocation16 + $0x390] ss:$12 sps:$4 sm:$0xff]   ;;  %v18792_v46 = vld [vmem:[#allocation16 + $0x3ac] ss:$12 sps:$4 sm:$0xff]  }
 0xc7a   : > { %v23711_v10 = vpack.c.bf16 %v11947_v9, %v11935_v30  ;;  %v23713_v36 = vpack.c.bf16 %v11946_v4, %v11934_v13  ;;  %14073 = vmatprep.mubr.bf16.mxu0 %v23606_v17  ;;  %14093 = vmatpush1.bf16.msra.mxu0 %v18775_v58  ;;  %v18789_v17 = vld [vmem:[#allocation16 + $0x530] ss:$12 sps:$4 sm:$0xff]   ;;  %v18790_v31 = vld [vmem:[#allocation16 + $0x3a8] ss:$12 sps:$4 sm:$0xff]   ;;  %v18822_v8 = vld [vmem:[#allocation16 + $0x6e0] ss:$12 sps:$4 sm:$0xff]  }
 0xc7b   : > { %v23716_v41 = vpack.c.bf16 %v11948_v57, %v11936_v14  ;;  %16617 = vmatpush3.bf16.msra.mxu1 %v18779_v5  ;;  %14094 = vmatprep.subr.bf16.mxu0 %v18782_v21  ;;  %v18818_v44 = vld [vmem:[#allocation16 + $0x608] ss:$12 sps:$4 sm:$0xff]   ;;  %v18793_v25 = vld [vmem:[#allocation16 + $0x3c0] ss:$12 sps:$4 sm:$0xff]   ;;  %v18827_v58 = vld [vmem:[#allocation16 + $0x6f8] ss:$12 sps:$4 sm:$0xff]  }
 0xc7c   : > { %14562 = vmatprep.mubr.bf16.mxu1 %v23713_v36  ;;  %16618 = vmatprep.subr.bf16.mxu1 %v18783_v61  ;;  %v18795_v61 = vld [vmem:[#allocation16 + $0x3c4] ss:$12 sps:$4 sm:$0xff]   ;;  %v18798_v43 = vld [vmem:[#allocation16 + $0x3dc] ss:$12 sps:$4 sm:$0xff]   ;;  %v18801_v27 = vld [vmem:[#allocation16 + $0x3f4] ss:$12 sps:$4 sm:$0xff]  }
 0xc7d   : > { %14563 = vmatmul.mubr.bf16.gmra.mrb[244].mxu1 %v23708_v11  ;;  %v18828_v62 = vld [vmem:[#allocation16 + $0x638] ss:$12 sps:$4 sm:$0xff]   ;;  %v18832_v39 = vld [vmem:[#allocation16 + $0x710] ss:$12 sps:$4 sm:$0xff]   ;;  %v18837_v13 = vld [vmem:[#allocation16 + $0x728] ss:$12 sps:$4 sm:$0xff]  }
 0xc7e   : > { %14095 = vmatpush1.bf16.msra.mxu0 %v18780_v48  ;;  %14603 = vmatprep.mubr.bf16.mxu1 %v23656_v50  ;;  %v18799_v5 = vld [vmem:[#allocation16 + $0x3f0] ss:$12 sps:$4 sm:$0xff]   ;;  %v18804_v21 = vld [vmem:[#allocation16 + $0x40c] ss:$12 sps:$4 sm:$0xff]   ;;  %v18802_v9 = vld [vmem:[#allocation16 + $0x408] ss:$12 sps:$4 sm:$0xff]  }
 0xc7f   : > { %16619 = vmatpush3.bf16.msra.mxu1 %v18784_v1  ;;  %14096 = vmatprep.subr.bf16.mxu0 %v18787_v15  ;;  %v18833_v30 = vld [vmem:[#allocation16 + $0x650] ss:$12 sps:$4 sm:$0xff]   ;;  %v18838_v14 = vld [vmem:[#allocation16 + $0x668] ss:$12 sps:$4 sm:$0xff]   ;;  %v18842_v57 = vld [vmem:[#allocation16 + $0x740] ss:$12 sps:$4 sm:$0xff]  }
 0xc80   : > { %16620 = vmatprep.subr.bf16.mxu1 %v18788_v49  ;;  %v18807_v4 = vld [vmem:[#allocation16 + $0x424] ss:$12 sps:$4 sm:$0xff]   ;;  %v18805_v48 = vld [vmem:[#allocation16 + $0x420] ss:$12 sps:$4 sm:$0xff]   ;;  %v18810_v1 = vld [vmem:[#allocation16 + $0x43c] ss:$12 sps:$4 sm:$0xff]  }
 0xc81   : > { %14074 = vmatmul.mubr.bf16.gmra.mrb[196].mxu0 %v23601_v23  ;;  %v18823_v23 = vld [vmem:[#allocation16 + $0x620] ss:$12 sps:$4 sm:$0xff]   ;;  %v18847_v49 = vld [vmem:[#allocation16 + $0x758] ss:$12 sps:$4 sm:$0xff]  }
 0xc82   : > { %14097 = vmatpush1.bf16.msra.mxu0 %v18785_v16  ;;  %14116 = vmatprep.mubr.bf16.mxu0 %v23654_v32  ;;  %v18796_v32 = vld [vmem:[#allocation16 + $0x3d8] ss:$12 sps:$4 sm:$0xff]   ;;  %v18843_v15 = vld [vmem:[#allocation16 + $0x680] ss:$12 sps:$4 sm:$0xff]  }
 0xc83   : > { %16621 = vmatpush3.bf16.msra.mxu1 %v18789_v17  ;;  %14098 = vmatprep.subr.bf16.mxu0 %v18792_v46  ;;  %v18808_v16 = vld [vmem:[#allocation16 + $0x438] ss:$12 sps:$4 sm:$0xff]   ;;  %v18813_v17 = vld [vmem:[#allocation16 + $0x454] ss:$12 sps:$4 sm:$0xff]  }
 0xc84   : > { %16646 = vmatprep.subr.bf16.mxu1 %v18817_v35  ;;  %v18848_v46 = vld [vmem:[#allocation16 + $0x698] ss:$12 sps:$4 sm:$0xff]   ;;  %v18852_v35 = vld [vmem:[#allocation16 + $0x770] ss:$12 sps:$4 sm:$0xff]  }
 0xc86   : > { %14099 = vmatpush1.bf16.msra.mxu0 %v18790_v31  ;;  %14604 = vmatmul.mubr.bf16.vlgmr.msra.gmra.mrb[248].mxu1 %v23652_v38  ;;  %v18811_v31 = vld [vmem:[#allocation16 + $0x450] ss:$12 sps:$4 sm:$0xff]  }
 0xc87   : > { %14611 = vmatprep.mubr.bf16.mxu1 %v23676_v51  ;;  %14100 = vmatprep.subr.bf16.mxu0 %v18795_v61  ;;  %v18816_v61 = vld [vmem:[#allocation16 + $0x46c] ss:$12 sps:$4 sm:$0xff]  }
 0xc88   : > { %16647 = vmatpush3.bf16.msra.mxu1 %v18818_v44  ;;  %v18853_v44 = vld [vmem:[#allocation16 + $0x6b0] ss:$12 sps:$4 sm:$0xff]  }
 0xc89   : > { %16648 = vmatprep.subr.bf16.mxu1 %v18822_v8  ;;  %v23730_v8 = vld [vmem:[#allocation16 + $0x848] ss:$12 sps:$4 sm:$0xff]  }
 0xc8a   : > { %14101 = vmatpush1.bf16.msra.mxu0 %v18793_v25  ;;  %v18814_v25 = vld [vmem:[#allocation16 + $0x468] ss:$12 sps:$4 sm:$0xff]  }
 0xc8b   : > { %14102 = vmatprep.subr.bf16.mxu0 %v18798_v43  ;;  %v18821_v43 = vld [vmem:[#allocation16 + $0x484] ss:$12 sps:$4 sm:$0xff]  }
 0xc8c   : > { %16649 = vmatpush3.bf16.msra.mxu1 %v18823_v23  ;;  %v18819_v23 = vld [vmem:[#allocation16 + $0x480] ss:$12 sps:$4 sm:$0xff]  }
 0xc8d   : > { %16650 = vmatprep.subr.bf16.mxu1 %v18827_v58  ;;  %v18826_v58 = vld [vmem:[#allocation16 + $0x49c] ss:$12 sps:$4 sm:$0xff]  }
 0xc8e   : > { %14103 = vmatpush1.bf16.msra.mxu0 %v18796_v32  ;;  %14612 = vmatmul.mubr.bf16.gmra.mrb[252].mxu1 %v23671_v33  ;;  %v18824_v32 = vld [vmem:[#allocation16 + $0x498] ss:$12 sps:$4 sm:$0xff]  }
 0xc8f   : > { %14619 = vmatprep.mubr.bf16.mxu1 %v23696_v47  ;;  %14104 = vmatprep.subr.bf16.mxu0 %v18801_v27  ;;  %v18831_v27 = vld [vmem:[#allocation16 + $0x4b4] ss:$12 sps:$4 sm:$0xff]  }
 0xc90   : > { %16651 = vmatpush3.bf16.msra.mxu1 %v18828_v62  ;;  %v18829_v62 = vld [vmem:[#allocation16 + $0x4b0] ss:$12 sps:$4 sm:$0xff]  }
 0xc91   : > { %16652 = vmatprep.subr.bf16.mxu1 %v18832_v39  ;;  %v18836_v39 = vld [vmem:[#allocation16 + $0x4cc] ss:$12 sps:$4 sm:$0xff]  }
 0xc92   : > { %14105 = vmatpush1.bf16.msra.mxu0 %v18799_v5  ;;  %v18834_v5 = vld [vmem:[#allocation16 + $0x4c8] ss:$12 sps:$4 sm:$0xff]  }
 0xc93   : > { %14106 = vmatprep.subr.bf16.mxu0 %v18804_v21  ;;  %v18841_v21 = vld [vmem:[#allocation16 + $0x4e4] ss:$12 sps:$4 sm:$0xff]  }
 0xc94   : > { %16653 = vmatpush3.bf16.msra.mxu1 %v18833_v30  ;;  %v9478_v30 = vld [vmem:[#allocation14 + $0x8] sm:$0xf] }
 0xc95   : > { %16654 = vmatprep.subr.bf16.mxu1 %v18837_v13  ;;  %v23738_v13 = vrot.slane %v9478_v30, %v22938_v7 }
 0xc96   : > { %14107 = vmatpush1.bf16.msra.mxu0 %v18802_v9  ;;  %14620 = vmatmul.mubr.bf16.gmra.mrb[0].mxu1 %v23691_v2  ;;  %v23742_v9 = vrot.slane %v9478_v30, %v22935_v34 }
 0xc97   : > { %14627 = vmatprep.mubr.bf16.mxu1 %v23716_v41  ;;  %14108 = vmatprep.subr.bf16.mxu0 %v18807_v4 }
 0xc98   : > { %16655 = vmatpush3.bf16.msra.mxu1 %v18838_v14  ;;  %v18844_v14 = vld [vmem:[#allocation16 + $0x4f8] ss:$12 sps:$4 sm:$0xff]  }
 0xc99   : > { %16656 = vmatprep.subr.bf16.mxu1 %v18842_v57 }
 0xc9a   : > { %14109 = vmatpush1.bf16.msra.mxu0 %v18805_v48  ;;  %v18851_v48 = vld [vmem:[#allocation16 + $0x514] ss:$12 sps:$4 sm:$0xff]  }
 0xc9b   : > { %14110 = vmatprep.subr.bf16.mxu0 %v18810_v1 }
 0xc9c   : > { %16657 = vmatpush3.bf16.msra.mxu1 %v18843_v15 }
 0xc9d   : > { %16658 = vmatprep.subr.bf16.mxu1 %v18847_v49 }
 0xc9e   : > { %14111 = vmatpush1.bf16.msra.mxu0 %v18808_v16  ;;  %14628 = vmatmul.mubr.bf16.gmra.mrb[4].mxu1 %v23711_v10 }
 0xc9f   : > { %14112 = vmatprep.subr.bf16.mxu0 %v18813_v17 }
 0xca0   : > { %16659 = vmatpush3.bf16.msra.mxu1 %v18848_v46 }
 0xca1   : > { %16660 = vmatprep.subr.bf16.mxu1 %v18852_v35 }
 0xca2   : > { %14113 = vmatpush1.bf16.msra.mxu0 %v18811_v31 }
 0xca3   : > { %14114 = vmatprep.subr.bf16.mxu0 %v18816_v61  ;;  %v18849_v61 = vld [vmem:[#allocation16 + $0x510] ss:$12 sps:$4 sm:$0xff]  }
 0xca4   : > { %16661 = vmatpush3.bf16.msra.mxu1 %v18853_v44 }
 0xca5   : > { %17046 = vmatprep.subr.bf16.mxu1 %v23730_v8 }
 0xca6   : > { %14115 = vmatpush1.bf16.msra.mxu0 %v18814_v25 }
 0xca7   : > { %14157 = vmatprep.subr.bf16.mxu0 %v18821_v43 }
 0xca9   : > { %14117 = vmatmul.mubr.bf16.vlgmr.msra.gmra.mrb[184].mxu0 %v23650_v59  ;;  %v18839_v59 = vld [vmem:[#allocation16 + $0x4e0] ss:$12 sps:$4 sm:$0xff]  }
 0xcaa   : > { %14126 = vmatprep.mubr.bf16.mxu0 %v23673_v24  ;;  %14158 = vmatpush1.bf16.msra.mxu0 %v18819_v23  ;;  %v18846_v24 = vld [vmem:[#allocation16 + $0x4fc] ss:$12 sps:$4 sm:$0xff]   ;;  %v18856_v23 = vld [vmem:[#allocation16 + $0x52c] ss:$12 sps:$4 sm:$0xff]  }
 0xcab   : > { %14159 = vmatprep.subr.bf16.mxu0 %v18826_v58 }
 0xcae   : > { %14160 = vmatpush1.bf16.msra.mxu0 %v18824_v32 }
 0xcaf   : > { %14161 = vmatprep.subr.bf16.mxu0 %v18831_v27 }
 0xcb1   : > { %14127 = vmatmul.mubr.bf16.gmra.mrb[188].mxu0 %v23668_v37  ;;  %v23745_v37 = vrot.slane %v9478_v30, %v22941_v54 }
 0xcb2   : > { %14136 = vmatprep.mubr.bf16.mxu0 %v23693_v63  ;;  %14162 = vmatpush1.bf16.msra.mxu0 %v18829_v62  ;;  %v24738_v63 = vsub.s32 3, %v24715_v56 }
 0xcb3   : > { %14163 = vmatprep.subr.bf16.mxu0 %v18836_v39 }
 0xcb4   : > { %v23750_v4 = vrot.slane %v9478_v30, %v24738_v63  ;;  %v18854_v63 = vld [vmem:[#allocation16 + $0x528] ss:$12 sps:$4 sm:$0xff]  }
 0xcb6   : > { %14164 = vmatpush1.bf16.msra.mxu0 %v18834_v5 }
 0xcb7   : > { %14165 = vmatprep.subr.bf16.mxu0 %v18841_v21 }
 0xcb9   : > { %14137 = vmatmul.mubr.bf16.gmra.mrb[192].mxu0 %v23688_v45 }
 0xcba   : > { %14146 = vmatprep.mubr.bf16.mxu0 %v23713_v36  ;;  %14166 = vmatpush1.bf16.msra.mxu0 %v18839_v59 }
 0xcbb   : > { %v11672_v57 = vpop.f32.mrb[168].mxu0  ;;  %14167 = vmatprep.subr.bf16.mxu0 %v18846_v24 }
 0xcbc   : > { %v17142_v1 = vadd.f32 %v11672_v57, %v23738_v13  ;;  %v11818_v45 = vpop.f32.mrb[184].mxu1  ;;  %v11674_v15 = vpop.f32.mrb[169].mxu0 }
 0xcbd   : > { %v17158_v49 = vadd.f32 %v11818_v45, %v23742_v9  ;;  %v17143_v16 = vadd.f32 %v11674_v15, %v23745_v37  ;;  %v11820_v17 = vpop.f32.mrb[185].mxu1  ;;  %v11676_v46 = vpop.f32.mrb[170].mxu0  ;;  %v18861_v45 = vld [vmem:[#allocation16 + $0x544] ss:$12 sps:$4 sm:$0xff]  }
 0xcbe   : > { %v17159_v36 = vadd.f32 %v11820_v17, %v23750_v4  ;;  %v17144_v56 = vadd.f32 %v11676_v46, %v23738_v13  ;;  %v11822_v35 = vpop.f32.mrb[186].mxu1  ;;  %14168 = vmatpush1.bf16.msra.mxu0 %v18844_v14  ;;  %v11678_v31 = vpop.f32.mrb[171].mxu0  ;;  %v11865_v58 = vmax.f32 %v17142_v1, 0.0  ;;  %v23768_v1 = vld [vmem:[#allocation16 + $0x788] ss:$12 sps:$4 sm:$0xff]  }
 0xcbf   : > { %v17160_v44 = vadd.f32 %v11822_v35, %v23742_v9  ;;  %v17145_v25 = vadd.f32 %v11678_v31, %v23745_v37  ;;  %v11824_v43 = vpop.f32.mrb[187].mxu1  ;;  %14169 = vmatprep.subr.bf16.mxu0 %v18851_v48  ;;  %v11867_v62 = vmax.f32 %v17158_v49, 0.0  ;;  %v11866_v39 = vmax.f32 %v17143_v16, 0.0  ;;  %v23773_v17 = vld [vmem:[#allocation16 + $0x860] ss:$12 sps:$4 sm:$0xff]  }
 0xcc0   : > { %v11877_v32 = vmax.f32 %v17144_v56, 0.0  ;;  %v17161_v27 = vadd.f32 %v11824_v43, %v23750_v4  ;;  %v11868_v30 = vmax.f32 %v17159_v36, 0.0 }
 0xcc1   : > { %v11879_v5 = vmax.f32 %v17160_v44, 0.0  ;;  %v11878_v21 = vmax.f32 %v17145_v25, 0.0  ;;  %14147 = vmatmul.mubr.bf16.gmra.mrb[196].mxu0 %v23708_v11  ;;  %v18859_v25 = vld [vmem:[#allocation16 + $0x540] ss:$12 sps:$4 sm:$0xff]  }
 0xcc2   : > { %v23761_v59 = vpack.c.bf16 %v11877_v32, %v11865_v58  ;;  %v11880_v24 = vmax.f32 %v17161_v27, 0.0  ;;  %14170 = vmatpush1.bf16.msra.mxu0 %v18849_v61  ;;  %14189 = vmatprep.mubr.bf16.mxu0 %v23656_v50  ;;  %v23784_v32 = vld [vmem:[#allocation16 + $0x7a0] ss:$12 sps:$4 sm:$0xff]   ;;  %v18866_v27 = vld [vmem:[#allocation16 + $0x55c] ss:$12 sps:$4 sm:$0xff]  }
 0xcc3   : > { %v23764_v14 = vpack.c.bf16 %v11879_v5, %v11867_v62  ;;  %v23766_v57 = vpack.c.bf16 %v11878_v21, %v11866_v39  ;;  %v11682_v48 = vpop.f32.mrb[172].mxu0  ;;  %14171 = vmatprep.subr.bf16.mxu0 %v18856_v23  ;;  %v23788_v21 = vld [vmem:[#allocation16 + $0x878] ss:$12 sps:$4 sm:$0xff]  }
 0xcc4   : > { %v23770_v15 = vpack.c.bf16 %v11880_v24, %v11868_v30  ;;  %v17146_v11 = vadd.f32 %v11682_v48, %v23738_v13  ;;  %v11828_v49 = vpop.f32.mrb[188].mxu1  ;;  %v11684_v16 = vpop.f32.mrb[173].mxu0 }
 0xcc5   : > { %v17162_v50 = vadd.f32 %v11828_v49, %v23742_v9  ;;  %v17147_v46 = vadd.f32 %v11684_v16, %v23745_v37  ;;  %v11830_v36 = vpop.f32.mrb[189].mxu1  ;;  %v11686_v56 = vpop.f32.mrb[174].mxu0  ;;  %14668 = vmatprep.mubr.bf16.mxu1 %v23766_v57 }
 0xcc6   : > { %v17163_v35 = vadd.f32 %v11830_v36, %v23750_v4  ;;  %v17148_v31 = vadd.f32 %v11686_v56, %v23738_v13  ;;  %v11832_v61 = vpop.f32.mrb[190].mxu1  ;;  %14172 = vmatpush1.bf16.msra.mxu0 %v18854_v63  ;;  %v11688_v44 = vpop.f32.mrb[175].mxu0  ;;  %14669 = vmatmul.mubr.bf16.vlgmr.msra.gmra.mrb[8].mxu1 %v23761_v59  ;;  %v11889_v62 = vmax.f32 %v17146_v11, 0.0 }
 0xcc7   : > { %v17164_v43 = vadd.f32 %v11832_v61, %v23742_v9  ;;  %v17149_v23 = vadd.f32 %v11688_v44, %v23745_v37  ;;  %v11834_v58 = vpop.f32.mrb[191].mxu1  ;;  %17054 = vmatpush3.bf16.msra.mxu1 %v23768_v1  ;;  %14173 = vmatprep.subr.bf16.mxu0 %v18861_v45  ;;  %v11891_v30 = vmax.f32 %v17162_v50, 0.0  ;;  %v11890_v24 = vmax.f32 %v17147_v46, 0.0  ;;  %v18864_v45 = vld [vmem:[#allocation16 + $0x558] ss:$12 sps:$4 sm:$0xff]  }
 0xcc8   : > { %v11901_v39 = vmax.f32 %v17148_v31, 0.0  ;;  %v17165_v5 = vadd.f32 %v11834_v58, %v23750_v4  ;;  %17047 = vmatprep.subr.bf16.mxu1 %v23773_v17  ;;  %v11892_v49 = vmax.f32 %v17163_v35, 0.0  ;;  %v23797_v61 = vld [vmem:[#allocation16 + $0x7b8] ss:$12 sps:$4 sm:$0xff]   ;;  %v18871_v50 = vld [vmem:[#allocation16 + $0x574] ss:$12 sps:$4 sm:$0xff]  }
 0xcc9   : > { %v11903_v63 = vmax.f32 %v17164_v43, 0.0  ;;  %v11902_v48 = vmax.f32 %v17149_v23, 0.0 }
 0xcca   : > { %v23790_v16 = vpack.c.bf16 %v11901_v39, %v11889_v62  ;;  %v11904_v36 = vmax.f32 %v17165_v5, 0.0  ;;  %14174 = vmatpush1.bf16.msra.mxu0 %v18859_v25  ;;  %v23803_v25 = vld [vmem:[#allocation16 + $0x890] ss:$12 sps:$4 sm:$0xff]  }
 0xccb   : > { %v23792_v56 = vpack.c.bf16 %v11903_v63, %v11891_v30  ;;  %v23794_v11 = vpack.c.bf16 %v11902_v48, %v11890_v24  ;;  %v11692_v31 = vpop.f32.mrb[176].mxu0  ;;  %17055 = vmatpush3.bf16.msra.mxu1 %v23784_v32  ;;  %14175 = vmatprep.subr.bf16.mxu0 %v18866_v27  ;;  %v18869_v63 = vld [vmem:[#allocation16 + $0x570] ss:$12 sps:$4 sm:$0xff]  }
 0xccc   : > { %v23799_v46 = vpack.c.bf16 %v11904_v36, %v11892_v49  ;;  %v17150_v35 = vadd.f32 %v11692_v31, %v23738_v13  ;;  %v11838_v44 = vpop.f32.mrb[192].mxu1  ;;  %v11694_v43 = vpop.f32.mrb[177].mxu0  ;;  %17048 = vmatprep.subr.bf16.mxu1 %v23788_v21  ;;  %v23814_v31 = vld [vmem:[#allocation16 + $0x7d0] ss:$12 sps:$4 sm:$0xff]  }
 0xccd   : > { %v17166_v23 = vadd.f32 %v11838_v44, %v23742_v9  ;;  %v17151_v58 = vadd.f32 %v11694_v43, %v23745_v37  ;;  %v11840_v62 = vpop.f32.mrb[193].mxu1  ;;  %v11696_v39 = vpop.f32.mrb[178].mxu0  ;;  %14676 = vmatprep.mubr.bf16.mxu1 %v23794_v11  ;;  %v18876_v44 = vld [vmem:[#allocation16 + $0x58c] ss:$12 sps:$4 sm:$0xff]  }
 0xcce   : > { %v17167_v27 = vadd.f32 %v11840_v62, %v23750_v4  ;;  %v17152_v5 = vadd.f32 %v11696_v39, %v23738_v13  ;;  %v11842_v30 = vpop.f32.mrb[194].mxu1  ;;  %14176 = vmatpush1.bf16.msra.mxu0 %v18864_v45  ;;  %v11698_v24 = vpop.f32.mrb[179].mxu0  ;;  %14677 = vmatmul.mubr.bf16.gmra.mrb[12].mxu1 %v23790_v16  ;;  %v11913_v43 = vmax.f32 %v17150_v35, 0.0  ;;  %v23818_v45 = vld [vmem:[#allocation16 + $0x8a8] ss:$12 sps:$4 sm:$0xff]  }
 0xccf   : > { %v17168_v48 = vadd.f32 %v11842_v30, %v23742_v9  ;;  %v17153_v49 = vadd.f32 %v11698_v24, %v23745_v37  ;;  %v11844_v36 = vpop.f32.mrb[195].mxu1  ;;  %17056 = vmatpush3.bf16.msra.mxu1 %v23797_v61  ;;  %14177 = vmatprep.subr.bf16.mxu0 %v18871_v50  ;;  %v11915_v29 = vmax.f32 %v17166_v23, 0.0  ;;  %v11914_v40 = vmax.f32 %v17151_v58, 0.0  ;;  %v18874_v50 = vld [vmem:[#allocation16 + $0x588] ss:$12 sps:$4 sm:$0xff]  }
 0xcd0   : > { %v11925_v62 = vmax.f32 %v17152_v5, 0.0  ;;  %v17169_v39 = vadd.f32 %v11844_v36, %v23750_v4  ;;  %17049 = vmatprep.subr.bf16.mxu1 %v23803_v25  ;;  %v11916_v24 = vmax.f32 %v17167_v27, 0.0  ;;  %v23827_v36 = vld [vmem:[#allocation16 + $0x7e8] ss:$12 sps:$4 sm:$0xff]   ;;  %v18881_v23 = vld [vmem:[#allocation16 + $0x5a4] ss:$12 sps:$4 sm:$0xff]  }
 0xcd1   : > { %v11927_v30 = vmax.f32 %v17168_v48, 0.0  ;;  %v11926_v26 = vmax.f32 %v17153_v49, 0.0 }
 0xcd2   : > { %v23820_v22 = vpack.c.bf16 %v11925_v62, %v11913_v43  ;;  %v11928_v0 = vmax.f32 %v17169_v39, 0.0  ;;  %14178 = vmatpush1.bf16.msra.mxu0 %v18869_v63  ;;  %v23833_v63 = vld [vmem:[#allocation16 + $0x8c0] ss:$12 sps:$4 sm:$0xff]  }
 0xcd3   : > { %v23822_v19 = vpack.c.bf16 %v11927_v30, %v11915_v29  ;;  %v23824_v35 = vpack.c.bf16 %v11926_v26, %v11914_v40  ;;  %v11702_v5 = vpop.f32.mrb[180].mxu0  ;;  %17057 = vmatpush3.bf16.msra.mxu1 %v23814_v31  ;;  %14179 = vmatprep.subr.bf16.mxu0 %v18876_v44  ;;  %v18879_v30 = vld [vmem:[#allocation16 + $0x5a0] ss:$12 sps:$4 sm:$0xff]  }
 0xcd4   : > { %v23829_v58 = vpack.c.bf16 %v11928_v0, %v11916_v24  ;;  %v17154_v27 = vadd.f32 %v11702_v5, %v23738_v13  ;;  %v11848_v48 = vpop.f32.mrb[196].mxu1  ;;  %v11704_v49 = vpop.f32.mrb[181].mxu0  ;;  %17050 = vmatprep.subr.bf16.mxu1 %v23818_v45 }
 0xcd5   : > { %v17170_v40 = vadd.f32 %v11848_v48, %v23742_v9  ;;  %v17155_v26 = vadd.f32 %v11704_v49, %v23745_v37  ;;  %v11850_v29 = vpop.f32.mrb[197].mxu1  ;;  %v11706_v43 = vpop.f32.mrb[182].mxu0  ;;  %14684 = vmatprep.mubr.bf16.mxu1 %v23824_v35  ;;  %v23844_v49 = vld [vmem:[#allocation16 + $0x800] ss:$12 sps:$4 sm:$0xff]  }
 0xcd6   : > { %v17171_v44 = vadd.f32 %v11850_v29, %v23750_v4  ;;  %v17156_v0 = vadd.f32 %v11706_v43, %v23738_v13  ;;  %v11852_v62 = vpop.f32.mrb[198].mxu1  ;;  %14180 = vmatpush1.bf16.msra.mxu0 %v18874_v50  ;;  %v11708_v39 = vpop.f32.mrb[183].mxu0  ;;  %14685 = vmatmul.mubr.bf16.gmra.mrb[16].mxu1 %v23820_v22  ;;  %v11937_v29 = vmax.f32 %v17154_v27, 0.0  ;;  %v23848_v50 = vld [vmem:[#allocation16 + $0x8d8] ss:$12 sps:$4 sm:$0xff]  }
 0xcd7   : > { %v17172_v24 = vadd.f32 %v11852_v62, %v23742_v9  ;;  %v17157_v5 = vadd.f32 %v11708_v39, %v23745_v37  ;;  %v11854_v48 = vpop.f32.mrb[199].mxu1  ;;  %17058 = vmatpush3.bf16.msra.mxu1 %v23827_v36  ;;  %14181 = vmatprep.subr.bf16.mxu0 %v18881_v23  ;;  %v11939_v43 = vmax.f32 %v17170_v40, 0.0  ;;  %v11938_v60 = vmax.f32 %v17155_v26, 0.0  ;;  %v18884_v23 = vld [vmem:[#allocation16 + $0x5b8] ss:$12 sps:$4 sm:$0xff]  }
 0xcd8   : > { %v11949_v42 = vmax.f32 %v17156_v0, 0.0  ;;  %v17173_v13 = vadd.f32 %v11854_v48, %v23750_v4  ;;  %17051 = vmatprep.subr.bf16.mxu1 %v23833_v63  ;;  %v11940_v37 = vmax.f32 %v17171_v44, 0.0  ;;  %v23857_v4 = vld [vmem:[#allocation16 + $0x818] ss:$12 sps:$4 sm:$0xff]   ;;  %v18891_v26 = vld [vmem:[#allocation16 + $0x5d4] ss:$12 sps:$4 sm:$0xff]  }
 0xcd9   : > { %v11951_v9 = vmax.f32 %v17172_v24, 0.0  ;;  %v11950_v62 = vmax.f32 %v17157_v5, 0.0  ;;  %v18896_v5 = vld [vmem:[#allocation16 + $0x5ec] ss:$12 sps:$4 sm:$0xff]  }
 0xcda   : > { %v23850_v39 = vpack.c.bf16 %v11949_v42, %v11937_v29  ;;  %v11952_v53 = vmax.f32 %v17173_v13, 0.0  ;;  %14182 = vmatpush1.bf16.msra.mxu0 %v18879_v30  ;;  %v23862_v42 = vld [vmem:[#allocation16 + $0x8f0] ss:$12 sps:$4 sm:$0xff]   ;;  %v18894_v29 = vld [vmem:[#allocation16 + $0x5e8] ss:$12 sps:$4 sm:$0xff]  }
 0xcdb   : > { %v23852_v52 = vpack.c.bf16 %v11951_v9, %v11939_v43  ;;  %v23854_v27 = vpack.c.bf16 %v11950_v62, %v11938_v60  ;;  %17059 = vmatpush3.bf16.msra.mxu1 %v23844_v49  ;;  %14183 = vmatprep.subr.bf16.mxu0 %v18886_v28  ;;  %v18889_v28 = vld [vmem:[#allocation16 + $0x5d0] ss:$12 sps:$4 sm:$0xff]  }
 0xcdc   : > { %v23859_v0 = vpack.c.bf16 %v11952_v53, %v11940_v37  ;;  %v16502_v40 = vpop.f32.mrb[200].mxu1  ;;  %17052 = vmatprep.subr.bf16.mxu1 %v23848_v50  ;;  %v23870_v53 = vld [vmem:[#allocation16 + $0x830] ss:$12 sps:$4 sm:$0xff]  }
 0xcdd   : > { %v16503_v44 = vpop.f32.mrb[201].mxu1  ;;  %14692 = vmatprep.mubr.bf16.mxu1 %v23854_v27  ;;  %v18899_v13 = vld [vmem:[#allocation16 + $0x604] ss:$12 sps:$4 sm:$0xff]  }
 0xcde   : > { %v23865_v30 = vadd.f32 %v16503_v44, %v16502_v40  ;;  %14184 = vmatpush1.bf16.msra.mxu0 %v18884_v23  ;;  %v16505_v60 = vpop.f32.mrb[202].mxu1  ;;  %14693 = vmatmul.mubr.bf16.gmra.mrb[20].mxu1 %v23850_v39  ;;  %v18897_v23 = vld [vmem:[#allocation16 + $0x600] ss:$12 sps:$4 sm:$0xff]  }
 0xcdf   : > { %v16506_v24 = vpop.f32.mrb[203].mxu1  ;;  %17060 = vmatpush3.bf16.msra.mxu1 %v23857_v4  ;;  %14741 = vmatprep.mubr.bf16.mxu1 %v23799_v46 }
 0xce0   : > { %v23872_v48 = vadd.f32 %v16506_v24, %v16505_v60  ;;  %14185 = vmatprep.subr.bf16.mxu0 %v18891_v26  ;;  %17053 = vmatprep.subr.bf16.mxu1 %v23862_v42  ;;  %v18902_v26 = vld [vmem:[#allocation16 + $0x61c] ss:$12 sps:$4 sm:$0xff]   ;;  %v18900_v60 = vld [vmem:[#allocation16 + $0x618] ss:$12 sps:$4 sm:$0xff]  }
 0xce2   : > { %14186 = vmatpush1.bf16.msra.mxu0 %v18889_v28  ;;  %v18905_v28 = vld [vmem:[#allocation16 + $0x634] ss:$12 sps:$4 sm:$0xff]  }
 0xce3   : > { %17061 = vmatpush3.bf16.msra.mxu1 %v23870_v53  ;;  %14187 = vmatprep.subr.bf16.mxu0 %v18896_v5 }
 0xce4   : > { %v16508_v43 = vpop.f32.mrb[204].mxu1 }
 0xce5   : > { %v16509_v9 = vpop.f32.mrb[205].mxu1 }
 0xce6   : > { %v23876_v62 = vadd.f32 %v16509_v9, %v16508_v43  ;;  %14188 = vmatpush1.bf16.msra.mxu0 %v18894_v29  ;;  %v16511_v37 = vpop.f32.mrb[206].mxu1  ;;  %14742 = vmatmul.mubr.bf16.vlgmr.msra.gmra.mrb[24].mxu1 %v23792_v56 }
 0xce7   : > { %v16512_v40 = vpop.f32.mrb[207].mxu1  ;;  %14749 = vmatprep.mubr.bf16.mxu1 %v23829_v58  ;;  %14230 = vmatprep.subr.bf16.mxu0 %v18899_v13  ;;  %v18903_v13 = vld [vmem:[#allocation16 + $0x630] ss:$12 sps:$4 sm:$0xff]  }
 0xce8   : > { %v23880_v44 = vadd.f32 %v16512_v40, %v16511_v37 }
 0xce9   : > { %14190 = vmatmul.mubr.bf16.vlgmr.msra.gmra.mrb[184].mxu0 %v23652_v38  ;;  %v18908_v38 = vld [vmem:[#allocation16 + $0x64c] ss:$12 sps:$4 sm:$0xff]  }
 0xcea   : > { %14199 = vmatprep.mubr.bf16.mxu0 %v23676_v51  ;;  %14231 = vmatpush1.bf16.msra.mxu0 %v18897_v23  ;;  %v18906_v51 = vld [vmem:[#allocation16 + $0x648] ss:$12 sps:$4 sm:$0xff]   ;;  %v18911_v23 = vld [vmem:[#allocation16 + $0x664] ss:$12 sps:$4 sm:$0xff]  }
 0xceb   : > { %14232 = vmatprep.subr.bf16.mxu0 %v18902_v26 }
 0xcec   : > { %v16514_v24 = vpop.f32.mrb[208].mxu1 }
 0xced   : > { %v16515_v5 = vpop.f32.mrb[209].mxu1 }
 0xcee   : > { %v23884_v29 = vadd.f32 %v16515_v5, %v16514_v24  ;;  %14233 = vmatpush1.bf16.msra.mxu0 %v18900_v60  ;;  %v16517_v43 = vpop.f32.mrb[210].mxu1  ;;  %14750 = vmatmul.mubr.bf16.gmra.mrb[28].mxu1 %v23822_v19  ;;  %v23895_v5 = vld [vmem:[#allocation17] sm:$0x7] }
 0xcef   : > { %v16518_v9 = vpop.f32.mrb[211].mxu1  ;;  %14757 = vmatprep.mubr.bf16.mxu1 %v23859_v0  ;;  %14234 = vmatprep.subr.bf16.mxu0 %v18905_v28  ;;  %v18909_v28 = vld [vmem:[#allocation16 + $0x660] ss:$12 sps:$4 sm:$0xff]  }
 0xcf0   : > { %v23888_v37 = vadd.f32 %v16518_v9, %v16517_v43 }
 0xcf1   : > { %14200 = vmatmul.mubr.bf16.gmra.mrb[188].mxu0 %v23671_v33  ;;  %v18914_v33 = vld [vmem:[#allocation16 + $0x67c] ss:$12 sps:$4 sm:$0xff]  }
 0xcf2   : > { %14209 = vmatprep.mubr.bf16.mxu0 %v23696_v47  ;;  %14235 = vmatpush1.bf16.msra.mxu0 %v18903_v13  ;;  %v23902_v47 = vrot.slane %v23895_v5, %v22935_v34  ;;  %v18912_v13 = vld [vmem:[#allocation16 + $0x678] ss:$12 sps:$4 sm:$0xff]  }
 0xcf3   : > { %14236 = vmatprep.subr.bf16.mxu0 %v18908_v38  ;;  %v18917_v38 = vld [vmem:[#allocation16 + $0x694] ss:$12 sps:$4 sm:$0xff]  }
 0xcf4   : > { %v16520_v40 = vpop.f32.mrb[212].mxu1  ;;  %v14414_v34 = vadd.f32 %v23872_v48, %v23902_v47 }
 0xcf5   : > { %v16521_v26 = vpop.f32.mrb[213].mxu1 }
 0xcf6   : > { %v23892_v60 = vadd.f32 %v16521_v26, %v16520_v40  ;;  %14237 = vmatpush1.bf16.msra.mxu0 %v18906_v51  ;;  %v16523_v24 = vpop.f32.mrb[214].mxu1  ;;  %14758 = vmatmul.mubr.bf16.gmra.mrb[32].mxu1 %v23852_v52 }
 0xcf7   : > { %v16524_v43 = vpop.f32.mrb[215].mxu1  ;;  %14238 = vmatprep.subr.bf16.mxu0 %v18911_v23  ;;  %v14411_v23 = vadd.f32 %v23865_v30, %v23902_v47  ;;  %v18918_v30 = vld [vmem:[#allocation16 + $0x6a8] ss:$12 sps:$4 sm:$0xff]  }
 0xcf8   : > { %v23897_v9 = vadd.f32 %v16524_v43, %v16523_v24  ;;  %v18915_v43 = vld [vmem:[#allocation16 + $0x690] ss:$12 sps:$4 sm:$0xff]  }
 0xcf9   : > { %14210 = vmatmul.mubr.bf16.gmra.mrb[192].mxu0 %v23691_v2 }
 0xcfa   : > { %14219 = vmatprep.mubr.bf16.mxu0 %v23716_v41  ;;  %14239 = vmatpush1.bf16.msra.mxu0 %v18909_v28 }
 0xcfb   : > { %14240 = vmatprep.subr.bf16.mxu0 %v18914_v33 }
 0xcfc   : > { %v16542_v51 = vpop.f32.mrb[216].mxu1 }
 0xcfd   : > { %v16543_v40 = vpop.f32.mrb[217].mxu1 }
 0xcfe   : > { %v16544_v26 = vadd.f32 %v16543_v40, %v16542_v51  ;;  %14241 = vmatpush1.bf16.msra.mxu0 %v18912_v13  ;;  %v16545_v24 = vpop.f32.mrb[218].mxu1  ;;  %v18923_v13 = vld [vmem:[#allocation16 + $0x6c4] ss:$12 sps:$4 sm:$0xff]  }
 0xcff   : > { %v16546_v2 = vpop.f32.mrb[219].mxu1  ;;  %14242 = vmatprep.subr.bf16.mxu0 %v18917_v38  ;;  %v14419_v38 = vadd.f32 %v23876_v62, %v23902_v47 }
 0xd00   : > { %v23909_v41 = vadd.f32 %v16544_v26, %v14411_v23  ;;  %v16547_v28 = vadd.f32 %v16546_v2, %v16545_v24  ;;  %v18921_v23 = vld [vmem:[#allocation16 + $0x6c0] ss:$12 sps:$4 sm:$0xff]  }
 0xd01   : > { %14220 = vmatmul.mubr.bf16.gmra.mrb[196].mxu0 %v23711_v10  ;;  %v18926_v10 = vld [vmem:[#allocation16 + $0x6dc] ss:$12 sps:$4 sm:$0xff]   ;;  %v18929_v2 = vld [vmem:[#allocation16 + $0x6f4] ss:$12 sps:$4 sm:$0xff]  }
 0xd02   : > { %v23912_v33 = vadd.f32 %v16547_v28, %v14414_v34  ;;  %14243 = vmatpush1.bf16.msra.mxu0 %v18915_v43  ;;  %14262 = vmatprep.mubr.bf16.mxu0 %v23766_v57  ;;  %v14422_v34 = vadd.f32 %v23880_v44, %v23902_v47  ;;  %v18924_v43 = vld [vmem:[#allocation16 + $0x6d8] ss:$12 sps:$4 sm:$0xff]   ;;  %v14430_v44 = vadd.f32 %v23888_v37, %v23902_v47  ;;  %v18938_v37 = vld [vmem:[#allocation16 + $0x73c] ss:$12 sps:$4 sm:$0xff]  }
 0xd03   : > { %14244 = vmatprep.subr.bf16.mxu0 %v18920_v6 }
 0xd04   : > { %v16548_v51 = vpop.f32.mrb[220].mxu1 }
 0xd05   : > { %v16549_v40 = vpop.f32.mrb[221].mxu1 }
 0xd06   : > { %v16550_v55 = vadd.f32 %v16549_v40, %v16548_v51  ;;  %14245 = vmatpush1.bf16.msra.mxu0 %v18918_v30  ;;  %v16551_v48 = vpop.f32.mrb[222].mxu1  ;;  %v14427_v30 = vadd.f32 %v23884_v29, %v23902_v47  ;;  %v18927_v40 = vld [vmem:[#allocation16 + $0x6f0] ss:$12 sps:$4 sm:$0xff]  }
 0xd07   : > { %v16552_v26 = vpop.f32.mrb[223].mxu1  ;;  %14246 = vmatprep.subr.bf16.mxu0 %v18923_v13 }
 0xd08   : > { %v23919_v24 = vadd.f32 %v16550_v55, %v14419_v38  ;;  %v16553_v57 = vadd.f32 %v16552_v26, %v16551_v48  ;;  %v18932_v55 = vld [vmem:[#allocation16 + $0x70c] ss:$12 sps:$4 sm:$0xff]   ;;  %v18930_v26 = vld [vmem:[#allocation16 + $0x708] ss:$12 sps:$4 sm:$0xff]  }
 0xd0a   : > { %v23921_v6 = vadd.f32 %v16553_v57, %v14422_v34  ;;  %14247 = vmatpush1.bf16.msra.mxu0 %v18921_v23  ;;  %v14435_v57 = vadd.f32 %v23892_v60, %v23902_v47  ;;  %v18939_v60 = vld [vmem:[#allocation16 + $0x750] ss:$12 sps:$4 sm:$0xff]  }
 0xd0b   : > { %14248 = vmatprep.subr.bf16.mxu0 %v18926_v10  ;;  %v18935_v10 = vld [vmem:[#allocation16 + $0x724] ss:$12 sps:$4 sm:$0xff]  }
 0xd0c   : > { %v16554_v62 = vpop.f32.mrb[224].mxu1 }
 0xd0d   : > { %v16555_v28 = vpop.f32.mrb[225].mxu1 }
 0xd0e   : > { %v16556_v51 = vadd.f32 %v16555_v28, %v16554_v62  ;;  %14249 = vmatpush1.bf16.msra.mxu0 %v18924_v43  ;;  %v16557_v13 = vpop.f32.mrb[226].mxu1  ;;  %v18933_v62 = vld [vmem:[#allocation16 + $0x720] ss:$12 sps:$4 sm:$0xff]  }
 0xd0f   : > { %v16558_v20 = vpop.f32.mrb[227].mxu1  ;;  %14250 = vmatprep.subr.bf16.mxu0 %v18929_v2 }
 0xd10   : > { %v23927_v38 = vadd.f32 %v16556_v51, %v14427_v30  ;;  %v16559_v48 = vadd.f32 %v16558_v20, %v16557_v13  ;;  %v14438_v20 = vadd.f32 %v23897_v9, %v23902_v47  ;;  %v18950_v9 = vld [vmem:[#allocation16 + $0x79c] ss:$12 sps:$4 sm:$0xff]   ;;  %v18948_v47 = vld [vmem:[#allocation16 + $0x798] ss:$12 sps:$4 sm:$0xff]  }
 0xd12   : > { %v23929_v23 = vadd.f32 %v16559_v48, %v14430_v44  ;;  %14251 = vmatpush1.bf16.msra.mxu0 %v18927_v40  ;;  %v18936_v40 = vld [vmem:[#allocation16 + $0x738] ss:$12 sps:$4 sm:$0xff]   ;;  %v18942_v48 = vld [vmem:[#allocation16 + $0x768] ss:$12 sps:$4 sm:$0xff]  }
 0xd13   : > { %14252 = vmatprep.subr.bf16.mxu0 %v18932_v55  ;;  %v18941_v55 = vld [vmem:[#allocation16 + $0x754] ss:$12 sps:$4 sm:$0xff]   ;;  %v18944_v44 = vld [vmem:[#allocation16 + $0x76c] ss:$12 sps:$4 sm:$0xff]  }
 0xd14   : > { %v16560_v29 = vpop.f32.mrb[228].mxu1 }
 0xd15   : > { %v16561_v34 = vpop.f32.mrb[229].mxu1 }
 0xd16   : > { %v16562_v43 = vadd.f32 %v16561_v34, %v16560_v29  ;;  %14253 = vmatpush1.bf16.msra.mxu0 %v18930_v26  ;;  %v16563_v2 = vpop.f32.mrb[230].mxu1  ;;  %v18947_v26 = vld [vmem:[#allocation16 + $0x784] ss:$12 sps:$4 sm:$0xff]   ;;  %v18953_v29 = vld [vmem:[#allocation16 + $0x7b4] ss:$12 sps:$4 sm:$0xff]  }
 0xd17   : > { %v16564_v28 = vpop.f32.mrb[231].mxu1  ;;  %14254 = vmatprep.subr.bf16.mxu0 %v18935_v10  ;;  %v18945_v10 = vld [vmem:[#allocation16 + $0x780] ss:$12 sps:$4 sm:$0xff]   ;;  %v18951_v34 = vld [vmem:[#allocation16 + $0x7b0] ss:$12 sps:$4 sm:$0xff]  }
 0xd18   : > { %v23935_v30 = vadd.f32 %v16562_v43, %v14435_v57  ;;  %v16565_v51 = vadd.f32 %v16564_v28, %v16563_v2  ;;  %v18956_v57 = vld [vmem:[#allocation16 + $0x7cc] ss:$12 sps:$4 sm:$0xff]   ;;  %v18954_v43 = vld [vmem:[#allocation16 + $0x7c8] ss:$12 sps:$4 sm:$0xff]   ;;  %v18959_v2 = vld [vmem:[#allocation16 + $0x7e4] ss:$12 sps:$4 sm:$0xff]  }
 0xd1a   : > { %v23937_v13 = vadd.f32 %v16565_v51, %v14438_v20  ;;  %14255 = vmatpush1.bf16.msra.mxu0 %v18933_v62  ;;  %v18965_v51 = vld [vmem:[#allocation16 + $0x814] ss:$12 sps:$4 sm:$0xff]  }
 0xd1b   : > { %14256 = vmatprep.subr.bf16.mxu0 %v18938_v37 }
 0xd1e   : > { %14257 = vmatpush1.bf16.msra.mxu0 %v18936_v40 }
 0xd1f   : > { %14258 = vmatprep.subr.bf16.mxu0 %v18941_v55 }
 0xd22   : > { %14259 = vmatpush1.bf16.msra.mxu0 %v18939_v60 }
 0xd23   : > { %14260 = vmatprep.subr.bf16.mxu0 %v18944_v44  ;;  %v18963_v44 = vld [vmem:[#allocation16 + $0x810] ss:$12 sps:$4 sm:$0xff]  }
 0xd26   : > { %14261 = vmatpush1.bf16.msra.mxu0 %v18942_v48 }
 0xd27   : > { %14303 = vmatprep.subr.bf16.mxu0 %v18947_v26 }
 0xd29   : > { %14263 = vmatmul.mubr.bf16.vlgmr.msra.gmra.mrb[184].mxu0 %v23761_v59  ;;  %v18957_v59 = vld [vmem:[#allocation16 + $0x7e0] ss:$12 sps:$4 sm:$0xff]  }
 0xd2a   : > { %14272 = vmatprep.mubr.bf16.mxu0 %v23794_v11  ;;  %14304 = vmatpush1.bf16.msra.mxu0 %v18945_v10  ;;  %v18962_v11 = vld [vmem:[#allocation16 + $0x7fc] ss:$12 sps:$4 sm:$0xff]  }
 0xd2b   : > { %14305 = vmatprep.subr.bf16.mxu0 %v18950_v9  ;;  %v18966_v9 = vld [vmem:[#allocation16 + $0x828] ss:$12 sps:$4 sm:$0xff]  }
 0xd2e   : > { %14306 = vmatpush1.bf16.msra.mxu0 %v18948_v47  ;;  %v18971_v47 = vld [vmem:[#allocation16 + $0x844] ss:$12 sps:$4 sm:$0xff]  }
 0xd2f   : > { %14307 = vmatprep.subr.bf16.mxu0 %v18953_v29 }
 0xd31   : > { %14273 = vmatmul.mubr.bf16.gmra.mrb[188].mxu0 %v23790_v16  ;;  %v18960_v16 = vld [vmem:[#allocation16 + $0x7f8] ss:$12 sps:$4 sm:$0xff]  }
 0xd32   : > { %14282 = vmatprep.mubr.bf16.mxu0 %v23824_v35  ;;  %14308 = vmatpush1.bf16.msra.mxu0 %v18951_v34 }
 0xd33   : > { %14309 = vmatprep.subr.bf16.mxu0 %v18956_v57  ;;  %v18969_v57 = vld [vmem:[#allocation16 + $0x840] ss:$12 sps:$4 sm:$0xff]  }
 0xd36   : > { %14310 = vmatpush1.bf16.msra.mxu0 %v18954_v43 }
 0xd37   : > { %14311 = vmatprep.subr.bf16.mxu0 %v18959_v2 }
 0xd38   : > { %v16582_v62 = vpop.f32.mrb[232].mxu1 }
 0xd39   : > { %14283 = vmatmul.mubr.bf16.gmra.mrb[192].mxu0 %v23820_v22  ;;  %v16583_v28 = vpop.f32.mrb[233].mxu1  ;;  %v18968_v22 = vld [vmem:[#allocation16 + $0x82c] ss:$12 sps:$4 sm:$0xff]  }
 0xd3a   : > { %14292 = vmatprep.mubr.bf16.mxu0 %v23854_v27  ;;  %14312 = vmatpush1.bf16.msra.mxu0 %v18957_v59  ;;  %v16584_v37 = vadd.f32 %v16583_v28, %v16582_v62  ;;  %v16585_v20 = vpop.f32.mrb[234].mxu1  ;;  %v18972_v62 = vld [vmem:[#allocation16 + $0x858] ss:$12 sps:$4 sm:$0xff]  }
 0xd3b   : > { %14313 = vmatprep.subr.bf16.mxu0 %v18962_v11  ;;  %v16586_v35 = vpop.f32.mrb[235].mxu1 }
 0xd3c   : > { %v23946_v40 = vadd.f32 %v16584_v37, %v23909_v41  ;;  %v16587_v55 = vadd.f32 %v16586_v35, %v16585_v20  ;;  %v18977_v37 = vld [vmem:[#allocation16 + $0x874] ss:$12 sps:$4 sm:$0xff]   ;;  %v18980_v35 = vld [vmem:[#allocation16 + $0x88c] ss:$12 sps:$4 sm:$0xff]  }
 0xd3e   : > { %v23949_v60 = vadd.f32 %v16587_v55, %v23912_v33  ;;  %14314 = vmatpush1.bf16.msra.mxu0 %v18960_v16 }
 0xd3f   : > { %14315 = vmatprep.subr.bf16.mxu0 %v18965_v51 }
 0xd40   : > { %v16588_v48 = vpop.f32.mrb[236].mxu1 }
 0xd41   : > { %14293 = vmatmul.mubr.bf16.gmra.mrb[196].mxu0 %v23850_v39  ;;  %v16589_v27 = vpop.f32.mrb[237].mxu1  ;;  %v18974_v39 = vld [vmem:[#allocation16 + $0x85c] ss:$12 sps:$4 sm:$0xff]  }
 0xd42   : > { %14316 = vmatpush1.bf16.msra.mxu0 %v18963_v44  ;;  %14335 = vmatprep.mubr.bf16.mxu0 %v23770_v15  ;;  %v16590_v26 = vadd.f32 %v16589_v27, %v16588_v48  ;;  %v16591_v10 = vpop.f32.mrb[238].mxu1  ;;  %v18978_v48 = vld [vmem:[#allocation16 + $0x888] ss:$12 sps:$4 sm:$0xff]  }
 0xd43   : > { %14317 = vmatprep.subr.bf16.mxu0 %v18968_v22  ;;  %v16592_v41 = vpop.f32.mrb[239].mxu1 }
 0xd44   : > { %v23954_v33 = vadd.f32 %v16590_v26, %v23919_v24  ;;  %v16593_v29 = vadd.f32 %v16592_v41, %v16591_v10  ;;  %v18983_v26 = vld [vmem:[#allocation16 + $0x8a4] ss:$12 sps:$4 sm:$0xff]   ;;  %v18986_v41 = vld [vmem:[#allocation16 + $0x8bc] ss:$12 sps:$4 sm:$0xff]  }
 0xd46   : > { %v23957_v34 = vadd.f32 %v16593_v29, %v23921_v6  ;;  %14318 = vmatpush1.bf16.msra.mxu0 %v18966_v9  ;;  %v18975_v6 = vld [vmem:[#allocation16 + $0x870] ss:$12 sps:$4 sm:$0xff]  }
 0xd47   : > { %14319 = vmatprep.subr.bf16.mxu0 %v18971_v47 }
 0xd48   : > { %v16594_v43 = vpop.f32.mrb[240].mxu1 }
 0xd49   : > { %v16595_v2 = vpop.f32.mrb[241].mxu1 }
 0xd4a   : > { %14320 = vmatpush1.bf16.msra.mxu0 %v18969_v57  ;;  %v16596_v59 = vadd.f32 %v16595_v2, %v16594_v43  ;;  %v16597_v11 = vpop.f32.mrb[242].mxu1  ;;  %v18984_v57 = vld [vmem:[#allocation16 + $0x8b8] ss:$12 sps:$4 sm:$0xff]   ;;  %v18989_v2 = vld [vmem:[#allocation16 + $0x8d4] ss:$12 sps:$4 sm:$0xff]  }
 0xd4b   : > { %14321 = vmatprep.subr.bf16.mxu0 %v18974_v39  ;;  %v16598_v28 = vpop.f32.mrb[243].mxu1 }
 0xd4c   : > { %v14557_v24 = vadd.f32 %v16596_v59, %v23927_v38  ;;  %v16599_v20 = vadd.f32 %v16598_v28, %v16597_v11  ;;  %v18992_v28 = vld [vmem:[#allocation16 + $0x8ec] ss:$12 sps:$4 sm:$0xff]  }
 0xd4e   : > { %v14560_v16 = vadd.f32 %v16599_v20, %v23929_v23  ;;  %14322 = vmatpush1.bf16.msra.mxu0 %v18972_v62  ;;  %v18981_v23 = vld [vmem:[#allocation16 + $0x8a0] ss:$12 sps:$4 sm:$0xff]   ;;  %v18987_v62 = vld [vmem:[#allocation16 + $0x8d0] ss:$12 sps:$4 sm:$0xff]  }
 0xd4f   : > { %14323 = vmatprep.subr.bf16.mxu0 %v18977_v37 }
 0xd50   : > { %v16600_v51 = vpop.f32.mrb[244].mxu1 }
 0xd51   : > { %v16601_v55 = vpop.f32.mrb[245].mxu1 }
 0xd52   : > { %14324 = vmatpush1.bf16.msra.mxu0 %v18975_v6  ;;  %v16602_v44 = vadd.f32 %v16601_v55, %v16600_v51  ;;  %v16603_v22 = vpop.f32.mrb[246].mxu1  ;;  %v18990_v6 = vld [vmem:[#allocation16 + $0x8e8] ss:$12 sps:$4 sm:$0xff]  }
 0xd53   : > { %14325 = vmatprep.subr.bf16.mxu0 %v18980_v35  ;;  %v16604_v27 = vpop.f32.mrb[247].mxu1 }
 0xd54   : > { %v14565_v10 = vadd.f32 %v16602_v44, %v23935_v30  ;;  %v16605_v9 = vadd.f32 %v16604_v27, %v16603_v22 }
 0xd56   : > { %v14568_v38 = vadd.f32 %v16605_v9, %v23937_v13  ;;  %14326 = vmatpush1.bf16.msra.mxu0 %v18978_v48 }
 0xd57   : > { %14327 = vmatprep.subr.bf16.mxu0 %v18983_v26 }
 0xd59   : > { %v16622_v47 = vpop.f32.mrb[248].mxu1 }
 0xd5a   : > { %14328 = vmatpush1.bf16.msra.mxu0 %v18981_v23  ;;  %v16623_v29 = vpop.f32.mrb[249].mxu1 }
 0xd5b   : > { %v16624_v39 = vadd.f32 %v16623_v29, %v16622_v47  ;;  %v16625_v43 = vpop.f32.mrb[250].mxu1  ;;  %14329 = vmatprep.subr.bf16.mxu0 %v18986_v41 }
 0xd5c   : > { %v16626_v59 = vpop.f32.mrb[251].mxu1 }
 0xd5d   : > { %v23964_v11 = vadd.f32 %v16624_v39, %v23946_v40  ;;  %v16627_v30 = vadd.f32 %v16626_v59, %v16625_v43 }
 0xd5e   : > { %14330 = vmatpush1.bf16.msra.mxu0 %v18984_v57 }
 0xd5f   : > { %v23967_v13 = vadd.f32 %v16627_v30, %v23949_v60  ;;  %14331 = vmatprep.subr.bf16.mxu0 %v18989_v2 }
 0xd61   : > { %v16628_v37 = vpop.f32.mrb[252].mxu1 }
 0xd62   : > { %14332 = vmatpush1.bf16.msra.mxu0 %v18987_v62  ;;  %v16629_v20 = vpop.f32.mrb[253].mxu1 }
 0xd63   : > { %v16630_v35 = vadd.f32 %v16629_v20, %v16628_v37  ;;  %v16631_v51 = vpop.f32.mrb[254].mxu1  ;;  %14333 = vmatprep.subr.bf16.mxu0 %v18992_v28 }
 0xd64   : > { %v16632_v55 = vpop.f32.mrb[255].mxu1 }
 0xd65   : > { %v14614_v44 = vadd.f32 %v16630_v35, %v23954_v33  ;;  %v16633_v40 = vadd.f32 %v16632_v55, %v16631_v51 }
 0xd66   : > { %14334 = vmatpush1.bf16.msra.mxu0 %v18990_v6 }
 0xd67   : > { %v14617_v22 = vadd.f32 %v16633_v40, %v23957_v34  ;;  %16686 = vmatprep.subr.bf16.mxu0 %v23730_v8 }
 0xd69   : > { %14336 = vmatmul.mubr.bf16.vlgmr.msra.gmra.mrb[184].mxu0 %v23764_v14  ;;  %v16634_v60 = vpop.f32.mrb[0].mxu1 }
 0xd6a   : > { %14345 = vmatprep.mubr.bf16.mxu0 %v23799_v46  ;;  %16687 = vmatpush3.bf16.msra.mxu0 %v23768_v1  ;;  %v16635_v48 = vpop.f32.mrb[1].mxu1 }
 0xd6b   : > { %v16636_v27 = vadd.f32 %v16635_v48, %v16634_v60  ;;  %v16637_v26 = vpop.f32.mrb[2].mxu1  ;;  %16688 = vmatprep.subr.bf16.mxu0 %v23773_v17 }
 0xd6c   : > { %v16638_v9 = vpop.f32.mrb[3].mxu1 }
 0xd6d   : > { %v14622_v33 = vadd.f32 %v16636_v27, %v14557_v24  ;;  %v16639_v23 = vadd.f32 %v16638_v9, %v16637_v26 }
 0xd6e   : > { %16689 = vmatpush3.bf16.msra.mxu0 %v23784_v32 }
 0xd6f   : > { %v14625_v34 = vadd.f32 %v16639_v23, %v14560_v16  ;;  %16690 = vmatprep.subr.bf16.mxu0 %v23788_v21 }
 0xd71   : > { %14346 = vmatmul.mubr.bf16.gmra.mrb[188].mxu0 %v23792_v56  ;;  %v16640_v8 = vpop.f32.mrb[4].mxu1 }
 0xd72   : > { %14355 = vmatprep.mubr.bf16.mxu0 %v23829_v58  ;;  %16691 = vmatpush3.bf16.msra.mxu0 %v23797_v61  ;;  %v16641_v1 = vpop.f32.mrb[5].mxu1 }
 0xd73   : > { %v16642_v46 = vadd.f32 %v16641_v1, %v16640_v8  ;;  %v16643_v41 = vpop.f32.mrb[6].mxu1  ;;  %16692 = vmatprep.subr.bf16.mxu0 %v23803_v25 }
 0xd74   : > { %v16644_v17 = vpop.f32.mrb[7].mxu1 }
 0xd75   : > { %v14630_v24 = vadd.f32 %v16642_v46, %v14565_v10  ;;  %v16645_v47 = vadd.f32 %v16644_v17, %v16643_v41 }
 0xd76   : > { %16693 = vmatpush3.bf16.msra.mxu0 %v23814_v31 }
 0xd77   : > { %v14633_v32 = vadd.f32 %v16645_v47, %v14568_v38  ;;  %16694 = vmatprep.subr.bf16.mxu0 %v23818_v45 }
 0xd79   : > { %14356 = vmatmul.mubr.bf16.gmra.mrb[192].mxu0 %v23822_v19 }
 0xd7a   : > { %14365 = vmatprep.mubr.bf16.mxu0 %v23859_v0  ;;  %16695 = vmatpush3.bf16.msra.mxu0 %v23827_v36 }
 0xd7b   : > { %16696 = vmatprep.subr.bf16.mxu0 %v23833_v63 }
 0xd7e   : > { %16697 = vmatpush3.bf16.msra.mxu0 %v23844_v49 }
 0xd7f   : > { %16698 = vmatprep.subr.bf16.mxu0 %v23848_v50 }
 0xd81   : > { %14366 = vmatmul.mubr.bf16.gmra.mrb[196].mxu0 %v23852_v52 }
 0xd82   : > { %16699 = vmatpush3.bf16.msra.mxu0 %v23857_v4  ;;  %14733 = vmatprep.mubr.bf16.mxu0 %v23770_v15 }
 0xd83   : > { %16700 = vmatprep.subr.bf16.mxu0 %v23862_v42 }
 0xd86   : > { %16701 = vmatpush3.bf16.msra.mxu0 %v23870_v53 }
 0xd89   : > { %14734 = vmatmul.mubr.bf16.vlgmr.msra.gmra.mrb[200].mxu0 %v23764_v14 }
 0xd99   : > { %v16662_v19 = vpop.f32.mrb[8].mxu1 }
 0xd9a   : > { %v16663_v21 = vpop.f32.mrb[9].mxu1 }
 0xd9b   : > { %v16664_v56 = vadd.f32 %v16663_v21, %v16662_v19  ;;  %v16665_v61 = vpop.f32.mrb[10].mxu1 }
 0xd9c   : > { %v16666_v25 = vpop.f32.mrb[11].mxu1 }
 0xd9d   : > { %v23997_v31 = vadd.f32 %v16664_v56, %v23964_v11  ;;  %v16667_v45 = vadd.f32 %v16666_v25, %v16665_v61  ;;  %v12390_v56 = vrot.slane %v23895_v5, %v22938_v7  ;;  %v12394_v61 = vrot.slane %v23895_v5, %v22941_v54 }
 0xd9f   : > { %v24000_v52 = vadd.f32 %v16667_v45, %v23967_v13 }
 0xda1   : > { %v16668_v36 = vpop.f32.mrb[12].mxu1 }
 0xda2   : > { %v16669_v15 = vpop.f32.mrb[13].mxu1 }
 0xda3   : > { %v16670_v58 = vadd.f32 %v16669_v15, %v16668_v36  ;;  %v16671_v63 = vpop.f32.mrb[14].mxu1 }
 0xda4   : > { %v16672_v49 = vpop.f32.mrb[15].mxu1 }
 0xda5   : > { %v14679_v50 = vadd.f32 %v16670_v58, %v14614_v44  ;;  %v16673_v4 = vadd.f32 %v16672_v49, %v16671_v63 }
 0xda7   : > { %v14682_v14 = vadd.f32 %v16673_v4, %v14617_v22 }
 0xda9   : > { %v16674_v0 = vpop.f32.mrb[16].mxu1 }
 0xdaa   : > { %v16675_v42 = vpop.f32.mrb[17].mxu1 }
 0xdab   : > { %v16676_v53 = vadd.f32 %v16675_v42, %v16674_v0  ;;  %v16677_v16 = vpop.f32.mrb[18].mxu1  ;;  %v24739_v42 = vld [vmem:[#allocation50_spill] sm:$0xff] }
 0xdac   : > { %v16678_v10 = vpop.f32.mrb[19].mxu1 }
 0xdad   : > { %v14687_v38 = vadd.f32 %v16676_v53, %v14622_v33  ;;  %v16679_v29 = vadd.f32 %v16678_v10, %v16677_v16  ;;  %v24740_v16 = vld [vmem:[#allocation52_spill] sm:$0xff] }
 0xdaf   : > { %v14690_v57 = vadd.f32 %v16679_v29, %v14625_v34 }
 0xdb1   : > { %v16680_v39 = vpop.f32.mrb[20].mxu1 }
 0xdb2   : > { %v16681_v43 = vpop.f32.mrb[21].mxu1 }
 0xdb3   : > { %v16682_v2 = vadd.f32 %v16681_v43, %v16680_v39  ;;  %v16683_v59 = vpop.f32.mrb[22].mxu1 }
 0xdb4   : > { %v16684_v11 = vpop.f32.mrb[23].mxu1 }
 0xdb5   : > { %v14695_v30 = vadd.f32 %v16682_v2, %v14630_v24  ;;  %v16685_v62 = vadd.f32 %v16684_v11, %v16683_v59  ;;  %v24742_v11 = vld [vmem:[#allocation56_spill] sm:$0xff] }
 0xdb7   : > { %v14698_v13 = vadd.f32 %v16685_v62, %v14633_v32 }
 0xdb9   : > { %v16708_v28 = vpop.f32.mrb[24].mxu1 }
 0xdba   : > { %v16709_v37 = vpop.f32.mrb[25].mxu1 }
 0xdbb   : > { %v16710_v20 = vadd.f32 %v16709_v37, %v16708_v28  ;;  %v16711_v6 = vpop.f32.mrb[26].mxu1  ;;  %v24743_v28 = vld [vmem:[#allocation48_spill] sm:$0xff] }
 0xdbc   : > { %v16712_v35 = vpop.f32.mrb[27].mxu1 }
 0xdbd   : > { %v14744_v51 = vadd.f32 %v16710_v20, %v14679_v50  ;;  %v16713_v55 = vadd.f32 %v16712_v35, %v16711_v6  ;;  %v24744_v6 = vld [vmem:[#allocation57_spill] sm:$0xff] }
 0xdbf   : > { %v14747_v44 = vadd.f32 %v16713_v55, %v14682_v14  ;;  %v24020_v53 = vadd.f32 %v14744_v51, %v24739_v42  ;;  %v24745_v51 = vld [vmem:[#allocation62_spill] sm:$0xff] }
 0xdc1   : > { %v16714_v40 = vpop.f32.mrb[28].mxu1 }
 0xdc2   : > { %v16715_v22 = vpop.f32.mrb[29].mxu1 }
 0xdc3   : > { %v16716_v60 = vadd.f32 %v16715_v22, %v16714_v40  ;;  %v16717_v48 = vpop.f32.mrb[30].mxu1  ;;  %v24746_v40 = vld [vmem:[#allocation46_spill] sm:$0xff] }
 0xdc4   : > { %v16718_v27 = vpop.f32.mrb[31].mxu1 }
 0xdc5   : > { %v14752_v26 = vadd.f32 %v16716_v60, %v14687_v38  ;;  %v16719_v9 = vadd.f32 %v16718_v27, %v16717_v48  ;;  %v24747_v60 = vld [vmem:[#allocation68_spill] sm:$0xff] }
 0xdc7   : > { %v14755_v33 = vadd.f32 %v16719_v9, %v14690_v57  ;;  %v24044_v55 = vadd.f32 %v14752_v26, %v24745_v51 }
 0xdc9   : > { %v16720_v23 = vpop.f32.mrb[32].mxu1  ;;  %v24052_v48 = vadd.f32 %v14755_v33, %v24747_v60 }
 0xdca   : > { %v16721_v34 = vpop.f32.mrb[33].mxu1 }
 0xdcb   : > { %v16722_v8 = vadd.f32 %v16721_v34, %v16720_v23  ;;  %v16723_v1 = vpop.f32.mrb[34].mxu1 }
 0xdcc   : > { %v16724_v46 = vpop.f32.mrb[35].mxu1 }
 0xdcd   : > { %v24002_v41 = vadd.f32 %v16722_v8, %v14695_v30  ;;  %v16725_v17 = vadd.f32 %v16724_v46, %v16723_v1 }
 0xdcf   : > { %v24004_v24 = vadd.f32 %v16725_v17, %v14698_v13 }
 0xe3c   : > { %v14337_v47 = vpop.f32.mrb[184].mxu0 }
 0xe3d   : > { %v14339_v32 = vpop.f32.mrb[185].mxu0  ;;  %v17174_v46 = vadd.f32 %v14337_v47, %v12390_v56  ;;  %v24751_v47 = vld [vmem:[#allocation44_spill] sm:$0xff] }
 0xe3e   : > { %v14341_v19 = vpop.f32.mrb[186].mxu0  ;;  %v17175_v17 = vadd.f32 %v14339_v32, %v12394_v61 }
 0xe3f   : > { %v14343_v21 = vpop.f32.mrb[187].mxu0 }
 0xe44   : > { %v14347_v25 = vpop.f32.mrb[188].mxu0 }
 0xe45   : > { %v17178_v45 = vadd.f32 %v14347_v25, %v12390_v56  ;;  %v14349_v36 = vpop.f32.mrb[189].mxu0  ;;  %v17176_v25 = vadd.f32 %v14341_v19, %v12390_v56 }
 0xe46   : > { %v17179_v15 = vadd.f32 %v14349_v36, %v12394_v61  ;;  %v14351_v58 = vpop.f32.mrb[190].mxu0 }
 0xe47   : > { %v24011_v63 = vadd.f32 %v17178_v45, %v23271_v12  ;;  %v17180_v49 = vadd.f32 %v14351_v58, %v12390_v56  ;;  %v14353_v50 = vpop.f32.mrb[191].mxu0  ;;  %v24741_v12 = vld [vmem:[#allocation55_spill] sm:$0xff]  ;;  %v17177_v45 = vadd.f32 %v14343_v21, %v12394_v61 }
 0xe48   : > { %v24014_v4 = vadd.f32 %v17179_v15, %v23268_v18  ;;  %v17181_v14 = vadd.f32 %v14353_v50, %v12394_v61  ;;  %v24028_v38 = vadd.f32 %v14747_v44, %v24741_v12  ;;  %v24748_v58 = vld [vmem:[#allocation43_spill] sm:$0xff]  ;;  %v24749_v50 = vld [vmem:[#allocation49_spill] sm:$0xff] }
 0xe49   : > { %v24017_v0 = vadd.f32 %v17180_v49, %v23279_v3  ;;  %v24059_v49 = vadd.f32 %v17174_v46, %v24748_v58  ;;  %v24068_v32 = vadd.f32 %v17177_v45, %v24751_v47  ;;  %v24752_v21 = vld [vmem:[#allocation47_spill] sm:$0xff] }
 0xe4a   : > { %v14800_v5 = vadd.f32 %v24014_v4, %v24011_v63  ;;  %v24025_v10 = vadd.f32 %v17181_v14, %v24740_v16  ;;  %v24062_v14 = vadd.f32 %v17175_v17, %v24749_v50 }
 0xe4c   : > { %v14804_v18 = vadd.f32 %v24025_v10, %v24017_v0  ;;  %v14357_v29 = vpop.f32.mrb[192].mxu0  ;;  %v14801_v57 = vadd.f32 %v14800_v5, %v24020_v53 }
 0xe4d   : > { %v17182_v3 = vadd.f32 %v14357_v29, %v12390_v56  ;;  %v14359_v39 = vpop.f32.mrb[193].mxu0  ;;  %v24750_v29 = vld [vmem:[#allocation53_spill] sm:$0xff] }
 0xe4e   : > { %v17183_v43 = vadd.f32 %v14359_v39, %v12394_v61  ;;  %v14361_v2 = vpop.f32.mrb[194].mxu0  ;;  %14802 = vadd.xlane.f32.xlu1 %v14801_v57  ;;  %v14805_v59 = vadd.f32 %v14804_v18, %v24028_v38  ;;  %v24065_v57 = vadd.f32 %v17176_v25, %v24750_v29  ;;  %v24753_v39 = vld [vmem:[#allocation54_spill] sm:$0xff] }
 0xe4f   : > { %v24035_v30 = vadd.f32 %v17182_v3, %v24742_v11  ;;  %v17184_v62 = vadd.f32 %v14361_v2, %v12390_v56  ;;  %v14363_v13 = vpop.f32.mrb[195].mxu0 }
 0xe50   : > { %v24038_v37 = vadd.f32 %v17183_v43, %v24743_v28  ;;  %v17185_v20 = vadd.f32 %v14363_v13, %v12394_v61  ;;  %14806 = vadd.xlane.f32.xlu0 %v14805_v59  ;;  %v24756_v28 = vld [vmem:[#allocation59_spill] sm:$0xff]  ;;  %v14796_v51 = vadd.f32 %v24068_v32, %v24065_v57 }
 0xe51   : > { %v24041_v35 = vadd.f32 %v17184_v62, %v24744_v6  ;;  %v24755_v62 = vld [vmem:[#allocation64_spill] sm:$0xff] }
 0xe52   : > { %v14808_v44 = vadd.f32 %v24038_v37, %v24035_v30  ;;  %v24049_v22 = vadd.f32 %v17185_v20, %v24746_v40 }
 0xe54   : > { %v14812_v27 = vadd.f32 %v24049_v22, %v24041_v35  ;;  %v14367_v9 = vpop.f32.mrb[196].mxu0  ;;  %v14809_v23 = vadd.f32 %v14808_v44, %v24044_v55  ;;  %v24757_v44 = vld [vmem:[#allocation58_spill] sm:$0xff] }
 0xe55   : > { %v14369_v34 = vpop.f32.mrb[197].mxu0  ;;  %v17186_v36 = vadd.f32 %v14367_v9, %v12390_v56 }
 0xe56   : > { %v14371_v8 = vpop.f32.mrb[198].mxu0  ;;  %14810 = vadd.xlane.f32.xlu1 %v14809_v23  ;;  %v14813_v26 = vadd.f32 %v14812_v27, %v24052_v48  ;;  %v17187_v33 = vadd.f32 %v14369_v34, %v12394_v61  ;;  %v24758_v27 = vld [vmem:[#allocation63_spill] sm:$0xff]  ;;  %v24759_v34 = vld [vmem:[#allocation74_spill] sm:$0xff] }
 0xe57   : > { %v14373_v1 = vpop.f32.mrb[199].mxu0  ;;  %v17188_v5 = vadd.f32 %v14371_v8, %v12390_v56  ;;  %v24071_v3 = vadd.f32 %v17186_v36, %v24752_v21  ;;  %v14792_v56 = vadd.f32 %v24062_v14, %v24059_v49  ;;  %v24099_v9 = vadd.f32 %v24002_v41, %v24758_v27 }
 0xe58   : > { %14814 = vadd.xlane.f32.xlu0 %v14813_v26  ;;  %v17189_v16 = vadd.f32 %v14373_v1, %v12394_v61  ;;  %v24074_v43 = vadd.f32 %v17187_v33, %v24753_v39  ;;  %v24754_v61 = vld [vmem:[#allocation51_spill] sm:$0xff]  ;;  %v24106_v8 = vadd.f32 %v24004_v24, %v24759_v34 }
 0xe59   : > { %v24080_v11 = vadd.f32 %v17188_v5, %v24754_v61 }
 0xe5a   : > { %v24083_v13 = vadd.f32 %v17189_v16, %v24755_v62 }
 0xe5c   : > { %v16702_v15 = vpop.f32.mrb[200].mxu0  ;;  %v14820_v23 = vadd.f32 %v24083_v13, %v24080_v11 }
 0xe5d   : > { %v16703_v42 = vpop.f32.mrb[201].mxu0 }
 0xe5e   : > { %v16704_v12 = vadd.f32 %v16703_v42, %v16702_v15  ;;  %v16705_v18 = vpop.f32.mrb[202].mxu0  ;;  %v14821_v1 = vadd.f32 %v14820_v23, %v24106_v8 }
 0xe5f   : > { %v16706_v19 = vpop.f32.mrb[203].mxu0 }
 0xe60   : > { %v14736_v2 = vadd.f32 %v16704_v12, %v23997_v31  ;;  %v16707_v59 = vadd.f32 %v16706_v19, %v16705_v18  ;;  %v14816_v31 = vadd.f32 %v24074_v43, %v24071_v3 }
 0xe62   : > { %v24086_v20 = vadd.f32 %v14736_v2, %v24756_v28  ;;  %v14739_v6 = vadd.f32 %v16707_v59, %v24000_v52  ;;  %v14817_v26 = vadd.f32 %v14816_v31, %v24099_v9 }
 0xe64   : > { %v24094_v40 = vadd.f32 %v14739_v6, %v24757_v44  ;;  %v14793_v60 = vadd.f32 %v14792_v56, %v24086_v20 }
 0xe66   : > { %14794 = vadd.xlane.f32.xlu1 %v14793_v60  ;;  %v14797_v52 = vadd.f32 %v14796_v51, %v24094_v40 }
 0xe68   : > { %14798 = vadd.xlane.f32.xlu0 %v14797_v52 }
 0xe6a   : > { %14818 = vadd.xlane.f32.xlu1 %v14817_v26 }
 0xe6c   : > { %14822 = vadd.xlane.f32.xlu0 %v14821_v1 }
 0xedb   : > { %v14803_v46 = vpop.xlane.xlu1 %14802 }
 0xedc   : > { %v14826_v41 = vmul.f32 0.0026041667, %v14803_v46 }
 0xedd   : > { %v14807_v17 = vpop.xlane.xlu0 %14806 }
 0xede   : > { %v24111_v25 = vsub.f32 %v24011_v63, %v14826_v41  ;;  %v24114_v45 = vsub.f32 %v24014_v4, %v14826_v41  ;;  %v24117_v36 = vsub.f32 %v24020_v53, %v14826_v41  ;;  %v14827_v24 = vmul.f32 0.0026041667, %v14807_v17 }
 0xee0   : > { %v14862_v33 = vmul.f32 %v24111_v25, %v24111_v25  ;;  %v14863_v15 = vmul.f32 %v24114_v45, %v24114_v45  ;;  %v24124_v58 = vsub.f32 %v24017_v0, %v14827_v24  ;;  %v24127_v50 = vsub.f32 %v24025_v10, %v14827_v24 }
 0xee1   : > { %v24130_v63 = vsub.f32 %v24028_v38, %v14827_v24  ;;  %v14864_v42 = vmul.f32 %v24117_v36, %v24117_v36 }
 0xee2   : > { %v14865_v4 = vmul.f32 %v24124_v58, %v24124_v58  ;;  %v14866_v53 = vmul.f32 %v24127_v50, %v24127_v50  ;;  %v14888_v5 = vadd.f32 %v14863_v15, %v14862_v33 }
 0xee3   : > { %v14811_v16 = vpop.xlane.xlu1 %14810  ;;  %v14867_v10 = vmul.f32 %v24130_v63, %v24130_v63 }
 0xee4   : > { %v14828_v12 = vmul.f32 0.0026041667, %v14811_v16  ;;  %v14889_v0 = vadd.f32 %v14888_v5, %v14864_v42  ;;  %v14892_v18 = vadd.f32 %v14866_v53, %v14865_v4 }
 0xee5   : > { %v14815_v29 = vpop.xlane.xlu0 %14814 }
 0xee6   : > { %v24141_v38 = vsub.f32 %v24035_v30, %v14828_v12  ;;  %v24144_v47 = vsub.f32 %v24038_v37, %v14828_v12  ;;  %v24147_v19 = vsub.f32 %v24044_v55, %v14828_v12  ;;  %v14829_v21 = vmul.f32 0.0026041667, %v14815_v29  ;;  %14890 = vadd.xlane.f32.xlu1 %v14889_v0 }
 0xee7   : > { %v14893_v39 = vadd.f32 %v14892_v18, %v14867_v10 }
 0xee8   : > { %v14868_v2 = vmul.f32 %v24141_v38, %v24141_v38  ;;  %v14869_v59 = vmul.f32 %v24144_v47, %v24144_v47  ;;  %v24154_v56 = vsub.f32 %v24041_v35, %v14829_v21  ;;  %v24157_v30 = vsub.f32 %v24049_v22, %v14829_v21 }
 0xee9   : > { %v24160_v37 = vsub.f32 %v24052_v48, %v14829_v21  ;;  %14894 = vadd.xlane.f32.xlu0 %v14893_v39  ;;  %v14870_v62 = vmul.f32 %v24147_v19, %v24147_v19 }
 0xeea   : > { %v14871_v55 = vmul.f32 %v24154_v56, %v24154_v56  ;;  %v14872_v61 = vmul.f32 %v24157_v30, %v24157_v30  ;;  %v14896_v28 = vadd.f32 %v14869_v59, %v14868_v2 }
 0xeeb   : > { %v14873_v35 = vmul.f32 %v24160_v37, %v24160_v37 }
 0xeec   : > { %v14897_v6 = vadd.f32 %v14896_v28, %v14870_v62  ;;  %v14900_v22 = vadd.f32 %v14872_v61, %v14871_v55 }
 0xeee   : > { %14898 = vadd.xlane.f32.xlu1 %v14897_v6  ;;  %v14901_v51 = vadd.f32 %v14900_v22, %v14873_v35 }
 0xef0   : > { %14902 = vadd.xlane.f32.xlu0 %v14901_v51  ;;  %v14790_v51 = vld [vmem:[#allocation19] sm:$0x7] }
 0xef3   : > { %v14795_v48 = vpop.xlane.xlu1 %14794 }
 0xef4   : > { %v14824_v31 = vmul.f32 0.0026041667, %v14795_v48 }
 0xef5   : > { %v14799_v44 = vpop.xlane.xlu0 %14798 }
 0xef6   : > { %v24171_v60 = vsub.f32 %v24059_v49, %v14824_v31  ;;  %v24174_v27 = vsub.f32 %v24062_v14, %v14824_v31  ;;  %v24177_v23 = vsub.f32 %v24086_v20, %v14824_v31  ;;  %v14825_v52 = vmul.f32 0.0026041667, %v14799_v44  ;;  %v14791_v44 = vld [vmem:[#allocation20] sm:$0x7] }
 0xef7   : > { %v14819_v34 = vpop.xlane.xlu1 %14818 }
 0xef8   : > { %v14856_v26 = vmul.f32 %v24171_v60, %v24171_v60  ;;  %v14857_v1 = vmul.f32 %v24174_v27, %v24174_v27  ;;  %v24184_v46 = vsub.f32 %v24065_v57, %v14825_v52  ;;  %v24187_v49 = vsub.f32 %v24068_v32, %v14825_v52 }
 0xef9   : > { %v24190_v14 = vsub.f32 %v24094_v40, %v14825_v52  ;;  %v14830_v41 = vmul.f32 0.0026041667, %v14819_v34  ;;  %v14823_v20 = vpop.xlane.xlu0 %14822  ;;  %v14858_v17 = vmul.f32 %v24177_v23, %v24177_v23  ;;  %v24231_v34 = vrot.slane %v14790_v51, %v22938_v7 }
 0xefa   : > { %v14859_v24 = vmul.f32 %v24184_v46, %v24184_v46  ;;  %v14860_v33 = vmul.f32 %v24187_v49, %v24187_v49  ;;  %v14831_v15 = vmul.f32 0.0026041667, %v14823_v20  ;;  %v14880_v57 = vadd.f32 %v14857_v1, %v14856_v26  ;;  %v24760_v1 = vld [vmem:[#allocation41_spill] sm:$0xff] }
 0xefb   : > { %v24199_v4 = vsub.f32 %v24071_v3, %v14830_v41  ;;  %v24202_v32 = vsub.f32 %v24074_v43, %v14830_v41  ;;  %v24205_v40 = vsub.f32 %v24099_v9, %v14830_v41  ;;  %v14861_v9 = vmul.f32 %v24190_v14, %v24190_v14 }
 0xefc   : > { %v24208_v53 = vsub.f32 %v24080_v11, %v14831_v15  ;;  %v24211_v42 = vsub.f32 %v24083_v13, %v14831_v15  ;;  %v24214_v5 = vsub.f32 %v24106_v8, %v14831_v15  ;;  %v14881_v16 = vadd.f32 %v14880_v57, %v14858_v17 }
 0xefd   : > { %v14874_v3 = vmul.f32 %v24199_v4, %v24199_v4  ;;  %v14875_v43 = vmul.f32 %v24202_v32, %v24202_v32  ;;  %v14884_v12 = vadd.f32 %v14860_v33, %v14859_v24  ;;  %v14876_v0 = vmul.f32 %v24205_v40, %v24205_v40 }
 0xefe   : > { %v14877_v11 = vmul.f32 %v24208_v53, %v24208_v53  ;;  %v14878_v13 = vmul.f32 %v24211_v42, %v24211_v42  ;;  %14882 = vadd.xlane.f32.xlu1 %v14881_v16  ;;  %v14879_v29 = vmul.f32 %v24214_v5, %v24214_v5  ;;  %v24234_v26 = vrot.slane %v14790_v51, %v22941_v54 }
 0xeff   : > { %v14885_v8 = vadd.f32 %v14884_v12, %v14861_v9  ;;  %v14904_v18 = vadd.f32 %v14875_v43, %v14874_v3  ;;  %v24237_v41 = vrot.slane %v14790_v51, %v24760_v1  ;;  %v24240_v17 = vrot.slane %v14791_v44, %v22938_v7 }
 0xf00   : > { %v14908_v10 = vadd.f32 %v14878_v13, %v14877_v11  ;;  %v24243_v24 = vrot.slane %v14791_v44, %v22941_v54  ;;  %v24246_v33 = vrot.slane %v14791_v44, %v24760_v1 }
 0xf01   : > { %14886 = vadd.xlane.f32.xlu0 %v14885_v8  ;;  %v14905_v21 = vadd.f32 %v14904_v18, %v14876_v0 }
 0xf02   : > { %v14909_v39 = vadd.f32 %v14908_v10, %v14879_v29 }
 0xf03   : > { %14906 = vadd.xlane.f32.xlu1 %v14905_v21 }
 0xf05   : > { %14910 = vadd.xlane.f32.xlu0 %v14909_v39 }
 0xf73   : > { %v14891_v2 = vpop.xlane.xlu1 %14890 }
 0xf74   : > { %v14914_v59 = vmul.f32 0.0026041667, %v14891_v2 }
 0xf76   : > { %v14922_v55 = vadd.f32 1e-05, %v14914_v59  ;;  %v14895_v61 = vpop.xlane.xlu0 %14894 }
 0xf77   : > { %v14915_v62 = vmul.f32 0.0026041667, %v14895_v61 }
 0xf78   : > { %19265 = vrsqrt.f32 %v14922_v55 }
 0xf79   : > { %v14923_v28 = vadd.f32 1e-05, %v14915_v62 }
 0xf7b   : > { %19267 = vrsqrt.f32 %v14923_v28  ;;  %v14899_v6 = vpop.xlane.xlu1 %14898 }
 0xf7c   : > { %v14916_v35 = vmul.f32 0.0026041667, %v14899_v6 }
 0xf7d   : > { %v14903_v22 = vpop.xlane.xlu0 %14902 }
 0xf7e   : > { %v14924_v48 = vadd.f32 1e-05, %v14916_v35  ;;  %v14917_v31 = vmul.f32 0.0026041667, %v14903_v22 }
 0xf80   : > { %19269 = vrsqrt.f32 %v14924_v48  ;;  %v14925_v52 = vadd.f32 1e-05, %v14917_v31 }
 0xf82   : > { %v19266_v20 = vpop.eup %19265  ;;  %19271 = vrsqrt.f32 %v14925_v52 }
 0xf83   : > { %v14942_v15 = vmul.f32 %v19266_v20, %v24111_v25  ;;  %v14943_v57 = vmul.f32 %v19266_v20, %v24114_v45  ;;  %v14944_v16 = vmul.f32 %v19266_v20, %v24117_v36 }
 0xf85   : > { %v19268_v3 = vpop.eup %19267  ;;  %v14982_v43 = vmul.f32 %v24231_v34, %v14942_v15  ;;  %v14983_v7 = vmul.f32 %v24234_v26, %v14943_v57  ;;  %v14984_v9 = vmul.f32 %v24237_v41, %v14944_v16 }
 0xf86   : > { %v14945_v54 = vmul.f32 %v19268_v3, %v24124_v58  ;;  %v14946_v12 = vmul.f32 %v19268_v3, %v24127_v50  ;;  %v14947_v11 = vmul.f32 %v19268_v3, %v24130_v63 }
 0xf87   : > { %v15022_v25 = vadd.f32 %v24240_v17, %v14982_v43  ;;  %v15023_v13 = vadd.f32 %v24243_v24, %v14983_v7  ;;  %v15024_v45 = vadd.f32 %v24246_v33, %v14984_v9 }
 0xf88   : > { %v14985_v36 = vmul.f32 %v24231_v34, %v14945_v54  ;;  %v14986_v8 = vmul.f32 %v24234_v26, %v14946_v12  ;;  %v14987_v0 = vmul.f32 %v24237_v41, %v14947_v11 }
 0xf89   : > { %15046 = vst [vmem:[%s24265_s3 + $0x30] sm:$0xff] %v15022_v25  ;;  %15047 = vst [vmem:[%s24265_s3 + $0x38] sm:$0xff] %v15023_v13 }
 0xf8a   : > { %15048 = vst [vmem:[%s24265_s3 + $0x40] sm:$0xff] %v15024_v45  ;;  %v19270_v58 = vpop.eup %19269  ;;  %v15025_v50 = vadd.f32 %v24240_v17, %v14985_v36  ;;  %v15026_v63 = vadd.f32 %v24243_v24, %v14986_v8  ;;  %v15027_v18 = vadd.f32 %v24246_v33, %v14987_v0 }
 0xf8b   : > { %v14948_v29 = vmul.f32 %v19270_v58, %v24141_v38  ;;  %v14949_v10 = vmul.f32 %v19270_v58, %v24144_v47  ;;  %v14950_v21 = vmul.f32 %v19270_v58, %v24147_v19  ;;  %v14883_v39 = vpop.xlane.xlu1 %14882 }
 0xf8c   : > { %v19272_v2 = vpop.eup %19271  ;;  %15049 = vst [vmem:[%s24265_s3 + $0x48] sm:$0xff] %v15025_v50  ;;  %15050 = vst [vmem:[%s24265_s3 + $0x50] sm:$0xff] %v15026_v63  ;;  %v14912_v59 = vmul.f32 0.0026041667, %v14883_v39 }
 0xf8d   : > { %15051 = vst [vmem:[%s24265_s3 + $0x58] sm:$0xff] %v15027_v18  ;;  %v14988_v55 = vmul.f32 %v24231_v34, %v14948_v29  ;;  %v14989_v61 = vmul.f32 %v24234_v26, %v14949_v10  ;;  %v14990_v62 = vmul.f32 %v24237_v41, %v14950_v21  ;;  %v14951_v38 = vmul.f32 %v19272_v2, %v24154_v56 }
 0xf8e   : > { %v14952_v47 = vmul.f32 %v19272_v2, %v24157_v30  ;;  %v14953_v19 = vmul.f32 %v19272_v2, %v24160_v37  ;;  %v14920_v28 = vadd.f32 1e-05, %v14912_v59  ;;  %v14887_v6 = vpop.xlane.xlu0 %14886 }
 0xf8f   : > { %v15028_v35 = vadd.f32 %v24240_v17, %v14988_v55  ;;  %v15029_v22 = vadd.f32 %v24243_v24, %v14989_v61  ;;  %v15030_v51 = vadd.f32 %v24246_v33, %v14990_v62  ;;  %v14991_v48 = vmul.f32 %v24231_v34, %v14951_v38 }
 0xf90   : > { %v14992_v31 = vmul.f32 %v24234_v26, %v14952_v47  ;;  %v14993_v56 = vmul.f32 %v24237_v41, %v14953_v19  ;;  %19273 = vrsqrt.f32 %v14920_v28  ;;  %v14913_v30 = vmul.f32 0.0026041667, %v14887_v6  ;;  %v14907_v37 = vpop.xlane.xlu1 %14906 }
 0xf91   : > { %15052 = vst [vmem:[%s24265_s3 + $0x60] sm:$0xff] %v15028_v35  ;;  %15053 = vst [vmem:[%s24265_s3 + $0x68] sm:$0xff] %v15029_v22  ;;  %v15031_v44 = vadd.f32 %v24240_v17, %v14991_v48  ;;  %v14918_v52 = vmul.f32 0.0026041667, %v14907_v37 }
 0xf92   : > { %15054 = vst [vmem:[%s24265_s3 + $0x70] sm:$0xff] %v15030_v51  ;;  %v15032_v1 = vadd.f32 %v24243_v24, %v14992_v31  ;;  %v15033_v20 = vadd.f32 %v24246_v33, %v14993_v56  ;;  %v14921_v15 = vadd.f32 1e-05, %v14913_v30  ;;  %v14911_v57 = vpop.xlane.xlu0 %14910 }
 0xf93   : > { %15055 = vst [vmem:[%s24265_s3 + $0x78] sm:$0xff] %v15031_v44  ;;  %v14926_v16 = vadd.f32 1e-05, %v14918_v52  ;;  %v14919_v3 = vmul.f32 0.0026041667, %v14911_v57 }
 0xf94   : > { %15056 = vst [vmem:[%s24265_s3 + $0x80] sm:$0xff] %v15032_v1  ;;  %15057 = vst [vmem:[%s24265_s3 + $0x88] sm:$0xff] %v15033_v20  ;;  %19275 = vrsqrt.f32 %v14921_v15 }
 0xf95   : > { %19277 = vrsqrt.f32 %v14926_v16  ;;  %v14927_v43 = vadd.f32 1e-05, %v14919_v3 }
 0xf97   : > { %19279 = vrsqrt.f32 %v14927_v43 }
 0xf9a   : > { %v19274_v7 = vpop.eup %19273 }
 0xf9b   : > { %v14936_v9 = vmul.f32 %v19274_v7, %v24171_v60  ;;  %v14937_v54 = vmul.f32 %v19274_v7, %v24174_v27  ;;  %v14938_v12 = vmul.f32 %v19274_v7, %v24177_v23 }
 0xf9d   : > { %v14976_v11 = vmul.f32 %v24231_v34, %v14936_v9  ;;  %v14977_v25 = vmul.f32 %v24234_v26, %v14937_v54  ;;  %v14978_v13 = vmul.f32 %v24237_v41, %v14938_v12 }
 0xf9e   : > { %v19276_v45 = vpop.eup %19275 }
 0xf9f   : > { %v19278_v36 = vpop.eup %19277  ;;  %v15016_v8 = vadd.f32 %v24240_v17, %v14976_v11  ;;  %v15017_v0 = vadd.f32 %v24243_v24, %v14977_v25  ;;  %v15018_v60 = vadd.f32 %v24246_v33, %v14978_v13  ;;  %v14939_v27 = vmul.f32 %v19276_v45, %v24184_v46 }
 0xfa0   : > { %v14940_v23 = vmul.f32 %v19276_v45, %v24187_v49  ;;  %v14941_v58 = vmul.f32 %v19276_v45, %v24190_v14  ;;  %v14954_v50 = vmul.f32 %v19278_v36, %v24199_v4  ;;  %v14955_v63 = vmul.f32 %v19278_v36, %v24202_v32 }
 0xfa1   : > { %v19280_v18 = vpop.eup %19279  ;;  %15040 = vst [vmem:[%s24265_s3] sm:$0xff] %v15016_v8  ;;  %15041 = vst [vmem:[%s24265_s3 + $0x8] sm:$0xff] %v15017_v0  ;;  %v14979_v29 = vmul.f32 %v24231_v34, %v14939_v27  ;;  %v14956_v10 = vmul.f32 %v19278_v36, %v24205_v40 }
 0xfa2   : > { %15042 = vst [vmem:[%s24265_s3 + $0x10] sm:$0xff] %v15018_v60  ;;  %v14980_v46 = vmul.f32 %v24234_v26, %v14940_v23  ;;  %v14981_v49 = vmul.f32 %v24237_v41, %v14941_v58  ;;  %v14994_v14 = vmul.f32 %v24231_v34, %v14954_v50  ;;  %v14995_v4 = vmul.f32 %v24234_v26, %v14955_v63 }
 0xfa3   : > { %v15019_v32 = vadd.f32 %v24240_v17, %v14979_v29  ;;  %v14996_v21 = vmul.f32 %v24237_v41, %v14956_v10  ;;  %v14957_v39 = vmul.f32 %v19280_v18, %v24208_v53  ;;  %v14958_v40 = vmul.f32 %v19280_v18, %v24211_v42 }
 0xfa4   : > { %v15020_v2 = vadd.f32 %v24243_v24, %v14980_v46  ;;  %v15021_v59 = vadd.f32 %v24246_v33, %v14981_v49  ;;  %v15034_v55 = vadd.f32 %v24240_v17, %v14994_v14  ;;  %v15035_v61 = vadd.f32 %v24243_v24, %v14995_v4 }
 0xfa5   : > { %15043 = vst [vmem:[%s24265_s3 + $0x18] sm:$0xff] %v15019_v32  ;;  %v15036_v62 = vadd.f32 %v24246_v33, %v14996_v21  ;;  %v14959_v53 = vmul.f32 %v19280_v18, %v24214_v5  ;;  %v14997_v38 = vmul.f32 %v24231_v34, %v14957_v39  ;;  %v14998_v42 = vmul.f32 %v24234_v26, %v14958_v40 }
 0xfa6   : > { %15044 = vst [vmem:[%s24265_s3 + $0x20] sm:$0xff] %v15020_v2  ;;  %15045 = vst [vmem:[%s24265_s3 + $0x28] sm:$0xff] %v15021_v59 }
 0xfa7   : > { %15058 = vst [vmem:[%s24265_s3 + $0x90] sm:$0xff] %v15034_v55  ;;  %15059 = vst [vmem:[%s24265_s3 + $0x98] sm:$0xff] %v15035_v61  ;;  %v14999_v47 = vmul.f32 %v24237_v41, %v14959_v53  ;;  %v15037_v19 = vadd.f32 %v24240_v17, %v14997_v38  ;;  %v15038_v28 = vadd.f32 %v24243_v24, %v14998_v42 }
 0xfa8   : > { %15060 = vst [vmem:[%s24265_s3 + $0xa0] sm:$0xff] %v15036_v62 }
 0xfa9   : > { %v15039_v5 = vadd.f32 %v24246_v33, %v14999_v47  ;;  %15061 = vst [vmem:[%s24265_s3 + $0xa8] sm:$0xff] %v15037_v19  ;;  %15062 = vst [vmem:[%s24265_s3 + $0xb0] sm:$0xff] %v15038_v28 }
 0xfab   : > { %15063 = vst [vmem:[%s24265_s3 + $0xb8] sm:$0xff] %v15039_v5 }
 0xfac   : > { %19656 = shalt.err (!%p19653_p9)
}
 0xfad   : > { %s19657_s1 = scalar_lea.hbm %s24349_s0, 3072  ;;  %s19661_s15 = scalar_lea.hbm %s24761_s18, 6144 }
 0xfae   : > { %p19658_p7 = scmp.ne.s32.totalorder %s24349_s0, %s19657_s1  ;;  %p19662_p13 = scmp.lt.u32.totalorder %s24349_s0, %s24761_s18 }
 0xfaf   : > { %p19663_p1 = scmp.lt.u32.totalorder %s19661_s15, %s19657_s1  ;;  %p19665_p2 = scmp.lt.u32.totalorder %s19657_s1, %s24349_s0 }
 0xfb0   : > { %p19659_p4 = pnand %p19658_p7, %p24762_p8 }
 0xfb1   : > { %p19664_p3 = por %p19663_p1, %p19662_p13 }
 0xfb2   : > { %p19660_p12 = pneg %p19659_p4 }
 0xfb3   : > { %p19666_p6 = por %p19665_p2, %p19664_p3 }
 0xfb5   : > { %p19667_p10 = pnand %p19666_p6, %p19660_p12 }
 0xfb7   : > { %19670 = shalt.err (!%p19667_p10)
}
 0xfb8   : > { %s19768_s28 = smov 384   ;;  %s19769_s27 = smov 24  }
 0xfb9   : > { %17496 = dma.vmem_to_hbm [thread:$0]  (%p24762_p8), %s24354_s26, 3072, %s24349_s0, %s15065_s25, %s19768_s28, %s19768_s28, %s19769_s27  }
 0xfba PF: > { %s15093_s2 = sand.u32 1, %s19721_s21   ;;  %p24763_p11 = scmp.ne.s32.totalorder %s24518_s12, 0 }
 0xfbb   : > { %p24764_p0 = scmp.ge.s32.totalorder %s19733_s24, 2  ;;  %s15094_s1 = scalar_lea.sflag [#allocation4], %s15093_s2 }
 0xfbd   : > { %p17537_p5 = pnand %p24764_p0, %p24763_p11 }
 0xfbf   : > { %19716 = dma.done.wait (!%p17537_p5), %s15094_s1, 3072  }
 0xfc0   : > { %19718 = vsyncadd (!%p17537_p5), %s15094_s1, 4294964224  ;;  %p31_p9 = scmp.ge.s32.totalorder %s20124_s13, 4   ;;  %s24765_s21 = smov %s19725_s22 }
 0xfc1   : > { %s24766_s22 = smov %s19729_s23  ;;  %s24767_s23 = smov %s20136_s17 }
 0xfc2   : > { %s24768_s24 = smov %s20124_s13  ;;  %33 = sbr.rel (!%p31_p9) target bundleno = 17 (0x11), region = 157 }
 0xfc9   :  { %15099 = vsyncpa [#allocation3], 1 }
 0xfca   :  { %15101 = vsyncpa [#allocation3 + $0x1], 1 }
 0xfcb   :  { %15102 = vsyncpa [#allocation6], 1 }
 0xfcc   :  { %15103 = vsyncpa [#allocation9], 1 }
 0xfcd   :  { %15104 = vsyncpa [#allocation12], 1 }
 0xfce   :  { %15105 = vsyncpa [#allocation15], 1 }
 0xfcf   :  { %15106 = vsyncpa [#allocation18], 1 }
 0xfd0   :  { %15107 = vsyncpa [#allocation21], 1 }
 0xfd1   :  { %15108 = vsyncpa [#allocation4], 1 }
 0xfd2   :  { %15110 = vsyncpa [#allocation4 + $0x1], 1 }

</bundles_post_ra>
